<compile_context>
chip_gen: v6e
topology: v6e:2x2x1
jax: 0.10.0
libtpu: 0.0.40
codegen_flags: <defaults>
</compile_context>

<pallas_src>
import functools

import jax
import jax.numpy as jnp
import numpy as np
from jax.experimental import pallas as pl
from jax.experimental.pallas import tpu as pltpu

NEG_SLOPE = 0.3
BATCH_TILE = 8   # samples per grid step; keeps every in-kernel row slice 8-aligned


# ----------------------------------------------------------------------------
# Fused forward kernel for ONE batch tile:
#   conv1..conv8 + flatten + fc1 + fc2, all in VMEM / vregs.
# ----------------------------------------------------------------------------
def _fused_disc_kernel(x1_ref,
                       w1_ref, b1_ref, w2_ref, b2_ref, w3_ref, b3_ref,
                       w4_ref, b4_ref, w5_ref, b5_ref, w6_ref, b6_ref,
                       w7_ref, b7_ref, w8_ref, b8_ref,
                       wf1_ref, bf1_ref, wf2_ref, bf2_ref,
                       out_ref, *, bt):
    f32 = jnp.float32
    bf16 = jnp.bfloat16

    def lrelu(v):
        # LeakyReLU(0.3): for slope in (0,1), max(v, 0.3*v) == leaky_relu(v).
        return jnp.maximum(v, NEG_SLOPE * v)

    def mm(a, b):
        return jnp.dot(a, b, preferred_element_type=f32)

    # --- conv1 + conv2 (block-diagonal over the 12 conv3 taps, lane-dense) ----
    # x1 rows = (w3, b0, b1, b3, b2, n), cols = (kw, cin, kd); 112*bt rows.
    h1 = lrelu(mm(x1_ref[...], w1_ref[...]) + b1_ref[...])          # (112bt, 12C) f32
    h2 = lrelu(mm(h1.astype(bf16), w2_ref[...]) + b2_ref[...])      # (112bt, 12C) f32

    # --- conv3: single K = 12*C matmul (taps concatenated along K) -------------
    h3 = lrelu(mm(h2.astype(bf16), w3_ref[...]) + b3_ref[...]).astype(bf16)
    # h3: (112bt, C), rows = (w3, b0, b1, b3, b2, n)

    # --- conv4: kW=7, sW=7 -> 7-tap sum over contiguous (16*bt)-row blocks ------
    nh = 16 * bt
    acc4 = mm(h3[0:nh], w4_ref[0])
    for k in range(1, 7):
        acc4 = acc4 + mm(h3[k * nh:(k + 1) * nh], w4_ref[k])
    h4 = lrelu(acc4 + b4_ref[...]).astype(bf16)                      # rows (b0,b1,b3,b2,n)

    # --- conv5: kH=2, sH=2 (b0-major row order -> two contiguous halves) --------
    half = 8 * bt
    h5 = lrelu(mm(h4[:half], w5_ref[0]) + mm(h4[half:], w5_ref[1])
               + b5_ref[...]).astype(bf16)                           # rows (b1,b3,b2,n)

    # --- conv6: kH=2, sH=2 -------------------------------------------------------
    q = 4 * bt
    h6 = lrelu(mm(h5[:q], w6_ref[0]) + mm(h5[q:], w6_ref[1]) + b6_ref[...])
    # h6: (4bt, C) f32, rows = (h6_value, n); kept f32 so 8-row slices stay aligned.

    r0 = h6[0 * bt:1 * bt].astype(bf16)
    r1 = h6[1 * bt:2 * bt].astype(bf16)
    r2 = h6[2 * bt:3 * bt].astype(bf16)
    r3 = h6[3 * bt:4 * bt].astype(bf16)

    # --- conv7: kH=4, sH=2, padH=1 (padding taps contribute nothing) -------------
    #   out row 0 <- input rows 0,1,2 via taps 1,2,3 ; out row 1 <- rows 1,2,3 via taps 0,1,2
    h7_0 = lrelu(mm(r0, w7_ref[1]) + mm(r1, w7_ref[2]) + mm(r2, w7_ref[3])
                 + b7_ref[...]).astype(bf16)                         # (bt, 2C)
    h7_1 = lrelu(mm(r1, w7_ref[0]) + mm(r2, w7_ref[1]) + mm(r3, w7_ref[2])
                 + b7_ref[...]).astype(bf16)                         # (bt, 2C)

    # --- conv8: kH=3, sH=2, padH=1 (only taps 1 and 2 touch real rows) -----------
    h8 = lrelu(mm(h7_0, w8_ref[1]) + mm(h7_1, w8_ref[2]) + b8_ref[...]).astype(bf16)
    # h8: (bt, 4C) == nn.Flatten output

    # --- fc1 + LeakyReLU, fc2 -----------------------------------------------------
    f1 = lrelu(mm(h8, wf1_ref[...]) + bf1_ref[...]).astype(bf16)
    out_ref[...] = (mm(f1, wf2_ref[...]) + bf2_ref[...]).astype(out_ref.dtype)


# ----------------------------------------------------------------------------
# Wrapper: layout preprocessing (pure JAX, tiny) + the batch-tiled pallas_call.
# ----------------------------------------------------------------------------
def muse_discriminator_forward(params, x):
    """x: (N, n_tracks, n_bars=2, n_steps_per_bar=16, n_pitches=84) float32."""
    n, tracks, d, hh, ww = x.shape
    assert d == 2 and hh == 16 and ww == 84, "fixed conv schedule needs (2, 16, 84)"
    c = params["conv1"][0].shape[0]
    of = params["fc2"][0].shape[0]
    bf16, f32 = jnp.bfloat16, jnp.float32

    bt = BATCH_TILE
    n_pad = ((n + bt - 1) // bt) * bt
    t = n_pad // bt
    xp = x if n_pad == n else jnp.pad(x, ((0, n_pad - n), (0, 0), (0, 0), (0, 0), (0, 0)))

    # im2col matrix with batch-tile outermost and the tap-friendly row ordering:
    #   row = (tile, w3, b0, b1, b3, b2, n_inner), col = (kw, cin, kd)
    # where h = 8*b3 + 4*b2 + 2*b1 + b0 and w = 12*w3 + kw.
    xr = xp.reshape(t, bt, tracks, 2, 2, 2, 2, 2, 7, 12)   # (t,n,c,d,b3,b2,b1,b0,w3,kw)
    xt = jnp.transpose(xr, (0, 8, 7, 6, 4, 5, 1, 9, 2, 3))  # (t,w3,b0,b1,b3,b2,n,kw,c,d)
    x1 = xt.reshape(t * 112 * bt, 12 * tracks * 2).astype(bf16)

    w1, b1 = params["conv1"]
    w2, b2 = params["conv2"]
    w3, b3 = params["conv3"]
    w4, b4 = params["conv4"]
    w5, b5 = params["conv5"]
    w6, b6 = params["conv6"]
    w7, b7 = params["conv7"]
    w8, b8 = params["conv8"]
    wf1, bf1 = params["fc1"]
    wf2, bf2 = params["fc2"]

    def tap_w(w):  # (Cout, Cin, 1, k, 1) or (Cout, Cin, 1, 1, k) -> (k, Cin, Cout)
        w = w.reshape(w.shape[0], w.shape[1], -1)
        return jnp.transpose(w, (2, 1, 0)).astype(bf16)

    def row(b):
        return b.reshape(1, -1).astype(f32)

    # conv1/conv2 as block-diagonal matmuls over the 12 conv3 taps (lane-dense),
    # conv3 as a single K-concatenated matmul.
    eye12 = jnp.eye(12, dtype=f32)
    W1bd = jnp.kron(eye12, w1.reshape(c, tracks * 2).T).astype(bf16)   # (12*cin*kd, 12C)
    W2bd = jnp.kron(eye12, w2.reshape(c, c).T).astype(bf16)            # (12C, 12C)
    B1t = row(jnp.tile(b1, 12))
    B2t = row(jnp.tile(b2, 12))
    W3cat = tap_w(w3).reshape(12 * c, c)                               # (12C, C)
    W4, W5, W6 = tap_w(w4), tap_w(w5), tap_w(w6)
    W7, W8 = tap_w(w7), tap_w(w8)
    WF1 = wf1.T.astype(bf16)
    WF2 = wf2.T.astype(bf16)

    inputs = (x1,
              W1bd, B1t, W2bd, B2t, W3cat, row(b3),
              W4, row(b4), W5, row(b5), W6, row(b6),
              W7, row(b7), W8, row(b8),
              WF1, row(bf1), WF2, row(bf2))

    def const_spec(a):
        # Constant index_map: weight blocks are fetched once and stay resident
        # in VMEM across the batch-tiled grid (no per-step re-DMA).
        nd = a.ndim
        return pl.BlockSpec(a.shape, lambda i, _nd=nd: (0,) * _nd)

    in_specs = [pl.BlockSpec((112 * bt, 12 * tracks * 2), lambda i: (i, 0))]
    in_specs += [const_spec(a) for a in inputs[1:]]

    kernel = functools.partial(_fused_disc_kernel, bt=bt)
    out = pl.pallas_call(
        kernel,
        out_shape=jax.ShapeDtypeStruct((n_pad, of), f32),
        grid_spec=pltpu.PrefetchScalarGridSpec(
            num_scalar_prefetch=0,
            grid=(t,),
            in_specs=in_specs,
            out_specs=pl.BlockSpec((bt, of), lambda i: (i, 0)),
        ),
        compiler_params=pltpu.CompilerParams(
            # Batch tiles are independent -> shard across TensorCores (2x on v7x)
            # and let Pallas pipeline the x1 input DMA against compute.
            dimension_semantics=("parallel",),
            # Per-step working set (weights + x1 tile + h1/h2 temporaries) is a
            # few MiB; 32 MiB is safe headroom on v5e/v6e/v7x.
            vmem_limit_bytes=32 * 1024 * 1024,
        ),
    )(*inputs)
    return out[:n]


# ----------------------------------------------------------------------------
# Parameters (deterministic, synthetic init; PyTorch weight layouts)
# ----------------------------------------------------------------------------
def init_params(key, hid_channels, hid_features, out_features, n_tracks, n_bars):
    C = hid_channels
    conv_specs = [
        ("conv1", (C, n_tracks, 2, 1, 1)),
        ("conv2", (C, C, n_bars - 1, 1, 1)),
        ("conv3", (C, C, 1, 1, 12)),
        ("conv4", (C, C, 1, 1, 7)),
        ("conv5", (C, C, 1, 2, 1)),
        ("conv6", (C, C, 1, 2, 1)),
        ("conv7", (2 * C, C, 1, 4, 1)),
        ("conv8", (4 * C, 2 * C, 1, 3, 1)),
    ]
    in_features = 4 * C if n_bars == 2 else 12 * C
    keys = jax.random.split(key, len(conv_specs) + 2)
    params = {}
    for (name, shp), k in zip(conv_specs, keys[: len(conv_specs)]):
        fan_in = shp[1] * shp[2] * shp[3] * shp[4]
        w = jax.random.normal(k, shp, jnp.float32) / jnp.sqrt(float(fan_in))
        params[name] = (w, jnp.zeros((shp[0],), jnp.float32))
    w1 = jax.random.normal(keys[-2], (hid_features, in_features), jnp.float32) / jnp.sqrt(
        float(in_features))
    params["fc1"] = (w1, jnp.zeros((hid_features,), jnp.float32))
    w2 = jax.random.normal(keys[-1], (out_features, hid_features), jnp.float32) / jnp.sqrt(
        float(hid_features))
    params["fc2"] = (w2, jnp.zeros((out_features,), jnp.float32))
    return params


# ----------------------------------------------------------------------------
# Plain-JAX f32 reference (im2col convs) for a numerical sanity check.
# ----------------------------------------------------------------------------
def _conv3d_ref(x, w, b, stride, padding):
    n, cin, D, H, W = x.shape
    cout = w.shape[0]
    kd, kh, kw = w.shape[2], w.shape[3], w.shape[4]
    sd, sh, sw = stride
    pd, ph, pw = padding
    xp = jnp.pad(x, ((0, 0), (0, 0), (pd, pd), (ph, ph), (pw, pw)))
    Dp, Hp, Wp = D + 2 * pd, H + 2 * ph, W + 2 * pw
    Do = (Dp - kd) // sd + 1
    Ho = (Hp - kh) // sh + 1
    Wo = (Wp - kw) // sw + 1
    cols = []
    for i in range(kd):
        for j in range(kh):
            for k in range(kw):
                cols.append(xp[:, :,
                               i: i + (Do - 1) * sd + 1: sd,
                               j: j + (Ho - 1) * sh + 1: sh,
                               k: k + (Wo - 1) * sw + 1: sw])
    col = jnp.stack(cols, axis=2).reshape(n, cin * kd * kh * kw, Do, Ho, Wo)
    col = jnp.transpose(col, (0, 2, 3, 4, 1)).reshape(n * Do * Ho * Wo, -1)
    out = col @ w.reshape(cout, -1).T + b
    out = out.reshape(n, Do, Ho, Wo, cout)
    return jnp.transpose(out, (0, 4, 1, 2, 3))


def muse_discriminator_reference(params, x):
    act = lambda v: jnp.where(v >= 0, v, NEG_SLOPE * v)
    h = act(_conv3d_ref(x, *params["conv1"], (1, 1, 1), (0, 0, 0)))
    h = act(_conv3d_ref(h, *params["conv2"], (1, 1, 1), (0, 0, 0)))
    h = act(_conv3d_ref(h, *params["conv3"], (1, 1, 12), (0, 0, 0)))
    h = act(_conv3d_ref(h, *params["conv4"], (1, 1, 7), (0, 0, 0)))
    h = act(_conv3d_ref(h, *params["conv5"], (1, 2, 1), (0, 0, 0)))
    h = act(_conv3d_ref(h, *params["conv6"], (1, 2, 1), (0, 0, 0)))
    h = act(_conv3d_ref(h, *params["conv7"], (1, 2, 1), (0, 1, 0)))
    h = act(_conv3d_ref(h, *params["conv8"], (1, 2, 1), (0, 1, 0)))
    h = h.reshape(h.shape[0], -1)
    w1, b1 = params["fc1"]
    h = act(h @ w1.T + b1)
    w2, b2 = params["fc2"]
    return h @ w2.T + b2


if __name__ == "__main__":
    # Small-but-consistent configuration: spatial dims must stay (2, 16, 84) for
    # the fixed conv schedule; hidden widths are shrunk instead.  batch=16 gives
    # two batch tiles -> a 2-step "parallel" grid (both v7x TensorCores busy).
    hid_channels = 32
    hid_features = 64
    out_features = 1
    n_tracks, n_bars, n_steps_per_bar, n_pitches = 4, 2, 16, 84
    batch = 16

    root = jax.random.PRNGKey(0)
    k_params, k_x = jax.random.split(root)
    params = init_params(k_params, hid_channels, hid_features, out_features,
                         n_tracks, n_bars)
    x = jax.random.normal(
        k_x, (batch, n_tracks, n_bars, n_steps_per_bar, n_pitches), jnp.float32)

    fwd = jax.jit(muse_discriminator_forward)
    out = fwd(params, x)
    jax.block_until_ready(out)
    assert out.shape == (batch, out_features), out.shape

    # Sanity check against the f32 reference (kernel uses bf16 MXU operands).
    ref = jax.jit(muse_discriminator_reference)(params, x)
    np.testing.assert_allclose(np.asarray(out), np.asarray(ref), rtol=5e-2, atol=3e-2)
    print("KERNEL_OK")
</pallas_src>

<mosaic_0001>
module attributes {stable_mosaic.version = 11 : i64} {
  func.func @_fused_disc_kernel(%arg0: i32, %arg1: memref<896x96xbf16, #tpu.memory_space<vmem>>, %arg2: memref<96x384xbf16, #tpu.memory_space<vmem>>, %arg3: memref<1x384xf32, #tpu.memory_space<vmem>>, %arg4: memref<384x384xbf16, #tpu.memory_space<vmem>>, %arg5: memref<1x384xf32, #tpu.memory_space<vmem>>, %arg6: memref<384x32xbf16, #tpu.memory_space<vmem>>, %arg7: memref<1x32xf32, #tpu.memory_space<vmem>>, %arg8: memref<7x32x32xbf16, #tpu.memory_space<vmem>>, %arg9: memref<1x32xf32, #tpu.memory_space<vmem>>, %arg10: memref<2x32x32xbf16, #tpu.memory_space<vmem>>, %arg11: memref<1x32xf32, #tpu.memory_space<vmem>>, %arg12: memref<2x32x32xbf16, #tpu.memory_space<vmem>>, %arg13: memref<1x32xf32, #tpu.memory_space<vmem>>, %arg14: memref<4x32x64xbf16, #tpu.memory_space<vmem>>, %arg15: memref<1x64xf32, #tpu.memory_space<vmem>>, %arg16: memref<3x64x128xbf16, #tpu.memory_space<vmem>>, %arg17: memref<1x128xf32, #tpu.memory_space<vmem>>, %arg18: memref<128x64xbf16, #tpu.memory_space<vmem>>, %arg19: memref<1x64xf32, #tpu.memory_space<vmem>>, %arg20: memref<64x1xbf16, #tpu.memory_space<vmem>>, %arg21: memref<1x1xf32, #tpu.memory_space<vmem>>, %arg22: memref<8x1xf32, #tpu.memory_space<vmem>>) attributes {dimension_semantics = [#tpu.dimension_semantics<parallel>], iteration_bounds = array<i64: 2>, scalar_prefetch = 0 : i64, scratch_operands = 0 : i64, tpu.core_type = #tpu.core_type<tc>, window_params = [{transform_indices = @transform_0, window_bounds = array<i64: 896, 96>}, {pipeline_mode = #tpu.pipeline_mode<synchronous>, transform_indices = @transform_1, window_bounds = array<i64: 96, 384>}, {pipeline_mode = #tpu.pipeline_mode<synchronous>, transform_indices = @transform_2, window_bounds = array<i64: 1, 384>}, {pipeline_mode = #tpu.pipeline_mode<synchronous>, transform_indices = @transform_3, window_bounds = array<i64: 384, 384>}, {pipeline_mode = #tpu.pipeline_mode<synchronous>, transform_indices = @transform_4, window_bounds = array<i64: 1, 384>}, {pipeline_mode = #tpu.pipeline_mode<synchronous>, transform_indices = @transform_5, window_bounds = array<i64: 384, 32>}, {pipeline_mode = #tpu.pipeline_mode<synchronous>, transform_indices = @transform_6, window_bounds = array<i64: 1, 32>}, {pipeline_mode = #tpu.pipeline_mode<synchronous>, transform_indices = @transform_7, window_bounds = array<i64: 7, 32, 32>}, {pipeline_mode = #tpu.pipeline_mode<synchronous>, transform_indices = @transform_8, window_bounds = array<i64: 1, 32>}, {pipeline_mode = #tpu.pipeline_mode<synchronous>, transform_indices = @transform_9, window_bounds = array<i64: 2, 32, 32>}, {pipeline_mode = #tpu.pipeline_mode<synchronous>, transform_indices = @transform_10, window_bounds = array<i64: 1, 32>}, {pipeline_mode = #tpu.pipeline_mode<synchronous>, transform_indices = @transform_11, window_bounds = array<i64: 2, 32, 32>}, {pipeline_mode = #tpu.pipeline_mode<synchronous>, transform_indices = @transform_12, window_bounds = array<i64: 1, 32>}, {pipeline_mode = #tpu.pipeline_mode<synchronous>, transform_indices = @transform_13, window_bounds = array<i64: 4, 32, 64>}, {pipeline_mode = #tpu.pipeline_mode<synchronous>, transform_indices = @transform_14, window_bounds = array<i64: 1, 64>}, {pipeline_mode = #tpu.pipeline_mode<synchronous>, transform_indices = @transform_15, window_bounds = array<i64: 3, 64, 128>}, {pipeline_mode = #tpu.pipeline_mode<synchronous>, transform_indices = @transform_16, window_bounds = array<i64: 1, 128>}, {pipeline_mode = #tpu.pipeline_mode<synchronous>, transform_indices = @transform_17, window_bounds = array<i64: 128, 64>}, {pipeline_mode = #tpu.pipeline_mode<synchronous>, transform_indices = @transform_18, window_bounds = array<i64: 1, 64>}, {pipeline_mode = #tpu.pipeline_mode<synchronous>, transform_indices = @transform_19, window_bounds = array<i64: 64, 1>}, {pipeline_mode = #tpu.pipeline_mode<synchronous>, transform_indices = @transform_20, window_bounds = array<i64: 1, 1>}, {transform_indices = @transform_21, window_bounds = array<i64: 8, 1>}]} {
    %c0 = arith.constant 0 : index
    %c0_0 = arith.constant 0 : index
    %0 = vector.load %arg1[%c0, %c0_0] : memref<896x96xbf16, #tpu.memory_space<vmem>>, vector<896x96xbf16>
    %c0_1 = arith.constant 0 : index
    %c0_2 = arith.constant 0 : index
    %1 = vector.load %arg2[%c0_1, %c0_2] : memref<96x384xbf16, #tpu.memory_space<vmem>>, vector<96x384xbf16>
    %cst = arith.constant dense<0.000000e+00> : vector<896x384xf32>
    %2 = tpu.matmul %0, %1, %cst {dimension_numbers = #tpu.dot_dimension_numbers<[1], [0], [0], [1], [0, 0, 1, 1], [], []>} : vector<896x96xbf16>, vector<96x384xbf16>, vector<896x384xf32> -> vector<896x384xf32>
    %c0_3 = arith.constant 0 : index
    %c0_4 = arith.constant 0 : index
    %3 = vector.load %arg3[%c0_3, %c0_4] : memref<1x384xf32, #tpu.memory_space<vmem>>, vector<1x384xf32>
    %4 = vector.broadcast %3 : vector<1x384xf32> to vector<896x384xf32>
    %5 = arith.addf %2, %4 : vector<896x384xf32>
    %cst_5 = arith.constant 3.000000e-01 : f32
    %6 = vector.broadcast %cst_5 : f32 to vector<896x384xf32>
    %7 = arith.mulf %6, %5 : vector<896x384xf32>
    %8 = arith.maximumf %5, %7 : vector<896x384xf32>
    %9 = arith.truncf %8 : vector<896x384xf32> to vector<896x384xbf16>
    %c0_6 = arith.constant 0 : index
    %c0_7 = arith.constant 0 : index
    %10 = vector.load %arg4[%c0_6, %c0_7] : memref<384x384xbf16, #tpu.memory_space<vmem>>, vector<384x384xbf16>
    %cst_8 = arith.constant dense<0.000000e+00> : vector<896x384xf32>
    %11 = tpu.matmul %9, %10, %cst_8 {dimension_numbers = #tpu.dot_dimension_numbers<[1], [0], [0], [1], [0, 0, 1, 1], [], []>} : vector<896x384xbf16>, vector<384x384xbf16>, vector<896x384xf32> -> vector<896x384xf32>
    %c0_9 = arith.constant 0 : index
    %c0_10 = arith.constant 0 : index
    %12 = vector.load %arg5[%c0_9, %c0_10] : memref<1x384xf32, #tpu.memory_space<vmem>>, vector<1x384xf32>
    %13 = vector.broadcast %12 : vector<1x384xf32> to vector<896x384xf32>
    %14 = arith.addf %11, %13 : vector<896x384xf32>
    %cst_11 = arith.constant 3.000000e-01 : f32
    %15 = vector.broadcast %cst_11 : f32 to vector<896x384xf32>
    %16 = arith.mulf %15, %14 : vector<896x384xf32>
    %17 = arith.maximumf %14, %16 : vector<896x384xf32>
    %18 = arith.truncf %17 : vector<896x384xf32> to vector<896x384xbf16>
    %c0_12 = arith.constant 0 : index
    %c0_13 = arith.constant 0 : index
    %19 = vector.load %arg6[%c0_12, %c0_13] : memref<384x32xbf16, #tpu.memory_space<vmem>>, vector<384x32xbf16>
    %cst_14 = arith.constant dense<0.000000e+00> : vector<896x32xf32>
    %20 = tpu.matmul %18, %19, %cst_14 {dimension_numbers = #tpu.dot_dimension_numbers<[1], [0], [0], [1], [0, 0, 1, 1], [], []>} : vector<896x384xbf16>, vector<384x32xbf16>, vector<896x32xf32> -> vector<896x32xf32>
    %c0_15 = arith.constant 0 : index
    %c0_16 = arith.constant 0 : index
    %21 = vector.load %arg7[%c0_15, %c0_16] : memref<1x32xf32, #tpu.memory_space<vmem>>, vector<1x32xf32>
    %22 = vector.broadcast %21 : vector<1x32xf32> to vector<896x32xf32>
    %23 = arith.addf %20, %22 : vector<896x32xf32>
    %cst_17 = arith.constant 3.000000e-01 : f32
    %24 = vector.broadcast %cst_17 : f32 to vector<896x32xf32>
    %25 = arith.mulf %24, %23 : vector<896x32xf32>
    %26 = arith.maximumf %23, %25 : vector<896x32xf32>
    %27 = arith.truncf %26 : vector<896x32xf32> to vector<896x32xbf16>
    %28 = vector.extract_strided_slice %27 {offsets = [0, 0], sizes = [128, 32], strides = [1, 1]} : vector<896x32xbf16> to vector<128x32xbf16>
    %c0_18 = arith.constant 0 : index
    %c0_19 = arith.constant 0 : index
    %c0_20 = arith.constant 0 : index
    %29 = vector.load %arg8[%c0_18, %c0_19, %c0_20] : memref<7x32x32xbf16, #tpu.memory_space<vmem>>, vector<1x32x32xbf16>
    %30 = vector.shape_cast %29 : vector<1x32x32xbf16> to vector<32x32xbf16>
    %cst_21 = arith.constant dense<0.000000e+00> : vector<128x32xf32>
    %31 = tpu.matmul %28, %30, %cst_21 {dimension_numbers = #tpu.dot_dimension_numbers<[1], [0], [0], [1], [0, 0, 1, 1], [], []>} : vector<128x32xbf16>, vector<32x32xbf16>, vector<128x32xf32> -> vector<128x32xf32>
    %32 = vector.extract_strided_slice %27 {offsets = [128, 0], sizes = [128, 32], strides = [1, 1]} : vector<896x32xbf16> to vector<128x32xbf16>
    %c1 = arith.constant 1 : index
    %c0_22 = arith.constant 0 : index
    %c0_23 = arith.constant 0 : index
    %33 = vector.load %arg8[%c1, %c0_22, %c0_23] : memref<7x32x32xbf16, #tpu.memory_space<vmem>>, vector<1x32x32xbf16>
    %34 = vector.shape_cast %33 : vector<1x32x32xbf16> to vector<32x32xbf16>
    %cst_24 = arith.constant dense<0.000000e+00> : vector<128x32xf32>
    %35 = tpu.matmul %32, %34, %cst_24 {dimension_numbers = #tpu.dot_dimension_numbers<[1], [0], [0], [1], [0, 0, 1, 1], [], []>} : vector<128x32xbf16>, vector<32x32xbf16>, vector<128x32xf32> -> vector<128x32xf32>
    %36 = arith.addf %31, %35 : vector<128x32xf32>
    %37 = vector.extract_strided_slice %27 {offsets = [256, 0], sizes = [128, 32], strides = [1, 1]} : vector<896x32xbf16> to vector<128x32xbf16>
    %c2 = arith.constant 2 : index
    %c0_25 = arith.constant 0 : index
    %c0_26 = arith.constant 0 : index
    %38 = vector.load %arg8[%c2, %c0_25, %c0_26] : memref<7x32x32xbf16, #tpu.memory_space<vmem>>, vector<1x32x32xbf16>
    %39 = vector.shape_cast %38 : vector<1x32x32xbf16> to vector<32x32xbf16>
    %cst_27 = arith.constant dense<0.000000e+00> : vector<128x32xf32>
    %40 = tpu.matmul %37, %39, %cst_27 {dimension_numbers = #tpu.dot_dimension_numbers<[1], [0], [0], [1], [0, 0, 1, 1], [], []>} : vector<128x32xbf16>, vector<32x32xbf16>, vector<128x32xf32> -> vector<128x32xf32>
    %41 = arith.addf %36, %40 : vector<128x32xf32>
    %42 = vector.extract_strided_slice %27 {offsets = [384, 0], sizes = [128, 32], strides = [1, 1]} : vector<896x32xbf16> to vector<128x32xbf16>
    %c3 = arith.constant 3 : index
    %c0_28 = arith.constant 0 : index
    %c0_29 = arith.constant 0 : index
    %43 = vector.load %arg8[%c3, %c0_28, %c0_29] : memref<7x32x32xbf16, #tpu.memory_space<vmem>>, vector<1x32x32xbf16>
    %44 = vector.shape_cast %43 : vector<1x32x32xbf16> to vector<32x32xbf16>
    %cst_30 = arith.constant dense<0.000000e+00> : vector<128x32xf32>
    %45 = tpu.matmul %42, %44, %cst_30 {dimension_numbers = #tpu.dot_dimension_numbers<[1], [0], [0], [1], [0, 0, 1, 1], [], []>} : vector<128x32xbf16>, vector<32x32xbf16>, vector<128x32xf32> -> vector<128x32xf32>
    %46 = arith.addf %41, %45 : vector<128x32xf32>
    %47 = vector.extract_strided_slice %27 {offsets = [512, 0], sizes = [128, 32], strides = [1, 1]} : vector<896x32xbf16> to vector<128x32xbf16>
    %c4 = arith.constant 4 : index
    %c0_31 = arith.constant 0 : index
    %c0_32 = arith.constant 0 : index
    %48 = vector.load %arg8[%c4, %c0_31, %c0_32] : memref<7x32x32xbf16, #tpu.memory_space<vmem>>, vector<1x32x32xbf16>
    %49 = vector.shape_cast %48 : vector<1x32x32xbf16> to vector<32x32xbf16>
    %cst_33 = arith.constant dense<0.000000e+00> : vector<128x32xf32>
    %50 = tpu.matmul %47, %49, %cst_33 {dimension_numbers = #tpu.dot_dimension_numbers<[1], [0], [0], [1], [0, 0, 1, 1], [], []>} : vector<128x32xbf16>, vector<32x32xbf16>, vector<128x32xf32> -> vector<128x32xf32>
    %51 = arith.addf %46, %50 : vector<128x32xf32>
    %52 = vector.extract_strided_slice %27 {offsets = [640, 0], sizes = [128, 32], strides = [1, 1]} : vector<896x32xbf16> to vector<128x32xbf16>
    %c5 = arith.constant 5 : index
    %c0_34 = arith.constant 0 : index
    %c0_35 = arith.constant 0 : index
    %53 = vector.load %arg8[%c5, %c0_34, %c0_35] : memref<7x32x32xbf16, #tpu.memory_space<vmem>>, vector<1x32x32xbf16>
    %54 = vector.shape_cast %53 : vector<1x32x32xbf16> to vector<32x32xbf16>
    %cst_36 = arith.constant dense<0.000000e+00> : vector<128x32xf32>
    %55 = tpu.matmul %52, %54, %cst_36 {dimension_numbers = #tpu.dot_dimension_numbers<[1], [0], [0], [1], [0, 0, 1, 1], [], []>} : vector<128x32xbf16>, vector<32x32xbf16>, vector<128x32xf32> -> vector<128x32xf32>
    %56 = arith.addf %51, %55 : vector<128x32xf32>
    %57 = vector.extract_strided_slice %27 {offsets = [768, 0], sizes = [128, 32], strides = [1, 1]} : vector<896x32xbf16> to vector<128x32xbf16>
    %c6 = arith.constant 6 : index
    %c0_37 = arith.constant 0 : index
    %c0_38 = arith.constant 0 : index
    %58 = vector.load %arg8[%c6, %c0_37, %c0_38] : memref<7x32x32xbf16, #tpu.memory_space<vmem>>, vector<1x32x32xbf16>
    %59 = vector.shape_cast %58 : vector<1x32x32xbf16> to vector<32x32xbf16>
    %cst_39 = arith.constant dense<0.000000e+00> : vector<128x32xf32>
    %60 = tpu.matmul %57, %59, %cst_39 {dimension_numbers = #tpu.dot_dimension_numbers<[1], [0], [0], [1], [0, 0, 1, 1], [], []>} : vector<128x32xbf16>, vector<32x32xbf16>, vector<128x32xf32> -> vector<128x32xf32>
    %61 = arith.addf %56, %60 : vector<128x32xf32>
    %c0_40 = arith.constant 0 : index
    %c0_41 = arith.constant 0 : index
    %62 = vector.load %arg9[%c0_40, %c0_41] : memref<1x32xf32, #tpu.memory_space<vmem>>, vector<1x32xf32>
    %63 = vector.broadcast %62 : vector<1x32xf32> to vector<128x32xf32>
    %64 = arith.addf %61, %63 : vector<128x32xf32>
    %cst_42 = arith.constant 3.000000e-01 : f32
    %65 = vector.broadcast %cst_42 : f32 to vector<128x32xf32>
    %66 = arith.mulf %65, %64 : vector<128x32xf32>
    %67 = arith.maximumf %64, %66 : vector<128x32xf32>
    %68 = arith.truncf %67 : vector<128x32xf32> to vector<128x32xbf16>
    %69 = vector.extract_strided_slice %68 {offsets = [0, 0], sizes = [64, 32], strides = [1, 1]} : vector<128x32xbf16> to vector<64x32xbf16>
    %c0_43 = arith.constant 0 : index
    %c0_44 = arith.constant 0 : index
    %c0_45 = arith.constant 0 : index
    %70 = vector.load %arg10[%c0_43, %c0_44, %c0_45] : memref<2x32x32xbf16, #tpu.memory_space<vmem>>, vector<1x32x32xbf16>
    %71 = vector.shape_cast %70 : vector<1x32x32xbf16> to vector<32x32xbf16>
    %cst_46 = arith.constant dense<0.000000e+00> : vector<64x32xf32>
    %72 = tpu.matmul %69, %71, %cst_46 {dimension_numbers = #tpu.dot_dimension_numbers<[1], [0], [0], [1], [0, 0, 1, 1], [], []>} : vector<64x32xbf16>, vector<32x32xbf16>, vector<64x32xf32> -> vector<64x32xf32>
    %73 = vector.extract_strided_slice %68 {offsets = [64, 0], sizes = [64, 32], strides = [1, 1]} : vector<128x32xbf16> to vector<64x32xbf16>
    %c1_47 = arith.constant 1 : index
    %c0_48 = arith.constant 0 : index
    %c0_49 = arith.constant 0 : index
    %74 = vector.load %arg10[%c1_47, %c0_48, %c0_49] : memref<2x32x32xbf16, #tpu.memory_space<vmem>>, vector<1x32x32xbf16>
    %75 = vector.shape_cast %74 : vector<1x32x32xbf16> to vector<32x32xbf16>
    %cst_50 = arith.constant dense<0.000000e+00> : vector<64x32xf32>
    %76 = tpu.matmul %73, %75, %cst_50 {dimension_numbers = #tpu.dot_dimension_numbers<[1], [0], [0], [1], [0, 0, 1, 1], [], []>} : vector<64x32xbf16>, vector<32x32xbf16>, vector<64x32xf32> -> vector<64x32xf32>
    %77 = arith.addf %72, %76 : vector<64x32xf32>
    %c0_51 = arith.constant 0 : index
    %c0_52 = arith.constant 0 : index
    %78 = vector.load %arg11[%c0_51, %c0_52] : memref<1x32xf32, #tpu.memory_space<vmem>>, vector<1x32xf32>
    %79 = vector.broadcast %78 : vector<1x32xf32> to vector<64x32xf32>
    %80 = arith.addf %77, %79 : vector<64x32xf32>
    %cst_53 = arith.constant 3.000000e-01 : f32
    %81 = vector.broadcast %cst_53 : f32 to vector<64x32xf32>
    %82 = arith.mulf %81, %80 : vector<64x32xf32>
    %83 = arith.maximumf %80, %82 : vector<64x32xf32>
    %84 = arith.truncf %83 : vector<64x32xf32> to vector<64x32xbf16>
    %85 = vector.extract_strided_slice %84 {offsets = [0, 0], sizes = [32, 32], strides = [1, 1]} : vector<64x32xbf16> to vector<32x32xbf16>
    %c0_54 = arith.constant 0 : index
    %c0_55 = arith.constant 0 : index
    %c0_56 = arith.constant 0 : index
    %86 = vector.load %arg12[%c0_54, %c0_55, %c0_56] : memref<2x32x32xbf16, #tpu.memory_space<vmem>>, vector<1x32x32xbf16>
    %87 = vector.shape_cast %86 : vector<1x32x32xbf16> to vector<32x32xbf16>
    %cst_57 = arith.constant dense<0.000000e+00> : vector<32x32xf32>
    %88 = tpu.matmul %85, %87, %cst_57 {dimension_numbers = #tpu.dot_dimension_numbers<[1], [0], [0], [1], [0, 0, 1, 1], [], []>} : vector<32x32xbf16>, vector<32x32xbf16>, vector<32x32xf32> -> vector<32x32xf32>
    %89 = vector.extract_strided_slice %84 {offsets = [32, 0], sizes = [32, 32], strides = [1, 1]} : vector<64x32xbf16> to vector<32x32xbf16>
    %c1_58 = arith.constant 1 : index
    %c0_59 = arith.constant 0 : index
    %c0_60 = arith.constant 0 : index
    %90 = vector.load %arg12[%c1_58, %c0_59, %c0_60] : memref<2x32x32xbf16, #tpu.memory_space<vmem>>, vector<1x32x32xbf16>
    %91 = vector.shape_cast %90 : vector<1x32x32xbf16> to vector<32x32xbf16>
    %cst_61 = arith.constant dense<0.000000e+00> : vector<32x32xf32>
    %92 = tpu.matmul %89, %91, %cst_61 {dimension_numbers = #tpu.dot_dimension_numbers<[1], [0], [0], [1], [0, 0, 1, 1], [], []>} : vector<32x32xbf16>, vector<32x32xbf16>, vector<32x32xf32> -> vector<32x32xf32>
    %93 = arith.addf %88, %92 : vector<32x32xf32>
    %c0_62 = arith.constant 0 : index
    %c0_63 = arith.constant 0 : index
    %94 = vector.load %arg13[%c0_62, %c0_63] : memref<1x32xf32, #tpu.memory_space<vmem>>, vector<1x32xf32>
    %95 = vector.broadcast %94 : vector<1x32xf32> to vector<32x32xf32>
    %96 = arith.addf %93, %95 : vector<32x32xf32>
    %cst_64 = arith.constant 3.000000e-01 : f32
    %97 = vector.broadcast %cst_64 : f32 to vector<32x32xf32>
    %98 = arith.mulf %97, %96 : vector<32x32xf32>
    %99 = arith.maximumf %96, %98 : vector<32x32xf32>
    %100 = vector.extract_strided_slice %99 {offsets = [0, 0], sizes = [8, 32], strides = [1, 1]} : vector<32x32xf32> to vector<8x32xf32>
    %101 = arith.truncf %100 : vector<8x32xf32> to vector<8x32xbf16>
    %102 = vector.extract_strided_slice %99 {offsets = [8, 0], sizes = [8, 32], strides = [1, 1]} : vector<32x32xf32> to vector<8x32xf32>
    %103 = arith.truncf %102 : vector<8x32xf32> to vector<8x32xbf16>
    %104 = vector.extract_strided_slice %99 {offsets = [16, 0], sizes = [8, 32], strides = [1, 1]} : vector<32x32xf32> to vector<8x32xf32>
    %105 = arith.truncf %104 : vector<8x32xf32> to vector<8x32xbf16>
    %106 = vector.extract_strided_slice %99 {offsets = [24, 0], sizes = [8, 32], strides = [1, 1]} : vector<32x32xf32> to vector<8x32xf32>
    %107 = arith.truncf %106 : vector<8x32xf32> to vector<8x32xbf16>
    %c1_65 = arith.constant 1 : index
    %c0_66 = arith.constant 0 : index
    %c0_67 = arith.constant 0 : index
    %108 = vector.load %arg14[%c1_65, %c0_66, %c0_67] : memref<4x32x64xbf16, #tpu.memory_space<vmem>>, vector<1x32x64xbf16>
    %109 = vector.shape_cast %108 : vector<1x32x64xbf16> to vector<32x64xbf16>
    %cst_68 = arith.constant dense<0.000000e+00> : vector<8x64xf32>
    %110 = tpu.matmul %101, %109, %cst_68 {dimension_numbers = #tpu.dot_dimension_numbers<[1], [0], [0], [1], [0, 0, 1, 1], [], []>} : vector<8x32xbf16>, vector<32x64xbf16>, vector<8x64xf32> -> vector<8x64xf32>
    %c2_69 = arith.constant 2 : index
    %c0_70 = arith.constant 0 : index
    %c0_71 = arith.constant 0 : index
    %111 = vector.load %arg14[%c2_69, %c0_70, %c0_71] : memref<4x32x64xbf16, #tpu.memory_space<vmem>>, vector<1x32x64xbf16>
    %112 = vector.shape_cast %111 : vector<1x32x64xbf16> to vector<32x64xbf16>
    %cst_72 = arith.constant dense<0.000000e+00> : vector<8x64xf32>
    %113 = tpu.matmul %103, %112, %cst_72 {dimension_numbers = #tpu.dot_dimension_numbers<[1], [0], [0], [1], [0, 0, 1, 1], [], []>} : vector<8x32xbf16>, vector<32x64xbf16>, vector<8x64xf32> -> vector<8x64xf32>
    %114 = arith.addf %110, %113 : vector<8x64xf32>
    %c3_73 = arith.constant 3 : index
    %c0_74 = arith.constant 0 : index
    %c0_75 = arith.constant 0 : index
    %115 = vector.load %arg14[%c3_73, %c0_74, %c0_75] : memref<4x32x64xbf16, #tpu.memory_space<vmem>>, vector<1x32x64xbf16>
    %116 = vector.shape_cast %115 : vector<1x32x64xbf16> to vector<32x64xbf16>
    %cst_76 = arith.constant dense<0.000000e+00> : vector<8x64xf32>
    %117 = tpu.matmul %105, %116, %cst_76 {dimension_numbers = #tpu.dot_dimension_numbers<[1], [0], [0], [1], [0, 0, 1, 1], [], []>} : vector<8x32xbf16>, vector<32x64xbf16>, vector<8x64xf32> -> vector<8x64xf32>
    %118 = arith.addf %114, %117 : vector<8x64xf32>
    %c0_77 = arith.constant 0 : index
    %c0_78 = arith.constant 0 : index
    %119 = vector.load %arg15[%c0_77, %c0_78] : memref<1x64xf32, #tpu.memory_space<vmem>>, vector<1x64xf32>
    %120 = vector.broadcast %119 : vector<1x64xf32> to vector<8x64xf32>
    %121 = arith.addf %118, %120 : vector<8x64xf32>
    %cst_79 = arith.constant 3.000000e-01 : f32
    %122 = vector.broadcast %cst_79 : f32 to vector<8x64xf32>
    %123 = arith.mulf %122, %121 : vector<8x64xf32>
    %124 = arith.maximumf %121, %123 : vector<8x64xf32>
    %125 = arith.truncf %124 : vector<8x64xf32> to vector<8x64xbf16>
    %c0_80 = arith.constant 0 : index
    %c0_81 = arith.constant 0 : index
    %c0_82 = arith.constant 0 : index
    %126 = vector.load %arg14[%c0_80, %c0_81, %c0_82] : memref<4x32x64xbf16, #tpu.memory_space<vmem>>, vector<1x32x64xbf16>
    %127 = vector.shape_cast %126 : vector<1x32x64xbf16> to vector<32x64xbf16>
    %cst_83 = arith.constant dense<0.000000e+00> : vector<8x64xf32>
    %128 = tpu.matmul %103, %127, %cst_83 {dimension_numbers = #tpu.dot_dimension_numbers<[1], [0], [0], [1], [0, 0, 1, 1], [], []>} : vector<8x32xbf16>, vector<32x64xbf16>, vector<8x64xf32> -> vector<8x64xf32>
    %c1_84 = arith.constant 1 : index
    %c0_85 = arith.constant 0 : index
    %c0_86 = arith.constant 0 : index
    %129 = vector.load %arg14[%c1_84, %c0_85, %c0_86] : memref<4x32x64xbf16, #tpu.memory_space<vmem>>, vector<1x32x64xbf16>
    %130 = vector.shape_cast %129 : vector<1x32x64xbf16> to vector<32x64xbf16>
    %cst_87 = arith.constant dense<0.000000e+00> : vector<8x64xf32>
    %131 = tpu.matmul %105, %130, %cst_87 {dimension_numbers = #tpu.dot_dimension_numbers<[1], [0], [0], [1], [0, 0, 1, 1], [], []>} : vector<8x32xbf16>, vector<32x64xbf16>, vector<8x64xf32> -> vector<8x64xf32>
    %132 = arith.addf %128, %131 : vector<8x64xf32>
    %c2_88 = arith.constant 2 : index
    %c0_89 = arith.constant 0 : index
    %c0_90 = arith.constant 0 : index
    %133 = vector.load %arg14[%c2_88, %c0_89, %c0_90] : memref<4x32x64xbf16, #tpu.memory_space<vmem>>, vector<1x32x64xbf16>
    %134 = vector.shape_cast %133 : vector<1x32x64xbf16> to vector<32x64xbf16>
    %cst_91 = arith.constant dense<0.000000e+00> : vector<8x64xf32>
    %135 = tpu.matmul %107, %134, %cst_91 {dimension_numbers = #tpu.dot_dimension_numbers<[1], [0], [0], [1], [0, 0, 1, 1], [], []>} : vector<8x32xbf16>, vector<32x64xbf16>, vector<8x64xf32> -> vector<8x64xf32>
    %136 = arith.addf %132, %135 : vector<8x64xf32>
    %c0_92 = arith.constant 0 : index
    %c0_93 = arith.constant 0 : index
    %137 = vector.load %arg15[%c0_92, %c0_93] : memref<1x64xf32, #tpu.memory_space<vmem>>, vector<1x64xf32>
    %138 = vector.broadcast %137 : vector<1x64xf32> to vector<8x64xf32>
    %139 = arith.addf %136, %138 : vector<8x64xf32>
    %cst_94 = arith.constant 3.000000e-01 : f32
    %140 = vector.broadcast %cst_94 : f32 to vector<8x64xf32>
    %141 = arith.mulf %140, %139 : vector<8x64xf32>
    %142 = arith.maximumf %139, %141 : vector<8x64xf32>
    %143 = arith.truncf %142 : vector<8x64xf32> to vector<8x64xbf16>
    %c1_95 = arith.constant 1 : index
    %c0_96 = arith.constant 0 : index
    %c0_97 = arith.constant 0 : index
    %144 = vector.load %arg16[%c1_95, %c0_96, %c0_97] : memref<3x64x128xbf16, #tpu.memory_space<vmem>>, vector<1x64x128xbf16>
    %145 = vector.shape_cast %144 : vector<1x64x128xbf16> to vector<64x128xbf16>
    %cst_98 = arith.constant dense<0.000000e+00> : vector<8x128xf32>
    %146 = tpu.matmul %125, %145, %cst_98 {dimension_numbers = #tpu.dot_dimension_numbers<[1], [0], [0], [1], [0, 0, 1, 1], [], []>} : vector<8x64xbf16>, vector<64x128xbf16>, vector<8x128xf32> -> vector<8x128xf32>
    %c2_99 = arith.constant 2 : index
    %c0_100 = arith.constant 0 : index
    %c0_101 = arith.constant 0 : index
    %147 = vector.load %arg16[%c2_99, %c0_100, %c0_101] : memref<3x64x128xbf16, #tpu.memory_space<vmem>>, vector<1x64x128xbf16>
    %148 = vector.shape_cast %147 : vector<1x64x128xbf16> to vector<64x128xbf16>
    %cst_102 = arith.constant dense<0.000000e+00> : vector<8x128xf32>
    %149 = tpu.matmul %143, %148, %cst_102 {dimension_numbers = #tpu.dot_dimension_numbers<[1], [0], [0], [1], [0, 0, 1, 1], [], []>} : vector<8x64xbf16>, vector<64x128xbf16>, vector<8x128xf32> -> vector<8x128xf32>
    %150 = arith.addf %146, %149 : vector<8x128xf32>
    %c0_103 = arith.constant 0 : index
    %c0_104 = arith.constant 0 : index
    %151 = vector.load %arg17[%c0_103, %c0_104] : memref<1x128xf32, #tpu.memory_space<vmem>>, vector<1x128xf32>
    %152 = vector.broadcast %151 : vector<1x128xf32> to vector<8x128xf32>
    %153 = arith.addf %150, %152 : vector<8x128xf32>
    %cst_105 = arith.constant 3.000000e-01 : f32
    %154 = vector.broadcast %cst_105 : f32 to vector<8x128xf32>
    %155 = arith.mulf %154, %153 : vector<8x128xf32>
    %156 = arith.maximumf %153, %155 : vector<8x128xf32>
    %157 = arith.truncf %156 : vector<8x128xf32> to vector<8x128xbf16>
    %c0_106 = arith.constant 0 : index
    %c0_107 = arith.constant 0 : index
    %158 = vector.load %arg18[%c0_106, %c0_107] : memref<128x64xbf16, #tpu.memory_space<vmem>>, vector<128x64xbf16>
    %cst_108 = arith.constant dense<0.000000e+00> : vector<8x64xf32>
    %159 = tpu.matmul %157, %158, %cst_108 {dimension_numbers = #tpu.dot_dimension_numbers<[1], [0], [0], [1], [0, 0, 1, 1], [], []>} : vector<8x128xbf16>, vector<128x64xbf16>, vector<8x64xf32> -> vector<8x64xf32>
    %c0_109 = arith.constant 0 : index
    %c0_110 = arith.constant 0 : index
    %160 = vector.load %arg19[%c0_109, %c0_110] : memref<1x64xf32, #tpu.memory_space<vmem>>, vector<1x64xf32>
    %161 = vector.broadcast %160 : vector<1x64xf32> to vector<8x64xf32>
    %162 = arith.addf %159, %161 : vector<8x64xf32>
    %cst_111 = arith.constant 3.000000e-01 : f32
    %163 = vector.broadcast %cst_111 : f32 to vector<8x64xf32>
    %164 = arith.mulf %163, %162 : vector<8x64xf32>
    %165 = arith.maximumf %162, %164 : vector<8x64xf32>
    %166 = arith.truncf %165 : vector<8x64xf32> to vector<8x64xbf16>
    %c0_112 = arith.constant 0 : index
    %c0_113 = arith.constant 0 : index
    %167 = vector.load %arg20[%c0_112, %c0_113] : memref<64x1xbf16, #tpu.memory_space<vmem>>, vector<64x1xbf16>
    %cst_114 = arith.constant dense<0.000000e+00> : vector<8x1xf32>
    %168 = tpu.matmul %166, %167, %cst_114 {dimension_numbers = #tpu.dot_dimension_numbers<[1], [0], [0], [1], [0, 0, 1, 1], [], []>} : vector<8x64xbf16>, vector<64x1xbf16>, vector<8x1xf32> -> vector<8x1xf32>
    %c0_115 = arith.constant 0 : index
    %c0_116 = arith.constant 0 : index
    %169 = vector.load %arg21[%c0_115, %c0_116] : memref<1x1xf32, #tpu.memory_space<vmem>>, vector<1x1xf32>
    %170 = vector.broadcast %169 : vector<1x1xf32> to vector<8x1xf32>
    %171 = arith.addf %168, %170 : vector<8x1xf32>
    %c0_117 = arith.constant 0 : index
    %c0_118 = arith.constant 0 : index
    %172 = vector.load %arg22[%c0_117, %c0_118] : memref<8x1xf32, #tpu.memory_space<vmem>>, vector<8x1xf32>
    tpu.vector_store %arg22[%c0_117, %c0_118], %171 {strides = array<i32>} : memref<8x1xf32, #tpu.memory_space<vmem>>, vector<8x1xf32>,
    return
  }
  func.func @transform_0(%arg0: i32) -> (i32, i32) {
    %c0_i32 = arith.constant 0 : i32
    %c0_i32_0 = arith.constant 0 : i32
    return %arg0, %c0_i32 : i32, i32
  }
  func.func @transform_1(%arg0: i32) -> (i32, i32) {
    %c0_i32 = arith.constant 0 : i32
    %c0_i32_0 = arith.constant 0 : i32
    %c0_i32_1 = arith.constant 0 : i32
    return %c0_i32, %c0_i32_0 : i32, i32
  }
  func.func @transform_2(%arg0: i32) -> (i32, i32) {
    %c0_i32 = arith.constant 0 : i32
    %c0_i32_0 = arith.constant 0 : i32
    %c0_i32_1 = arith.constant 0 : i32
    return %c0_i32, %c0_i32_0 : i32, i32
  }
  func.func @transform_3(%arg0: i32) -> (i32, i32) {
    %c0_i32 = arith.constant 0 : i32
    %c0_i32_0 = arith.constant 0 : i32
    %c0_i32_1 = arith.constant 0 : i32
    return %c0_i32, %c0_i32_0 : i32, i32
  }
  func.func @transform_4(%arg0: i32) -> (i32, i32) {
    %c0_i32 = arith.constant 0 : i32
    %c0_i32_0 = arith.constant 0 : i32
    %c0_i32_1 = arith.constant 0 : i32
    return %c0_i32, %c0_i32_0 : i32, i32
  }
  func.func @transform_5(%arg0: i32) -> (i32, i32) {
    %c0_i32 = arith.constant 0 : i32
    %c0_i32_0 = arith.constant 0 : i32
    %c0_i32_1 = arith.constant 0 : i32
    return %c0_i32, %c0_i32_0 : i32, i32
  }
  func.func @transform_6(%arg0: i32) -> (i32, i32) {
    %c0_i32 = arith.constant 0 : i32
    %c0_i32_0 = arith.constant 0 : i32
    %c0_i32_1 = arith.constant 0 : i32
    return %c0_i32, %c0_i32_0 : i32, i32
  }
  func.func @transform_7(%arg0: i32) -> (i32, i32, i32) {
    %c0_i32 = arith.constant 0 : i32
    %c0_i32_0 = arith.constant 0 : i32
    %c0_i32_1 = arith.constant 0 : i32
    %c0_i32_2 = arith.constant 0 : i32
    return %c0_i32, %c0_i32_0, %c0_i32_1 : i32, i32, i32
  }
  func.func @transform_8(%arg0: i32) -> (i32, i32) {
    %c0_i32 = arith.constant 0 : i32
    %c0_i32_0 = arith.constant 0 : i32
    %c0_i32_1 = arith.constant 0 : i32
    return %c0_i32, %c0_i32_0 : i32, i32
  }
  func.func @transform_9(%arg0: i32) -> (i32, i32, i32) {
    %c0_i32 = arith.constant 0 : i32
    %c0_i32_0 = arith.constant 0 : i32
    %c0_i32_1 = arith.constant 0 : i32
    %c0_i32_2 = arith.constant 0 : i32
    return %c0_i32, %c0_i32_0, %c0_i32_1 : i32, i32, i32
  }
  func.func @transform_10(%arg0: i32) -> (i32, i32) {
    %c0_i32 = arith.constant 0 : i32
    %c0_i32_0 = arith.constant 0 : i32
    %c0_i32_1 = arith.constant 0 : i32
    return %c0_i32, %c0_i32_0 : i32, i32
  }
  func.func @transform_11(%arg0: i32) -> (i32, i32, i32) {
    %c0_i32 = arith.constant 0 : i32
    %c0_i32_0 = arith.constant 0 : i32
    %c0_i32_1 = arith.constant 0 : i32
    %c0_i32_2 = arith.constant 0 : i32
    return %c0_i32, %c0_i32_0, %c0_i32_1 : i32, i32, i32
  }
  func.func @transform_12(%arg0: i32) -> (i32, i32) {
    %c0_i32 = arith.constant 0 : i32
    %c0_i32_0 = arith.constant 0 : i32
    %c0_i32_1 = arith.constant 0 : i32
    return %c0_i32, %c0_i32_0 : i32, i32
  }
  func.func @transform_13(%arg0: i32) -> (i32, i32, i32) {
    %c0_i32 = arith.constant 0 : i32
    %c0_i32_0 = arith.constant 0 : i32
    %c0_i32_1 = arith.constant 0 : i32
    %c0_i32_2 = arith.constant 0 : i32
    return %c0_i32, %c0_i32_0, %c0_i32_1 : i32, i32, i32
  }
  func.func @transform_14(%arg0: i32) -> (i32, i32) {
    %c0_i32 = arith.constant 0 : i32
    %c0_i32_0 = arith.constant 0 : i32
    %c0_i32_1 = arith.constant 0 : i32
    return %c0_i32, %c0_i32_0 : i32, i32
  }
  func.func @transform_15(%arg0: i32) -> (i32, i32, i32) {
    %c0_i32 = arith.constant 0 : i32
    %c0_i32_0 = arith.constant 0 : i32
    %c0_i32_1 = arith.constant 0 : i32
    %c0_i32_2 = arith.constant 0 : i32
    return %c0_i32, %c0_i32_0, %c0_i32_1 : i32, i32, i32
  }
  func.func @transform_16(%arg0: i32) -> (i32, i32) {
    %c0_i32 = arith.constant 0 : i32
    %c0_i32_0 = arith.constant 0 : i32
    %c0_i32_1 = arith.constant 0 : i32
    return %c0_i32, %c0_i32_0 : i32, i32
  }
  func.func @transform_17(%arg0: i32) -> (i32, i32) {
    %c0_i32 = arith.constant 0 : i32
    %c0_i32_0 = arith.constant 0 : i32
    %c0_i32_1 = arith.constant 0 : i32
    return %c0_i32, %c0_i32_0 : i32, i32
  }
  func.func @transform_18(%arg0: i32) -> (i32, i32) {
    %c0_i32 = arith.constant 0 : i32
    %c0_i32_0 = arith.constant 0 : i32
    %c0_i32_1 = arith.constant 0 : i32
    return %c0_i32, %c0_i32_0 : i32, i32
  }
  func.func @transform_19(%arg0: i32) -> (i32, i32) {
    %c0_i32 = arith.constant 0 : i32
    %c0_i32_0 = arith.constant 0 : i32
    %c0_i32_1 = arith.constant 0 : i32
    return %c0_i32, %c0_i32_0 : i32, i32
  }
  func.func @transform_20(%arg0: i32) -> (i32, i32) {
    %c0_i32 = arith.constant 0 : i32
    %c0_i32_0 = arith.constant 0 : i32
    %c0_i32_1 = arith.constant 0 : i32
    return %c0_i32, %c0_i32_0 : i32, i32
  }
  func.func @transform_21(%arg0: i32) -> (i32, i32) {
    %c0_i32 = arith.constant 0 : i32
    %c0_i32_0 = arith.constant 0 : i32
    return %arg0, %c0_i32 : i32, i32
  }
}

</mosaic_0001>

<bundles_post_ra>
// kernel: tile.13
= control target key start
LH: loop header
LB: loop body
LE: loop exit
PB: predicated region body
PF: predicated region fallthrough
CT: control target
= control target key end

     0   :  { %s28_s0 = inlined_call_operand.vmem [shape: f32[32], index: 0, kind: input, shape index: {}]   ;;  %s29_s1 = inlined_call_operand.vmem [shape: f32[12,32], index: 1, kind: output, shape index: {}]  }
   0x1   :  { %v4_v0 = vld [vmem:[%s28_s0] ss:$0 sm:$0xff] }
   0x2   :  { %5 = vst [vmem:[%s29_s1] sm:$0xff] %v4_v0  ;;  %8 = vst [vmem:[%s29_s1 + $0x8] sm:$0xff] %v4_v0 }

// kernel: tile.14
= control target key start
LH: loop header
LB: loop body
LE: loop exit
PB: predicated region body
PF: predicated region fallthrough
CT: control target
= control target key end

     0   :  { %s53_s8 = smov 96   ;;  %vm3_vm0 = vcmask 261120   ;;  %s55_s15 = smov 64   ;;  %vm9_vm1 = vcmask 1048320   ;;  %vm15_vm2 = vcmask 785920   ;;  %vm21_vm3 = vcmask 523520   ;;  %s87_s0 = inlined_call_operand.vmem [shape: f32[12,32], index: 0, kind: input, shape index: {}]   ;;  %s88_s1 = inlined_call_operand.vmem [shape: f32[1,384], index: 1, kind: output, shape index: {}]  }
   0x1   :  { %v45_v0 = vld [vmem:[%s87_s0 + $0x3] ss:$4 sm:$0x7]   ;;  %v46_v1 = vld [vmem:[%s87_s0 + $0x2] ss:$4 sm:$0x7]  }
   0x2   :  { %7 = vrot.lane.b32.xlu0 %v45_v0, %s53_s8  ;;  %v47_v2 = vld [vmem:[%s87_s0 + $0x1] ss:$4 sm:$0x7]   ;;  %v2_v3 = vld [vmem:[%s87_s0] ss:$4 sm:$0x7]  }
   0x3   :  { %s54_s0 = smov 32   ;;  %4 = vst.msk [vmem:[#allocation0] ss:$8 sm:$0x7] %vm3_vm0, %v2_v3  }
   0x4   :  { %19 = vrot.lane.b32.xlu1 %v47_v2, %s54_s0 }
   0x6   :  { %13 = vrot.lane.b32.xlu0 %v46_v1, %s55_s15 }
  0x74   :  { %v8_v4 = vpop.permute.xlu0 %7  }
  0x75   :  { %10 = vst.msk [vmem:[#allocation0] ss:$8 sm:$0x7] %vm9_vm1, %v8_v4  }
  0x76   :  { %v20_v5 = vpop.permute.xlu1 %19  }
  0x78   :  { %v14_v6 = vpop.permute.xlu0 %13  }
  0x79   :  { %16 = vst.msk [vmem:[#allocation0] ss:$8 sm:$0x7] %vm15_vm2, %v14_v6  }
  0x7a   :  { %22 = vst.msk [vmem:[#allocation0] ss:$8 sm:$0x7] %vm21_vm3, %v20_v5  }
  0x81   :  { %v27_v7 = vld [vmem:[#allocation0] sm:$0x1]  ;;  %v32_v8 = vld [vmem:[#allocation0 + $0x8] sm:$0x1]  ;;  %v38_v9 = vld [vmem:[#allocation0 + $0x10] sm:$0x1] }
  0x82   :  { %30 = vst [vmem:[%s88_s1] sm:$0x1] %v27_v7  ;;  %48 = vst [vmem:[%s88_s1 + $0x1] sm:$0x1] %v32_v8 }
  0x83   :  { %49 = vst [vmem:[%s88_s1 + $0x2] sm:$0x1] %v38_v9 }

// kernel: muse_discriminator_forward.1
= control target key start
LH: loop header
LB: loop body
LE: loop exit
PB: predicated region body
PF: predicated region fallthrough
CT: control target
= control target key end

     0   :  { %s12332_s26 = smov 0   ;;  %s17372_s0 = inlined_call_operand.vmem [shape: bf16[1792,96], index: 0, kind: input, shape index: {}]   ;;  %s17373_s1 = inlined_call_operand.vmem [shape: bf16[96,384], index: 1, kind: input, shape index: {}]   ;;  %s17374_s2 = inlined_call_operand.vmem [shape: f32[1,384], index: 2, kind: input, shape index: {}]   ;;  %s17375_s3 = inlined_call_operand.vmem [shape: bf16[384,384], index: 3, kind: input, shape index: {}]   ;;  %s17376_s4 = inlined_call_operand.vmem [shape: f32[1,384], index: 4, kind: input, shape index: {}]   ;;  %s17377_s5 = inlined_call_operand.vmem [shape: bf16[384,32], index: 5, kind: input, shape index: {}]   ;;  %s17378_s6 = inlined_call_operand.vmem [shape: f32[1,32], index: 6, kind: input, shape index: {}]   ;;  %s17379_s7 = inlined_call_operand.vmem [shape: bf16[7,32,32], index: 7, kind: input, shape index: {}]   ;;  %s17380_s8 = inlined_call_operand.vmem [shape: f32[1,32], index: 8, kind: input, shape index: {}]   ;;  %s17381_s9 = inlined_call_operand.vmem [shape: bf16[2,32,32], index: 9, kind: input, shape index: {}]   ;;  %s17382_s10 = inlined_call_operand.vmem [shape: f32[1,32], index: 10, kind: input, shape index: {}]   ;;  %s17383_s11 = inlined_call_operand.vmem [shape: bf16[2,32,32], index: 11, kind: input, shape index: {}]   ;;  %s17384_s12 = inlined_call_operand.vmem [shape: f32[1,32], index: 12, kind: input, shape index: {}]   ;;  %s17385_s13 = inlined_call_operand.vmem [shape: bf16[4,32,64], index: 13, kind: input, shape index: {}]   ;;  %s17386_s14 = inlined_call_operand.vmem [shape: f32[1,64], index: 14, kind: input, shape index: {}]   ;;  %s17387_s15 = inlined_call_operand.vmem [shape: bf16[3,64,128], index: 15, kind: input, shape index: {}]   ;;  %s17388_s16 = inlined_call_operand.vmem [shape: f32[1,128], index: 16, kind: input, shape index: {}]   ;;  %s17389_s17 = inlined_call_operand.vmem [shape: bf16[128,64], index: 17, kind: input, shape index: {}]   ;;  %s17390_s18 = inlined_call_operand.vmem [shape: f32[1,64], index: 18, kind: input, shape index: {}]   ;;  %s17391_s19 = inlined_call_operand.vmem [shape: bf16[64,1], index: 19, kind: input, shape index: {}]   ;;  %s17392_s20 = inlined_call_operand.<no memory space> [shape: f32[1,1], index: 20, kind: input, shape index: {}]   ;;  %s17393_s21 = inlined_call_operand.vmem [shape: f32[16,1], index: 21, kind: output, shape index: {}]  }
   0x1   :  { %17572 = sst [smem:[#allocation256_spill]] %s17372_s0  ;;  %v26_v0 = vstv %s17392_s20 }
   0x2   :  { %17573 = sst [smem:[#allocation257_spill]] %s17373_s1  ;;  %27 = vst [vmem:[#allocation2] sm:$0x1] %v26_v0 }
   0x3   :  { %17574 = sst [smem:[#allocation258_spill]] %s17374_s2 }
   0x4   :  { %17575 = sst [smem:[#allocation259_spill]] %s17375_s3 }
   0x5   :  { %17576 = sst [smem:[#allocation260_spill]] %s17376_s4 }
   0x6   :  { %17577 = sst [smem:[#allocation261_spill]] %s17377_s5 }
   0x7 LB: > { %s12338_s27 = sadd.s32 4294967295, %s12214_s26   ;;  %p10450_p0 = scmp.ge.s32.totalorder %s12214_s26, 1  ;;  %s12214_s26 = sphi %s12332_s26, %s33_s26  }
   0x8   : > { %p590_p1 = scmp.lt.s32.totalorder %s12214_s26, 3 }
   0xa   : > { %p591_p2 = pnand %p10450_p0, %p590_p1 }
   0xc   : > { %594 = sbr.rel (%p591_p2) target bundleno = 3284 (0xcd4), region = 104 }
  0x11   : > { %s17578_s20 = sld [smem:[#allocation257_spill]]  ;;  %s649_s29 = smul.u32 112, %s12338_s27  ;;  %v17401_v3 = vmov 0   ;;  %vm1189_vm0 = vcmask 785408   ;;  %vm8219_vm1 = vcmask 261120   ;;  %vm12218_vm2 = vmmov 0  }
  0x12   : > { %1390 = vmatprep.mubr.bf16.mxu0 %v17401_v3  ;;  %s17579_s28 = sld [smem:[#allocation256_spill]]  ;;  %vm10073_vm3 = vcmask 523264   ;;  %p655_p4 = scmp.lt.s32.totalorder %s12338_s27, 1  ;;  %vm10391_vm4 = vcmask 7168  }
  0x13   : > { %p650_p3 = scmp.lt.s32.totalorder %s649_s29, 223  ;;  %s17580_s22 = sld [smem:[#allocation259_spill]] }
  0x14   : > { %s17582_s23 = sld [smem:[#allocation258_spill]]  ;;  %s18559_s27 = smov (!%p655_p4, %s12338_s27), 1 }
  0x15   : > { %s18557_s29 = smov (!%p650_p3, %s649_s29), 223  ;;  %s17824_s5 = sld [smem:[#allocation260_spill]] }
  0x16   : > { %s10451_s1 = sshll.u32 %s18557_s29, 2  ;;  %s17946_s3 = sld [smem:[#allocation261_spill]] }
  0x17   : > { %v11933_v1 = vld [vmem:[%s17578_s20 + $0x7c] ss:$12 sps:$4 sm:$0xff]   ;;  %v11935_v2 = vld [vmem:[%s17578_s20 + $0x80] ss:$12 sps:$4 sm:$0xff]   ;;  %v11936_v4 = vld [vmem:[%s17578_s20 + $0x78] ss:$12 sps:$4 sm:$0xff]  }
  0x18   : > { %1362 = vmatprep.subr.bf16.mxu0 %v11933_v1  ;;  %11254 = vmatprep.subr.bf16.mxu1 %v11935_v2  ;;  %v11937_v5 = vld [vmem:[%s17578_s20 + $0x64] ss:$12 sps:$4 sm:$0xff]   ;;  %v11939_v6 = vld [vmem:[%s17578_s20 + $0x68] ss:$12 sps:$4 sm:$0xff]   ;;  %v11940_v7 = vld [vmem:[%s17578_s20 + $0x60] ss:$12 sps:$4 sm:$0xff]   ;;  %s12380_s0 = scalar_lea.vmem %s17579_s28, %s10451_s1 }
  0x19   : > { %1363 = vmatpush1.bf16.msra.mxu0 %v11936_v4  ;;  %11255 = vmatpush3.bf16.msra.mxu1 %v11935_v2  ;;  %v11941_v8 = vld [vmem:[%s17578_s20 + $0x4c] ss:$12 sps:$4 sm:$0xff]   ;;  %v11943_v9 = vld [vmem:[%s17578_s20 + $0x50] ss:$12 sps:$4 sm:$0xff]   ;;  %v11944_v10 = vld [vmem:[%s17578_s20 + $0x48] ss:$12 sps:$4 sm:$0xff]  }
  0x1a   : > { %1364 = vmatprep.subr.bf16.mxu0 %v11937_v5  ;;  %11256 = vmatprep.subr.bf16.mxu1 %v11939_v6  ;;  %v11945_v11 = vld [vmem:[%s17578_s20 + $0x34] ss:$12 sps:$4 sm:$0xff]   ;;  %v11947_v12 = vld [vmem:[%s17578_s20 + $0x38] ss:$12 sps:$4 sm:$0xff]   ;;  %v11948_v13 = vld [vmem:[%s17578_s20 + $0x30] ss:$12 sps:$4 sm:$0xff]  }
  0x1b   : > { %v11949_v14 = vld [vmem:[%s17578_s20 + $0x1c] ss:$12 sps:$4 sm:$0xff]   ;;  %v11951_v15 = vld [vmem:[%s17578_s20 + $0x20] ss:$12 sps:$4 sm:$0xff]   ;;  %v11952_v17 = vld [vmem:[%s17578_s20 + $0x18] ss:$12 sps:$4 sm:$0xff]  }
  0x1c   : > { %v11957_v16 = vld [vmem:[%s12380_s0] sm:$0xff]   ;;  %v11955_v19 = vld [vmem:[%s17578_s20 + $0x8] ss:$12 sps:$4 sm:$0xff]   ;;  %v11961_v21 = vld [vmem:[%s17580_s22 + $0x22c] ss:$12 sps:$4 sm:$0xff]   ;;  %s10452_s2 = sshll.u32 %s18559_s27, 3 }
  0x1d   : > { %1365 = vmatpush1.bf16.msra.mxu0 %v11940_v7  ;;  %11257 = vmatpush3.bf16.msra.mxu1 %v11939_v6  ;;  %v11953_v18 = vld [vmem:[%s17578_s20 + $0x4] ss:$12 sps:$4 sm:$0xff]   ;;  %v11956_v20 = vld [vmem:[%s17578_s20] ss:$12 sps:$4 sm:$0xff]   ;;  %v11959_v23 = vld [vmem:[%s17580_s22 + $0x228] ss:$12 sps:$4 sm:$0xff]   ;;  %s658_s4 = scalar_lea.vmem %s17393_s21, %s10452_s2 }
  0x1e   : > { %1366 = vmatprep.subr.bf16.mxu0 %v11941_v8  ;;  %11258 = vmatprep.subr.bf16.mxu1 %v11943_v9  ;;  %v11958_v22 = vld [vmem:[%s12380_s0 + $0x8] sm:$0xff]   ;;  %v11962_v24 = vld [vmem:[%s12380_s0 + $0x10] sm:$0xff]   ;;  %v11963_v25 = vld [vmem:[%s12380_s0 + $0x18] sm:$0xff]  }
  0x1f   : > { %11266 = vmatprep.mubr.msk.bf16.mxu1 %vm1189_vm0, %v11957_v16  ;;  %v11964_v26 = vld [vmem:[%s12380_s0 + $0x20] sm:$0xff]   ;;  %v11976_v28 = vld [vmem:[%s17580_s22 + $0x210] ss:$12 sps:$4 sm:$0xff]   ;;  %v11965_v29 = vld [vmem:[%s12380_s0 + $0x28] sm:$0xff]  }
  0x20   : > { %v11978_v27 = vld [vmem:[%s17580_s22 + $0x214] ss:$12 sps:$4 sm:$0xff]   ;;  %v11967_v31 = vld [vmem:[%s12380_s0 + $0x38] sm:$0xff]   ;;  %v12451_v35 = vld [vmem:[%s12380_s0 + $0x48] sm:$0xff]  }
  0x21   : > { %1367 = vmatpush1.bf16.msra.mxu0 %v11944_v10  ;;  %11259 = vmatpush3.bf16.msra.mxu1 %v11943_v9  ;;  %v11966_v30 = vld [vmem:[%s12380_s0 + $0x30] sm:$0xff]   ;;  %v11993_v32 = vld [vmem:[%s17580_s22 + $0x1f8] ss:$12 sps:$4 sm:$0xff]   ;;  %v11995_v33 = vld [vmem:[%s17580_s22 + $0x1fc] ss:$12 sps:$4 sm:$0xff]  }
  0x22   : > { %1368 = vmatprep.subr.bf16.mxu0 %v11945_v11  ;;  %11260 = vmatprep.subr.bf16.mxu1 %v11947_v12  ;;  %v12443_v34 = vld [vmem:[%s12380_s0 + $0x40] sm:$0xff]   ;;  %v12454_v36 = vld [vmem:[%s12380_s0 + $0x50] sm:$0xff]   ;;  %v12010_v38 = vld [vmem:[%s17580_s22 + $0xac] ss:$12 sps:$4 sm:$0xff]  }
  0x23   : > { %v12008_v37 = vld [vmem:[%s17580_s22 + $0xa8] ss:$12 sps:$4 sm:$0xff]   ;;  %v12469_v39 = vld [vmem:[%s12380_s0 + $0x58] sm:$0xff]   ;;  %v12475_v41 = vld [vmem:[%s12380_s0 + $0x60] sm:$0xff]  }
  0x24   : > { %v12013_v40 = vld [vmem:[%s17580_s22 + $0x94] ss:$12 sps:$4 sm:$0xff]   ;;  %v12011_v42 = vld [vmem:[%s17580_s22 + $0x90] ss:$12 sps:$4 sm:$0xff]   ;;  %v12016_v46 = vld [vmem:[%s17580_s22 + $0x78] ss:$12 sps:$4 sm:$0xff]  }
  0x25   : > { %1369 = vmatpush1.bf16.msra.mxu0 %v11948_v13  ;;  %11261 = vmatpush3.bf16.msra.mxu1 %v11947_v12  ;;  %v12018_v43 = vld [vmem:[%s17580_s22 + $0x7c] ss:$12 sps:$4 sm:$0xff]   ;;  %v12019_v44 = vld [vmem:[%s17580_s22 + $0x1e0] ss:$12 sps:$4 sm:$0xff]   ;;  %v12021_v45 = vld [vmem:[%s17580_s22 + $0x1e4] ss:$12 sps:$4 sm:$0xff]  }
  0x26   : > { %1370 = vmatprep.subr.bf16.mxu0 %v11949_v14  ;;  %11262 = vmatprep.subr.bf16.mxu1 %v11951_v15  ;;  %v12499_v47 = vld [vmem:[%s12380_s0 + $0x68] sm:$0xff]   ;;  %v12024_v48 = vld [vmem:[%s17580_s22 + $0x64] ss:$12 sps:$4 sm:$0xff]   ;;  %v12032_v53 = vld [vmem:[%s17580_s22 + $0x34] ss:$12 sps:$4 sm:$0xff]  }
  0x27   : > { %v12505_v49 = vld [vmem:[%s12380_s0 + $0x70] sm:$0xff]   ;;  %v12022_v50 = vld [vmem:[%s17580_s22 + $0x60] ss:$12 sps:$4 sm:$0xff]   ;;  %v12526_v54 = vld [vmem:[%s12380_s0 + $0x78] sm:$0xff]  }
  0x28   : > { %v12029_v51 = vld [vmem:[%s17580_s22 + $0x4c] ss:$12 sps:$4 sm:$0xff]   ;;  %v12027_v52 = vld [vmem:[%s17580_s22 + $0x48] ss:$12 sps:$4 sm:$0xff]   ;;  %v12529_v55 = vld [vmem:[%s12380_s0 + $0x80] sm:$0xff]  }
  0x29   : > { %1371 = vmatpush1.bf16.msra.mxu0 %v11952_v17  ;;  %11263 = vmatpush3.bf16.msra.mxu1 %v11951_v15  ;;  %v12030_v56 = vld [vmem:[%s17580_s22 + $0x30] ss:$12 sps:$4 sm:$0xff]   ;;  %v12035_v58 = vld [vmem:[%s17580_s22 + $0x18] ss:$12 sps:$4 sm:$0xff]   ;;  %v12550_v60 = vld [vmem:[%s12380_s0 + $0x88] sm:$0xff]  }
  0x2a   : > { %1372 = vmatprep.subr.bf16.mxu0 %v11953_v18  ;;  %11264 = vmatprep.subr.bf16.mxu1 %v11955_v19  ;;  %v12037_v57 = vld [vmem:[%s17580_s22 + $0x1c] ss:$12 sps:$4 sm:$0xff]   ;;  %v12040_v59 = vld [vmem:[%s17580_s22 + $0x4] ss:$12 sps:$4 sm:$0xff]   ;;  %v12038_v62 = vld [vmem:[%s17580_s22] ss:$12 sps:$4 sm:$0xff]  }
  0x2b   : > { %v12553_v61 = vld [vmem:[%s12380_s0 + $0x90] sm:$0xff]   ;;  %v12045_v63 = vld [vmem:[%s17580_s22 + $0x16c] ss:$12 sps:$4 sm:$0xff]   ;;  %v12578_v4 = vld [vmem:[%s12380_s0 + $0xa0] sm:$0xff]  }
  0x2c   : > { %v12043_v0 = vld [vmem:[%s17580_s22 + $0x168] ss:$12 sps:$4 sm:$0xff]   ;;  %v12575_v2 = vld [vmem:[%s12380_s0 + $0x98] sm:$0xff]   ;;  %v12056_v9 = vld [vmem:[%s17580_s22 + $0x124] ss:$12 sps:$4 sm:$0xff]  }
  0x2d   : > { %1373 = vmatpush1.bf16.msra.mxu0 %v11956_v20  ;;  %11265 = vmatpush3.bf16.msra.mxu1 %v11955_v19  ;;  %v12048_v1 = vld [vmem:[%s17580_s22 + $0x154] ss:$12 sps:$4 sm:$0xff]   ;;  %v12046_v5 = vld [vmem:[%s17580_s22 + $0x150] ss:$12 sps:$4 sm:$0xff]   ;;  %v12051_v7 = vld [vmem:[%s17580_s22 + $0x138] ss:$12 sps:$4 sm:$0xff]  }
  0x2e   : > { %4362 = vmatprep.subr.bf16.mxu0 %v11961_v21  ;;  %3769 = vmatprep.subr.bf16.mxu1 %v12010_v38  ;;  %v12053_v6 = vld [vmem:[%s17580_s22 + $0x13c] ss:$12 sps:$4 sm:$0xff]   ;;  %v12603_v10 = vld [vmem:[%s12380_s0 + $0xb0] sm:$0xff]   ;;  %v12054_v11 = vld [vmem:[%s17580_s22 + $0x120] ss:$12 sps:$4 sm:$0xff]  }
  0x2f   : > { %v12597_v8 = vld [vmem:[%s12380_s0 + $0xa8] sm:$0xff]   ;;  %v12622_v14 = vld [vmem:[%s12380_s0 + $0xb8] sm:$0xff]   ;;  %v12064_v15 = vld [vmem:[%s17580_s22 + $0xf4] ss:$12 sps:$4 sm:$0xff]  }
  0x30   : > { %10527 = vmatmul.mubr.msk.bf16.vlgmr.msra.gmra.mxu0 %vm1189_vm0, %v11957_v16  ;;  %11267 = vmatmul.mubr.msk.bf16.vlgmr.msra.gmra.mxu1 %vm1189_vm0, %v11958_v22  ;;  %v12061_v12 = vld [vmem:[%s17580_s22 + $0x10c] ss:$12 sps:$4 sm:$0xff]   ;;  %v12059_v13 = vld [vmem:[%s17580_s22 + $0x108] ss:$12 sps:$4 sm:$0xff]   ;;  %v12628_v16 = vld [vmem:[%s12380_s0 + $0xc0] sm:$0xff]  }
  0x31   : > { %4363 = vmatpush1.bf16.msra.mxu0 %v11959_v23  ;;  %1400 = vmatprep.mubr.bf16.mxu0 %v17401_v3  ;;  %v12062_v17 = vld [vmem:[%s17580_s22 + $0xf0] ss:$12 sps:$4 sm:$0xff]   ;;  %v12067_v19 = vld [vmem:[%s17580_s22 + $0xd8] ss:$12 sps:$4 sm:$0xff]   ;;  %v12647_v20 = vld [vmem:[%s12380_s0 + $0xc8] sm:$0xff]  }
  0x32   : > { %11270 = vmatprep.mubr.msk.bf16.mxu1 %vm1189_vm0, %v11962_v24  ;;  %4364 = vmatprep.subr.bf16.mxu0 %v11978_v27  ;;  %v12069_v18 = vld [vmem:[%s17580_s22 + $0xdc] ss:$12 sps:$4 sm:$0xff]   ;;  %v12650_v21 = vld [vmem:[%s12380_s0 + $0xd0] sm:$0xff]   ;;  %v12070_v23 = vld [vmem:[%s17580_s22 + $0xc0] ss:$12 sps:$4 sm:$0xff]  }
  0x33   : > { %3770 = vmatpush1.bf16.msra.mxu1 %v12008_v37  ;;  %v12075_v27 = vld [vmem:[%s17580_s22 + $0x1cc] ss:$12 sps:$4 sm:$0xff]   ;;  %v12004_v37 = vld [vmem:[%s12380_s0 + $0x130] sm:$0xff]  }
  0x34   : > { %3771 = vmatprep.subr.bf16.mxu1 %v12013_v40  ;;  %v12005_v38 = vld [vmem:[%s12380_s0 + $0x138] sm:$0xff]   ;;  %v12007_v40 = vld [vmem:[%s12380_s0 + $0x148] sm:$0xff]  }
  0x35   : > { %4365 = vmatpush1.bf16.msra.mxu0 %v11976_v28  ;;  %v12686_v28 = vld [vmem:[%s12380_s0 + $0xe8] sm:$0xff]  }
  0x36   : > { %4366 = vmatprep.subr.bf16.mxu0 %v11995_v33  ;;  %v12715_v33 = vld [vmem:[%s12380_s0 + $0x110] sm:$0xff]  }
  0x37   : > { %3772 = vmatpush1.bf16.msra.mxu1 %v12011_v42  ;;  %v12078_v42 = vld [vmem:[%s17580_s22 + $0x1b4] ss:$12 sps:$4 sm:$0xff]  }
  0x38   : > { %10528 = vmatmul.mubr.msk.bf16.gmra.mxu0 %vm1189_vm0, %v11958_v22  ;;  %11271 = vmatmul.mubr.msk.bf16.gmra.mxu1 %vm1189_vm0, %v11963_v25  ;;  %v12072_v22 = vld [vmem:[%s17580_s22 + $0xc4] ss:$12 sps:$4 sm:$0xff]  }
  0x39   : > { %1410 = vmatprep.mubr.bf16.mxu0 %v17401_v3  ;;  %11274 = vmatprep.mubr.msk.bf16.mxu1 %vm1189_vm0, %v11964_v26 }
  0x3a   : > { %4367 = vmatpush1.bf16.msra.mxu0 %v11993_v32  ;;  %3773 = vmatprep.subr.bf16.mxu1 %v12018_v43  ;;  %v12712_v32 = vld [vmem:[%s12380_s0 + $0x108] sm:$0xff]   ;;  %v12076_v43 = vld [vmem:[%s17580_s22 + $0x1b0] ss:$12 sps:$4 sm:$0xff]  }
  0x3b   : > { %4368 = vmatprep.subr.bf16.mxu0 %v12021_v45  ;;  %3774 = vmatpush1.bf16.msra.mxu1 %v12016_v46  ;;  %v12025_v45 = vld [vmem:[%s12380_s0 + $0x160] sm:$0xff]   ;;  %v12026_v46 = vld [vmem:[%s12380_s0 + $0x168] sm:$0xff]  }
  0x3c   : > { %3775 = vmatprep.subr.bf16.mxu1 %v12024_v48  ;;  %v798_v48 = vlaneseq }
  0x3e   : > { %4369 = vmatpush1.bf16.msra.mxu0 %v12019_v44  ;;  %v12015_v44 = vld [vmem:[%s12380_s0 + $0x158] sm:$0xff]  }
  0x3f   : > { %3776 = vmatpush1.bf16.msra.mxu1 %v12022_v50  ;;  %4370 = vmatprep.subr.bf16.mxu0 %v12075_v27  ;;  %v12041_v50 = vld [vmem:[%s12380_s0 + $0x180] sm:$0xff]  }
  0x40   : > { %10529 = vmatmul.mubr.msk.bf16.gmra.mxu0 %vm1189_vm0, %v11962_v24  ;;  %11275 = vmatmul.mubr.msk.bf16.gmra.mxu1 %vm1189_vm0, %v11965_v29  ;;  %v12666_v24 = vld [vmem:[%s12380_s0 + $0xd8] sm:$0xff]  }
  0x41   : > { %1420 = vmatprep.mubr.bf16.mxu0 %v17401_v3  ;;  %11278 = vmatprep.mubr.msk.bf16.mxu1 %vm1189_vm0, %v11966_v30 }
  0x42   : > { %3777 = vmatprep.subr.bf16.mxu1 %v12029_v51  ;;  %v12777_v51 = vshrl.u32 %v798_v48, 7 }
  0x43   : > { %3778 = vmatpush1.bf16.msra.mxu1 %v12027_v52 }
  0x44   : > { %3779 = vmatprep.subr.bf16.mxu1 %v12032_v53  ;;  %17581 = vst [vmem:[#allocation3_spill] sm:$0xff] %v12777_v51  ;;  %v17398_v52 = vsub.s32 2, %v12777_v51  ;;  %v796_v53 = vld [vmem:[%s17582_s23] sm:$0x7]  ;;  %v17400_v27 = vsub.s32 0, %v12777_v51 }
  0x47   : > { %3780 = vmatpush1.bf16.msra.mxu1 %v12030_v56  ;;  %v12049_v56 = vld [vmem:[%s12380_s0 + $0x190] sm:$0xff]  }
  0x48   : > { %10530 = vmatmul.mubr.msk.bf16.gmra.mxu0 %vm1189_vm0, %v11963_v25  ;;  %11279 = vmatmul.mubr.msk.bf16.gmra.mxu1 %vm1189_vm0, %v11967_v31  ;;  %v12669_v25 = vld [vmem:[%s12380_s0 + $0xe0] sm:$0xff]  }
  0x49   : > { %1430 = vmatprep.mubr.bf16.mxu0 %v17401_v3  ;;  %11282 = vmatprep.mubr.msk.bf16.mxu1 %vm1189_vm0, %v12443_v34 }
  0x4a   : > { %3781 = vmatprep.subr.bf16.mxu1 %v12037_v57 }
  0x4b   : > { %3782 = vmatpush1.bf16.msra.mxu1 %v12035_v58 }
  0x4c   : > { %3783 = vmatprep.subr.bf16.mxu1 %v12040_v59 }
  0x4f   : > { %3784 = vmatpush1.bf16.msra.mxu1 %v12038_v62 }
  0x50   : > { %10531 = vmatmul.mubr.msk.bf16.gmra.mxu0 %vm1189_vm0, %v11964_v26  ;;  %11283 = vmatmul.mubr.msk.bf16.gmra.mxu1 %vm1189_vm0, %v12451_v35  ;;  %v12073_v26 = vld [vmem:[%s17580_s22 + $0x1c8] ss:$12 sps:$4 sm:$0xff]  }
  0x51   : > { %1440 = vmatprep.mubr.bf16.mxu0 %v17401_v3  ;;  %11286 = vmatprep.mubr.msk.bf16.mxu1 %vm1189_vm0, %v12454_v36 }
  0x52   : > { %3785 = vmatprep.subr.bf16.mxu1 %v12045_v63  ;;  %4371 = vmatpush1.bf16.msra.mxu0 %v12073_v26 }
  0x53   : > { %3786 = vmatpush2.bf16.msra.mxu1 %v12043_v0  ;;  %4372 = vmatprep.subr.bf16.mxu0 %v12078_v42 }
  0x54   : > { %3787 = vmatprep.subr.bf16.mxu1 %v12048_v1 }
  0x56   : > { %4373 = vmatpush1.bf16.msra.mxu0 %v12076_v43  ;;  %v12065_v43 = vld [vmem:[%s12380_s0 + $0x1b0] sm:$0xff]  }
  0x57   : > { %3788 = vmatpush2.bf16.msra.mxu1 %v12046_v5 }
  0x58   : > { %10532 = vmatmul.mubr.msk.bf16.gmra.mxu0 %vm1189_vm0, %v11965_v29  ;;  %11287 = vmatmul.mubr.msk.bf16.gmra.mxu1 %vm1189_vm0, %v12469_v39  ;;  %v12689_v29 = vld [vmem:[%s12380_s0 + $0xf0] sm:$0xff]  }
  0x59   : > { %1450 = vmatprep.mubr.bf16.mxu0 %v17401_v3  ;;  %11290 = vmatprep.mubr.msk.bf16.mxu1 %vm1189_vm0, %v12475_v41 }
  0x5a   : > { %3789 = vmatprep.subr.bf16.mxu1 %v12053_v6  ;;  %v12057_v6 = vld [vmem:[%s12380_s0 + $0x1a0] sm:$0xff]  }
  0x5b   : > { %3790 = vmatpush2.bf16.msra.mxu1 %v12051_v7 }
  0x5c   : > { %3791 = vmatprep.subr.bf16.mxu1 %v12056_v9 }
  0x5f   : > { %3792 = vmatpush2.bf16.msra.mxu1 %v12054_v11 }
  0x60   : > { %10533 = vmatmul.mubr.msk.bf16.gmra.mxu0 %vm1189_vm0, %v11966_v30  ;;  %11291 = vmatmul.mubr.msk.bf16.gmra.mxu1 %vm1189_vm0, %v12499_v47  ;;  %v12699_v30 = vld [vmem:[%s12380_s0 + $0xf8] sm:$0xff]  }
  0x61   : > { %1460 = vmatprep.mubr.bf16.mxu0 %v17401_v3  ;;  %11294 = vmatprep.mubr.msk.bf16.mxu1 %vm1189_vm0, %v12505_v49 }
  0x62   : > { %3793 = vmatprep.subr.bf16.mxu1 %v12061_v12 }
  0x63   : > { %3794 = vmatpush2.bf16.msra.mxu1 %v12059_v13 }
  0x64   : > { %3795 = vmatprep.subr.bf16.mxu1 %v12064_v15 }
  0x67   : > { %3796 = vmatpush2.bf16.msra.mxu1 %v12062_v17 }
  0x68   : > { %10534 = vmatmul.mubr.msk.bf16.gmra.mxu0 %vm1189_vm0, %v11967_v31  ;;  %11295 = vmatmul.mubr.msk.bf16.gmra.mxu1 %vm1189_vm0, %v12526_v54  ;;  %v12702_v31 = vld [vmem:[%s12380_s0 + $0x100] sm:$0xff]  }
  0x69   : > { %1470 = vmatprep.mubr.bf16.mxu0 %v17401_v3  ;;  %11298 = vmatprep.mubr.msk.bf16.mxu1 %vm1189_vm0, %v12529_v55 }
  0x6a   : > { %3797 = vmatprep.subr.bf16.mxu1 %v12069_v18 }
  0x6b   : > { %3798 = vmatpush2.bf16.msra.mxu1 %v12067_v19 }
  0x6c   : > { %3799 = vmatprep.subr.bf16.mxu1 %v12072_v22 }
  0x6f   : > { %3800 = vmatpush2.bf16.msra.mxu1 %v12070_v23 }
  0x70   : > { %10535 = vmatmul.mubr.msk.bf16.gmra.mxu0 %vm1189_vm0, %v12443_v34  ;;  %11299 = vmatmul.mubr.msk.bf16.gmra.mxu1 %vm1189_vm0, %v12550_v60  ;;  %v12725_v34 = vld [vmem:[%s12380_s0 + $0x118] sm:$0xff]  }
  0x71   : > { %1480 = vmatprep.mubr.bf16.mxu0 %v17401_v3  ;;  %11302 = vmatprep.mubr.msk.bf16.mxu1 %vm1189_vm0, %v12553_v61 }
  0x72   : > { %4955 = vmatprep.subr.bf16.mxu1 %v17401_v3 }
  0x78   : > { %10536 = vmatmul.mubr.msk.bf16.gmra.mxu0 %vm1189_vm0, %v12451_v35  ;;  %11303 = vmatmul.mubr.msk.bf16.gmra.mxu1 %vm1189_vm0, %v12575_v2  ;;  %v12002_v35 = vld [vmem:[%s12380_s0 + $0x120] sm:$0xff]  }
  0x79   : > { %1490 = vmatprep.mubr.bf16.mxu0 %v17401_v3  ;;  %11306 = vmatprep.mubr.msk.bf16.mxu1 %vm1189_vm0, %v12578_v4 }
  0x80   : > { %10537 = vmatmul.mubr.msk.bf16.gmra.mxu0 %vm1189_vm0, %v12454_v36  ;;  %11307 = vmatmul.mubr.msk.bf16.gmra.mxu1 %vm1189_vm0, %v12597_v8  ;;  %v12003_v36 = vld [vmem:[%s12380_s0 + $0x128] sm:$0xff]  }
  0x81   : > { %1500 = vmatprep.mubr.bf16.mxu0 %v17401_v3  ;;  %11310 = vmatprep.mubr.msk.bf16.mxu1 %vm1189_vm0, %v12603_v10 }
  0x88   : > { %10538 = vmatmul.mubr.msk.bf16.gmra.mxu0 %vm1189_vm0, %v12469_v39  ;;  %11311 = vmatmul.mubr.msk.bf16.gmra.mxu1 %vm1189_vm0, %v12622_v14  ;;  %v12006_v39 = vld [vmem:[%s12380_s0 + $0x140] sm:$0xff]  }
  0x89   : > { %1510 = vmatprep.mubr.bf16.mxu0 %v17401_v3  ;;  %11314 = vmatprep.mubr.msk.bf16.mxu1 %vm1189_vm0, %v12628_v16 }
  0x90   : > { %10539 = vmatmul.mubr.msk.bf16.gmra.mxu0 %vm1189_vm0, %v12475_v41  ;;  %11315 = vmatmul.mubr.msk.bf16.gmra.mxu1 %vm1189_vm0, %v12647_v20  ;;  %v12014_v41 = vld [vmem:[%s12380_s0 + $0x150] sm:$0xff]  }
  0x91   : > { %1520 = vmatprep.mubr.bf16.mxu0 %v17401_v3  ;;  %11318 = vmatprep.mubr.msk.bf16.mxu1 %vm1189_vm0, %v12650_v21 }
  0x98   : > { %10540 = vmatmul.mubr.msk.bf16.gmra.mxu0 %vm1189_vm0, %v12499_v47  ;;  %11319 = vmatmul.mubr.msk.bf16.gmra.mxu1 %vm1189_vm0, %v12666_v24  ;;  %v12033_v47 = vld [vmem:[%s12380_s0 + $0x170] sm:$0xff]  }
  0x99   : > { %1530 = vmatprep.mubr.bf16.mxu0 %v17401_v3  ;;  %11322 = vmatprep.mubr.msk.bf16.mxu1 %vm1189_vm0, %v12669_v25 }
  0xa0   : > { %10541 = vmatmul.mubr.msk.bf16.gmra.mxu0 %vm1189_vm0, %v12505_v49  ;;  %11323 = vmatmul.mubr.msk.bf16.gmra.mxu1 %vm1189_vm0, %v12686_v28  ;;  %v12034_v49 = vld [vmem:[%s12380_s0 + $0x178] sm:$0xff]  }
  0xa1   : > { %1540 = vmatprep.mubr.bf16.mxu0 %v17401_v3  ;;  %11326 = vmatprep.mubr.msk.bf16.mxu1 %vm1189_vm0, %v12689_v29 }
  0xa8   : > { %10542 = vmatmul.mubr.msk.bf16.gmra.mxu0 %vm1189_vm0, %v12526_v54  ;;  %11327 = vmatmul.mubr.msk.bf16.gmra.mxu1 %vm1189_vm0, %v12699_v30  ;;  %v12042_v54 = vld [vmem:[%s12380_s0 + $0x188] sm:$0xff]  }
  0xa9   : > { %1550 = vmatprep.mubr.bf16.mxu0 %v17401_v3  ;;  %11330 = vmatprep.mubr.msk.bf16.mxu1 %vm1189_vm0, %v12702_v31 }
  0xb0   : > { %10543 = vmatmul.mubr.msk.bf16.gmra.mxu0 %vm1189_vm0, %v12529_v55  ;;  %11331 = vmatmul.mubr.msk.bf16.gmra.mxu1 %vm1189_vm0, %v12712_v32  ;;  %v12791_v55 = vrot.slane %v796_v53, %v17398_v52 }
  0xb1   : > { %1560 = vmatprep.mubr.bf16.mxu0 %v17401_v3  ;;  %11334 = vmatprep.mubr.msk.bf16.mxu1 %vm1189_vm0, %v12715_v33 }
  0xb8   : > { %10544 = vmatmul.mubr.msk.bf16.gmra.mxu0 %vm1189_vm0, %v12550_v60  ;;  %11335 = vmatmul.mubr.msk.bf16.gmra.mxu1 %vm1189_vm0, %v12725_v34 }
  0xb9   : > { %1570 = vmatprep.mubr.bf16.mxu0 %v17401_v3  ;;  %11338 = vmatprep.mubr.msk.bf16.mxu1 %vm1189_vm0, %v12002_v35 }
  0xc0   : > { %10545 = vmatmul.mubr.msk.bf16.gmra.mxu0 %vm1189_vm0, %v12553_v61  ;;  %11339 = vmatmul.mubr.msk.bf16.gmra.mxu1 %vm1189_vm0, %v12003_v36 }
  0xc1   : > { %1580 = vmatprep.mubr.bf16.mxu0 %v17401_v3  ;;  %11342 = vmatprep.mubr.msk.bf16.mxu1 %vm1189_vm0, %v12004_v37 }
  0xc8   : > { %10546 = vmatmul.mubr.msk.bf16.gmra.mxu0 %vm1189_vm0, %v12575_v2  ;;  %11343 = vmatmul.mubr.msk.bf16.gmra.mxu1 %vm1189_vm0, %v12005_v38  ;;  %v12050_v2 = vld [vmem:[%s12380_s0 + $0x198] sm:$0xff]  }
  0xc9   : > { %1590 = vmatprep.mubr.bf16.mxu0 %v17401_v3  ;;  %11346 = vmatprep.mubr.msk.bf16.mxu1 %vm1189_vm0, %v12006_v39 }
  0xd0   : > { %10547 = vmatmul.mubr.msk.bf16.gmra.mxu0 %vm1189_vm0, %v12578_v4  ;;  %11347 = vmatmul.mubr.msk.bf16.gmra.mxu1 %vm1189_vm0, %v12007_v40  ;;  %v17399_v4 = vsub.s32 1, %v12777_v51  ;;  %v12058_v40 = vld [vmem:[%s12380_s0 + $0x1a8] sm:$0xff]  }
  0xd1   : > { %1600 = vmatprep.mubr.bf16.mxu0 %v17401_v3  ;;  %11350 = vmatprep.mubr.msk.bf16.mxu1 %vm1189_vm0, %v12014_v41 }
  0xd2   : > { %v12815_v15 = vrot.slane %v796_v53, %v17399_v4 }
  0xd8   : > { %10548 = vmatmul.mubr.msk.bf16.gmra.mxu0 %vm1189_vm0, %v12597_v8  ;;  %11351 = vmatmul.mubr.msk.bf16.gmra.mxu1 %vm1189_vm0, %v12015_v44 }
  0xd9   : > { %1610 = vmatprep.mubr.bf16.mxu0 %v17401_v3  ;;  %11354 = vmatprep.mubr.msk.bf16.mxu1 %vm1189_vm0, %v12025_v45 }
  0xe0   : > { %10549 = vmatmul.mubr.msk.bf16.gmra.mxu0 %vm1189_vm0, %v12603_v10  ;;  %11355 = vmatmul.mubr.msk.bf16.gmra.mxu1 %vm1189_vm0, %v12026_v46 }
  0xe1   : > { %1620 = vmatprep.mubr.bf16.mxu0 %v17401_v3  ;;  %11358 = vmatprep.mubr.msk.bf16.mxu1 %vm1189_vm0, %v12033_v47 }
  0xe8   : > { %10550 = vmatmul.mubr.msk.bf16.gmra.mxu0 %vm1189_vm0, %v12622_v14  ;;  %11359 = vmatmul.mubr.msk.bf16.gmra.mxu1 %vm1189_vm0, %v12034_v49 }
  0xe9   : > { %1630 = vmatprep.mubr.bf16.mxu0 %v17401_v3  ;;  %11362 = vmatprep.mubr.msk.bf16.mxu1 %vm1189_vm0, %v12041_v50  ;;  %v12836_v50 = vrot.slane %v796_v53, %v17400_v27 }
  0xf0   : > { %v12794_v57 = vpop.f32.mrf.mxu0  ;;  %10551 = vmatmul.mubr.msk.bf16.gmra.mxu0 %vm1189_vm0, %v12628_v16  ;;  %v11268_v58 = vpop.f32.mrf.mxu1  ;;  %11363 = vmatmul.mubr.msk.bf16.gmra.mxu1 %vm1189_vm0, %v12042_v54 }
  0xf1   : > { %v1994_v59 = vadd.f32 %v11268_v58, %v12791_v55  ;;  %1640 = vmatprep.mubr.bf16.mxu0 %v17401_v3  ;;  %11366 = vmatprep.mubr.msk.bf16.mxu1 %vm1189_vm0, %v12049_v56 }
  0xf2   : > { %v1394_v60 = vpop.f32.mrf.mxu0  ;;  %v1985_v61 = vpop.f32.mrf.mxu1 }
  0xf3   : > { %v1986_v62 = vadd.f32 %v1985_v61, %v12791_v55  ;;  %v2440_v63 = vmul.f32 0.3, %v1994_v59  ;;  %v1395_v41 = vadd.f32 %v1394_v60, %v12815_v15 }
  0xf4   : > { %v1396_v0 = vpop.f32.mrf.mxu0  ;;  %v11269_v1 = vpop.f32.mrf.mxu1 }
  0xf5   : > { %v2434_v5 = vmul.f32 0.3, %v1986_v62  ;;  %v1997_v7 = vadd.f32 %v11269_v1, %v12791_v55  ;;  %v2776_v11 = vmax.f32 %v1994_v59, %v2440_v63  ;;  %v2433_v60 = vmul.f32 0.3, %v1395_v41 }
  0xf6   : > { %v1398_v8 = vpop.f32.mrf.mxu0  ;;  %v1988_v9 = vpop.f32.mrf.mxu1  ;;  %v12846_v53 = vadd.f32 %v1396_v0, %v12836_v50 }
  0xf7   : > { %v1989_v10 = vadd.f32 %v1988_v9, %v12791_v55  ;;  %v2443_v12 = vmul.f32 0.3, %v1997_v7  ;;  %v2770_v16 = vmax.f32 %v1986_v62, %v2434_v5  ;;  %v1399_v23 = vadd.f32 %v1398_v8, %v12815_v15 }
  0xf8   : > { %v12808_v13 = vpop.f32.mrf.mxu0  ;;  %10552 = vmatmul.mubr.msk.bf16.gmra.mxu0 %vm1189_vm0, %v12647_v20  ;;  %v11272_v14 = vpop.f32.mrf.mxu1  ;;  %11367 = vmatmul.mubr.msk.bf16.gmra.mxu1 %vm1189_vm0, %v12050_v2  ;;  %v1393_v8 = vadd.f32 %v12794_v57, %v12836_v50 }
  0xf9   : > { %v2437_v17 = vmul.f32 0.3, %v1989_v10  ;;  %v2010_v18 = vadd.f32 %v11272_v14, %v12791_v55  ;;  %1650 = vmatprep.mubr.bf16.mxu0 %v17401_v3  ;;  %11370 = vmatprep.mubr.msk.bf16.mxu1 %vm1189_vm0, %v12057_v6  ;;  %v2779_v19 = vmax.f32 %v1997_v7, %v2443_v12  ;;  %v2436_v48 = vmul.f32 0.3, %v1399_v23  ;;  %v12066_v14 = vld [vmem:[%s12380_s0 + $0x1b8] sm:$0xff]  }
  0xfa   : > { %v1404_v22 = vpop.f32.mrf.mxu0  ;;  %v2001_v20 = vpop.f32.mrf.mxu1 }
  0xfb   : > { %v2773_v26 = vmax.f32 %v1989_v10, %v2437_v17  ;;  %v12822_v35 = vpack.c.bf16 %v2779_v19, %v2776_v11  ;;  %v2452_v36 = vmul.f32 0.3, %v2010_v18  ;;  %v2002_v37 = vadd.f32 %v2001_v20, %v12791_v55 }
  0xfc   : > { %v12825_v38 = vpop.f32.mrf.mxu0  ;;  %v11273_v39 = vpop.f32.mrf.mxu1  ;;  %v2772_v6 = vmax.f32 %v1399_v23, %v2436_v48  ;;  %v1405_v17 = vadd.f32 %v1404_v22, %v12815_v15  ;;  %v2435_v20 = vmul.f32 0.3, %v12846_v53  ;;  %v12079_v22 = vld [vmem:[%s17580_s22 + $0x198] ss:$12 sps:$4 sm:$0xff]  }
  0xfd   : > { %17583 = vst [vmem:[#allocation4_spill] sm:$0xff] %v12822_v35  ;;  %v12829_v42 = vpack.c.bf16 %v2773_v26, %v2770_v16  ;;  %v2446_v44 = vmul.f32 0.3, %v2002_v37  ;;  %v2013_v45 = vadd.f32 %v11273_v39, %v12791_v55  ;;  %v2788_v54 = vmax.f32 %v2010_v18, %v2452_v36 }
  0xfe   : > { %v1408_v46 = vpop.f32.mrf.mxu0  ;;  %v2004_v47 = vpop.f32.mrf.mxu1  ;;  %v2769_v16 = vmax.f32 %v1395_v41, %v2433_v60  ;;  %v12081_v41 = vld [vmem:[%s17580_s22 + $0x19c] ss:$12 sps:$4 sm:$0xff]   ;;  %v2439_v48 = vmul.f32 0.3, %v1405_v17 }
  0xff   : > { %17584 = vst [vmem:[#allocation5_spill] sm:$0xff] %v12829_v42  ;;  %v2005_v49 = vadd.f32 %v2004_v47, %v12791_v55  ;;  %v2455_v56 = vmul.f32 0.3, %v2013_v45  ;;  %v2782_v61 = vmax.f32 %v2002_v37, %v2446_v44  ;;  %v12849_v1 = vadd.f32 %v1408_v46, %v12815_v15  ;;  %4374 = vmatprep.subr.bf16.mxu0 %v12081_v41 }
 0x100   : > { %v12838_v58 = vpop.f32.mrf.mxu0  ;;  %10553 = vmatmul.mubr.msk.bf16.gmra.mxu0 %vm1189_vm0, %v12650_v21  ;;  %v11276_v59 = vpop.f32.mrf.mxu1  ;;  %11371 = vmatmul.mubr.msk.bf16.gmra.mxu1 %vm1189_vm0, %v12058_v40  ;;  %v2432_v44 = vmul.f32 0.3, %v1393_v8 }
 0x101   : > { %v2449_v62 = vmul.f32 0.3, %v2005_v49  ;;  %1660 = vmatprep.mubr.bf16.mxu0 %v17401_v3  ;;  %11374 = vmatprep.mubr.msk.bf16.mxu1 %vm1189_vm0, %v12065_v43  ;;  %v2791_v63 = vmax.f32 %v2013_v45, %v2455_v56  ;;  %v2026_v21 = vadd.f32 %v11276_v59, %v12791_v55  ;;  %v2442_v57 = vmul.f32 0.3, %v12849_v1 }
 0x102   : > { %v1414_v2 = vpop.f32.mrf.mxu0  ;;  %v2017_v5 = vpop.f32.mrf.mxu1  ;;  %v12867_v43 = vpack.c.bf16 %v2772_v6, %v2769_v16  ;;  %v12877_v45 = vadd.f32 %v12808_v13, %v12836_v50  ;;  %v2771_v59 = vmax.f32 %v12846_v53, %v2435_v20  ;;  %v1407_v13 = vadd.f32 %v12825_v38, %v12836_v50  ;;  %4375 = vmatpush1.bf16.msra.mxu0 %v12079_v22 }
 0x103   : > { %v2785_v7 = vmax.f32 %v2005_v49, %v2449_v62  ;;  %v12854_v9 = vpack.c.bf16 %v2791_v63, %v2788_v54  ;;  %v2464_v10 = vmul.f32 0.3, %v2026_v21  ;;  %v2018_v11 = vadd.f32 %v2017_v5, %v12791_v55 }
 0x104   : > { %v12857_v0 = vpop.f32.mrf.mxu0  ;;  %v11277_v12 = vpop.f32.mrf.mxu1  ;;  %17587 = vst [vmem:[#allocation8_spill] sm:$0xff] %v12867_v43  ;;  %v2778_v63 = vmax.f32 %v12849_v1, %v2442_v57  ;;  %v2768_v6 = vmax.f32 %v1393_v8, %v2432_v44  ;;  %v1415_v53 = vadd.f32 %v1414_v2, %v12815_v15  ;;  %v2441_v20 = vmul.f32 0.3, %v1407_v13 }
 0x105   : > { %17585 = vst [vmem:[#allocation6_spill] sm:$0xff] %v12854_v9  ;;  %v12861_v18 = vpack.c.bf16 %v2785_v7, %v2782_v61  ;;  %v2029_v19 = vadd.f32 %v11277_v12, %v12791_v55  ;;  %v2458_v23 = vmul.f32 0.3, %v2018_v11  ;;  %v2800_v37 = vmax.f32 %v2026_v21, %v2464_v10 }
 0x106   : > { %v1418_v26 = vpop.f32.mrf.mxu0  ;;  %v2020_v36 = vpop.f32.mrf.mxu1  ;;  %v2438_v12 = vmul.f32 0.3, %v12877_v45 }
 0x107   : > { %17586 = vst [vmem:[#allocation7_spill] sm:$0xff] %v12861_v18  ;;  %v2467_v39 = vmul.f32 0.3, %v2029_v19  ;;  %v2021_v40 = vadd.f32 %v2020_v36, %v12791_v55  ;;  %v2794_v49 = vmax.f32 %v2018_v11, %v2458_v23  ;;  %v12890_v60 = vadd.f32 %v1418_v26, %v12815_v15 }
 0x108   : > { %v12879_v46 = vpop.f32.mrf.mxu0  ;;  %10554 = vmatmul.mubr.msk.bf16.gmra.mxu0 %vm1189_vm0, %v12666_v24  ;;  %v11280_v47 = vpop.f32.mrf.mxu1  ;;  %11375 = vmatmul.mubr.msk.bf16.gmra.mxu1 %vm1189_vm0, %v12066_v14  ;;  %v2775_v14 = vmax.f32 %v1405_v17, %v2439_v48  ;;  %v2777_v48 = vmax.f32 %v1407_v13, %v2441_v20 }
 0x109   : > { %v2803_v54 = vmax.f32 %v2029_v19, %v2467_v39  ;;  %v2461_v56 = vmul.f32 0.3, %v2021_v40  ;;  %3801 = vmatprep.mubr.bf16.mxu1 %v12867_v43  ;;  %1670 = vmatprep.mubr.bf16.mxu0 %v17401_v3  ;;  %v2042_v24 = vadd.f32 %v11280_v47, %v12791_v55  ;;  %v12904_v19 = vpack.c.bf16 %v2771_v59, %v2768_v6 }
 0x10a   : > { %v1424_v61 = vpop.f32.mrf.mxu0  ;;  %v2033_v62 = vpop.f32.mrf.mxu1  ;;  %v2448_v8 = vmul.f32 0.3, %v12890_v60  ;;  %v12908_v39 = vpack.c.bf16 %v2778_v63, %v2775_v14  ;;  %v1413_v6 = vadd.f32 %v12838_v58, %v12836_v50 }
 0x10b   : > { %v12894_v21 = vpack.c.bf16 %v2803_v54, %v2800_v37  ;;  %v2797_v5 = vmax.f32 %v2021_v40, %v2461_v56  ;;  %v2476_v7 = vmul.f32 0.3, %v2042_v24  ;;  %v2034_v38 = vadd.f32 %v2033_v62, %v12791_v55  ;;  %17590 = vst [vmem:[#allocation11_spill] sm:$0xff] %v12904_v19 }
 0x10c   : > { %v12898_v10 = vpop.f32.mrf.mxu0  ;;  %v11281_v11 = vpop.f32.mrf.mxu1  ;;  %17591 = vst [vmem:[#allocation12_spill] sm:$0xff] %v12908_v39  ;;  %v2445_v40 = vmul.f32 0.3, %v1415_v53  ;;  %v2784_v54 = vmax.f32 %v12890_v60, %v2448_v8 }
 0x10d   : > { %17588 = vst [vmem:[#allocation9_spill] sm:$0xff] %v12894_v21  ;;  %v12901_v16 = vpack.c.bf16 %v2797_v5, %v2794_v49  ;;  %v2045_v1 = vadd.f32 %v11281_v11, %v12791_v55  ;;  %v2470_v57 = vmul.f32 0.3, %v2034_v38  ;;  %v2812_v26 = vmax.f32 %v2042_v24, %v2476_v7 }
 0x10e   : > { %v1428_v2 = vpop.f32.mrf.mxu0  ;;  %v2036_v23 = vpop.f32.mrf.mxu1  ;;  %v1417_v49 = vadd.f32 %v12857_v0, %v12836_v50  ;;  %v2774_v24 = vmax.f32 %v12877_v45, %v2438_v12  ;;  %v2781_v13 = vmax.f32 %v1415_v53, %v2445_v40  ;;  %v1425_v11 = vadd.f32 %v1424_v61, %v12815_v15 }
 0x10f   : > { %17589 = vst [vmem:[#allocation10_spill] sm:$0xff] %v12901_v16  ;;  %v2479_v36 = vmul.f32 0.3, %v2045_v1  ;;  %v2037_v37 = vadd.f32 %v2036_v23, %v12791_v55  ;;  %v2806_v41 = vmax.f32 %v2034_v38, %v2470_v57  ;;  %v1429_v63 = vadd.f32 %v1428_v2, %v12815_v15 }
 0x110   : > { %v12910_v17 = vpop.f32.mrf.mxu0  ;;  %10555 = vmatmul.mubr.msk.bf16.gmra.mxu0 %vm1189_vm0, %v12669_v25  ;;  %v11284_v22 = vpop.f32.mrf.mxu1  ;;  %3802 = vmatmul.mubr.bf16.vlgmr.msra.gmra.mxu1 %v12904_v19  ;;  %v12934_v12 = vpack.c.bf16 %v2777_v48, %v2774_v24  ;;  %v12936_v58 = vpack.c.bf16 %v2784_v54, %v2781_v13  ;;  %v12941_v61 = vadd.f32 %v12879_v46, %v12836_v50 }
 0x111   : > { %v2815_v44 = vmax.f32 %v2045_v1, %v2479_v36  ;;  %v2473_v47 = vmul.f32 0.3, %v2037_v37  ;;  %3811 = vmatprep.mubr.bf16.mxu1 %v12908_v39  ;;  %1680 = vmatprep.mubr.bf16.mxu0 %v17401_v3  ;;  %v2058_v56 = vadd.f32 %v11284_v22, %v12791_v55  ;;  %v2447_v1 = vmul.f32 0.3, %v1417_v49 }
 0x112   : > { %v1434_v59 = vpop.f32.mrf.mxu0  ;;  %v2049_v25 = vpop.f32.mrf.mxu1  ;;  %17594 = vst [vmem:[#allocation15_spill] sm:$0xff] %v12934_v12  ;;  %17595 = vst [vmem:[#allocation16_spill] sm:$0xff] %v12936_v58  ;;  %v2454_v53 = vmul.f32 0.3, %v1429_v63  ;;  %v2444_v36 = vmul.f32 0.3, %v1413_v6  ;;  %v1427_v46 = vadd.f32 %v12898_v10, %v12836_v50 }
 0x113   : > { %v12922_v62 = vpack.c.bf16 %v2815_v44, %v2812_v26  ;;  %v2809_v5 = vmax.f32 %v2037_v37, %v2473_v47  ;;  %v2488_v7 = vmul.f32 0.3, %v2058_v56  ;;  %v2050_v0 = vadd.f32 %v2049_v25, %v12791_v55 }
 0x114   : > { %v12928_v38 = vpop.f32.mrf.mxu0  ;;  %v11285_v60 = vpop.f32.mrf.mxu1  ;;  %v2451_v22 = vmul.f32 0.3, %v1425_v11  ;;  %v2783_v48 = vmax.f32 %v1417_v49, %v2447_v1  ;;  %v2790_v24 = vmax.f32 %v1429_v63, %v2454_v53  ;;  %v2450_v10 = vmul.f32 0.3, %v12941_v61 }
 0x115   : > { %17592 = vst [vmem:[#allocation13_spill] sm:$0xff] %v12922_v62  ;;  %v12931_v14 = vpack.c.bf16 %v2809_v5, %v2806_v41  ;;  %v2061_v45 = vadd.f32 %v11285_v60, %v12791_v55  ;;  %v2482_v20 = vmul.f32 0.3, %v2050_v0  ;;  %v2824_v2 = vmax.f32 %v2058_v56, %v2488_v7 }
 0x116   : > { %v1438_v8 = vpop.f32.mrf.mxu0  ;;  %v2052_v57 = vpop.f32.mrf.mxu1  ;;  %v2780_v7 = vmax.f32 %v1413_v6, %v2444_v36  ;;  %v2453_v53 = vmul.f32 0.3, %v1427_v46 }
 0x117   : > { %17593 = vst [vmem:[#allocation14_spill] sm:$0xff] %v12931_v14  ;;  %v2491_v23 = vmul.f32 0.3, %v2061_v45  ;;  %v2053_v26 = vadd.f32 %v2052_v57, %v12791_v55  ;;  %v2818_v41 = vmax.f32 %v2050_v0, %v2482_v20  ;;  %v1439_v54 = vadd.f32 %v1438_v8, %v12815_v15 }
 0x118   : > { %v12943_v37 = vpop.f32.mrf.mxu0  ;;  %10556 = vmatmul.mubr.msk.bf16.gmra.mxu0 %vm1189_vm0, %v12686_v28  ;;  %v11288_v40 = vpop.f32.mrf.mxu1  ;;  %3812 = vmatmul.mubr.bf16.gmra.mxu1 %v12934_v12  ;;  %v1435_v0 = vadd.f32 %v1434_v59, %v12815_v15  ;;  %v2787_v20 = vmax.f32 %v1425_v11, %v2451_v22  ;;  %v12964_v63 = vpack.c.bf16 %v2783_v48, %v2780_v7 }
 0x119   : > { %v2827_v44 = vmax.f32 %v2061_v45, %v2491_v23  ;;  %v2485_v47 = vmul.f32 0.3, %v2053_v26  ;;  %3821 = vmatprep.mubr.bf16.mxu1 %v12936_v58  ;;  %1690 = vmatprep.mubr.bf16.mxu0 %v17401_v3  ;;  %v2074_v56 = vadd.f32 %v11288_v40, %v12791_v55 }
 0x11a   : > { %v1444_v28 = vpop.f32.mrf.mxu0  ;;  %v2065_v25 = vpop.f32.mrf.mxu1  ;;  %17598 = vst [vmem:[#allocation19_spill] sm:$0xff] %v12964_v63 }
 0x11b   : > { %v12954_v5 = vpack.c.bf16 %v2827_v44, %v2824_v2  ;;  %v2821_v13 = vmax.f32 %v2053_v26, %v2485_v47  ;;  %v2500_v60 = vmul.f32 0.3, %v2074_v56  ;;  %v2066_v45 = vadd.f32 %v2065_v25, %v12791_v55 }
 0x11c   : > { %v12958_v49 = vpop.f32.mrf.mxu0  ;;  %v11289_v1 = vpop.f32.mrf.mxu1  ;;  %v2460_v2 = vmul.f32 0.3, %v1439_v54  ;;  %v12967_v44 = vpack.c.bf16 %v2790_v24, %v2787_v20  ;;  %v2457_v47 = vmul.f32 0.3, %v1435_v0  ;;  %v1437_v24 = vadd.f32 %v12928_v38, %v12836_v50 }
 0x11d   : > { %17596 = vst [vmem:[#allocation17_spill] sm:$0xff] %v12954_v5  ;;  %v12961_v8 = vpack.c.bf16 %v2821_v13, %v2818_v41  ;;  %v2077_v57 = vadd.f32 %v11289_v1, %v12791_v55  ;;  %v2494_v6 = vmul.f32 0.3, %v2066_v45  ;;  %v2836_v26 = vmax.f32 %v2074_v56, %v2500_v60 }
 0x11e   : > { %v1448_v23 = vpop.f32.mrf.mxu0  ;;  %v2068_v59 = vpop.f32.mrf.mxu1  ;;  %17599 = vst [vmem:[#allocation20_spill] sm:$0xff] %v12967_v44  ;;  %v2789_v56 = vmax.f32 %v1427_v46, %v2453_v53  ;;  %v2796_v13 = vmax.f32 %v1439_v54, %v2460_v2  ;;  %v1445_v2 = vadd.f32 %v1444_v28, %v12815_v15  ;;  %v12999_v28 = vadd.f32 %v12943_v37, %v12836_v50 }
 0x11f   : > { %17597 = vst [vmem:[#allocation18_spill] sm:$0xff] %v12961_v8  ;;  %v2503_v36 = vmul.f32 0.3, %v2077_v57  ;;  %v2069_v40 = vadd.f32 %v2068_v59, %v12791_v55  ;;  %v2830_v22 = vmax.f32 %v2066_v45, %v2494_v6  ;;  %v1449_v45 = vadd.f32 %v1448_v23, %v12815_v15 }
 0x120   : > { %v12969_v25 = vpop.f32.mrf.mxu0  ;;  %10557 = vmatmul.mubr.msk.bf16.gmra.mxu0 %vm1189_vm0, %v12689_v29  ;;  %v11292_v11 = vpop.f32.mrf.mxu1  ;;  %3822 = vmatmul.mubr.bf16.gmra.mxu1 %v12964_v63  ;;  %v2786_v29 = vmax.f32 %v12941_v61, %v2450_v10  ;;  %v1433_v6 = vadd.f32 %v12910_v17, %v12836_v50  ;;  %v2793_v59 = vmax.f32 %v1435_v0, %v2457_v47  ;;  %v2459_v23 = vmul.f32 0.3, %v1437_v24 }
 0x121   : > { %v2839_v41 = vmax.f32 %v2077_v57, %v2503_v36  ;;  %v2497_v48 = vmul.f32 0.3, %v2069_v40  ;;  %3831 = vmatprep.mubr.bf16.mxu1 %v12967_v44  ;;  %1700 = vmatprep.mubr.bf16.mxu0 %v17401_v3  ;;  %v2090_v7 = vadd.f32 %v11292_v11, %v12791_v55  ;;  %v2466_v0 = vmul.f32 0.3, %v1449_v45 }
 0x122   : > { %v1454_v60 = vpop.f32.mrf.mxu0  ;;  %v2081_v1 = vpop.f32.mrf.mxu1  ;;  %v12992_v10 = vpack.c.bf16 %v2789_v56, %v2786_v29  ;;  %v12994_v17 = vpack.c.bf16 %v2796_v13, %v2793_v59  ;;  %v2463_v13 = vmul.f32 0.3, %v1445_v2  ;;  %v2795_v59 = vmax.f32 %v1437_v24, %v2459_v23 }
 0x123   : > { %v12980_v20 = vpack.c.bf16 %v2839_v41, %v2836_v26  ;;  %v2833_v57 = vmax.f32 %v2069_v40, %v2497_v48  ;;  %v2512_v46 = vmul.f32 0.3, %v2090_v7  ;;  %v2082_v53 = vadd.f32 %v2081_v1, %v12791_v55 }
 0x124   : > { %v12986_v38 = vpop.f32.mrf.mxu0  ;;  %v11293_v54 = vpop.f32.mrf.mxu1  ;;  %17602 = vst [vmem:[#allocation23_spill] sm:$0xff] %v12992_v10  ;;  %17603 = vst [vmem:[#allocation24_spill] sm:$0xff] %v12994_v17  ;;  %v2456_v1 = vmul.f32 0.3, %v1433_v6  ;;  %v1447_v37 = vadd.f32 %v12958_v49, %v12836_v50  ;;  %v2802_v52 = vmax.f32 %v1449_v45, %v2466_v0  ;;  %v2462_v49 = vmul.f32 0.3, %v12999_v28 }
 0x125   : > { %17600 = vst [vmem:[#allocation21_spill] sm:$0xff] %v12980_v20  ;;  %v12989_v36 = vpack.c.bf16 %v2833_v57, %v2830_v22  ;;  %v2093_v61 = vadd.f32 %v11293_v54, %v12791_v55  ;;  %v2506_v26 = vmul.f32 0.3, %v2082_v53  ;;  %v2848_v47 = vmax.f32 %v2090_v7, %v2512_v46 }
 0x126   : > { %v1458_v40 = vpop.f32.mrf.mxu0  ;;  %v2084_v11 = vpop.f32.mrf.mxu1  ;;  %v2465_v0 = vmul.f32 0.3, %v1447_v37 }
 0x127   : > { %17601 = vst [vmem:[#allocation22_spill] sm:$0xff] %v12989_v36  ;;  %v2515_v41 = vmul.f32 0.3, %v2093_v61  ;;  %v2085_v48 = vadd.f32 %v2084_v11, %v12791_v55  ;;  %v2842_v29 = vmax.f32 %v2082_v53, %v2506_v26  ;;  %v1459_v46 = vadd.f32 %v1458_v40, %v12815_v15 }
 0x128   : > { %v13001_v22 = vpop.f32.mrf.mxu0  ;;  %10558 = vmatmul.mubr.msk.bf16.gmra.mxu0 %vm1189_vm0, %v12699_v30  ;;  %v11296_v56 = vpop.f32.mrf.mxu1  ;;  %3832 = vmatmul.mubr.bf16.gmra.mxu1 %v12992_v10  ;;  %v1455_v26 = vadd.f32 %v1454_v60, %v12815_v15  ;;  %v2799_v40 = vmax.f32 %v1445_v2, %v2463_v13 }
 0x129   : > { %v2851_v57 = vmax.f32 %v2093_v61, %v2515_v41  ;;  %v2509_v7 = vmul.f32 0.3, %v2085_v48  ;;  %3841 = vmatprep.mubr.bf16.mxu1 %v12994_v17  ;;  %1710 = vmatprep.mubr.bf16.mxu0 %v17401_v3  ;;  %v2106_v54 = vadd.f32 %v11296_v56, %v12791_v55  ;;  %v2792_v61 = vmax.f32 %v1433_v6, %v2456_v1 }
 0x12a   : > { %v1464_v30 = vpop.f32.mrf.mxu0  ;;  %v2097_v11 = vpop.f32.mrf.mxu1  ;;  %v2469_v17 = vmul.f32 0.3, %v1455_v26 }
 0x12b   : > { %v13012_v4 = vpack.c.bf16 %v2851_v57, %v2848_v47  ;;  %v2845_v53 = vmax.f32 %v2085_v48, %v2509_v7  ;;  %v2524_v41 = vmul.f32 0.3, %v2106_v54  ;;  %v2098_v27 = vadd.f32 %v2097_v11, %v12791_v55 }
 0x12c   : > { %v13016_v24 = vpop.f32.mrf.mxu0  ;;  %v11297_v23 = vpop.f32.mrf.mxu1  ;;  %v13022_v45 = vpack.c.bf16 %v2795_v59, %v2792_v61  ;;  %v2472_v47 = vmul.f32 0.3, %v1459_v46  ;;  %v13025_v11 = vpack.c.bf16 %v2802_v52, %v2799_v40  ;;  %v1457_v52 = vadd.f32 %v12986_v38, %v12836_v50 }
 0x12d   : > { %17604 = vst [vmem:[#allocation25_spill] sm:$0xff] %v13012_v4  ;;  %v13019_v3 = vpack.c.bf16 %v2845_v53, %v2842_v29  ;;  %v2109_v56 = vadd.f32 %v11297_v23, %v12791_v55  ;;  %v2518_v6 = vmul.f32 0.3, %v2098_v27  ;;  %v2860_v1 = vmax.f32 %v2106_v54, %v2524_v41 }
 0x12e   : > { %17606 = vst [vmem:[#allocation27_spill] sm:$0xff] %v13022_v45  ;;  %v1468_v48 = vpop.f32.mrf.mxu0  ;;  %v2100_v60 = vpop.f32.mrf.mxu1  ;;  %17607 = vst [vmem:[#allocation28_spill] sm:$0xff] %v13025_v11  ;;  %v17608_v54 = vmov 0   ;;  %v2801_v53 = vmax.f32 %v1447_v37, %v2465_v0  ;;  %v2808_v61 = vmax.f32 %v1459_v46, %v2472_v47  ;;  %v1465_v47 = vadd.f32 %v1464_v30, %v12815_v15 }
 0x12f   : > { %17605 = vst [vmem:[#allocation26_spill] sm:$0xff] %v13019_v3  ;;  %v2527_v57 = vmul.f32 0.3, %v2109_v56  ;;  %v2101_v7 = vadd.f32 %v2100_v60, %v12791_v55  ;;  %v2854_v13 = vmax.f32 %v2098_v27, %v2518_v6  ;;  %v1469_v27 = vadd.f32 %v1468_v48, %v12815_v15 }
 0x130   : > { %v13027_v10 = vpop.f32.mrf.mxu0  ;;  %10559 = vmatmul.mubr.msk.bf16.gmra.mxu0 %vm1189_vm0, %v12702_v31  ;;  %v11300_v2 = vpop.f32.mrf.mxu1  ;;  %3842 = vmatmul.mubr.bf16.gmra.mxu1 %v13022_v45  ;;  %v2798_v31 = vmax.f32 %v12999_v28, %v2462_v49  ;;  %v1453_v6 = vadd.f32 %v12969_v25, %v12836_v50 }
 0x131   : > { %v2863_v29 = vmax.f32 %v2109_v56, %v2527_v57  ;;  %v2521_v59 = vmul.f32 0.3, %v2101_v7  ;;  %3851 = vmatprep.mubr.bf16.mxu1 %v13025_v11  ;;  %1720 = vmatprep.mubr.bf16.mxu0 %v17608_v54  ;;  %v2122_v41 = vadd.f32 %v11300_v2, %v12791_v55  ;;  %v2805_v57 = vmax.f32 %v1455_v26, %v2469_v17 }
 0x132   : > { %v1474_v23 = vpop.f32.mrf.mxu0  ;;  %v2113_v40 = vpop.f32.mrf.mxu1  ;;  %v13048_v49 = vpack.c.bf16 %v2801_v53, %v2798_v31  ;;  %v2478_v25 = vmul.f32 0.3, %v1469_v27  ;;  %v2468_v11 = vmul.f32 0.3, %v1453_v6 }
 0x133   : > { %v13038_v60 = vpack.c.bf16 %v2863_v29, %v2860_v1  ;;  %v2857_v56 = vmax.f32 %v2101_v7, %v2521_v59  ;;  %v2536_v37 = vmul.f32 0.3, %v2122_v41  ;;  %v2114_v0 = vadd.f32 %v2113_v40, %v12791_v55 }
 0x134   : > { %v1476_v38 = vpop.f32.mrf.mxu0  ;;  %v11301_v46 = vpop.f32.mrf.mxu1  ;;  %17611 = vst [vmem:[#allocation31_spill] sm:$0xff] %v13048_v49  ;;  %v2471_v1 = vmul.f32 0.3, %v1457_v52  ;;  %v13050_v59 = vpack.c.bf16 %v2808_v61, %v2805_v57 }
 0x135   : > { %17609 = vst [vmem:[#allocation29_spill] sm:$0xff] %v13038_v60  ;;  %v13045_v2 = vpack.c.bf16 %v2857_v56, %v2854_v13  ;;  %v2125_v28 = vadd.f32 %v11301_v46, %v12791_v55  ;;  %v2530_v48 = vmul.f32 0.3, %v2114_v0  ;;  %v2872_v17 = vmax.f32 %v2122_v41, %v2536_v37 }
 0x136   : > { %v1478_v7 = vpop.f32.mrf.mxu0  ;;  %v2116_v29 = vpop.f32.mrf.mxu1  ;;  %17612 = vst [vmem:[#allocation32_spill] sm:$0xff] %v13050_v59  ;;  %v2475_v13 = vmul.f32 0.3, %v1465_v47  ;;  %v2807_v61 = vmax.f32 %v1457_v52, %v2471_v1  ;;  %v13062_v41 = vadd.f32 %v13016_v24, %v12836_v50 }
 0x137   : > { %17610 = vst [vmem:[#allocation30_spill] sm:$0xff] %v13045_v2  ;;  %v2539_v26 = vmul.f32 0.3, %v2125_v28  ;;  %v2117_v40 = vadd.f32 %v2116_v29, %v12791_v55  ;;  %v2866_v53 = vmax.f32 %v2114_v0, %v2530_v48  ;;  %v13065_v57 = vadd.f32 %v1478_v7, %v12815_v15 }
 0x138   : > { %v13053_v45 = vpop.f32.mrf.mxu0  ;;  %10560 = vmatmul.mubr.msk.bf16.gmra.mxu0 %vm1189_vm0, %v12712_v32  ;;  %v11304_v30 = vpop.f32.mrf.mxu1  ;;  %3852 = vmatmul.mubr.bf16.gmra.mxu1 %v13048_v49  ;;  %v2814_v29 = vmax.f32 %v1469_v27, %v2478_v25  ;;  %v2804_v48 = vmax.f32 %v1453_v6, %v2468_v11  ;;  %v2811_v7 = vmax.f32 %v1465_v47, %v2475_v13  ;;  %v2477_v11 = vmul.f32 0.3, %v13062_v41 }
 0x139   : > { %v2875_v31 = vmax.f32 %v2125_v28, %v2539_v26  ;;  %v2533_v56 = vmul.f32 0.3, %v2117_v40  ;;  %3861 = vmatprep.mubr.bf16.mxu1 %v13050_v59  ;;  %1730 = vmatprep.mubr.bf16.mxu0 %v17608_v54  ;;  %v2138_v32 = vadd.f32 %v11304_v30, %v12791_v55  ;;  %v1463_v26 = vadd.f32 %v13001_v22, %v12836_v50 }
 0x13a   : > { %v1484_v37 = vpop.f32.mrf.mxu0  ;;  %v2129_v46 = vpop.f32.mrf.mxu1  ;;  %v1475_v49 = vadd.f32 %v1474_v23, %v12815_v15  ;;  %v13079_v25 = vpack.c.bf16 %v2807_v61, %v2804_v48  ;;  %v2484_v6 = vmul.f32 0.3, %v13065_v57  ;;  %v13084_v47 = vpack.c.bf16 %v2814_v29, %v2811_v7  ;;  %v12082_v23 = vld [vmem:[%s17580_s22 + $0x180] ss:$12 sps:$4 sm:$0xff]  }
 0x13b   : > { %v13068_v0 = vpack.c.bf16 %v2875_v31, %v2872_v17  ;;  %v2869_v28 = vmax.f32 %v2117_v40, %v2533_v56  ;;  %v2548_v52 = vmul.f32 0.3, %v2138_v32  ;;  %v2130_v1 = vadd.f32 %v2129_v46, %v12791_v55 }
 0x13c   : > { %v13073_v24 = vpop.f32.mrf.mxu0  ;;  %v11305_v59 = vpop.f32.mrf.mxu1  ;;  %17615 = vst [vmem:[#allocation35_spill] sm:$0xff] %v13079_v25  ;;  %17616 = vst [vmem:[#allocation36_spill] sm:$0xff] %v13084_v47  ;;  %v2474_v13 = vmul.f32 0.3, %v1463_v26  ;;  %v2481_v29 = vmul.f32 0.3, %v1475_v49  ;;  %v2813_v7 = vmax.f32 %v13062_v41, %v2477_v11  ;;  %v1485_v41 = vadd.f32 %v1484_v37, %v12815_v15 }
 0x13d   : > { %17613 = vst [vmem:[#allocation33_spill] sm:$0xff] %v13068_v0  ;;  %v13076_v30 = vpack.c.bf16 %v2869_v28, %v2866_v53  ;;  %v2141_v27 = vadd.f32 %v11305_v59, %v12791_v55  ;;  %v2542_v22 = vmul.f32 0.3, %v2130_v1  ;;  %v2884_v31 = vmax.f32 %v2138_v32, %v2548_v52  ;;  %v12084_v59 = vld [vmem:[%s17580_s22 + $0x184] ss:$12 sps:$4 sm:$0xff]  }
 0x13e   : > { %v1488_v17 = vpop.f32.mrf.mxu0  ;;  %v2132_v40 = vpop.f32.mrf.mxu1  ;;  %v13093_v53 = vadd.f32 %v1476_v38, %v12836_v50  ;;  %v1473_v38 = vadd.f32 %v13027_v10, %v12836_v50  ;;  %4376 = vmatprep.subr.bf16.mxu0 %v12084_v59  ;;  %v2817_v63 = vmax.f32 %v1475_v49, %v2481_v29  ;;  %v2487_v49 = vmul.f32 0.3, %v1485_v41 }
 0x13f   : > { %17614 = vst [vmem:[#allocation34_spill] sm:$0xff] %v13076_v30  ;;  %v2551_v56 = vmul.f32 0.3, %v2141_v27  ;;  %v2133_v46 = vadd.f32 %v2132_v40, %v12791_v55  ;;  %v2878_v28 = vmax.f32 %v2130_v1, %v2542_v22  ;;  %v13106_v40 = vadd.f32 %v1488_v17, %v12815_v15  ;;  %4377 = vmatpush1.bf16.msra.mxu0 %v12082_v23 }
 0x140   : > { %v13095_v61 = vpop.f32.mrf.mxu0  ;;  %10561 = vmatmul.mubr.msk.bf16.gmra.mxu0 %vm1189_vm0, %v12715_v33  ;;  %v11308_v32 = vpop.f32.mrf.mxu1  ;;  %3862 = vmatmul.mubr.bf16.gmra.mxu1 %v13079_v25  ;;  %v2820_v1 = vmax.f32 %v13065_v57, %v2484_v6  ;;  %v2480_v6 = vmul.f32 0.3, %v1473_v38 }
 0x141   : > { %v2887_v48 = vmax.f32 %v2141_v27, %v2551_v56  ;;  %v2545_v52 = vmul.f32 0.3, %v2133_v46  ;;  %3871 = vmatprep.mubr.bf16.mxu1 %v13084_v47  ;;  %1740 = vmatprep.mubr.bf16.mxu0 %v17608_v54  ;;  %v2154_v33 = vadd.f32 %v11308_v32, %v12791_v55  ;;  %v2810_v56 = vmax.f32 %v1463_v26, %v2474_v13 }
 0x142   : > { %v1494_v44 = vpop.f32.mrf.mxu0  ;;  %v2145_v25 = vpop.f32.mrf.mxu1  ;;  %v2483_v32 = vmul.f32 0.3, %v13093_v53 }
 0x143   : > { %v13110_v27 = vpack.c.bf16 %v2887_v48, %v2884_v31  ;;  %v2881_v22 = vmax.f32 %v2133_v46, %v2545_v52  ;;  %v2560_v11 = vmul.f32 0.3, %v2154_v33  ;;  %v2146_v10 = vadd.f32 %v2145_v25, %v12791_v55 }
 0x144   : > { %v1496_v47 = vpop.f32.mrf.mxu0  ;;  %v11309_v17 = vpop.f32.mrf.mxu1  ;;  %v13118_v57 = vpack.c.bf16 %v2813_v7, %v2810_v56  ;;  %v2490_v31 = vmul.f32 0.3, %v13106_v40  ;;  %v13122_v48 = vpack.c.bf16 %v2820_v1, %v2817_v63  ;;  %v2819_v52 = vmax.f32 %v13093_v53, %v2483_v32 }
 0x145   : > { %17617 = vst [vmem:[#allocation37_spill] sm:$0xff] %v13110_v27  ;;  %v13115_v58 = vpack.c.bf16 %v2881_v22, %v2878_v28  ;;  %v2157_v59 = vadd.f32 %v11309_v17, %v12791_v55  ;;  %v2554_v26 = vmul.f32 0.3, %v2146_v10  ;;  %v2896_v23 = vmax.f32 %v2154_v33, %v2560_v11 }
 0x146   : > { %17619 = vst [vmem:[#allocation39_spill] sm:$0xff] %v13118_v57  ;;  %v1498_v46 = vpop.f32.mrf.mxu0  ;;  %v2148_v37 = vpop.f32.mrf.mxu1  ;;  %17620 = vst [vmem:[#allocation40_spill] sm:$0xff] %v13122_v48  ;;  %v1483_v63 = vadd.f32 %v13053_v45, %v12836_v50  ;;  %v1487_v33 = vadd.f32 %v13073_v24, %v12836_v50  ;;  %v2816_v53 = vmax.f32 %v1473_v38, %v2480_v6 }
 0x147   : > { %17618 = vst [vmem:[#allocation38_spill] sm:$0xff] %v13115_v58  ;;  %v2563_v13 = vmul.f32 0.3, %v2157_v59  ;;  %v2149_v25 = vadd.f32 %v2148_v37, %v12791_v55  ;;  %v2890_v7 = vmax.f32 %v2146_v10, %v2554_v26  ;;  %v13141_v32 = vadd.f32 %v1498_v46, %v12815_v15 }
 0x148   : > { %v13124_v29 = vpop.f32.mrf.mxu0  ;;  %10562 = vmatmul.mubr.msk.bf16.gmra.mxu0 %vm1189_vm0, %v12725_v34  ;;  %v11312_v28 = vpop.f32.mrf.mxu1  ;;  %3872 = vmatmul.mubr.bf16.gmra.mxu1 %v13118_v57  ;;  %v2826_v34 = vmax.f32 %v13106_v40, %v2490_v31  ;;  %v2823_v26 = vmax.f32 %v1485_v41, %v2487_v49  ;;  %v1495_v40 = vadd.f32 %v1494_v44, %v12815_v15  ;;  %v2486_v6 = vmul.f32 0.3, %v1483_v63 }
 0x149   : > { %v2899_v22 = vmax.f32 %v2157_v59, %v2563_v13  ;;  %v2557_v56 = vmul.f32 0.3, %v2149_v25  ;;  %3881 = vmatprep.mubr.bf16.mxu1 %v13122_v48  ;;  %1750 = vmatprep.mubr.bf16.mxu0 %v17608_v54  ;;  %v2170_v1 = vadd.f32 %v11312_v28, %v12791_v55  ;;  %v13146_v48 = vpack.c.bf16 %v2819_v52, %v2816_v53  ;;  %v12183_v53 = vld [vmem:[%s12380_s0 + $0x120] sm:$0xff]  }
 0x14a   : > { %v1504_v11 = vpop.f32.mrf.mxu0  ;;  %v2161_v17 = vpop.f32.mrf.mxu1  ;;  %v2489_v46 = vmul.f32 0.3, %v1487_v33  ;;  %v13152_v49 = vpack.c.bf16 %v2826_v34, %v2823_v26  ;;  %v2496_v28 = vmul.f32 0.3, %v13141_v32  ;;  %v13158_v44 = vadd.f32 %v13095_v61, %v12836_v50 }
 0x14b   : > { %v13138_v10 = vpack.c.bf16 %v2899_v22, %v2896_v23  ;;  %v2893_v59 = vmax.f32 %v2149_v25, %v2557_v56  ;;  %v2572_v37 = vmul.f32 0.3, %v2170_v1  ;;  %v2162_v45 = vadd.f32 %v2161_v17, %v12791_v55  ;;  %17622 = vst [vmem:[#allocation42_spill] sm:$0xff] %v13146_v48 }
 0x14c   : > { %v13144_v13 = vpop.f32.mrf.mxu0  ;;  %v11313_v24 = vpop.f32.mrf.mxu1  ;;  %17624 = vst [vmem:[#allocation44_spill] sm:$0xff] %v13152_v49  ;;  %v2825_v61 = vmax.f32 %v1487_v33, %v2489_v46  ;;  %v2832_v12 = vmax.f32 %v13141_v32, %v2496_v28 }
 0x14d   : > { %17621 = vst [vmem:[#allocation41_spill] sm:$0xff] %v13138_v10  ;;  %v13149_v31 = vpack.c.bf16 %v2893_v59, %v2890_v7  ;;  %v2173_v38 = vadd.f32 %v11313_v24, %v12791_v55  ;;  %v2566_v23 = vmul.f32 0.3, %v2162_v45  ;;  %v2908_v22 = vmax.f32 %v2170_v1, %v2572_v37 }
 0x14e   : > { %v1508_v25 = vpop.f32.mrf.mxu0  ;;  %v2164_v41 = vpop.f32.mrf.mxu1  ;;  %v13161_v7 = vadd.f32 %v1496_v47, %v12836_v50  ;;  %v2493_v59 = vmul.f32 0.3, %v1495_v40 }
 0x14f   : > { %17623 = vst [vmem:[#allocation43_spill] sm:$0xff] %v13149_v31  ;;  %v2575_v56 = vmul.f32 0.3, %v2173_v38  ;;  %v2165_v52 = vadd.f32 %v2164_v41, %v12791_v55  ;;  %v2902_v1 = vmax.f32 %v2162_v45, %v2566_v23  ;;  %v13171_v47 = vadd.f32 %v1508_v25, %v12815_v15 }
 0x150   : > { %v13163_v17 = vpop.f32.mrf.mxu0  ;;  %10563 = vmatmul.mubr.msk.bf16.gmra.mxu0 %vm1189_vm0, %v12183_v53  ;;  %v11316_v34 = vpop.f32.mrf.mxu1  ;;  %3882 = vmatmul.mubr.bf16.gmra.mxu1 %v13146_v48  ;;  %v2822_v53 = vmax.f32 %v1483_v63, %v2486_v6  ;;  %v1505_v23 = vadd.f32 %v1504_v11, %v12815_v15 }
 0x151   : > { %v2911_v26 = vmax.f32 %v2173_v38, %v2575_v56  ;;  %v2569_v37 = vmul.f32 0.3, %v2165_v52  ;;  %3891 = vmatprep.mubr.bf16.mxu1 %v13152_v49  ;;  %1760 = vmatprep.mubr.bf16.mxu0 %v17608_v54  ;;  %v2186_v24 = vadd.f32 %v11316_v34, %v12791_v55  ;;  %v2492_v38 = vmul.f32 0.3, %v13158_v44 }
 0x152   : > { %v1514_v41 = vpop.f32.mrf.mxu0  ;;  %v2177_v57 = vpop.f32.mrf.mxu1  ;;  %v2829_v49 = vmax.f32 %v1495_v40, %v2493_v59  ;;  %v2495_v34 = vmul.f32 0.3, %v13161_v7  ;;  %v13186_v6 = vpack.c.bf16 %v2825_v61, %v2822_v53  ;;  %v2502_v28 = vmul.f32 0.3, %v13171_v47  ;;  %v12184_v61 = vld [vmem:[%s12380_s0 + $0x128] sm:$0xff]  }
 0x153   : > { %v13175_v48 = vpack.c.bf16 %v2911_v26, %v2908_v22  ;;  %v2905_v45 = vmax.f32 %v2165_v52, %v2569_v37  ;;  %v2584_v56 = vmul.f32 0.3, %v2186_v24  ;;  %v2178_v33 = vadd.f32 %v2177_v57, %v12791_v55  ;;  %v12085_v57 = vld [vmem:[%s17580_s22 + $0xb0] ss:$12 sps:$4 sm:$0xff]  }
 0x154   : > { %v13180_v46 = vpop.f32.mrf.mxu0  ;;  %v11317_v25 = vpop.f32.mrf.mxu1  ;;  %17627 = vst [vmem:[#allocation47_spill] sm:$0xff] %v13186_v6  ;;  %v13193_v37 = vpack.c.bf16 %v2832_v12, %v2829_v49  ;;  %v13205_v12 = vadd.f32 %v13144_v13, %v12836_v50  ;;  %v2838_v49 = vmax.f32 %v13171_v47, %v2502_v28  ;;  %4956 = vmatpush1.bf16.msra.mxu1 %v12085_v57 }
 0x155   : > { %17625 = vst [vmem:[#allocation45_spill] sm:$0xff] %v13175_v48  ;;  %v13183_v63 = vpack.c.bf16 %v2905_v45, %v2902_v1  ;;  %v2189_v32 = vadd.f32 %v11317_v25, %v12791_v55  ;;  %v2578_v22 = vmul.f32 0.3, %v2178_v33  ;;  %v2920_v26 = vmax.f32 %v2186_v24, %v2584_v56  ;;  %4957 = vmatprep.subr.bf16.mxu1 %v17608_v54 }
 0x156   : > { %v1518_v11 = vpop.f32.mrf.mxu0  ;;  %v2180_v52 = vpop.f32.mrf.mxu1  ;;  %17628 = vst [vmem:[#allocation48_spill] sm:$0xff] %v13193_v37  ;;  %v2499_v1 = vmul.f32 0.3, %v1505_v23  ;;  %v2831_v24 = vmax.f32 %v13161_v7, %v2495_v34  ;;  %v1503_v13 = vadd.f32 %v13124_v29, %v12836_v50 }
 0x157   : > { %17626 = vst [vmem:[#allocation46_spill] sm:$0xff] %v13183_v63  ;;  %v2587_v40 = vmul.f32 0.3, %v2189_v32  ;;  %v2181_v59 = vadd.f32 %v2180_v52, %v12791_v55  ;;  %v2914_v25 = vmax.f32 %v2178_v33, %v2578_v22  ;;  %v2828_v33 = vmax.f32 %v13158_v44, %v2492_v38 }
 0x158   : > { %v13195_v45 = vpop.f32.mrf.mxu0  ;;  %10564 = vmatmul.mubr.msk.bf16.gmra.mxu0 %vm1189_vm0, %v12184_v61  ;;  %v11320_v53 = vpop.f32.mrf.mxu1  ;;  %3892 = vmatmul.mubr.bf16.gmra.mxu1 %v13186_v6  ;;  %v13213_v22 = vadd.f32 %v1518_v11, %v12815_v15  ;;  %v2835_v7 = vmax.f32 %v1505_v23, %v2499_v1  ;;  %v1515_v44 = vadd.f32 %v1514_v41, %v12815_v15  ;;  %v2501_v11 = vmul.f32 0.3, %v13205_v12 }
 0x159   : > { %v2923_v39 = vmax.f32 %v2189_v32, %v2587_v40  ;;  %v2581_v19 = vmul.f32 0.3, %v2181_v59  ;;  %3901 = vmatprep.mubr.bf16.mxu1 %v13193_v37  ;;  %1770 = vmatprep.mubr.bf16.mxu0 %v17608_v54  ;;  %v2202_v56 = vadd.f32 %v11320_v53, %v12791_v55  ;;  %v2498_v37 = vmul.f32 0.3, %v1503_v13 }
 0x15a   : > { %v1524_v52 = vpop.f32.mrf.mxu0  ;;  %v2193_v61 = vpop.f32.mrf.mxu1  ;;  %v2508_v1 = vmul.f32 0.3, %v13213_v22 }
 0x15b   : > { %v13210_v32 = vpack.c.bf16 %v2923_v39, %v2920_v26  ;;  %v2917_v40 = vmax.f32 %v2181_v59, %v2581_v19  ;;  %v2596_v47 = vmul.f32 0.3, %v2202_v56  ;;  %v2194_v34 = vadd.f32 %v2193_v61, %v12791_v55 }
 0x15c   : > { %v13219_v28 = vpop.f32.mrf.mxu0  ;;  %v11321_v57 = vpop.f32.mrf.mxu1  ;;  %v13225_v19 = vpack.c.bf16 %v2831_v24, %v2828_v33  ;;  %v13228_v59 = vpack.c.bf16 %v2838_v49, %v2835_v7  ;;  %v12185_v33 = vld [vmem:[%s12380_s0 + $0x130] sm:$0xff]   ;;  %v2505_v49 = vmul.f32 0.3, %v1515_v44 }
 0x15d   : > { %17629 = vst [vmem:[#allocation49_spill] sm:$0xff] %v13210_v32  ;;  %v13222_v39 = vpack.c.bf16 %v2917_v40, %v2914_v25  ;;  %v2205_v38 = vadd.f32 %v11321_v57, %v12791_v55  ;;  %v2590_v26 = vmul.f32 0.3, %v2194_v34  ;;  %v2932_v53 = vmax.f32 %v2202_v56, %v2596_v47 }
 0x15e   : > { %17631 = vst [vmem:[#allocation51_spill] sm:$0xff] %v13225_v19  ;;  %v1528_v29 = vpop.f32.mrf.mxu0  ;;  %v2196_v23 = vpop.f32.mrf.mxu1  ;;  %17632 = vst [vmem:[#allocation52_spill] sm:$0xff] %v13228_v59  ;;  %v13234_v25 = vadd.f32 %v13163_v17, %v12836_v50  ;;  %v2837_v47 = vmax.f32 %v13205_v12, %v2501_v11  ;;  %v1517_v17 = vadd.f32 %v13180_v46, %v12836_v50 }
 0x15f   : > { %17630 = vst [vmem:[#allocation50_spill] sm:$0xff] %v13222_v39  ;;  %v2599_v61 = vmul.f32 0.3, %v2205_v38  ;;  %v2197_v41 = vadd.f32 %v2196_v23, %v12791_v55  ;;  %v2926_v7 = vmax.f32 %v2194_v34, %v2590_v26  ;;  %v13247_v23 = vadd.f32 %v1528_v29, %v12815_v15 }
 0x160   : > { %v13236_v24 = vpop.f32.mrf.mxu0  ;;  %10565 = vmatmul.mubr.msk.bf16.gmra.mxu0 %vm1189_vm0, %v12185_v33  ;;  %v11324_v40 = vpop.f32.mrf.mxu1  ;;  %3902 = vmatmul.mubr.bf16.gmra.mxu1 %v13225_v19  ;;  %v2844_v34 = vmax.f32 %v13213_v22, %v2508_v1  ;;  %v2504_v29 = vmul.f32 0.3, %v13234_v25 }
 0x161   : > { %v2935_v57 = vmax.f32 %v2205_v38, %v2599_v61  ;;  %v2593_v56 = vmul.f32 0.3, %v2197_v41  ;;  %3911 = vmatprep.mubr.bf16.mxu1 %v13228_v59  ;;  %1780 = vmatprep.mubr.bf16.mxu0 %v17608_v54  ;;  %v2218_v33 = vadd.f32 %v11324_v40, %v12791_v55  ;;  %v2834_v61 = vmax.f32 %v1503_v13, %v2498_v37 }
 0x162   : > { %v1534_v6 = vpop.f32.mrf.mxu0  ;;  %v2209_v19 = vpop.f32.mrf.mxu1  ;;  %v1525_v59 = vadd.f32 %v1524_v52, %v12815_v15  ;;  %v2841_v40 = vmax.f32 %v1515_v44, %v2505_v49  ;;  %v2514_v37 = vmul.f32 0.3, %v13247_v23  ;;  %v12186_v49 = vld [vmem:[%s12380_s0 + $0x138] sm:$0xff]  }
 0x163   : > { %v13251_v38 = vpack.c.bf16 %v2935_v57, %v2932_v53  ;;  %v2929_v26 = vmax.f32 %v2197_v41, %v2593_v56  ;;  %v2608_v43 = vmul.f32 0.3, %v2218_v33  ;;  %v2210_v12 = vadd.f32 %v2209_v19, %v12791_v55 }
 0x164   : > { %v13255_v11 = vpop.f32.mrf.mxu0  ;;  %v11325_v46 = vpop.f32.mrf.mxu1  ;;  %v13261_v1 = vpack.c.bf16 %v2837_v47, %v2834_v61  ;;  %v2507_v53 = vmul.f32 0.3, %v1517_v17  ;;  %v2511_v39 = vmul.f32 0.3, %v1525_v59 }
 0x165   : > { %17633 = vst [vmem:[#allocation53_spill] sm:$0xff] %v13251_v38  ;;  %v13258_v32 = vpack.c.bf16 %v2929_v26, %v2926_v7  ;;  %v2221_v22 = vadd.f32 %v11325_v46, %v12791_v55  ;;  %v2602_v52 = vmul.f32 0.3, %v2210_v12  ;;  %v2944_v19 = vmax.f32 %v2218_v33, %v2608_v43 }
 0x166   : > { %17635 = vst [vmem:[#allocation55_spill] sm:$0xff] %v13261_v1  ;;  %v1538_v13 = vpop.f32.mrf.mxu0  ;;  %v2212_v41 = vpop.f32.mrf.mxu1  ;;  %v13265_v38 = vpack.c.bf16 %v2844_v34, %v2841_v40  ;;  %v2843_v43 = vmax.f32 %v1517_v17, %v2507_v53  ;;  %v13276_v33 = vadd.f32 %v13219_v28, %v12836_v50  ;;  %v2850_v34 = vmax.f32 %v13247_v23, %v2514_v37 }
 0x167   : > { %17634 = vst [vmem:[#allocation54_spill] sm:$0xff] %v13258_v32  ;;  %v2611_v57 = vmul.f32 0.3, %v2221_v22  ;;  %v2213_v56 = vadd.f32 %v2212_v41, %v12791_v55  ;;  %v2938_v47 = vmax.f32 %v2210_v12, %v2602_v52  ;;  %v1523_v17 = vadd.f32 %v13195_v45, %v12836_v50 }
 0x168   : > { %17636 = vst [vmem:[#allocation56_spill] sm:$0xff] %v13265_v38  ;;  %v13267_v44 = vpop.f32.mrf.mxu0  ;;  %10566 = vmatmul.mubr.msk.bf16.gmra.mxu0 %vm1189_vm0, %v12186_v49  ;;  %v11328_v7 = vpop.f32.mrf.mxu1  ;;  %3912 = vmatmul.mubr.bf16.gmra.mxu1 %v13261_v1  ;;  %v2840_v49 = vmax.f32 %v13234_v25, %v2504_v29  ;;  %v2847_v53 = vmax.f32 %v1525_v59, %v2511_v39 }
 0x169   : > { %v2947_v26 = vmax.f32 %v2221_v22, %v2611_v57  ;;  %v2605_v61 = vmul.f32 0.3, %v2213_v56  ;;  %3921 = vmatprep.mubr.bf16.mxu1 %v13265_v38  ;;  %1790 = vmatprep.mubr.bf16.mxu0 %v17608_v54  ;;  %v2234_v46 = vadd.f32 %v11328_v7, %v12791_v55  ;;  %v13284_v22 = vadd.f32 %v1538_v13, %v12815_v15 }
 0x16a   : > { %v1544_v40 = vpop.f32.mrf.mxu0  ;;  %v2225_v41 = vpop.f32.mrf.mxu1  ;;  %v1535_v7 = vadd.f32 %v1534_v6, %v12815_v15  ;;  %v13295_v13 = vpack.c.bf16 %v2843_v43, %v2840_v49  ;;  %v13298_v59 = vpack.c.bf16 %v2850_v34, %v2847_v53  ;;  %v2510_v38 = vmul.f32 0.3, %v1523_v17  ;;  %v12187_v49 = vld [vmem:[%s12380_s0 + $0x140] sm:$0xff]  }
 0x16b   : > { %v13281_v12 = vpack.c.bf16 %v2947_v26, %v2944_v19  ;;  %v2941_v52 = vmax.f32 %v2213_v56, %v2605_v61  ;;  %v2620_v28 = vmul.f32 0.3, %v2234_v46  ;;  %v2226_v57 = vadd.f32 %v2225_v41, %v12791_v55 }
 0x16c   : > { %v13289_v23 = vpop.f32.mrf.mxu0  ;;  %v11329_v37 = vpop.f32.mrf.mxu1  ;;  %17639 = vst [vmem:[#allocation59_spill] sm:$0xff] %v13295_v13  ;;  %v2513_v19 = vmul.f32 0.3, %v13276_v33  ;;  %17640 = vst [vmem:[#allocation60_spill] sm:$0xff] %v13298_v59  ;;  %v2520_v26 = vmul.f32 0.3, %v13284_v22 }
 0x16d   : > { %17637 = vst [vmem:[#allocation57_spill] sm:$0xff] %v13281_v12  ;;  %v13292_v25 = vpack.c.bf16 %v2941_v52, %v2938_v47  ;;  %v2237_v29 = vadd.f32 %v11329_v37, %v12791_v55  ;;  %v2614_v56 = vmul.f32 0.3, %v2226_v57  ;;  %v2956_v61 = vmax.f32 %v2234_v46, %v2620_v28 }
 0x16e   : > { %v1548_v45 = vpop.f32.mrf.mxu0  ;;  %v2228_v39 = vpop.f32.mrf.mxu1  ;;  %v13304_v47 = vadd.f32 %v13236_v24, %v12836_v50  ;;  %v2517_v34 = vmul.f32 0.3, %v1535_v7  ;;  %v2849_v28 = vmax.f32 %v13276_v33, %v2513_v19  ;;  %v13316_v24 = vadd.f32 %v13255_v11, %v12836_v50  ;;  %v12086_v33 = vld [vmem:[%s17580_s22 + $0x98] ss:$12 sps:$4 sm:$0xff]  }
 0x16f   : > { %17638 = vst [vmem:[#allocation58_spill] sm:$0xff] %v13292_v25  ;;  %v2623_v41 = vmul.f32 0.3, %v2237_v29  ;;  %v2229_v6 = vadd.f32 %v2228_v39, %v12791_v55  ;;  %v2950_v53 = vmax.f32 %v2226_v57, %v2614_v56  ;;  %v13319_v39 = vadd.f32 %v1548_v45, %v12815_v15  ;;  %4958 = vmatpush1.bf16.msra.mxu1 %v12086_v33 }
 0x170   : > { %v13306_v43 = vpop.f32.mrf.mxu0  ;;  %10567 = vmatmul.mubr.msk.bf16.gmra.mxu0 %vm1189_vm0, %v12187_v49  ;;  %v11332_v52 = vpop.f32.mrf.mxu1  ;;  %3922 = vmatmul.mubr.bf16.gmra.mxu1 %v13295_v13  ;;  %v2856_v57 = vmax.f32 %v13284_v22, %v2520_v26  ;;  %v2846_v19 = vmax.f32 %v1523_v17, %v2510_v38  ;;  %v1545_v11 = vadd.f32 %v1544_v40, %v12815_v15  ;;  %v2516_v12 = vmul.f32 0.3, %v13304_v47  ;;  %v12087_v38 = vld [vmem:[%s17580_s22 + $0x230] ss:$12 sps:$4 sm:$0xff]  }
 0x171   : > { %v2959_v37 = vmax.f32 %v2237_v29, %v2623_v41  ;;  %v2617_v46 = vmul.f32 0.3, %v2229_v6  ;;  %3931 = vmatprep.mubr.bf16.mxu1 %v13298_v59  ;;  %1800 = vmatprep.mubr.bf16.mxu0 %v17608_v54  ;;  %v2250_v49 = vadd.f32 %v11332_v52, %v12791_v55  ;;  %v2853_v25 = vmax.f32 %v1535_v7, %v2517_v34 }
 0x172   : > { %v1554_v13 = vpop.f32.mrf.mxu0  ;;  %v2241_v1 = vpop.f32.mrf.mxu1  ;;  %v13339_v40 = vpack.c.bf16 %v2849_v28, %v2846_v19  ;;  %v2526_v17 = vmul.f32 0.3, %v13319_v39  ;;  %4959 = vmatprep.subr.bf16.mxu1 %v17608_v54  ;;  %11378 = vmatprep.subr.bf16.mxu0 %v12087_v38  ;;  %v12188_v28 = vld [vmem:[%s12380_s0 + $0x148] sm:$0xff]  }
 0x173   : > { %v13323_v29 = vpack.c.bf16 %v2959_v37, %v2956_v61  ;;  %v2953_v56 = vmax.f32 %v2229_v6, %v2617_v46  ;;  %v2632_v41 = vmul.f32 0.3, %v2250_v49  ;;  %v2242_v45 = vadd.f32 %v2241_v1, %v12791_v55 }
 0x174   : > { %v13330_v59 = vpop.f32.mrf.mxu0  ;;  %v11333_v52 = vpop.f32.mrf.mxu1  ;;  %17643 = vst [vmem:[#allocation63_spill] sm:$0xff] %v13339_v40  ;;  %v2519_v1 = vmul.f32 0.3, %v13316_v24  ;;  %v13345_v46 = vpack.c.bf16 %v2856_v57, %v2853_v25  ;;  %v2862_v57 = vmax.f32 %v13319_v39, %v2526_v17 }
 0x175   : > { %17641 = vst [vmem:[#allocation61_spill] sm:$0xff] %v13323_v29  ;;  %v13333_v22 = vpack.c.bf16 %v2953_v56, %v2950_v53  ;;  %v2253_v26 = vadd.f32 %v11333_v52, %v12791_v55  ;;  %v2626_v61 = vmul.f32 0.3, %v2242_v45  ;;  %v2968_v7 = vmax.f32 %v2250_v49, %v2632_v41 }
 0x176   : > { %v1558_v6 = vpop.f32.mrf.mxu0  ;;  %v2244_v37 = vpop.f32.mrf.mxu1  ;;  %17644 = vst [vmem:[#allocation64_spill] sm:$0xff] %v13345_v46  ;;  %v2523_v56 = vmul.f32 0.3, %v1545_v11  ;;  %v2855_v25 = vmax.f32 %v13316_v24, %v2519_v1  ;;  %v1547_v49 = vadd.f32 %v13289_v23, %v12836_v50  ;;  %v1543_v24 = vadd.f32 %v13267_v44, %v12836_v50 }
 0x177   : > { %17642 = vst [vmem:[#allocation62_spill] sm:$0xff] %v13333_v22  ;;  %v2635_v34 = vmul.f32 0.3, %v2253_v26  ;;  %v2245_v53 = vadd.f32 %v2244_v37, %v12791_v55  ;;  %v2962_v52 = vmax.f32 %v2242_v45, %v2626_v61 }
 0x178   : > { %v13347_v33 = vpop.f32.mrf.mxu0  ;;  %10568 = vmatmul.mubr.msk.bf16.gmra.mxu0 %vm1189_vm0, %v12188_v28  ;;  %v11336_v19 = vpop.f32.mrf.mxu1  ;;  %3932 = vmatmul.mubr.bf16.gmra.mxu1 %v13339_v40  ;;  %v2852_v28 = vmax.f32 %v13304_v47, %v2516_v12  ;;  %v2859_v1 = vmax.f32 %v1545_v11, %v2523_v56 }
 0x179   : > { %v2971_v29 = vmax.f32 %v2253_v26, %v2635_v34  ;;  %v2629_v22 = vmul.f32 0.3, %v2245_v53  ;;  %3941 = vmatprep.mubr.bf16.mxu1 %v13345_v46  ;;  %1810 = vmatprep.mubr.bf16.mxu0 %v17608_v54  ;;  %v2266_v41 = vadd.f32 %v11336_v19, %v12791_v55  ;;  %v13363_v26 = vadd.f32 %v1558_v6, %v12815_v15 }
 0x17a   : > { %v1564_v38 = vpop.f32.mrf.mxu0  ;;  %v2257_v37 = vpop.f32.mrf.mxu1  ;;  %v1555_v19 = vadd.f32 %v1554_v13, %v12815_v15  ;;  %v13376_v11 = vpack.c.bf16 %v2862_v57, %v2859_v1  ;;  %v2522_v13 = vmul.f32 0.3, %v1543_v24 }
 0x17b   : > { %v13360_v45 = vpack.c.bf16 %v2971_v29, %v2968_v7  ;;  %v2965_v61 = vmax.f32 %v2245_v53, %v2629_v22  ;;  %v2644_v34 = vmul.f32 0.3, %v2266_v41  ;;  %v2258_v23 = vadd.f32 %v2257_v37, %v12791_v55 }
 0x17c   : > { %v13368_v39 = vpop.f32.mrf.mxu0  ;;  %v11337_v17 = vpop.f32.mrf.mxu1  ;;  %v13374_v29 = vpack.c.bf16 %v2855_v25, %v2852_v28  ;;  %v2525_v22 = vmul.f32 0.3, %v1547_v49  ;;  %17648 = vst [vmem:[#allocation68_spill] sm:$0xff] %v13376_v11  ;;  %v2532_v53 = vmul.f32 0.3, %v13363_v26  ;;  %v12189_v25 = vld [vmem:[%s12380_s0 + $0x150] sm:$0xff]  }
 0x17d   : > { %17645 = vst [vmem:[#allocation65_spill] sm:$0xff] %v13360_v45  ;;  %v13371_v12 = vpack.c.bf16 %v2965_v61, %v2962_v52  ;;  %v2269_v47 = vadd.f32 %v11337_v17, %v12791_v55  ;;  %v2638_v6 = vmul.f32 0.3, %v2258_v23  ;;  %v2980_v56 = vmax.f32 %v2266_v41, %v2644_v34 }
 0x17e   : > { %17647 = vst [vmem:[#allocation67_spill] sm:$0xff] %v13374_v29  ;;  %v1568_v7 = vpop.f32.mrf.mxu0  ;;  %v2260_v44 = vpop.f32.mrf.mxu1  ;;  %v13382_v52 = vadd.f32 %v13306_v43, %v12836_v50  ;;  %v2529_v57 = vmul.f32 0.3, %v1555_v19  ;;  %v2861_v34 = vmax.f32 %v1547_v49, %v2525_v22  ;;  %v1557_v43 = vadd.f32 %v13330_v59, %v12836_v50 }
 0x17f   : > { %17646 = vst [vmem:[#allocation66_spill] sm:$0xff] %v13371_v12  ;;  %v2647_v37 = vmul.f32 0.3, %v2269_v47  ;;  %v2261_v46 = vadd.f32 %v2260_v44, %v12791_v55  ;;  %v2974_v1 = vmax.f32 %v2258_v23, %v2638_v6  ;;  %v13394_v44 = vadd.f32 %v1568_v7, %v12815_v15 }
 0x180   : > { %v13384_v61 = vpop.f32.mrf.mxu0  ;;  %10569 = vmatmul.mubr.msk.bf16.gmra.mxu0 %vm1189_vm0, %v12189_v25  ;;  %v11340_v28 = vpop.f32.mrf.mxu1  ;;  %3942 = vmatmul.mubr.bf16.gmra.mxu1 %v13374_v29  ;;  %v2868_v29 = vmax.f32 %v13363_v26, %v2532_v53  ;;  %v2858_v6 = vmax.f32 %v1543_v24, %v2522_v13  ;;  %v2528_v7 = vmul.f32 0.3, %v13382_v52 }
 0x181   : > { %v2983_v17 = vmax.f32 %v2269_v47, %v2647_v37  ;;  %v2641_v41 = vmul.f32 0.3, %v2261_v46  ;;  %3951 = vmatprep.mubr.bf16.mxu1 %v13376_v11  ;;  %1820 = vmatprep.mubr.bf16.mxu0 %v17608_v54  ;;  %v2282_v25 = vadd.f32 %v11340_v28, %v12791_v55  ;;  %v1565_v37 = vadd.f32 %v1564_v38, %v12815_v15 }
 0x182   : > { %v1574_v40 = vpop.f32.mrf.mxu0  ;;  %v2273_v45 = vpop.f32.mrf.mxu1  ;;  %v2865_v28 = vmax.f32 %v1555_v19, %v2529_v57  ;;  %v13408_v53 = vpack.c.bf16 %v2861_v34, %v2858_v6  ;;  %v2538_v24 = vmul.f32 0.3, %v13394_v44  ;;  %v12190_v57 = vld [vmem:[%s12380_s0 + $0x158] sm:$0xff]  }
 0x183   : > { %v13398_v23 = vpack.c.bf16 %v2983_v17, %v2980_v56  ;;  %v2977_v47 = vmax.f32 %v2261_v46, %v2641_v41  ;;  %v2656_v11 = vmul.f32 0.3, %v2282_v25  ;;  %v2274_v49 = vadd.f32 %v2273_v45, %v12791_v55 }
 0x184   : > { %v13402_v22 = vpop.f32.mrf.mxu0  ;;  %v11341_v59 = vpop.f32.mrf.mxu1  ;;  %17651 = vst [vmem:[#allocation71_spill] sm:$0xff] %v13408_v53  ;;  %v2531_v46 = vmul.f32 0.3, %v1557_v43  ;;  %v2535_v32 = vmul.f32 0.3, %v1565_v37 }
 0x185   : > { %17649 = vst [vmem:[#allocation69_spill] sm:$0xff] %v13398_v23  ;;  %v13405_v12 = vpack.c.bf16 %v2977_v47, %v2974_v1  ;;  %v2285_v26 = vadd.f32 %v11341_v59, %v12791_v55  ;;  %v2650_v38 = vmul.f32 0.3, %v2274_v49  ;;  %v2992_v45 = vmax.f32 %v2282_v25, %v2656_v11 }
 0x186   : > { %v1578_v56 = vpop.f32.mrf.mxu0  ;;  %v2276_v13 = vpop.f32.mrf.mxu1  ;;  %v13412_v23 = vpack.c.bf16 %v2868_v29, %v2865_v28  ;;  %v2867_v11 = vmax.f32 %v1557_v43, %v2531_v46  ;;  %v13423_v29 = vadd.f32 %v13368_v39, %v12836_v50  ;;  %v2874_v25 = vmax.f32 %v13394_v44, %v2538_v24 }
 0x187   : > { %17650 = vst [vmem:[#allocation70_spill] sm:$0xff] %v13405_v12  ;;  %v2659_v17 = vmul.f32 0.3, %v2285_v26  ;;  %v2277_v41 = vadd.f32 %v2276_v13, %v12791_v55  ;;  %v2986_v34 = vmax.f32 %v2274_v49, %v2650_v38  ;;  %v1563_v43 = vadd.f32 %v13347_v33, %v12836_v50 }
 0x188   : > { %17652 = vst [vmem:[#allocation72_spill] sm:$0xff] %v13412_v23  ;;  %v13414_v19 = vpop.f32.mrf.mxu0  ;;  %10570 = vmatmul.mubr.msk.bf16.gmra.mxu0 %vm1189_vm0, %v12190_v57  ;;  %v11344_v1 = vpop.f32.mrf.mxu1  ;;  %3952 = vmatmul.mubr.bf16.gmra.mxu1 %v13408_v53  ;;  %v2864_v57 = vmax.f32 %v13382_v52, %v2528_v7  ;;  %v2871_v46 = vmax.f32 %v1565_v37, %v2535_v32  ;;  %v12088_v7 = vld [vmem:[%s17580_s22 + $0x80] ss:$12 sps:$4 sm:$0xff]   ;;  %v2537_v32 = vmul.f32 0.3, %v13423_v29 }
 0x189   : > { %v2995_v47 = vmax.f32 %v2285_v26, %v2659_v17  ;;  %v2653_v6 = vmul.f32 0.3, %v2277_v41  ;;  %3961 = vmatprep.mubr.bf16.mxu1 %v13412_v23  ;;  %1830 = vmatprep.mubr.bf16.mxu0 %v17608_v54  ;;  %v2298_v59 = vadd.f32 %v11344_v1, %v12791_v55  ;;  %v13431_v26 = vadd.f32 %v1578_v56, %v12815_v15 }
 0x18a   : > { %v1584_v28 = vpop.f32.mrf.mxu0  ;;  %v2289_v13 = vpop.f32.mrf.mxu1  ;;  %v1575_v1 = vadd.f32 %v1574_v40, %v12815_v15  ;;  %v13445_v56 = vpack.c.bf16 %v2867_v11, %v2864_v57  ;;  %4960 = vmatpush1.bf16.msra.mxu1 %v12088_v7  ;;  %v12191_v57 = vld [vmem:[%s12380_s0 + $0x160] sm:$0xff]   ;;  %v2873_v7 = vmax.f32 %v13423_v29, %v2537_v32 }
 0x18b   : > { %v13428_v49 = vpack.c.bf16 %v2995_v47, %v2992_v45  ;;  %v2989_v38 = vmax.f32 %v2277_v41, %v2653_v6  ;;  %v2668_v39 = vmul.f32 0.3, %v2298_v59  ;;  %v2290_v17 = vadd.f32 %v2289_v13, %v12791_v55  ;;  %4961 = vmatprep.subr.bf16.mxu1 %v17608_v54 }
 0x18c   : > { %v13436_v44 = vpop.f32.mrf.mxu0  ;;  %v11345_v24 = vpop.f32.mrf.mxu1  ;;  %17655 = vst [vmem:[#allocation75_spill] sm:$0xff] %v13445_v56  ;;  %v13448_v41 = vpack.c.bf16 %v2874_v25, %v2871_v46  ;;  %v2544_v40 = vmul.f32 0.3, %v13431_v26  ;;  %v2534_v13 = vmul.f32 0.3, %v1563_v43  ;;  %v1585_v29 = vadd.f32 %v1584_v28, %v12815_v15 }
 0x18d   : > { %17653 = vst [vmem:[#allocation73_spill] sm:$0xff] %v13428_v49  ;;  %v13439_v23 = vpack.c.bf16 %v2989_v38, %v2986_v34  ;;  %v2301_v52 = vadd.f32 %v11345_v24, %v12791_v55  ;;  %v2662_v33 = vmul.f32 0.3, %v2290_v17  ;;  %v3004_v34 = vmax.f32 %v2298_v59, %v2668_v39 }
 0x18e   : > { %v1588_v37 = vpop.f32.mrf.mxu0  ;;  %v2292_v45 = vpop.f32.mrf.mxu1  ;;  %17656 = vst [vmem:[#allocation76_spill] sm:$0xff] %v13448_v41  ;;  %v13454_v38 = vadd.f32 %v13384_v61, %v12836_v50  ;;  %v2541_v25 = vmul.f32 0.3, %v1575_v1  ;;  %v1577_v61 = vadd.f32 %v13402_v22, %v12836_v50  ;;  %v2547_v12 = vmul.f32 0.3, %v1585_v29 }
 0x18f   : > { %17654 = vst [vmem:[#allocation74_spill] sm:$0xff] %v13439_v23  ;;  %v2671_v47 = vmul.f32 0.3, %v2301_v52  ;;  %v2293_v6 = vadd.f32 %v2292_v45, %v12791_v55  ;;  %v2998_v46 = vmax.f32 %v2290_v17, %v2662_v33  ;;  %v13467_v45 = vadd.f32 %v1588_v37, %v12815_v15 }
 0x190   : > { %v13456_v11 = vpop.f32.mrf.mxu0  ;;  %10571 = vmatmul.mubr.msk.bf16.gmra.mxu0 %vm1189_vm0, %v12191_v57  ;;  %v11348_v24 = vpop.f32.mrf.mxu1  ;;  %3962 = vmatmul.mubr.bf16.gmra.mxu1 %v13445_v56  ;;  %v2880_v17 = vmax.f32 %v13431_v26, %v2544_v40  ;;  %v2877_v49 = vmax.f32 %v1575_v1, %v2541_v25  ;;  %v12192_v25 = vld [vmem:[%s12380_s0 + $0x168] sm:$0xff]  }
 0x191   : > { %v3007_v59 = vmax.f32 %v2301_v52, %v2671_v47  ;;  %v2665_v39 = vmul.f32 0.3, %v2293_v6  ;;  %3971 = vmatprep.mubr.bf16.mxu1 %v13448_v41  ;;  %1840 = vmatprep.mubr.bf16.mxu0 %v17608_v54  ;;  %v2314_v57 = vadd.f32 %v11348_v24, %v12791_v55  ;;  %v2870_v47 = vmax.f32 %v1563_v43, %v2534_v13 }
 0x192   : > { %v1594_v53 = vpop.f32.mrf.mxu0  ;;  %v2305_v56 = vpop.f32.mrf.mxu1  ;;  %v2540_v24 = vmul.f32 0.3, %v13454_v38  ;;  %v2550_v43 = vmul.f32 0.3, %v13467_v45 }
 0x193   : > { %v13472_v52 = vpack.c.bf16 %v3007_v59, %v3004_v34  ;;  %v3001_v33 = vmax.f32 %v2293_v6, %v2665_v39  ;;  %v2680_v32 = vmul.f32 0.3, %v2314_v57  ;;  %v2306_v22 = vadd.f32 %v2305_v56, %v12791_v55 }
 0x194   : > { %v13476_v41 = vpop.f32.mrf.mxu0  ;;  %v11349_v37 = vpop.f32.mrf.mxu1  ;;  %v13482_v40 = vpack.c.bf16 %v2873_v7, %v2870_v47  ;;  %v2543_v34 = vmul.f32 0.3, %v1577_v61 }
 0x195   : > { %17657 = vst [vmem:[#allocation77_spill] sm:$0xff] %v13472_v52  ;;  %v13479_v23 = vpack.c.bf16 %v3001_v33, %v2998_v46  ;;  %v2317_v26 = vadd.f32 %v11349_v37, %v12791_v55  ;;  %v2674_v28 = vmul.f32 0.3, %v2306_v22  ;;  %v3016_v56 = vmax.f32 %v2314_v57, %v2680_v32 }
 0x196   : > { %17659 = vst [vmem:[#allocation79_spill] sm:$0xff] %v13482_v40  ;;  %v1598_v6 = vpop.f32.mrf.mxu0  ;;  %v2308_v13 = vpop.f32.mrf.mxu1  ;;  %v13486_v52 = vpack.c.bf16 %v2880_v17, %v2877_v49  ;;  %v2879_v57 = vmax.f32 %v1577_v61, %v2543_v34  ;;  %v1587_v49 = vadd.f32 %v13436_v44, %v12836_v50  ;;  %v2886_v17 = vmax.f32 %v13467_v45, %v2550_v43 }
 0x197   : > { %17658 = vst [vmem:[#allocation78_spill] sm:$0xff] %v13479_v23  ;;  %v2683_v59 = vmul.f32 0.3, %v2317_v26  ;;  %v2309_v39 = vadd.f32 %v2308_v13, %v12791_v55  ;;  %v3010_v7 = vmax.f32 %v2306_v22, %v2674_v28  ;;  %v13503_v22 = vadd.f32 %v1598_v6, %v12815_v15 }
 0x198   : > { %17660 = vst [vmem:[#allocation80_spill] sm:$0xff] %v13486_v52  ;;  %v13488_v1 = vpop.f32.mrf.mxu0  ;;  %10572 = vmatmul.mubr.msk.bf16.gmra.mxu0 %vm1189_vm0, %v12192_v25  ;;  %v11352_v46 = vpop.f32.mrf.mxu1  ;;  %3972 = vmatmul.mubr.bf16.gmra.mxu1 %v13482_v40  ;;  %v2876_v25 = vmax.f32 %v13454_v38, %v2540_v24  ;;  %v1583_v61 = vadd.f32 %v13414_v19, %v12836_v50 }
 0x199   : > { %v3019_v33 = vmax.f32 %v2317_v26, %v2683_v59  ;;  %v2677_v47 = vmul.f32 0.3, %v2309_v39  ;;  %3981 = vmatprep.mubr.bf16.mxu1 %v13486_v52  ;;  %1850 = vmatprep.mubr.bf16.mxu0 %v17608_v54  ;;  %v2330_v32 = vadd.f32 %v11352_v46, %v12791_v55  ;;  %v2883_v34 = vmax.f32 %v1585_v29, %v2547_v12 }
 0x19a   : > { %v1604_v37 = vpop.f32.mrf.mxu0  ;;  %v2321_v13 = vpop.f32.mrf.mxu1  ;;  %v1595_v59 = vadd.f32 %v1594_v53, %v12815_v15  ;;  %v13514_v6 = vpack.c.bf16 %v2879_v57, %v2876_v25  ;;  %v2556_v29 = vmul.f32 0.3, %v13503_v22  ;;  %v2546_v53 = vmul.f32 0.3, %v1583_v61  ;;  %v12193_v57 = vld [vmem:[%s12380_s0 + $0x170] sm:$0xff]  }
 0x19b   : > { %v13500_v40 = vpack.c.bf16 %v3019_v33, %v3016_v56  ;;  %v3013_v26 = vmax.f32 %v2309_v39, %v2677_v47  ;;  %v2692_v28 = vmul.f32 0.3, %v2330_v32  ;;  %v2322_v44 = vadd.f32 %v2321_v13, %v12791_v55 }
 0x19c   : > { %v13508_v45 = vpop.f32.mrf.mxu0  ;;  %v11353_v43 = vpop.f32.mrf.mxu1  ;;  %17663 = vst [vmem:[#allocation83_spill] sm:$0xff] %v13514_v6  ;;  %v2549_v56 = vmul.f32 0.3, %v1587_v49  ;;  %v13516_v12 = vpack.c.bf16 %v2886_v17, %v2883_v34  ;;  %v2553_v17 = vmul.f32 0.3, %v1595_v59 }
 0x19d   : > { %17661 = vst [vmem:[#allocation81_spill] sm:$0xff] %v13500_v40  ;;  %v13511_v38 = vpack.c.bf16 %v3013_v26, %v3010_v7  ;;  %v2333_v24 = vadd.f32 %v11353_v43, %v12791_v55  ;;  %v2686_v39 = vmul.f32 0.3, %v2322_v44  ;;  %v3028_v33 = vmax.f32 %v2330_v32, %v2692_v28 }
 0x19e   : > { %v1608_v46 = vpop.f32.mrf.mxu0  ;;  %v2324_v19 = vpop.f32.mrf.mxu1  ;;  %17664 = vst [vmem:[#allocation84_spill] sm:$0xff] %v13516_v12  ;;  %v13522_v7 = vadd.f32 %v13456_v11, %v12836_v50  ;;  %v2885_v28 = vmax.f32 %v1587_v49, %v2549_v56  ;;  %v1597_v11 = vadd.f32 %v13476_v41, %v12836_v50 }
 0x19f   : > { %17662 = vst [vmem:[#allocation82_spill] sm:$0xff] %v13511_v38  ;;  %v2695_v47 = vmul.f32 0.3, %v2333_v24  ;;  %v2325_v13 = vadd.f32 %v2324_v19, %v12791_v55  ;;  %v3022_v34 = vmax.f32 %v2322_v44, %v2686_v39  ;;  %v13534_v19 = vadd.f32 %v1608_v46, %v12815_v15 }
 0x1a0   : > { %v13524_v26 = vpop.f32.mrf.mxu0  ;;  %10573 = vmatmul.mubr.msk.bf16.gmra.mxu0 %vm1189_vm0, %v12193_v57  ;;  %v11356_v25 = vpop.f32.mrf.mxu1  ;;  %3982 = vmatmul.mubr.bf16.gmra.mxu1 %v13514_v6  ;;  %v2892_v6 = vmax.f32 %v13503_v22, %v2556_v29  ;;  %v2882_v39 = vmax.f32 %v1583_v61, %v2546_v53  ;;  %v2552_v46 = vmul.f32 0.3, %v13522_v7 }
 0x1a1   : > { %v3031_v43 = vmax.f32 %v2333_v24, %v2695_v47  ;;  %v2689_v32 = vmul.f32 0.3, %v2325_v13  ;;  %3991 = vmatprep.mubr.bf16.mxu1 %v13516_v12  ;;  %1860 = vmatprep.mubr.bf16.mxu0 %v17608_v54  ;;  %v2346_v57 = vadd.f32 %v11356_v25, %v12791_v55  ;;  %v1605_v47 = vadd.f32 %v1604_v37, %v12815_v15 }
 0x1a2   : > { %v1614_v52 = vpop.f32.mrf.mxu0  ;;  %v2337_v40 = vpop.f32.mrf.mxu1  ;;  %v2889_v25 = vmax.f32 %v1595_v59, %v2553_v17  ;;  %v13548_v29 = vpack.c.bf16 %v2885_v28, %v2882_v39  ;;  %v2562_v61 = vmul.f32 0.3, %v13534_v19  ;;  %v12194_v17 = vld [vmem:[%s12380_s0 + $0x178] sm:$0xff]  }
 0x1a3   : > { %v13538_v44 = vpack.c.bf16 %v3031_v43, %v3028_v33  ;;  %v3025_v24 = vmax.f32 %v2325_v13, %v2689_v32  ;;  %v2704_v12 = vmul.f32 0.3, %v2346_v57  ;;  %v2338_v49 = vadd.f32 %v2337_v40, %v12791_v55 }
 0x1a4   : > { %v13542_v56 = vpop.f32.mrf.mxu0  ;;  %v11357_v41 = vpop.f32.mrf.mxu1  ;;  %17667 = vst [vmem:[#allocation87_spill] sm:$0xff] %v13548_v29  ;;  %v2555_v33 = vmul.f32 0.3, %v1597_v11  ;;  %v2559_v23 = vmul.f32 0.3, %v1605_v47 }
 0x1a5   : > { %17665 = vst [vmem:[#allocation85_spill] sm:$0xff] %v13538_v44  ;;  %v13545_v38 = vpack.c.bf16 %v3025_v24, %v3022_v34  ;;  %v2349_v22 = vadd.f32 %v11357_v41, %v12791_v55  ;;  %v2698_v37 = vmul.f32 0.3, %v2338_v49  ;;  %v3040_v40 = vmax.f32 %v2346_v57, %v2704_v12 }
 0x1a6   : > { %v1618_v13 = vpop.f32.mrf.mxu0  ;;  %v2340_v53 = vpop.f32.mrf.mxu1  ;;  %v13552_v44 = vpack.c.bf16 %v2892_v6, %v2889_v25  ;;  %v2891_v12 = vmax.f32 %v1597_v11, %v2555_v33  ;;  %v13563_v6 = vadd.f32 %v13508_v45, %v12836_v50  ;;  %v2898_v57 = vmax.f32 %v13534_v19, %v2562_v61  ;;  %v12089_v11 = vld [vmem:[%s17580_s22 + $0x68] ss:$12 sps:$4 sm:$0xff]  }
 0x1a7   : > { %17666 = vst [vmem:[#allocation86_spill] sm:$0xff] %v13545_v38  ;;  %v2707_v43 = vmul.f32 0.3, %v2349_v22  ;;  %v2341_v32 = vadd.f32 %v2340_v53, %v12791_v55  ;;  %v3034_v28 = vmax.f32 %v2338_v49, %v2698_v37  ;;  %v1603_v45 = vadd.f32 %v13488_v1, %v12836_v50  ;;  %4962 = vmatpush1.bf16.msra.mxu1 %v12089_v11  ;;  %v12195_v11 = vld [vmem:[%s12380_s0 + $0x180] sm:$0xff]  }
 0x1a8   : > { %17668 = vst [vmem:[#allocation88_spill] sm:$0xff] %v13552_v44  ;;  %v13554_v59 = vpop.f32.mrf.mxu0  ;;  %10574 = vmatmul.mubr.msk.bf16.gmra.mxu0 %vm1189_vm0, %v12194_v17  ;;  %v11360_v34 = vpop.f32.mrf.mxu1  ;;  %3992 = vmatmul.mubr.bf16.gmra.mxu1 %v13548_v29  ;;  %v2888_v17 = vmax.f32 %v13522_v7, %v2552_v46  ;;  %v2895_v19 = vmax.f32 %v1605_v47, %v2559_v23 }
 0x1a9   : > { %v3043_v24 = vmax.f32 %v2349_v22, %v2707_v43  ;;  %v2701_v39 = vmul.f32 0.3, %v2341_v32  ;;  %4001 = vmatprep.mubr.bf16.mxu1 %v13552_v44  ;;  %1870 = vmatprep.mubr.bf16.mxu0 %v17608_v54  ;;  %v2362_v41 = vadd.f32 %v11360_v34, %v12791_v55  ;;  %v13571_v22 = vadd.f32 %v1618_v13, %v12815_v15 }
 0x1aa   : > { %v1624_v25 = vpop.f32.mrf.mxu0  ;;  %v2353_v53 = vpop.f32.mrf.mxu1  ;;  %v1615_v46 = vadd.f32 %v1614_v52, %v12815_v15  ;;  %v2561_v34 = vmul.f32 0.3, %v13563_v6  ;;  %4963 = vmatprep.subr.bf16.mxu1 %v17608_v54 }
 0x1ab   : > { %v13568_v49 = vpack.c.bf16 %v3043_v24, %v3040_v40  ;;  %v3037_v37 = vmax.f32 %v2341_v32, %v2701_v39  ;;  %v2716_v33 = vmul.f32 0.3, %v2362_v41  ;;  %v2354_v61 = vadd.f32 %v2353_v53, %v12791_v55 }
 0x1ac   : > { %v13579_v43 = vpop.f32.mrf.mxu0  ;;  %v11361_v7 = vpop.f32.mrf.mxu1  ;;  %v13585_v32 = vpack.c.bf16 %v2891_v12, %v2888_v17  ;;  %v13588_v24 = vpack.c.bf16 %v2898_v57, %v2895_v19  ;;  %v2568_v39 = vmul.f32 0.3, %v13571_v22  ;;  %v13595_v12 = vadd.f32 %v13524_v26, %v12836_v50 }
 0x1ad   : > { %17669 = vst [vmem:[#allocation89_spill] sm:$0xff] %v13568_v49  ;;  %v13582_v40 = vpack.c.bf16 %v3037_v37, %v3034_v28  ;;  %v2365_v13 = vadd.f32 %v11361_v7, %v12791_v55  ;;  %v2710_v1 = vmul.f32 0.3, %v2354_v61  ;;  %v3052_v52 = vmax.f32 %v2362_v41, %v2716_v33 }
 0x1ae   : > { %17671 = vst [vmem:[#allocation91_spill] sm:$0xff] %v13585_v32  ;;  %v1628_v23 = vpop.f32.mrf.mxu0  ;;  %v2356_v47 = vpop.f32.mrf.mxu1  ;;  %17672 = vst [vmem:[#allocation92_spill] sm:$0xff] %v13588_v24  ;;  %v2558_v37 = vmul.f32 0.3, %v1603_v45  ;;  %v2565_v19 = vmul.f32 0.3, %v1615_v46  ;;  %v2897_v33 = vmax.f32 %v13563_v6, %v2561_v34  ;;  %v1617_v26 = vadd.f32 %v13542_v56, %v12836_v50 }
 0x1af   : > { %17670 = vst [vmem:[#allocation90_spill] sm:$0xff] %v13582_v40  ;;  %v2719_v28 = vmul.f32 0.3, %v2365_v13  ;;  %v2357_v53 = vadd.f32 %v2356_v47, %v12791_v55  ;;  %v3046_v7 = vmax.f32 %v2354_v61, %v2710_v1  ;;  %v13608_v47 = vadd.f32 %v1628_v23, %v12815_v15 }
 0x1b0   : > { %v13597_v17 = vpop.f32.mrf.mxu0  ;;  %10575 = vmatmul.mubr.msk.bf16.gmra.mxu0 %vm1189_vm0, %v12195_v11  ;;  %v11364_v57 = vpop.f32.mrf.mxu1  ;;  %4002 = vmatmul.mubr.bf16.gmra.mxu1 %v13585_v32  ;;  %v2904_v61 = vmax.f32 %v13571_v22, %v2568_v39  ;;  %v2564_v23 = vmul.f32 0.3, %v13595_v12  ;;  %v2567_v39 = vmul.f32 0.3, %v1617_v26 }
 0x1b1   : > { %v3055_v44 = vmax.f32 %v2365_v13, %v2719_v28  ;;  %v2713_v41 = vmul.f32 0.3, %v2357_v53  ;;  %4011 = vmatprep.mubr.bf16.mxu1 %v13588_v24  ;;  %1880 = vmatprep.mubr.bf16.mxu0 %v17608_v54  ;;  %v2378_v11 = vadd.f32 %v11364_v57, %v12791_v55  ;;  %v2894_v28 = vmax.f32 %v1603_v45, %v2558_v37 }
 0x1b2   : > { %v1634_v29 = vpop.f32.mrf.mxu0  ;;  %v2369_v32 = vpop.f32.mrf.mxu1  ;;  %v1625_v24 = vadd.f32 %v1624_v25, %v12815_v15  ;;  %v2901_v57 = vmax.f32 %v1615_v46, %v2565_v19  ;;  %v2574_v45 = vmul.f32 0.3, %v13608_v47  ;;  %v12196_v19 = vld [vmem:[%s12380_s0 + $0x188] sm:$0xff]  }
 0x1b3   : > { %v13612_v13 = vpack.c.bf16 %v3055_v44, %v3052_v52  ;;  %v3049_v1 = vmax.f32 %v2357_v53, %v2713_v41  ;;  %v2728_v49 = vmul.f32 0.3, %v2378_v11  ;;  %v2370_v6 = vadd.f32 %v2369_v32, %v12791_v55 }
 0x1b4   : > { %v13616_v34 = vpop.f32.mrf.mxu0  ;;  %v11365_v56 = vpop.f32.mrf.mxu1  ;;  %v13622_v44 = vpack.c.bf16 %v2897_v33, %v2894_v28  ;;  %v2571_v38 = vmul.f32 0.3, %v1625_v24 }
 0x1b5   : > { %17673 = vst [vmem:[#allocation93_spill] sm:$0xff] %v13612_v13  ;;  %v13619_v40 = vpack.c.bf16 %v3049_v1, %v3046_v7  ;;  %v2381_v22 = vadd.f32 %v11365_v56, %v12791_v55  ;;  %v2722_v25 = vmul.f32 0.3, %v2370_v6  ;;  %v3064_v32 = vmax.f32 %v2378_v11, %v2728_v49 }
 0x1b6   : > { %17675 = vst [vmem:[#allocation95_spill] sm:$0xff] %v13622_v44  ;;  %v1638_v52 = vpop.f32.mrf.mxu0  ;;  %v2372_v53 = vpop.f32.mrf.mxu1  ;;  %v13626_v13 = vpack.c.bf16 %v2904_v61, %v2901_v57  ;;  %v2903_v49 = vmax.f32 %v1617_v26, %v2567_v39  ;;  %v1627_v11 = vadd.f32 %v13579_v43, %v12836_v50  ;;  %v2910_v61 = vmax.f32 %v13608_v47, %v2574_v45 }
 0x1b7   : > { %17674 = vst [vmem:[#allocation94_spill] sm:$0xff] %v13619_v40  ;;  %v2731_v37 = vmul.f32 0.3, %v2381_v22  ;;  %v2373_v41 = vadd.f32 %v2372_v53, %v12791_v55  ;;  %v3058_v33 = vmax.f32 %v2370_v6, %v2722_v25  ;;  %v13643_v6 = vadd.f32 %v1638_v52, %v12815_v15 }
 0x1b8   : > { %17676 = vst [vmem:[#allocation96_spill] sm:$0xff] %v13626_v13  ;;  %v13628_v46 = vpop.f32.mrf.mxu0  ;;  %10576 = vmatmul.mubr.msk.bf16.gmra.mxu0 %vm1189_vm0, %v12196_v19  ;;  %v11368_v7 = vpop.f32.mrf.mxu1  ;;  %4012 = vmatmul.mubr.bf16.gmra.mxu1 %v13622_v44  ;;  %v2900_v19 = vmax.f32 %v13595_v12, %v2564_v23  ;;  %v1623_v26 = vadd.f32 %v13554_v59, %v12836_v50 }
 0x1b9   : > { %v3067_v1 = vmax.f32 %v2381_v22, %v2731_v37  ;;  %v2725_v28 = vmul.f32 0.3, %v2373_v41  ;;  %4021 = vmatprep.mubr.bf16.mxu1 %v13626_v13  ;;  %1890 = vmatprep.mubr.bf16.mxu0 %v17608_v54  ;;  %v2394_v56 = vadd.f32 %v11368_v7, %v12791_v55  ;;  %v2907_v39 = vmax.f32 %v1625_v24, %v2571_v38 }
 0x1ba   : > { %v1644_v57 = vpop.f32.mrf.mxu0  ;;  %v2385_v53 = vpop.f32.mrf.mxu1  ;;  %v1635_v37 = vadd.f32 %v1634_v29, %v12815_v15  ;;  %v13654_v52 = vpack.c.bf16 %v2903_v49, %v2900_v19  ;;  %v2580_v24 = vmul.f32 0.3, %v13643_v6  ;;  %v2570_v29 = vmul.f32 0.3, %v1623_v26  ;;  %v12197_v49 = vld [vmem:[%s12380_s0 + $0x190] sm:$0xff]  }
 0x1bb   : > { %v13640_v44 = vpack.c.bf16 %v3067_v1, %v3064_v32  ;;  %v3061_v22 = vmax.f32 %v2373_v41, %v2725_v28  ;;  %v2740_v25 = vmul.f32 0.3, %v2394_v56  ;;  %v2386_v43 = vadd.f32 %v2385_v53, %v12791_v55 }
 0x1bc   : > { %v13648_v47 = vpop.f32.mrf.mxu0  ;;  %v11369_v45 = vpop.f32.mrf.mxu1  ;;  %17679 = vst [vmem:[#allocation99_spill] sm:$0xff] %v13654_v52  ;;  %v2573_v32 = vmul.f32 0.3, %v1627_v11  ;;  %v13656_v38 = vpack.c.bf16 %v2910_v61, %v2907_v39  ;;  %v2577_v61 = vmul.f32 0.3, %v1635_v37 }
 0x1bd   : > { %17677 = vst [vmem:[#allocation97_spill] sm:$0xff] %v13640_v44  ;;  %v13651_v12 = vpack.c.bf16 %v3061_v22, %v3058_v33  ;;  %v2397_v23 = vadd.f32 %v11369_v45, %v12791_v55  ;;  %v2734_v41 = vmul.f32 0.3, %v2386_v43  ;;  %v3076_v1 = vmax.f32 %v2394_v56, %v2740_v25 }
 0x1be   : > { %v1648_v7 = vpop.f32.mrf.mxu0  ;;  %v2388_v59 = vpop.f32.mrf.mxu1  ;;  %17680 = vst [vmem:[#allocation100_spill] sm:$0xff] %v13656_v38  ;;  %v13662_v33 = vadd.f32 %v13597_v17, %v12836_v50  ;;  %v2909_v25 = vmax.f32 %v1627_v11, %v2573_v32  ;;  %v1637_v17 = vadd.f32 %v13616_v34, %v12836_v50 }
 0x1bf   : > { %17678 = vst [vmem:[#allocation98_spill] sm:$0xff] %v13651_v12  ;;  %v2743_v28 = vmul.f32 0.3, %v2397_v23  ;;  %v2389_v53 = vadd.f32 %v2388_v59, %v12791_v55  ;;  %v3070_v39 = vmax.f32 %v2386_v43, %v2734_v41  ;;  %v13674_v59 = vadd.f32 %v1648_v7, %v12815_v15 }
 0x1c0   : > { %v13664_v22 = vpop.f32.mrf.mxu0  ;;  %10577 = vmatmul.mubr.msk.bf16.gmra.mxu0 %vm1189_vm0, %v12197_v49  ;;  %v11372_v19 = vpop.f32.mrf.mxu1  ;;  %4022 = vmatmul.mubr.bf16.gmra.mxu1 %v13654_v52  ;;  %v2916_v52 = vmax.f32 %v13643_v6, %v2580_v24  ;;  %v2906_v41 = vmax.f32 %v1623_v26, %v2570_v29  ;;  %v2576_v7 = vmul.f32 0.3, %v13662_v33  ;;  %v2913_v12 = vmax.f32 %v1635_v37, %v2577_v61  ;;  %v12091_v26 = vld [vmem:[%s17580_s22 + $0x50] ss:$12 sps:$4 sm:$0xff]  }
 0x1c1   : > { %v3079_v45 = vmax.f32 %v2397_v23, %v2743_v28  ;;  %v2737_v56 = vmul.f32 0.3, %v2389_v53  ;;  %4031 = vmatprep.mubr.bf16.mxu1 %v13656_v38  ;;  %1900 = vmatprep.mubr.bf16.mxu0 %v17608_v54  ;;  %v2410_v49 = vadd.f32 %v11372_v19, %v12791_v55  ;;  %v1645_v28 = vadd.f32 %v1644_v57, %v12815_v15 }
 0x1c2   : > { %v1654_v13 = vpop.f32.mrf.mxu0  ;;  %v2401_v44 = vpop.f32.mrf.mxu1  ;;  %v13691_v24 = vpack.c.bf16 %v2909_v25, %v2906_v41  ;;  %v2579_v57 = vmul.f32 0.3, %v1637_v17  ;;  %v13695_v61 = vpack.c.bf16 %v2916_v52, %v2913_v12  ;;  %4964 = vmatpush1.bf16.msra.mxu1 %v12091_v26  ;;  %v1647_v12 = vadd.f32 %v13648_v47, %v12836_v50 }
 0x1c3   : > { %v13678_v43 = vpack.c.bf16 %v3079_v45, %v3076_v1  ;;  %v3073_v23 = vmax.f32 %v2389_v53, %v2737_v56  ;;  %v2752_v38 = vmul.f32 0.3, %v2410_v49  ;;  %v2402_v11 = vadd.f32 %v2401_v44, %v12791_v55  ;;  %4965 = vmatprep.subr.bf16.mxu1 %v17608_v54 }
 0x1c4   : > { %v13682_v32 = vpop.f32.mrf.mxu0  ;;  %v11373_v34 = vpop.f32.mrf.mxu1  ;;  %17683 = vst [vmem:[#allocation103_spill] sm:$0xff] %v13691_v24  ;;  %v2586_v44 = vmul.f32 0.3, %v13674_v59  ;;  %17684 = vst [vmem:[#allocation104_spill] sm:$0xff] %v13695_v61 }
 0x1c5   : > { %17681 = vst [vmem:[#allocation101_spill] sm:$0xff] %v13678_v43  ;;  %v13685_v19 = vpack.c.bf16 %v3073_v23, %v3070_v39  ;;  %v2413_v6 = vadd.f32 %v11373_v34, %v12791_v55  ;;  %v2746_v1 = vmul.f32 0.3, %v2402_v11  ;;  %v3088_v45 = vmax.f32 %v2410_v49, %v2752_v38  ;;  %v12198_v34 = vld [vmem:[%s12380_s0 + $0x198] sm:$0xff]  }
 0x1c6   : > { %v1658_v53 = vpop.f32.mrf.mxu0  ;;  %v2404_v29 = vpop.f32.mrf.mxu1  ;;  %v2583_v39 = vmul.f32 0.3, %v1645_v28  ;;  %v2915_v38 = vmax.f32 %v1637_v17, %v2579_v57  ;;  %v2922_v52 = vmax.f32 %v13674_v59, %v2586_v44  ;;  %v1643_v17 = vadd.f32 %v13628_v46, %v12836_v50 }
 0x1c7   : > { %17682 = vst [vmem:[#allocation102_spill] sm:$0xff] %v13685_v19  ;;  %v2755_v56 = vmul.f32 0.3, %v2413_v6  ;;  %v2405_v37 = vadd.f32 %v2404_v29, %v12791_v55  ;;  %v3082_v41 = vmax.f32 %v2402_v11, %v2746_v1  ;;  %v2912_v11 = vmax.f32 %v13662_v33, %v2576_v7 }
 0x1c8   : > { %v13697_v23 = vpop.f32.mrf.mxu0  ;;  %10578 = vmatmul.mubr.msk.bf16.gmra.mxu0 %vm1189_vm0, %v12198_v34  ;;  %v11376_v25 = vpop.f32.mrf.mxu1  ;;  %4032 = vmatmul.mubr.bf16.gmra.mxu1 %v13691_v24  ;;  %v1659_v1 = vadd.f32 %v1658_v53, %v12815_v15  ;;  %v2919_v57 = vmax.f32 %v1645_v28, %v2583_v39  ;;  %v2585_v7 = vmul.f32 0.3, %v1647_v12 }
 0x1c9   : > { %v3091_v43 = vmax.f32 %v2413_v6, %v2755_v56  ;;  %v2749_v19 = vmul.f32 0.3, %v2405_v37  ;;  %4041 = vmatprep.mubr.bf16.mxu1 %v13695_v61  ;;  %1910 = vmatprep.mubr.bf16.mxu0 %v17608_v54  ;;  %v2426_v49 = vadd.f32 %v11376_v25, %v12791_v55  ;;  %v1655_v25 = vadd.f32 %v1654_v13, %v12815_v15  ;;  %v12199_v13 = vld [vmem:[%s12380_s0 + $0x1a0] sm:$0xff]  }
 0x1ca   : > { %v1664_v26 = vpop.f32.mrf.mxu0  ;;  %v2417_v29 = vpop.f32.mrf.mxu1  ;;  %v13722_v46 = vpack.c.bf16 %v2922_v52, %v2919_v57  ;;  %v2592_v28 = vmul.f32 0.3, %v1659_v1 }
 0x1cb   : > { %v13710_v6 = vpack.c.bf16 %v3091_v43, %v3088_v45  ;;  %v3085_v56 = vmax.f32 %v2405_v37, %v2749_v19  ;;  %v2764_v47 = vmul.f32 0.3, %v2426_v49  ;;  %v2418_v59 = vadd.f32 %v2417_v29, %v12791_v55 }
 0x1cc   : > { %v1666_v44 = vpop.f32.mrf.mxu0  ;;  %v11377_v34 = vpop.f32.mrf.mxu1  ;;  %v13720_v43 = vpack.c.bf16 %v2915_v38, %v2912_v11  ;;  %17688 = vst [vmem:[#allocation108_spill] sm:$0xff] %v13722_v46  ;;  %v2589_v38 = vmul.f32 0.3, %v1655_v25 }
 0x1cd   : > { %17685 = vst [vmem:[#allocation105_spill] sm:$0xff] %v13710_v6  ;;  %v13717_v61 = vpack.c.bf16 %v3085_v56, %v3082_v41  ;;  %v2429_v33 = vadd.f32 %v11377_v34, %v12791_v55  ;;  %v2758_v19 = vmul.f32 0.3, %v2418_v59  ;;  %v3100_v37 = vmax.f32 %v2426_v49, %v2764_v47 }
 0x1ce   : > { %17687 = vst [vmem:[#allocation107_spill] sm:$0xff] %v13720_v43  ;;  %v1668_v53 = vpop.f32.mrf.mxu0  ;;  %v2420_v45 = vpop.f32.mrf.mxu1  ;;  %v2582_v6 = vmul.f32 0.3, %v1643_v17  ;;  %v2921_v49 = vmax.f32 %v1647_v12, %v2585_v7  ;;  %v2928_v34 = vmax.f32 %v1659_v1, %v2592_v28  ;;  %v2925_v12 = vmax.f32 %v1655_v25, %v2589_v38 }
 0x1cf   : > { %17686 = vst [vmem:[#allocation106_spill] sm:$0xff] %v13717_v61  ;;  %v2767_v39 = vmul.f32 0.3, %v2429_v33  ;;  %v2421_v29 = vadd.f32 %v2420_v45, %v12791_v55  ;;  %v3094_v11 = vmax.f32 %v2418_v59, %v2758_v19  ;;  %v1657_v55 = vadd.f32 %v13682_v32, %v12836_v50 }
 0x1d0   : > { %v13725_v24 = vpop.f32.mrf.mxu0  ;;  %10579 = vmatmul.mubr.msk.bf16.gmra.mxu0 %vm1189_vm0, %v12199_v13  ;;  %v13729_v41 = vpop.f32.mrf.mxu1  ;;  %4042 = vmatmul.mubr.bf16.gmra.mxu1 %v13720_v43  ;;  %v1669_v13 = vadd.f32 %v1668_v53, %v12815_v15  ;;  %v2918_v59 = vmax.f32 %v1643_v17, %v2582_v6  ;;  %v1665_v32 = vadd.f32 %v1664_v26, %v12815_v15 }
 0x1d1   : > { %v3103_v56 = vmax.f32 %v2429_v33, %v2767_v39  ;;  %v2761_v52 = vmul.f32 0.3, %v2421_v29  ;;  %4051 = vmatprep.mubr.bf16.mxu1 %v13722_v46  ;;  %1920 = vmatprep.mubr.bf16.mxu0 %v17608_v54  ;;  %v1653_v33 = vadd.f32 %v13664_v22, %v12836_v50  ;;  %v2591_v1 = vmul.f32 0.3, %v1657_v55  ;;  %v12200_v22 = vld [vmem:[%s12380_s0 + $0x1a8] sm:$0xff]  }
 0x1d2   : > { %v1674_v57 = vpop.f32.mrf.mxu0  ;;  %v13736_v47 = vpop.f32.mrf.mxu1  ;;  %v13748_v46 = vpack.c.bf16 %v2921_v49, %v2918_v59  ;;  %v2598_v53 = vmul.f32 0.3, %v1669_v13  ;;  %v2595_v26 = vmul.f32 0.3, %v1665_v32  ;;  %v1667_v38 = vadd.f32 %v1666_v44, %v12836_v50 }
 0x1d3   : > { %v13738_v45 = vpack.c.bf16 %v3103_v56, %v3100_v37  ;;  %v3097_v43 = vmax.f32 %v2421_v29, %v2761_v52  ;;  %v13752_v29 = vpack.c.bf16 %v2928_v34, %v2925_v12  ;;  %v2588_v6 = vmul.f32 0.3, %v1653_v33 }
 0x1d4   : > { %v1676_v19 = vpop.f32.mrf.mxu0  ;;  %v13743_v39 = vpop.f32.mrf.mxu1  ;;  %17691 = vst [vmem:[#allocation111_spill] sm:$0xff] %v13748_v46  ;;  %v2934_v52 = vmax.f32 %v1669_v13, %v2598_v53  ;;  %v1663_v59 = vadd.f32 %v13697_v23, %v12836_v50  ;;  %v2597_v44 = vmul.f32 0.3, %v1667_v38 }
 0x1d5   : > { %17689 = vst [vmem:[#allocation109_spill] sm:$0xff] %v13738_v45  ;;  %v13746_v7 = vpack.c.bf16 %v3097_v43, %v3094_v11  ;;  %17692 = vst [vmem:[#allocation112_spill] sm:$0xff] %v13752_v29  ;;  %v2927_v43 = vmax.f32 %v1657_v55, %v2591_v1  ;;  %v2924_v34 = vmax.f32 %v1653_v33, %v2588_v6  ;;  %v12201_v6 = vld [vmem:[%s12380_s0 + $0x1b0] sm:$0xff]  }
 0x1d6   : > { %v1678_v28 = vpop.f32.mrf.mxu0  ;;  %v13750_v37 = vpop.f32.mrf.mxu1  ;;  %v2931_v45 = vmax.f32 %v1665_v32, %v2595_v26  ;;  %v2933_v32 = vmax.f32 %v1667_v38, %v2597_v44  ;;  %v1677_v26 = vadd.f32 %v1676_v19, %v12836_v50 }
 0x1d7   : > { %17690 = vst [vmem:[#allocation110_spill] sm:$0xff] %v13746_v7  ;;  %v1679_v49 = vadd.f32 %v1678_v28, %v12815_v15  ;;  %v1675_v7 = vadd.f32 %v1674_v57, %v12815_v15  ;;  %v13772_v55 = vpack.c.bf16 %v2927_v43, %v2924_v34  ;;  %v2594_v28 = vmul.f32 0.3, %v1663_v59 }
 0x1d8   : > { %v13754_v17 = vpop.f32.mrf.mxu0  ;;  %10580 = vmatmul.mubr.msk.bf16.gmra.mxu0 %vm1189_vm0, %v12200_v22  ;;  %v13758_v25 = vpop.f32.mrf.mxu1  ;;  %4052 = vmatmul.mubr.bf16.gmra.mxu1 %v13748_v46  ;;  %v13776_v53 = vpack.c.bf16 %v2934_v52, %v2931_v45 }
 0x1d9   : > { %4061 = vmatprep.mubr.bf16.mxu1 %v13752_v29  ;;  %1930 = vmatprep.mubr.bf16.mxu0 %v17608_v54  ;;  %17693 = vst [vmem:[#allocation113_spill] sm:$0xff] %v13772_v55  ;;  %v2604_v13 = vmul.f32 0.3, %v1679_v49  ;;  %v2601_v57 = vmul.f32 0.3, %v1675_v7  ;;  %v2930_v46 = vmax.f32 %v1663_v59, %v2594_v28 }
 0x1da   : > { %v1684_v11 = vpop.f32.mrf.mxu0  ;;  %v13764_v56 = vpop.f32.mrf.mxu1  ;;  %17694 = vst [vmem:[#allocation114_spill] sm:$0xff] %v13776_v53 }
 0x1db   : > { %v2940_v52 = vmax.f32 %v1679_v49, %v2604_v13  ;;  %v2937_v38 = vmax.f32 %v1675_v7, %v2601_v57  ;;  %v1685_v19 = vadd.f32 %v1684_v11, %v12815_v15  ;;  %v13799_v44 = vpack.c.bf16 %v2933_v32, %v2930_v46 }
 0x1dc   : > { %v1686_v12 = vpop.f32.mrf.mxu0  ;;  %v13769_v22 = vpop.f32.mrf.mxu1  ;;  %v2603_v49 = vmul.f32 0.3, %v1677_v26 }
 0x1dd   : > { %17698 = vst [vmem:[#allocation118_spill] sm:$0xff] %v13799_v44  ;;  %v13804_v28 = vpack.c.bf16 %v2940_v52, %v2937_v38  ;;  %v2607_v46 = vmul.f32 0.3, %v1685_v19  ;;  %v1687_v57 = vadd.f32 %v1686_v12, %v12836_v50 }
 0x1de   : > { %v1688_v1 = vpop.f32.mrf.mxu0  ;;  %v13774_v29 = vpop.f32.mrf.mxu1  ;;  %v2939_v11 = vmax.f32 %v1677_v26, %v2603_v49 }
 0x1df   : > { %v1689_v34 = vadd.f32 %v1688_v1, %v12815_v15  ;;  %17700 = vst [vmem:[#allocation120_spill] sm:$0xff] %v13804_v28  ;;  %v2609_v26 = vmul.f32 0.3, %v1687_v57 }
 0x1e0   : > { %v13778_v33 = vpop.f32.mrf.mxu0  ;;  %10581 = vmatmul.mubr.msk.bf16.gmra.mxu0 %vm1189_vm0, %v12201_v6  ;;  %v13782_v23 = vpop.f32.mrf.mxu1  ;;  %4062 = vmatmul.mubr.bf16.gmra.mxu1 %v13772_v55  ;;  %v12092_v6 = vld [vmem:[%s17580_s22 + $0x38] ss:$12 sps:$4 sm:$0xff]  }
 0x1e1   : > { %17695 = vst [vmem:[#allocation115_spill] sm:$0xff] %v13782_v23  ;;  %4071 = vmatprep.mubr.bf16.mxu1 %v13776_v53  ;;  %1940 = vmatprep.mubr.bf16.mxu0 %v17608_v54  ;;  %v1673_v53 = vadd.f32 %v13725_v24, %v12836_v50  ;;  %v2610_v59 = vmul.f32 0.3, %v1689_v34 }
 0x1e2   : > { %v1694_v45 = vpop.f32.mrf.mxu0  ;;  %v13788_v43 = vpop.f32.mrf.mxu1  ;;  %4966 = vmatpush1.bf16.msra.mxu1 %v12092_v6 }
 0x1e3   : > { %17696 = vst [vmem:[#allocation116_spill] sm:$0xff] %v13788_v43  ;;  %4967 = vmatprep.subr.bf16.mxu1 %v17608_v54  ;;  %v2600_v40 = vmul.f32 0.3, %v1673_v53  ;;  %v12202_v43 = vld [vmem:[%s12380_s0 + $0x1b8] sm:$0xff]   ;;  %v2946_v6 = vmax.f32 %v1689_v34, %v2610_v59 }
 0x1e4   : > { %v1696_v55 = vpop.f32.mrf.mxu0  ;;  %v13796_v61 = vpop.f32.mrf.mxu1  ;;  %v12090_v34 = vld [vmem:[%s17580_s22 + $0x218] ss:$12 sps:$4 sm:$0xff]  }
 0x1e5   : > { %17697 = vst [vmem:[#allocation117_spill] sm:$0xff] %v13796_v61  ;;  %v2943_v61 = vmax.f32 %v1685_v19, %v2607_v46  ;;  %v12203_v19 = vld [vmem:[%s17580_s22 + $0x230] ss:$12 sps:$4 sm:$0xff]  }
 0x1e6   : > { %v1698_v1 = vpop.f32.mrf.mxu0  ;;  %v13801_v13 = vpop.f32.mrf.mxu1 }
 0x1e7   : > { %17699 = vst [vmem:[#allocation119_spill] sm:$0xff] %v13801_v13  ;;  %v1699_v38 = vadd.f32 %v1698_v1, %v12815_v15  ;;  %v2936_v13 = vmax.f32 %v1673_v53, %v2600_v40  ;;  %v13831_v53 = vpack.c.bf16 %v2946_v6, %v2943_v61  ;;  %v1697_v61 = vadd.f32 %v1696_v55, %v12836_v50  ;;  %v12093_v6 = vld [vmem:[%s17580_s22 + $0x200] ss:$12 sps:$4 sm:$0xff]  }
 0x1e8   : > { %v13806_v24 = vpop.f32.mrf.mxu0  ;;  %10582 = vmatmul.mubr.msk.bf16.gmra.mxu0 %vm1189_vm0, %v12202_v43  ;;  %v13810_v7 = vpop.f32.mrf.mxu1  ;;  %4072 = vmatmul.mubr.bf16.gmra.mxu1 %v13799_v44  ;;  %v1683_v43 = vadd.f32 %v13754_v17, %v12836_v50 }
 0x1e9   : > { %17701 = vst [vmem:[#allocation121_spill] sm:$0xff] %v13810_v7  ;;  %4081 = vmatprep.mubr.bf16.mxu1 %v13804_v28  ;;  %4394 = vmatprep.mubr.bf16.mxu0 %v17608_v54  ;;  %v1695_v28 = vadd.f32 %v1694_v45, %v12815_v15  ;;  %v13824_v23 = vpack.c.bf16 %v2939_v11, %v2936_v13  ;;  %v2616_v40 = vmul.f32 0.3, %v1699_v38  ;;  %17706 = vst [vmem:[#allocation126_spill] sm:$0xff] %v13831_v53 }
 0x1ea   : > { %v1704_v32 = vpop.f32.mrf.mxu0  ;;  %v13816_v52 = vpop.f32.mrf.mxu1  ;;  %v2606_v17 = vmul.f32 0.3, %v1683_v43  ;;  %v2945_v13 = vmax.f32 %v1687_v57, %v2609_v26 }
 0x1eb   : > { %17702 = vst [vmem:[#allocation122_spill] sm:$0xff] %v13816_v52  ;;  %17704 = vst [vmem:[#allocation124_spill] sm:$0xff] %v13824_v23  ;;  %v2613_v45 = vmul.f32 0.3, %v1695_v28 }
 0x1ec   : > { %v1706_v7 = vpop.f32.mrf.mxu0  ;;  %v13821_v44 = vpop.f32.mrf.mxu1 }
 0x1ed   : > { %17703 = vst [vmem:[#allocation123_spill] sm:$0xff] %v13821_v44  ;;  %v2949_v55 = vmax.f32 %v1695_v28, %v2613_v45 }
 0x1ee   : > { %v1708_v12 = vpop.f32.mrf.mxu0  ;;  %v13826_v49 = vpop.f32.mrf.mxu1 }
 0x1ef   : > { %17705 = vst [vmem:[#allocation125_spill] sm:$0xff] %v13826_v49  ;;  %v2615_v49 = vmul.f32 0.3, %v1697_v61 }
 0x1f0   : > { %v13833_v1 = vpop.f32.mrf.mxu0  ;;  %v13835_v59 = vpop.f32.mrf.mxu1  ;;  %4082 = vmatmul.mubr.bf16.gmra.mxu1 %v13824_v23  ;;  %4395 = vmatmul.mubr.bf16.vlgmr.msra.gmra.mxu0 %v12829_v42  ;;  %v2952_v23 = vmax.f32 %v1699_v38, %v2616_v40  ;;  %v2942_v42 = vmax.f32 %v1683_v43, %v2606_v17 }
 0x1f1   : > { %17707 = vst [vmem:[#allocation127_spill] sm:$0xff] %v13835_v59  ;;  %4091 = vmatprep.mubr.bf16.mxu1 %v13831_v53  ;;  %11379 = vmatpush3.bf16.msra.mxu0 %v12203_v19  ;;  %v1709_v53 = vadd.f32 %v1708_v12, %v12815_v15  ;;  %v1693_v19 = vadd.f32 %v13778_v33, %v12836_v50 }
 0x1f2   : > { %v1714_v46 = vpop.f32.mrf.mxu0  ;;  %v13844_v11 = vpop.f32.mrf.mxu1  ;;  %4404 = vmatprep.mubr.bf16.mxu0 %v17608_v54  ;;  %11380 = vmatprep.subr.bf16.mxu0 %v12090_v34  ;;  %v13856_v59 = vpack.c.bf16 %v2945_v13, %v2942_v42  ;;  %v13860_v12 = vpack.c.bf16 %v2952_v23, %v2949_v55  ;;  %v2951_v42 = vmax.f32 %v1697_v61, %v2615_v49 }
 0x1f3   : > { %17708 = vst [vmem:[#allocation128_spill] sm:$0xff] %v13844_v11  ;;  %v1705_v11 = vadd.f32 %v1704_v32, %v12815_v15  ;;  %v2622_v38 = vmul.f32 0.3, %v1709_v53  ;;  %v2612_v43 = vmul.f32 0.3, %v1693_v19  ;;  %v1707_v32 = vadd.f32 %v1706_v7, %v12836_v50 }
 0x1f4   : > { %v1716_v57 = vpop.f32.mrf.mxu0  ;;  %v13853_v26 = vpop.f32.mrf.mxu1  ;;  %17709 = vst [vmem:[#allocation129_spill] sm:$0xff] %v13856_v59  ;;  %17710 = vst [vmem:[#allocation130_spill] sm:$0xff] %v13860_v12  ;;  %v1703_v55 = vadd.f32 %v13806_v24, %v12836_v50  ;;  %v12094_v7 = vld [vmem:[%s17580_s22 + $0x20] ss:$12 sps:$4 sm:$0xff]  }
 0x1f5   : > { %11381 = vmatpush3.bf16.msra.mxu0 %v12090_v34  ;;  %v2619_v28 = vmul.f32 0.3, %v1705_v11  ;;  %v2958_v17 = vmax.f32 %v1709_v53, %v2622_v38  ;;  %v2948_v13 = vmax.f32 %v1693_v19, %v2612_v43  ;;  %v2621_v61 = vmul.f32 0.3, %v1707_v32  ;;  %4968 = vmatpush1.bf16.msra.mxu1 %v12094_v7 }
 0x1f6   : > { %v1718_v44 = vpop.f32.mrf.mxu0  ;;  %v13858_v52 = vpop.f32.mrf.mxu1  ;;  %11382 = vmatprep.subr.bf16.mxu0 %v12093_v6  ;;  %v2618_v24 = vmul.f32 0.3, %v1703_v55  ;;  %4969 = vmatprep.subr.bf16.mxu1 %v17608_v54 }
 0x1f7   : > { %v1719_v45 = vadd.f32 %v1718_v44, %v12815_v15  ;;  %v13882_v49 = vpack.c.bf16 %v2951_v42, %v2948_v13  ;;  %v2957_v43 = vmax.f32 %v1707_v32, %v2621_v61 }
 0x1f8   : > { %v13862_v40 = vpop.f32.mrf.mxu0  ;;  %v13864_v33 = vpop.f32.mrf.mxu1  ;;  %4092 = vmatmul.mubr.bf16.gmra.mxu1 %v13856_v59  ;;  %4405 = vmatmul.mubr.bf16.gmra.mxu0 %v12822_v35  ;;  %v2954_v7 = vmax.f32 %v1703_v55, %v2618_v24 }
 0x1f9   : > { %17711 = vst [vmem:[#allocation131_spill] sm:$0xff] %v13864_v33  ;;  %4101 = vmatprep.mubr.bf16.mxu1 %v13860_v12  ;;  %4414 = vmatprep.mubr.bf16.mxu0 %v17608_v54  ;;  %v2955_v12 = vmax.f32 %v1705_v11, %v2619_v28  ;;  %v1715_v33 = vadd.f32 %v1714_v46, %v12815_v15  ;;  %17713 = vst [vmem:[#allocation133_spill] sm:$0xff] %v13882_v49  ;;  %v2628_v44 = vmul.f32 0.3, %v1719_v45 }
 0x1fa   : > { %v1724_v34 = vpop.f32.mrf.mxu0  ;;  %v13871_v23 = vpop.f32.mrf.mxu1  ;;  %11383 = vmatpush3.bf16.msra.mxu0 %v12093_v6  ;;  %v1717_v28 = vadd.f32 %v1716_v57, %v12836_v50  ;;  %v13906_v61 = vpack.c.bf16 %v2957_v43, %v2954_v7  ;;  %v1723_v7 = vadd.f32 %v13862_v40, %v12836_v50 }
 0x1fb   : > { %v13886_v19 = vpack.c.bf16 %v2958_v17, %v2955_v12  ;;  %v2625_v46 = vmul.f32 0.3, %v1715_v33  ;;  %v2964_v17 = vmax.f32 %v1719_v45, %v2628_v44  ;;  %v1725_v32 = vadd.f32 %v1724_v34, %v12815_v15 }
 0x1fc   : > { %v1726_v59 = vpop.f32.mrf.mxu0  ;;  %v13876_v35 = vpop.f32.mrf.mxu1  ;;  %17718 = vst [vmem:[#allocation138_spill] sm:$0xff] %v13906_v61  ;;  %v2627_v57 = vmul.f32 0.3, %v1717_v28 }
 0x1fd   : > { %17712 = vst [vmem:[#allocation132_spill] sm:$0xff] %v13876_v35  ;;  %17715 = vst [vmem:[#allocation135_spill] sm:$0xff] %v13886_v19  ;;  %v1727_v34 = vadd.f32 %v1726_v59, %v12836_v50 }
 0x1fe   : > { %v1728_v53 = vpop.f32.mrf.mxu0  ;;  %v13884_v6 = vpop.f32.mrf.mxu1 }
 0x1ff   : > { %17714 = vst [vmem:[#allocation134_spill] sm:$0xff] %v13884_v6  ;;  %v1729_v13 = vadd.f32 %v1728_v53, %v12815_v15 }
 0x200   : > { %v13888_v38 = vpop.f32.mrf.mxu0  ;;  %v13890_v11 = vpop.f32.mrf.mxu1  ;;  %4102 = vmatmul.mubr.bf16.gmra.mxu1 %v13882_v49  ;;  %4415 = vmatmul.mubr.bf16.gmra.mxu0 %v12861_v18  ;;  %v1713_v49 = vadd.f32 %v13833_v1, %v12836_v50  ;;  %v2631_v1 = vmul.f32 0.3, %v1725_v32 }
 0x201   : > { %17716 = vst [vmem:[#allocation136_spill] sm:$0xff] %v13890_v11  ;;  %4111 = vmatprep.mubr.bf16.mxu1 %v13886_v19  ;;  %4424 = vmatprep.mubr.bf16.mxu0 %v17608_v54  ;;  %v2961_v19 = vmax.f32 %v1715_v33, %v2625_v46  ;;  %v2634_v35 = vmul.f32 0.3, %v1729_v13  ;;  %v2963_v33 = vmax.f32 %v1717_v28, %v2627_v57  ;;  %v2633_v28 = vmul.f32 0.3, %v1727_v34 }
 0x202   : > { %v1734_v12 = vpop.f32.mrf.mxu0  ;;  %v13897_v42 = vpop.f32.mrf.mxu1  ;;  %v2624_v53 = vmul.f32 0.3, %v1713_v49 }
 0x203   : > { %17717 = vst [vmem:[#allocation137_spill] sm:$0xff] %v13897_v42  ;;  %v13910_v45 = vpack.c.bf16 %v2964_v17, %v2961_v19  ;;  %v2970_v46 = vmax.f32 %v1729_v13, %v2634_v35 }
 0x204   : > { %v1736_v18 = vpop.f32.mrf.mxu0  ;;  %v13903_v11 = vpop.f32.mrf.mxu1  ;;  %v2960_v17 = vmax.f32 %v1713_v49, %v2624_v53 }
 0x205   : > { %17720 = vst [vmem:[#allocation140_spill] sm:$0xff] %v13910_v45 }
 0x206   : > { %v1738_v6 = vpop.f32.mrf.mxu0  ;;  %v13908_v42 = vpop.f32.mrf.mxu1 }
 0x207   : > { %17719 = vst [vmem:[#allocation139_spill] sm:$0xff] %v13908_v42  ;;  %v1739_v43 = vadd.f32 %v1738_v6, %v12815_v15  ;;  %v13929_v42 = vpack.c.bf16 %v2963_v33, %v2960_v17  ;;  %v2630_v6 = vmul.f32 0.3, %v1723_v7  ;;  %v1733_v17 = vadd.f32 %v13888_v38, %v12836_v50 }
 0x208   : > { %v13912_v55 = vpop.f32.mrf.mxu0  ;;  %v13914_v44 = vpop.f32.mrf.mxu1  ;;  %4112 = vmatmul.mubr.bf16.gmra.mxu1 %v13906_v61  ;;  %4425 = vmatmul.mubr.bf16.gmra.mxu0 %v12854_v9 }
 0x209   : > { %17721 = vst [vmem:[#allocation141_spill] sm:$0xff] %v13914_v44  ;;  %4121 = vmatprep.mubr.bf16.mxu1 %v13910_v45  ;;  %4434 = vmatprep.mubr.bf16.mxu0 %v17608_v54  ;;  %v2967_v44 = vmax.f32 %v1725_v32, %v2631_v1  ;;  %v1735_v45 = vadd.f32 %v1734_v12, %v12815_v15  ;;  %17723 = vst [vmem:[#allocation143_spill] sm:$0xff] %v13929_v42 }
 0x20a   : > { %v1744_v24 = vpop.f32.mrf.mxu0  ;;  %v13921_v19 = vpop.f32.mrf.mxu1  ;;  %v2969_v12 = vmax.f32 %v1727_v34, %v2633_v28  ;;  %v1737_v32 = vadd.f32 %v1736_v18, %v12836_v50 }
 0x20b   : > { %17722 = vst [vmem:[#allocation142_spill] sm:$0xff] %v13921_v19  ;;  %v2640_v19 = vmul.f32 0.3, %v1739_v43  ;;  %v13933_v35 = vpack.c.bf16 %v2970_v46, %v2967_v44  ;;  %v2637_v40 = vmul.f32 0.3, %v1735_v45  ;;  %v2966_v46 = vmax.f32 %v1723_v7, %v2630_v6 }
 0x20c   : > { %v1746_v61 = vpop.f32.mrf.mxu0  ;;  %v13926_v9 = vpop.f32.mrf.mxu1  ;;  %v2639_v34 = vmul.f32 0.3, %v1737_v32 }
 0x20d   : > { %17725 = vst [vmem:[#allocation145_spill] sm:$0xff] %v13933_v35  ;;  %v2976_v1 = vmax.f32 %v1739_v43, %v2640_v19  ;;  %v2636_v43 = vmul.f32 0.3, %v1733_v17 }
 0x20e   : > { %v1748_v59 = vpop.f32.mrf.mxu0  ;;  %v13931_v57 = vpop.f32.mrf.mxu1 }
 0x20f   : > { %17724 = vst [vmem:[#allocation144_spill] sm:$0xff] %v13931_v57  ;;  %v1749_v33 = vadd.f32 %v1748_v59, %v12815_v15  ;;  %v13952_v57 = vpack.c.bf16 %v2969_v12, %v2966_v46  ;;  %v2972_v46 = vmax.f32 %v1733_v17, %v2636_v43 }
 0x210   : > { %v13935_v49 = vpop.f32.mrf.mxu0  ;;  %v13937_v13 = vpop.f32.mrf.mxu1  ;;  %4122 = vmatmul.mubr.bf16.gmra.mxu1 %v13929_v42  ;;  %4435 = vmatmul.mubr.bf16.gmra.mxu0 %v12901_v16 }
 0x211   : > { %17726 = vst [vmem:[#allocation146_spill] sm:$0xff] %v13937_v13  ;;  %4131 = vmatprep.mubr.bf16.mxu1 %v13933_v35  ;;  %4444 = vmatprep.mubr.bf16.mxu0 %v17608_v54  ;;  %v2973_v13 = vmax.f32 %v1735_v45, %v2637_v40  ;;  %v1745_v35 = vadd.f32 %v1744_v24, %v12815_v15  ;;  %17728 = vst [vmem:[#allocation148_spill] sm:$0xff] %v13952_v57 }
 0x212   : > { %v1754_v53 = vpop.f32.mrf.mxu0  ;;  %v13944_v44 = vpop.f32.mrf.mxu1  ;;  %v2975_v45 = vmax.f32 %v1737_v32, %v2639_v34  ;;  %v1747_v24 = vadd.f32 %v1746_v61, %v12836_v50 }
 0x213   : > { %17727 = vst [vmem:[#allocation147_spill] sm:$0xff] %v13944_v44  ;;  %v2646_v44 = vmul.f32 0.3, %v1749_v33  ;;  %v13956_v19 = vpack.c.bf16 %v2976_v1, %v2973_v13  ;;  %v2643_v38 = vmul.f32 0.3, %v1745_v35  ;;  %v1755_v61 = vadd.f32 %v1754_v53, %v12815_v15 }
 0x214   : > { %v1756_v42 = vpop.f32.mrf.mxu0  ;;  %v13949_v16 = vpop.f32.mrf.mxu1  ;;  %v12095_v1 = vld [vmem:[%s17580_s22 + $0x8] ss:$12 sps:$4 sm:$0xff]   ;;  %v2645_v34 = vmul.f32 0.3, %v1747_v24 }
 0x215   : > { %17730 = vst [vmem:[#allocation150_spill] sm:$0xff] %v13956_v19  ;;  %v2982_v40 = vmax.f32 %v1749_v33, %v2646_v44  ;;  %v2979_v32 = vmax.f32 %v1745_v35, %v2643_v38  ;;  %4970 = vmatpush1.bf16.msra.mxu1 %v12095_v1  ;;  %v12096_v44 = vld [vmem:[%s17580_s22 + $0x1e8] ss:$12 sps:$4 sm:$0xff]   ;;  %v13981_v33 = vpack.c.bf16 %v2975_v45, %v2972_v46  ;;  %v2649_v38 = vmul.f32 0.3, %v1755_v61 }
 0x216   : > { %v1758_v18 = vpop.f32.mrf.mxu0  ;;  %v13954_v28 = vpop.f32.mrf.mxu1  ;;  %4971 = vmatprep.subr.bf16.mxu1 %v17608_v54  ;;  %11384 = vmatprep.subr.bf16.mxu0 %v12096_v44  ;;  %v2981_v45 = vmax.f32 %v1747_v24, %v2645_v34  ;;  %v1757_v1 = vadd.f32 %v1756_v42, %v12836_v50 }
 0x217   : > { %17729 = vst [vmem:[#allocation149_spill] sm:$0xff] %v13954_v28  ;;  %v1759_v12 = vadd.f32 %v1758_v18, %v12815_v15  ;;  %17734 = vst [vmem:[#allocation154_spill] sm:$0xff] %v13981_v33  ;;  %v13986_v17 = vpack.c.bf16 %v2982_v40, %v2979_v32  ;;  %11385 = vmatpush3.bf16.msra.mxu0 %v12096_v44 }
 0x218   : > { %v13958_v7 = vpop.f32.mrf.mxu0  ;;  %v13960_v59 = vpop.f32.mrf.mxu1  ;;  %4132 = vmatmul.mubr.bf16.gmra.mxu1 %v13952_v57  ;;  %4445 = vmatmul.mubr.bf16.gmra.mxu0 %v12894_v21  ;;  %v1743_v57 = vadd.f32 %v13912_v55, %v12836_v50  ;;  %v2651_v42 = vmul.f32 0.3, %v1757_v1 }
 0x219   : > { %17731 = vst [vmem:[#allocation151_spill] sm:$0xff] %v13960_v59  ;;  %4141 = vmatprep.mubr.bf16.mxu1 %v13956_v19  ;;  %4454 = vmatprep.mubr.bf16.mxu0 %v17608_v54  ;;  %v2652_v55 = vmul.f32 0.3, %v1759_v12  ;;  %17736 = vst [vmem:[#allocation156_spill] sm:$0xff] %v13986_v17 }
 0x21a   : > { %v1764_v6 = vpop.f32.mrf.mxu0  ;;  %v13967_v13 = vpop.f32.mrf.mxu1  ;;  %v2642_v35 = vmul.f32 0.3, %v1743_v57 }
 0x21b   : > { %17732 = vst [vmem:[#allocation152_spill] sm:$0xff] %v13967_v13  ;;  %v2988_v32 = vmax.f32 %v1759_v12, %v2652_v55  ;;  %v1765_v59 = vadd.f32 %v1764_v6, %v12815_v15  ;;  %v2987_v6 = vmax.f32 %v1757_v1, %v2651_v42 }
 0x21c   : > { %v1766_v19 = vpop.f32.mrf.mxu0  ;;  %v13975_v21 = vpop.f32.mrf.mxu1 }
 0x21d   : > { %17733 = vst [vmem:[#allocation153_spill] sm:$0xff] %v13975_v21 }
 0x21e   : > { %v1768_v18 = vpop.f32.mrf.mxu0  ;;  %v13983_v13 = vpop.f32.mrf.mxu1 }
 0x21f   : > { %17735 = vst [vmem:[#allocation155_spill] sm:$0xff] %v13983_v13  ;;  %v1769_v13 = vadd.f32 %v1768_v18, %v12815_v15 }
 0x220   : > { %v13988_v43 = vpop.f32.mrf.mxu0  ;;  %v13990_v53 = vpop.f32.mrf.mxu1  ;;  %4142 = vmatmul.mubr.bf16.gmra.mxu1 %v13981_v33  ;;  %4455 = vmatmul.mubr.bf16.gmra.mxu0 %v12931_v14  ;;  %v1753_v33 = vadd.f32 %v13935_v49, %v12836_v50  ;;  %v2655_v49 = vmul.f32 0.3, %v1765_v59 }
 0x221   : > { %17737 = vst [vmem:[#allocation157_spill] sm:$0xff] %v13990_v53  ;;  %4151 = vmatprep.mubr.bf16.mxu1 %v13986_v17  ;;  %4464 = vmatprep.mubr.bf16.mxu0 %v17608_v54  ;;  %v2978_v53 = vmax.f32 %v1743_v57, %v2642_v35  ;;  %v2985_v17 = vmax.f32 %v1755_v61, %v2649_v38  ;;  %v2658_v44 = vmul.f32 0.3, %v1769_v13 }
 0x222   : > { %v1774_v40 = vpop.f32.mrf.mxu0  ;;  %v13997_v46 = vpop.f32.mrf.mxu1  ;;  %v2648_v18 = vmul.f32 0.3, %v1753_v33  ;;  %v1767_v61 = vadd.f32 %v1766_v19, %v12836_v50 }
 0x223   : > { %v14005_v24 = vpack.c.bf16 %v2981_v45, %v2978_v53  ;;  %v14009_v12 = vpack.c.bf16 %v2988_v32, %v2985_v17  ;;  %v2994_v53 = vmax.f32 %v1769_v13, %v2658_v44  ;;  %v1763_v32 = vadd.f32 %v13958_v7, %v12836_v50  ;;  %v12097_v7 = vld [vmem:[%s17580_s22 + $0x170] ss:$12 sps:$4 sm:$0xff]  }
 0x224   : > { %v1776_v14 = vpop.f32.mrf.mxu0  ;;  %v14002_v21 = vpop.f32.mrf.mxu1  ;;  %v2984_v45 = vmax.f32 %v1753_v33, %v2648_v18  ;;  %v2657_v1 = vmul.f32 0.3, %v1767_v61  ;;  %4972 = vmatpush2.bf16.msra.mxu1 %v12097_v7 }
 0x225   : > { %17738 = vst [vmem:[#allocation158_spill] sm:$0xff] %v14005_v24  ;;  %17740 = vst [vmem:[#allocation160_spill] sm:$0xff] %v14009_v12  ;;  %v1777_v18 = vadd.f32 %v1776_v14, %v12836_v50  ;;  %4973 = vmatprep.subr.bf16.mxu1 %v17608_v54  ;;  %v12098_v14 = vld [vmem:[%s17580_s22 + $0x158] ss:$12 sps:$4 sm:$0xff]  }
 0x226   : > { %v1778_v34 = vpop.f32.mrf.mxu0  ;;  %v14007_v28 = vpop.f32.mrf.mxu1 }
 0x227   : > { %17739 = vst [vmem:[#allocation159_spill] sm:$0xff] %v14007_v28  ;;  %v1779_v38 = vadd.f32 %v1778_v34, %v12815_v15  ;;  %v14028_v28 = vpack.c.bf16 %v2987_v6, %v2984_v45  ;;  %v2654_v34 = vmul.f32 0.3, %v1763_v32 }
 0x228   : > { %v14011_v57 = vpop.f32.mrf.mxu0  ;;  %v14013_v55 = vpop.f32.mrf.mxu1  ;;  %4152 = vmatmul.mubr.bf16.gmra.mxu1 %v14005_v24  ;;  %4465 = vmatmul.mubr.bf16.gmra.mxu0 %v12922_v62 }
 0x229   : > { %17741 = vst [vmem:[#allocation161_spill] sm:$0xff] %v14013_v55  ;;  %4161 = vmatprep.mubr.bf16.mxu1 %v14009_v12  ;;  %4474 = vmatprep.mubr.bf16.mxu0 %v17608_v54  ;;  %v2991_v55 = vmax.f32 %v1765_v59, %v2655_v49  ;;  %v1775_v12 = vadd.f32 %v1774_v40, %v12815_v15  ;;  %17743 = vst [vmem:[#allocation163_spill] sm:$0xff] %v14028_v28 }
 0x22a   : > { %v1784_v35 = vpop.f32.mrf.mxu0  ;;  %v14020_v17 = vpop.f32.mrf.mxu1  ;;  %v2993_v40 = vmax.f32 %v1767_v61, %v2657_v1  ;;  %v2990_v45 = vmax.f32 %v1763_v32, %v2654_v34  ;;  %4974 = vmatpush2.bf16.msra.mxu1 %v12098_v14 }
 0x22b   : > { %17742 = vst [vmem:[#allocation162_spill] sm:$0xff] %v14020_v17  ;;  %v2664_v17 = vmul.f32 0.3, %v1779_v38  ;;  %v14032_v13 = vpack.c.bf16 %v2994_v53, %v2991_v55  ;;  %v2661_v59 = vmul.f32 0.3, %v1775_v12  ;;  %v1785_v1 = vadd.f32 %v1784_v35, %v12815_v15  ;;  %4975 = vmatprep.subr.bf16.mxu1 %v17608_v54 }
 0x22c   : > { %v1786_v24 = vpop.f32.mrf.mxu0  ;;  %v14025_v62 = vpop.f32.mrf.mxu1  ;;  %v14058_v7 = vpack.c.bf16 %v2993_v40, %v2990_v45 }
 0x22d   : > { %17744 = vst [vmem:[#allocation164_spill] sm:$0xff] %v14032_v13  ;;  %v3000_v6 = vmax.f32 %v1779_v38, %v2664_v17  ;;  %v2997_v61 = vmax.f32 %v1775_v12, %v2661_v59  ;;  %v2663_v17 = vmul.f32 0.3, %v1777_v18  ;;  %v12099_v12 = vld [vmem:[%s17580_s22 + $0x140] ss:$12 sps:$4 sm:$0xff]   ;;  %v1787_v40 = vadd.f32 %v1786_v24, %v12836_v50 }
 0x22e   : > { %v1788_v19 = vpop.f32.mrf.mxu0  ;;  %v14030_v42 = vpop.f32.mrf.mxu1  ;;  %17747 = vst [vmem:[#allocation167_spill] sm:$0xff] %v14058_v7  ;;  %v2667_v35 = vmul.f32 0.3, %v1785_v1  ;;  %4976 = vmatpush2.bf16.msra.mxu1 %v12099_v12  ;;  %v12100_v24 = vld [vmem:[%s17580_s22 + $0x128] ss:$12 sps:$4 sm:$0xff]  }
 0x22f   : > { %v1789_v53 = vadd.f32 %v1788_v19, %v12815_v15  ;;  %v14062_v34 = vpack.c.bf16 %v3000_v6, %v2997_v61  ;;  %v2999_v59 = vmax.f32 %v1777_v18, %v2663_v17  ;;  %4977 = vmatprep.subr.bf16.mxu1 %v17608_v54 }
 0x230   : > { %v14034_v33 = vpop.f32.mrf.mxu0  ;;  %v14036_v44 = vpop.f32.mrf.mxu1  ;;  %4162 = vmatmul.mubr.bf16.gmra.mxu1 %v14028_v28  ;;  %4475 = vmatmul.mubr.bf16.gmra.mxu0 %v12961_v8  ;;  %v1773_v28 = vadd.f32 %v13988_v43, %v12836_v50  ;;  %v3003_v18 = vmax.f32 %v1785_v1, %v2667_v35 }
 0x231   : > { %4171 = vmatprep.mubr.bf16.mxu1 %v14032_v13  ;;  %4484 = vmatprep.mubr.bf16.mxu0 %v17608_v54  ;;  %v2670_v32 = vmul.f32 0.3, %v1789_v53  ;;  %17748 = vst [vmem:[#allocation168_spill] sm:$0xff] %v14062_v34 }
 0x232   : > { %v1794_v55 = vpop.f32.mrf.mxu0  ;;  %v14046_v49 = vpop.f32.mrf.mxu1  ;;  %v2660_v43 = vmul.f32 0.3, %v1773_v28  ;;  %4978 = vmatpush2.bf16.msra.mxu1 %v12100_v24 }
 0x233   : > { %17745 = vst [vmem:[#allocation165_spill] sm:$0xff] %v14046_v49  ;;  %v3006_v14 = vmax.f32 %v1789_v53, %v2670_v32  ;;  %v1795_v17 = vadd.f32 %v1794_v55, %v12815_v15  ;;  %v2669_v53 = vmul.f32 0.3, %v1787_v40  ;;  %4979 = vmatprep.subr.bf16.mxu1 %v17608_v54  ;;  %v12101_v55 = vld [vmem:[%s17580_s22 + $0x110] ss:$12 sps:$4 sm:$0xff]  }
 0x234   : > { %v1796_v8 = vpop.f32.mrf.mxu0  ;;  %v14052_v13 = vpop.f32.mrf.mxu1 }
 0x235   : > { %17746 = vst [vmem:[#allocation166_spill] sm:$0xff] %v14052_v13  ;;  %v2673_v1 = vmul.f32 0.3, %v1795_v17  ;;  %v1797_v35 = vadd.f32 %v1796_v8, %v12836_v50  ;;  %v12102_v8 = vld [vmem:[%s17580_s22 + $0xf8] ss:$12 sps:$4 sm:$0xff]  }
 0x236   : > { %v1798_v38 = vpop.f32.mrf.mxu0  ;;  %v14060_v19 = vpop.f32.mrf.mxu1  ;;  %4980 = vmatpush2.bf16.msra.mxu1 %v12101_v55 }
 0x237   : > { %v1799_v61 = vadd.f32 %v1798_v38, %v12815_v15  ;;  %4981 = vmatprep.subr.bf16.mxu1 %v17608_v54 }
 0x238   : > { %v14065_v13 = vpop.f32.mrf.mxu0  ;;  %v14067_v49 = vpop.f32.mrf.mxu1  ;;  %4172 = vmatmul.mubr.bf16.gmra.mxu1 %v14058_v7  ;;  %4485 = vmatmul.mubr.bf16.gmra.mxu0 %v12954_v5  ;;  %v2996_v7 = vmax.f32 %v1773_v28, %v2660_v43  ;;  %v1783_v5 = vadd.f32 %v14011_v57, %v12836_v50  ;;  %v14093_v43 = vpack.c.bf16 %v3006_v14, %v3003_v18 }
 0x239   : > { %17749 = vst [vmem:[#allocation169_spill] sm:$0xff] %v14067_v49  ;;  %4181 = vmatprep.mubr.bf16.mxu1 %v14062_v34  ;;  %4494 = vmatprep.mubr.bf16.mxu0 %v17608_v54  ;;  %v2676_v28 = vmul.f32 0.3, %v1799_v61 }
 0x23a   : > { %v1804_v6 = vpop.f32.mrf.mxu0  ;;  %v14077_v45 = vpop.f32.mrf.mxu1  ;;  %v14089_v12 = vpack.c.bf16 %v2999_v59, %v2996_v7  ;;  %17753 = vst [vmem:[#allocation173_spill] sm:$0xff] %v14093_v43  ;;  %v2666_v57 = vmul.f32 0.3, %v1783_v5  ;;  %v3005_v7 = vmax.f32 %v1787_v40, %v2669_v53  ;;  %v3009_v40 = vmax.f32 %v1795_v17, %v2673_v1  ;;  %4982 = vmatpush2.bf16.msra.mxu1 %v12102_v8 }
 0x23b   : > { %17750 = vst [vmem:[#allocation170_spill] sm:$0xff] %v14077_v45  ;;  %v3012_v24 = vmax.f32 %v1799_v61, %v2676_v28  ;;  %v1805_v53 = vadd.f32 %v1804_v6, %v12815_v15  ;;  %v2675_v61 = vmul.f32 0.3, %v1797_v35  ;;  %4983 = vmatprep.subr.bf16.mxu1 %v17608_v54  ;;  %v12103_v6 = vld [vmem:[%s17580_s22 + $0xe0] ss:$12 sps:$4 sm:$0xff]  }
 0x23c   : > { %v1806_v49 = vpop.f32.mrf.mxu0  ;;  %v14083_v34 = vpop.f32.mrf.mxu1  ;;  %17752 = vst [vmem:[#allocation172_spill] sm:$0xff] %v14089_v12 }
 0x23d   : > { %17751 = vst [vmem:[#allocation171_spill] sm:$0xff] %v14083_v34  ;;  %v2679_v17 = vmul.f32 0.3, %v1805_v53  ;;  %v1807_v1 = vadd.f32 %v1806_v49, %v12836_v50  ;;  %v12104_v49 = vld [vmem:[%s17580_s22 + $0xc8] ss:$12 sps:$4 sm:$0xff]  }
 0x23e   : > { %v1808_v38 = vpop.f32.mrf.mxu0  ;;  %v14091_v32 = vpop.f32.mrf.mxu1  ;;  %4984 = vmatpush2.bf16.msra.mxu1 %v12103_v6 }
 0x23f   : > { %v1809_v18 = vadd.f32 %v1808_v38, %v12815_v15  ;;  %4985 = vmatprep.subr.bf16.mxu1 %v17608_v54 }
 0x240   : > { %v14096_v34 = vpop.f32.mrf.mxu0  ;;  %v14098_v45 = vpop.f32.mrf.mxu1  ;;  %4182 = vmatmul.mubr.bf16.gmra.mxu1 %v14089_v12  ;;  %4495 = vmatmul.mubr.bf16.gmra.mxu0 %v12989_v36  ;;  %v3002_v12 = vmax.f32 %v1783_v5, %v2666_v57  ;;  %v1793_v36 = vadd.f32 %v14034_v33, %v12836_v50  ;;  %v14124_v57 = vpack.c.bf16 %v3012_v24, %v3009_v40 }
 0x241   : > { %17754 = vst [vmem:[#allocation174_spill] sm:$0xff] %v14098_v45  ;;  %4191 = vmatprep.mubr.bf16.mxu1 %v14093_v43  ;;  %4504 = vmatprep.mubr.bf16.mxu0 %v17608_v54  ;;  %v2682_v5 = vmul.f32 0.3, %v1809_v18 }
 0x242   : > { %v1814_v59 = vpop.f32.mrf.mxu0  ;;  %v14108_v14 = vpop.f32.mrf.mxu1  ;;  %v14120_v55 = vpack.c.bf16 %v3005_v7, %v3002_v12  ;;  %17759 = vst [vmem:[#allocation179_spill] sm:$0xff] %v14124_v57  ;;  %v2672_v33 = vmul.f32 0.3, %v1793_v36  ;;  %v3011_v12 = vmax.f32 %v1797_v35, %v2675_v61  ;;  %v3015_v35 = vmax.f32 %v1805_v53, %v2679_v17  ;;  %4986 = vmatpush2.bf16.msra.mxu1 %v12104_v49 }
 0x243   : > { %17755 = vst [vmem:[#allocation175_spill] sm:$0xff] %v14108_v14  ;;  %v3018_v8 = vmax.f32 %v1809_v18, %v2682_v5  ;;  %v1815_v61 = vadd.f32 %v1814_v59, %v12815_v15  ;;  %v2681_v18 = vmul.f32 0.3, %v1807_v1 }
 0x244   : > { %v1816_v45 = vpop.f32.mrf.mxu0  ;;  %v14114_v43 = vpop.f32.mrf.mxu1  ;;  %17757 = vst [vmem:[#allocation177_spill] sm:$0xff] %v14120_v55 }
 0x245   : > { %17756 = vst [vmem:[#allocation176_spill] sm:$0xff] %v14114_v43  ;;  %v2685_v59 = vmul.f32 0.3, %v1815_v61  ;;  %v3017_v53 = vmax.f32 %v1807_v1, %v2681_v18 }
 0x246   : > { %v1818_v38 = vpop.f32.mrf.mxu0  ;;  %v14122_v28 = vpop.f32.mrf.mxu1 }
 0x247   : > { %17758 = vst [vmem:[#allocation178_spill] sm:$0xff] %v14122_v28  ;;  %v1819_v40 = vadd.f32 %v1818_v38, %v12815_v15 }
 0x248   : > { %v14127_v43 = vpop.f32.mrf.mxu0  ;;  %v14129_v14 = vpop.f32.mrf.mxu1  ;;  %4192 = vmatmul.mubr.bf16.gmra.mxu1 %v14120_v55  ;;  %4505 = vmatmul.mubr.bf16.gmra.mxu0 %v12980_v20  ;;  %v3008_v55 = vmax.f32 %v1793_v36, %v2672_v33  ;;  %v1803_v20 = vadd.f32 %v14065_v13, %v12836_v50  ;;  %v14155_v33 = vpack.c.bf16 %v3018_v8, %v3015_v35 }
 0x249   : > { %17760 = vst [vmem:[#allocation180_spill] sm:$0xff] %v14129_v14  ;;  %4201 = vmatprep.mubr.bf16.mxu1 %v14124_v57  ;;  %4514 = vmatprep.mubr.bf16.mxu0 %v17608_v54  ;;  %v2688_v36 = vmul.f32 0.3, %v1819_v40 }
 0x24a   : > { %v1824_v7 = vpop.f32.mrf.mxu0  ;;  %v14139_v24 = vpop.f32.mrf.mxu1  ;;  %v14151_v6 = vpack.c.bf16 %v3011_v12, %v3008_v55  ;;  %17765 = vst [vmem:[#allocation185_spill] sm:$0xff] %v14155_v33  ;;  %v2678_v13 = vmul.f32 0.3, %v1803_v20  ;;  %v1817_v55 = vadd.f32 %v1816_v45, %v12836_v50  ;;  %v12105_v45 = vld [vmem:[%s17580_s22 + $0x1d0] ss:$12 sps:$4 sm:$0xff]  }
 0x24b   : > { %17761 = vst [vmem:[#allocation181_spill] sm:$0xff] %v14139_v24  ;;  %v3024_v8 = vmax.f32 %v1819_v40, %v2688_v36  ;;  %11386 = vmatprep.subr.bf16.mxu0 %v12105_v45 }
 0x24c   : > { %v1826_v14 = vpop.f32.mrf.mxu0  ;;  %v14145_v57 = vpop.f32.mrf.mxu1  ;;  %17763 = vst [vmem:[#allocation183_spill] sm:$0xff] %v14151_v6  ;;  %v3014_v35 = vmax.f32 %v1803_v20, %v2678_v13  ;;  %v2687_v18 = vmul.f32 0.3, %v1817_v55  ;;  %11387 = vmatpush3.bf16.msra.mxu0 %v12105_v45 }
 0x24d   : > { %17762 = vst [vmem:[#allocation182_spill] sm:$0xff] %v14145_v57 }
 0x24e   : > { %v1828_v38 = vpop.f32.mrf.mxu0  ;;  %v14153_v5 = vpop.f32.mrf.mxu1  ;;  %v14177_v1 = vpack.c.bf16 %v3017_v53, %v3014_v35  ;;  %v1827_v53 = vadd.f32 %v1826_v14, %v12836_v50 }
 0x24f   : > { %17764 = vst [vmem:[#allocation184_spill] sm:$0xff] %v14153_v5  ;;  %v1829_v49 = vadd.f32 %v1828_v38, %v12815_v15  ;;  %v3021_v5 = vmax.f32 %v1815_v61, %v2685_v59  ;;  %v3023_v59 = vmax.f32 %v1817_v55, %v2687_v18 }
 0x250   : > { %v14157_v24 = vpop.f32.mrf.mxu0  ;;  %v14159_v57 = vpop.f32.mrf.mxu1  ;;  %4202 = vmatmul.mubr.bf16.gmra.mxu1 %v14151_v6  ;;  %4515 = vmatmul.mubr.bf16.gmra.mxu0 %v13019_v3  ;;  %v1813_v6 = vadd.f32 %v14096_v34, %v12836_v50  ;;  %17769 = vst [vmem:[#allocation189_spill] sm:$0xff] %v14177_v1  ;;  %v2693_v14 = vmul.f32 0.3, %v1827_v53 }
 0x251   : > { %17766 = vst [vmem:[#allocation186_spill] sm:$0xff] %v14159_v57  ;;  %4211 = vmatprep.mubr.bf16.mxu1 %v14155_v33  ;;  %4524 = vmatprep.mubr.bf16.mxu0 %v17608_v54  ;;  %v1825_v33 = vadd.f32 %v1824_v7, %v12815_v15  ;;  %v2694_v20 = vmul.f32 0.3, %v1829_v49  ;;  %v14181_v38 = vpack.c.bf16 %v3024_v8, %v3021_v5 }
 0x252   : > { %v1834_v17 = vpop.f32.mrf.mxu0  ;;  %v14166_v12 = vpop.f32.mrf.mxu1  ;;  %v2684_v34 = vmul.f32 0.3, %v1813_v6 }
 0x253   : > { %17767 = vst [vmem:[#allocation187_spill] sm:$0xff] %v14166_v12  ;;  %17771 = vst [vmem:[#allocation191_spill] sm:$0xff] %v14181_v38  ;;  %v2691_v7 = vmul.f32 0.3, %v1825_v33  ;;  %v3030_v35 = vmax.f32 %v1829_v49, %v2694_v20  ;;  %v1835_v12 = vadd.f32 %v1834_v17, %v12815_v15 }
 0x254   : > { %v1836_v57 = vpop.f32.mrf.mxu0  ;;  %v14171_v3 = vpop.f32.mrf.mxu1 }
 0x255   : > { %17768 = vst [vmem:[#allocation188_spill] sm:$0xff] %v14171_v3  ;;  %v1837_v17 = vadd.f32 %v1836_v57, %v12836_v50 }
 0x256   : > { %v1838_v40 = vpop.f32.mrf.mxu0  ;;  %v14179_v36 = vpop.f32.mrf.mxu1 }
 0x257   : > { %17770 = vst [vmem:[#allocation190_spill] sm:$0xff] %v14179_v36  ;;  %v1839_v36 = vadd.f32 %v1838_v40, %v12815_v15 }
 0x258   : > { %v14183_v13 = vpop.f32.mrf.mxu0  ;;  %v14185_v61 = vpop.f32.mrf.mxu1  ;;  %4212 = vmatmul.mubr.bf16.gmra.mxu1 %v14177_v1  ;;  %4525 = vmatmul.mubr.bf16.gmra.mxu0 %v13012_v4  ;;  %v1823_v1 = vadd.f32 %v14127_v43, %v12836_v50  ;;  %v2697_v43 = vmul.f32 0.3, %v1835_v12 }
 0x259   : > { %17772 = vst [vmem:[#allocation192_spill] sm:$0xff] %v14185_v61  ;;  %4221 = vmatprep.mubr.bf16.mxu1 %v14181_v38  ;;  %4534 = vmatprep.mubr.bf16.mxu0 %v17608_v54  ;;  %v3020_v61 = vmax.f32 %v1813_v6, %v2684_v34  ;;  %v3027_v38 = vmax.f32 %v1825_v33, %v2691_v7  ;;  %v2700_v45 = vmul.f32 0.3, %v1839_v36 }
 0x25a   : > { %v1844_v5 = vpop.f32.mrf.mxu0  ;;  %v14192_v8 = vpop.f32.mrf.mxu1  ;;  %v2690_v40 = vmul.f32 0.3, %v1823_v1  ;;  %v3029_v33 = vmax.f32 %v1827_v53, %v2693_v14  ;;  %v2699_v53 = vmul.f32 0.3, %v1837_v17 }
 0x25b   : > { %v14200_v55 = vpack.c.bf16 %v3023_v59, %v3020_v61  ;;  %v14204_v49 = vpack.c.bf16 %v3030_v35, %v3027_v38  ;;  %v3036_v61 = vmax.f32 %v1839_v36, %v2700_v45  ;;  %v1833_v35 = vadd.f32 %v14157_v24, %v12836_v50 }
 0x25c   : > { %v1846_v4 = vpop.f32.mrf.mxu0  ;;  %v14197_v3 = vpop.f32.mrf.mxu1  ;;  %v3026_v59 = vmax.f32 %v1823_v1, %v2690_v40 }
 0x25d   : > { %17773 = vst [vmem:[#allocation193_spill] sm:$0xff] %v14200_v55  ;;  %17775 = vst [vmem:[#allocation195_spill] sm:$0xff] %v14204_v49 }
 0x25e   : > { %v1848_v18 = vpop.f32.mrf.mxu0  ;;  %v14202_v28 = vpop.f32.mrf.mxu1 }
 0x25f   : > { %17774 = vst [vmem:[#allocation194_spill] sm:$0xff] %v14202_v28  ;;  %v1849_v7 = vadd.f32 %v1848_v18, %v12815_v15  ;;  %v14223_v28 = vpack.c.bf16 %v3029_v33, %v3026_v59  ;;  %v2696_v18 = vmul.f32 0.3, %v1833_v35  ;;  %v1843_v59 = vadd.f32 %v14183_v13, %v12836_v50 }
 0x260   : > { %v14206_v6 = vpop.f32.mrf.mxu0  ;;  %v14208_v20 = vpop.f32.mrf.mxu1  ;;  %4222 = vmatmul.mubr.bf16.gmra.mxu1 %v14200_v55  ;;  %4535 = vmatmul.mubr.bf16.gmra.mxu0 %v13045_v2 }
 0x261   : > { %17776 = vst [vmem:[#allocation196_spill] sm:$0xff] %v14208_v20  ;;  %4231 = vmatprep.mubr.bf16.mxu1 %v14204_v49  ;;  %4544 = vmatprep.mubr.bf16.mxu0 %v17608_v54  ;;  %v3033_v20 = vmax.f32 %v1835_v12, %v2697_v43  ;;  %v1845_v49 = vadd.f32 %v1844_v5, %v12815_v15  ;;  %17778 = vst [vmem:[#allocation198_spill] sm:$0xff] %v14223_v28 }
 0x262   : > { %v1854_v34 = vpop.f32.mrf.mxu0  ;;  %v14215_v38 = vpop.f32.mrf.mxu1  ;;  %v3035_v12 = vmax.f32 %v1837_v17, %v2699_v53  ;;  %v1847_v5 = vadd.f32 %v1846_v4, %v12836_v50 }
 0x263   : > { %17777 = vst [vmem:[#allocation197_spill] sm:$0xff] %v14215_v38  ;;  %v2706_v38 = vmul.f32 0.3, %v1849_v7  ;;  %v14227_v36 = vpack.c.bf16 %v3036_v61, %v3033_v20  ;;  %v2703_v24 = vmul.f32 0.3, %v1845_v49  ;;  %v3032_v61 = vmax.f32 %v1833_v35, %v2696_v18 }
 0x264   : > { %v1856_v55 = vpop.f32.mrf.mxu0  ;;  %v14220_v2 = vpop.f32.mrf.mxu1  ;;  %v2705_v17 = vmul.f32 0.3, %v1847_v5 }
 0x265   : > { %17780 = vst [vmem:[#allocation200_spill] sm:$0xff] %v14227_v36  ;;  %v3042_v43 = vmax.f32 %v1849_v7, %v2706_v38  ;;  %v2702_v7 = vmul.f32 0.3, %v1843_v59 }
 0x266   : > { %v1858_v57 = vpop.f32.mrf.mxu0  ;;  %v14225_v14 = vpop.f32.mrf.mxu1 }
 0x267   : > { %17779 = vst [vmem:[#allocation199_spill] sm:$0xff] %v14225_v14  ;;  %v1859_v33 = vadd.f32 %v1858_v57, %v12815_v15  ;;  %v14246_v14 = vpack.c.bf16 %v3035_v12, %v3032_v61  ;;  %v1853_v61 = vadd.f32 %v14206_v6, %v12836_v50 }
 0x268   : > { %v14229_v1 = vpop.f32.mrf.mxu0  ;;  %v14231_v45 = vpop.f32.mrf.mxu1  ;;  %4232 = vmatmul.mubr.bf16.gmra.mxu1 %v14223_v28  ;;  %4545 = vmatmul.mubr.bf16.gmra.mxu0 %v13038_v60 }
 0x269   : > { %17781 = vst [vmem:[#allocation201_spill] sm:$0xff] %v14231_v45  ;;  %4241 = vmatprep.mubr.bf16.mxu1 %v14227_v36  ;;  %4554 = vmatprep.mubr.bf16.mxu0 %v17608_v54  ;;  %v3039_v45 = vmax.f32 %v1845_v49, %v2703_v24  ;;  %v1855_v36 = vadd.f32 %v1854_v34, %v12815_v15  ;;  %17783 = vst [vmem:[#allocation203_spill] sm:$0xff] %v14246_v14 }
 0x26a   : > { %v1864_v40 = vpop.f32.mrf.mxu0  ;;  %v14238_v20 = vpop.f32.mrf.mxu1  ;;  %v3041_v49 = vmax.f32 %v1847_v5, %v2705_v17  ;;  %v1857_v34 = vadd.f32 %v1856_v55, %v12836_v50 }
 0x26b   : > { %17782 = vst [vmem:[#allocation202_spill] sm:$0xff] %v14238_v20  ;;  %v2712_v20 = vmul.f32 0.3, %v1859_v33  ;;  %v14250_v38 = vpack.c.bf16 %v3042_v43, %v3039_v45  ;;  %v2709_v13 = vmul.f32 0.3, %v1855_v36  ;;  %v3038_v43 = vmax.f32 %v1843_v59, %v2702_v7 }
 0x26c   : > { %v1866_v28 = vpop.f32.mrf.mxu0  ;;  %v14243_v60 = vpop.f32.mrf.mxu1  ;;  %v2711_v5 = vmul.f32 0.3, %v1857_v34 }
 0x26d   : > { %17785 = vst [vmem:[#allocation205_spill] sm:$0xff] %v14250_v38  ;;  %v3048_v24 = vmax.f32 %v1859_v33, %v2712_v20  ;;  %v2708_v33 = vmul.f32 0.3, %v1853_v61 }
 0x26e   : > { %v1868_v4 = vpop.f32.mrf.mxu0  ;;  %v14248_v53 = vpop.f32.mrf.mxu1 }
 0x26f   : > { %17784 = vst [vmem:[#allocation204_spill] sm:$0xff] %v14248_v53  ;;  %v1869_v12 = vadd.f32 %v1868_v4, %v12815_v15  ;;  %v14269_v53 = vpack.c.bf16 %v3041_v49, %v3038_v43  ;;  %v1863_v43 = vadd.f32 %v14229_v1, %v12836_v50 }
 0x270   : > { %v14252_v35 = vpop.f32.mrf.mxu0  ;;  %v14254_v57 = vpop.f32.mrf.mxu1  ;;  %4242 = vmatmul.mubr.bf16.gmra.mxu1 %v14246_v14  ;;  %4555 = vmatmul.mubr.bf16.gmra.mxu0 %v13076_v30 }
 0x271   : > { %17786 = vst [vmem:[#allocation206_spill] sm:$0xff] %v14254_v57  ;;  %4251 = vmatprep.mubr.bf16.mxu1 %v14250_v38  ;;  %4564 = vmatprep.mubr.bf16.mxu0 %v17608_v54  ;;  %v3045_v57 = vmax.f32 %v1855_v36, %v2709_v13  ;;  %v1865_v38 = vadd.f32 %v1864_v40, %v12815_v15  ;;  %17788 = vst [vmem:[#allocation208_spill] sm:$0xff] %v14269_v53 }
 0x272   : > { %v1874_v18 = vpop.f32.mrf.mxu0  ;;  %v14261_v45 = vpop.f32.mrf.mxu1  ;;  %v3047_v36 = vmax.f32 %v1857_v34, %v2711_v5  ;;  %v1867_v40 = vadd.f32 %v1866_v28, %v12836_v50 }
 0x273   : > { %17787 = vst [vmem:[#allocation207_spill] sm:$0xff] %v14261_v45  ;;  %v2718_v45 = vmul.f32 0.3, %v1869_v12  ;;  %v14273_v20 = vpack.c.bf16 %v3048_v24, %v3045_v57  ;;  %v2715_v6 = vmul.f32 0.3, %v1865_v38  ;;  %v3044_v24 = vmax.f32 %v1853_v61, %v2708_v33 }
 0x274   : > { %v1876_v14 = vpop.f32.mrf.mxu0  ;;  %v14266_v30 = vpop.f32.mrf.mxu1  ;;  %v2717_v34 = vmul.f32 0.3, %v1867_v40 }
 0x275   : > { %17790 = vst [vmem:[#allocation210_spill] sm:$0xff] %v14273_v20  ;;  %v3054_v13 = vmax.f32 %v1869_v12, %v2718_v45  ;;  %v2714_v12 = vmul.f32 0.3, %v1863_v43 }
 0x276   : > { %v1878_v55 = vpop.f32.mrf.mxu0  ;;  %v14271_v17 = vpop.f32.mrf.mxu1 }
 0x277   : > { %17789 = vst [vmem:[#allocation209_spill] sm:$0xff] %v14271_v17  ;;  %v1879_v49 = vadd.f32 %v1878_v55, %v12815_v15  ;;  %v14292_v17 = vpack.c.bf16 %v3047_v36, %v3044_v24  ;;  %v1873_v24 = vadd.f32 %v14252_v35, %v12836_v50 }
 0x278   : > { %v14275_v59 = vpop.f32.mrf.mxu0  ;;  %v14277_v4 = vpop.f32.mrf.mxu1  ;;  %4252 = vmatmul.mubr.bf16.gmra.mxu1 %v14269_v53  ;;  %4565 = vmatmul.mubr.bf16.gmra.mxu0 %v13068_v0 }
 0x279   : > { %17791 = vst [vmem:[#allocation211_spill] sm:$0xff] %v14277_v4  ;;  %4261 = vmatprep.mubr.bf16.mxu1 %v14273_v20  ;;  %4574 = vmatprep.mubr.bf16.mxu0 %v17608_v54  ;;  %v3051_v4 = vmax.f32 %v1865_v38, %v2715_v6  ;;  %v1875_v20 = vadd.f32 %v1874_v18, %v12815_v15  ;;  %17793 = vst [vmem:[#allocation213_spill] sm:$0xff] %v14292_v17 }
 0x27a   : > { %v1884_v7 = vpop.f32.mrf.mxu0  ;;  %v14284_v57 = vpop.f32.mrf.mxu1  ;;  %v3053_v38 = vmax.f32 %v1867_v40, %v2717_v34  ;;  %v1877_v18 = vadd.f32 %v1876_v14, %v12836_v50 }
 0x27b   : > { %17792 = vst [vmem:[#allocation212_spill] sm:$0xff] %v14284_v57  ;;  %v2724_v57 = vmul.f32 0.3, %v1879_v49  ;;  %v14296_v45 = vpack.c.bf16 %v3054_v13, %v3051_v4  ;;  %v2721_v1 = vmul.f32 0.3, %v1875_v20  ;;  %v3050_v13 = vmax.f32 %v1863_v43, %v2714_v12 }
 0x27c   : > { %v1886_v53 = vpop.f32.mrf.mxu0  ;;  %v14289_v0 = vpop.f32.mrf.mxu1  ;;  %v2723_v40 = vmul.f32 0.3, %v1877_v18 }
 0x27d   : > { %17795 = vst [vmem:[#allocation215_spill] sm:$0xff] %v14296_v45  ;;  %v3060_v6 = vmax.f32 %v1879_v49, %v2724_v57  ;;  %v2720_v49 = vmul.f32 0.3, %v1873_v24 }
 0x27e   : > { %v1888_v28 = vpop.f32.mrf.mxu0  ;;  %v14294_v5 = vpop.f32.mrf.mxu1 }
 0x27f   : > { %17794 = vst [vmem:[#allocation214_spill] sm:$0xff] %v14294_v5  ;;  %v1889_v36 = vadd.f32 %v1888_v28, %v12815_v15  ;;  %v14315_v5 = vpack.c.bf16 %v3053_v38, %v3050_v13  ;;  %v1883_v13 = vadd.f32 %v14275_v59, %v12836_v50 }
 0x280   : > { %v14298_v61 = vpop.f32.mrf.mxu0  ;;  %v14300_v55 = vpop.f32.mrf.mxu1  ;;  %4262 = vmatmul.mubr.bf16.gmra.mxu1 %v14292_v17  ;;  %4575 = vmatmul.mubr.bf16.gmra.mxu0 %v13115_v58 }
 0x281   : > { %17796 = vst [vmem:[#allocation216_spill] sm:$0xff] %v14300_v55  ;;  %4271 = vmatprep.mubr.bf16.mxu1 %v14296_v45  ;;  %4584 = vmatprep.mubr.bf16.mxu0 %v17608_v54  ;;  %v3057_v55 = vmax.f32 %v1875_v20, %v2721_v1  ;;  %v1885_v45 = vadd.f32 %v1884_v7, %v12815_v15  ;;  %17798 = vst [vmem:[#allocation218_spill] sm:$0xff] %v14315_v5  ;;  %v2726_v59 = vmul.f32 0.3, %v1883_v13 }
 0x282   : > { %v1894_v33 = vpop.f32.mrf.mxu0  ;;  %v14307_v4 = vpop.f32.mrf.mxu1  ;;  %v3059_v20 = vmax.f32 %v1877_v18, %v2723_v40  ;;  %v1887_v7 = vadd.f32 %v1886_v53, %v12836_v50  ;;  %v12106_v53 = vld [vmem:[%s17580_s22 + $0x1b8] ss:$12 sps:$4 sm:$0xff]  }
 0x283   : > { %17797 = vst [vmem:[#allocation217_spill] sm:$0xff] %v14307_v4  ;;  %v2730_v4 = vmul.f32 0.3, %v1889_v36  ;;  %v14319_v57 = vpack.c.bf16 %v3060_v6, %v3057_v55  ;;  %v2727_v35 = vmul.f32 0.3, %v1885_v45  ;;  %v3056_v6 = vmax.f32 %v1873_v24, %v2720_v49  ;;  %11388 = vmatprep.subr.bf16.mxu0 %v12106_v53 }
 0x284   : > { %v1896_v17 = vpop.f32.mrf.mxu0  ;;  %v14312_v58 = vpop.f32.mrf.mxu1  ;;  %v2729_v40 = vmul.f32 0.3, %v1887_v7  ;;  %11389 = vmatpush3.bf16.msra.mxu0 %v12106_v53 }
 0x285   : > { %17800 = vst [vmem:[#allocation220_spill] sm:$0xff] %v14319_v57  ;;  %v3066_v1 = vmax.f32 %v1889_v36, %v2730_v4  ;;  %v14341_v18 = vpack.c.bf16 %v3059_v20, %v3056_v6  ;;  %v1897_v20 = vadd.f32 %v1896_v17, %v12836_v50 }
 0x286   : > { %v1898_v14 = vpop.f32.mrf.mxu0  ;;  %v14317_v34 = vpop.f32.mrf.mxu1 }
 0x287   : > { %17799 = vst [vmem:[#allocation219_spill] sm:$0xff] %v14317_v34  ;;  %v1899_v38 = vadd.f32 %v1898_v14, %v12815_v15  ;;  %17804 = vst [vmem:[#allocation224_spill] sm:$0xff] %v14341_v18  ;;  %v2735_v17 = vmul.f32 0.3, %v1897_v20 }
 0x288   : > { %v14321_v43 = vpop.f32.mrf.mxu0  ;;  %v14323_v28 = vpop.f32.mrf.mxu1  ;;  %4272 = vmatmul.mubr.bf16.gmra.mxu1 %v14315_v5  ;;  %4585 = vmatmul.mubr.bf16.gmra.mxu0 %v13110_v27 }
 0x289   : > { %17801 = vst [vmem:[#allocation221_spill] sm:$0xff] %v14323_v28  ;;  %4281 = vmatprep.mubr.bf16.mxu1 %v14319_v57  ;;  %4594 = vmatprep.mubr.bf16.mxu0 %v17608_v54  ;;  %v3063_v28 = vmax.f32 %v1885_v45, %v2727_v35  ;;  %v1895_v57 = vadd.f32 %v1894_v33, %v12815_v15  ;;  %v2736_v24 = vmul.f32 0.3, %v1899_v38 }
 0x28a   : > { %v1904_v12 = vpop.f32.mrf.mxu0  ;;  %v14330_v55 = vpop.f32.mrf.mxu1  ;;  %v3065_v35 = vmax.f32 %v1887_v7, %v2729_v40 }
 0x28b   : > { %17802 = vst [vmem:[#allocation222_spill] sm:$0xff] %v14330_v55  ;;  %v14345_v14 = vpack.c.bf16 %v3066_v1, %v3063_v28  ;;  %v2733_v33 = vmul.f32 0.3, %v1895_v57  ;;  %v3072_v6 = vmax.f32 %v1899_v38, %v2736_v24  ;;  %v1905_v55 = vadd.f32 %v1904_v12, %v12815_v15 }
 0x28c   : > { %v1906_v5 = vpop.f32.mrf.mxu0  ;;  %v14335_v27 = vpop.f32.mrf.mxu1 }
 0x28d   : > { %17803 = vst [vmem:[#allocation223_spill] sm:$0xff] %v14335_v27  ;;  %17806 = vst [vmem:[#allocation226_spill] sm:$0xff] %v14345_v14  ;;  %v1907_v12 = vadd.f32 %v1906_v5, %v12836_v50 }
 0x28e   : > { %v1908_v4 = vpop.f32.mrf.mxu0  ;;  %v14343_v36 = vpop.f32.mrf.mxu1 }
 0x28f   : > { %17805 = vst [vmem:[#allocation225_spill] sm:$0xff] %v14343_v36  ;;  %v1909_v36 = vadd.f32 %v1908_v4, %v12815_v15 }
 0x290   : > { %v14347_v49 = vpop.f32.mrf.mxu0  ;;  %v14349_v45 = vpop.f32.mrf.mxu1  ;;  %4282 = vmatmul.mubr.bf16.gmra.mxu1 %v14341_v18  ;;  %4595 = vmatmul.mubr.bf16.gmra.mxu0 %v13149_v31  ;;  %v1893_v18 = vadd.f32 %v14298_v61, %v12836_v50  ;;  %v2739_v61 = vmul.f32 0.3, %v1905_v55 }
 0x291   : > { %17807 = vst [vmem:[#allocation227_spill] sm:$0xff] %v14349_v45  ;;  %4291 = vmatprep.mubr.bf16.mxu1 %v14345_v14  ;;  %4604 = vmatprep.mubr.bf16.mxu0 %v17608_v54  ;;  %v3062_v45 = vmax.f32 %v1883_v13, %v2726_v59  ;;  %v3069_v14 = vmax.f32 %v1895_v57, %v2733_v33  ;;  %v2742_v53 = vmul.f32 0.3, %v1909_v36 }
 0x292   : > { %v1914_v28 = vpop.f32.mrf.mxu0  ;;  %v14356_v1 = vpop.f32.mrf.mxu1  ;;  %v2732_v4 = vmul.f32 0.3, %v1893_v18  ;;  %v3071_v57 = vmax.f32 %v1897_v20, %v2735_v17  ;;  %v2741_v20 = vmul.f32 0.3, %v1907_v12 }
 0x293   : > { %v14364_v7 = vpack.c.bf16 %v3065_v35, %v3062_v45  ;;  %v14368_v38 = vpack.c.bf16 %v3072_v6, %v3069_v14  ;;  %v3078_v45 = vmax.f32 %v1909_v36, %v2742_v53  ;;  %v1903_v6 = vadd.f32 %v14321_v43, %v12836_v50 }
 0x294   : > { %v1916_v31 = vpop.f32.mrf.mxu0  ;;  %v14361_v27 = vpop.f32.mrf.mxu1  ;;  %v3068_v35 = vmax.f32 %v1893_v18, %v2732_v4 }
 0x295   : > { %17808 = vst [vmem:[#allocation228_spill] sm:$0xff] %v14361_v27  ;;  %17809 = vst [vmem:[#allocation229_spill] sm:$0xff] %v14364_v7 }
 0x296   : > { %v1918_v40 = vpop.f32.mrf.mxu0  ;;  %v14366_v34 = vpop.f32.mrf.mxu1  ;;  %17811 = vst [vmem:[#allocation231_spill] sm:$0xff] %v14368_v38 }
 0x297   : > { %17810 = vst [vmem:[#allocation230_spill] sm:$0xff] %v14366_v34  ;;  %v1919_v33 = vadd.f32 %v1918_v40, %v12815_v15  ;;  %v14387_v34 = vpack.c.bf16 %v3071_v57, %v3068_v35  ;;  %v2738_v40 = vmul.f32 0.3, %v1903_v6  ;;  %v1913_v35 = vadd.f32 %v14347_v49, %v12836_v50 }
 0x298   : > { %v14370_v13 = vpop.f32.mrf.mxu0  ;;  %v14372_v24 = vpop.f32.mrf.mxu1  ;;  %4292 = vmatmul.mubr.bf16.gmra.mxu1 %v14364_v7  ;;  %4605 = vmatmul.mubr.bf16.gmra.mxu0 %v13138_v10 }
 0x299   : > { %17812 = vst [vmem:[#allocation232_spill] sm:$0xff] %v14372_v24  ;;  %4301 = vmatprep.mubr.bf16.mxu1 %v14368_v38  ;;  %4614 = vmatprep.mubr.bf16.mxu0 %v17608_v54  ;;  %v3075_v24 = vmax.f32 %v1905_v55, %v2739_v61  ;;  %v1915_v38 = vadd.f32 %v1914_v28, %v12815_v15  ;;  %17815 = vst [vmem:[#allocation235_spill] sm:$0xff] %v14387_v34  ;;  %v2744_v49 = vmul.f32 0.3, %v1913_v35 }
 0x29a   : > { %v1924_v59 = vpop.f32.mrf.mxu0  ;;  %v14379_v14 = vpop.f32.mrf.mxu1  ;;  %v3077_v55 = vmax.f32 %v1907_v12, %v2741_v20  ;;  %v1917_v28 = vadd.f32 %v1916_v31, %v12836_v50 }
 0x29b   : > { %17813 = vst [vmem:[#allocation233_spill] sm:$0xff] %v14379_v14  ;;  %v2748_v14 = vmul.f32 0.3, %v1919_v33  ;;  %v14391_v36 = vpack.c.bf16 %v3078_v45, %v3075_v24  ;;  %v2745_v43 = vmul.f32 0.3, %v1915_v38  ;;  %v3074_v45 = vmax.f32 %v1903_v6, %v2738_v40 }
 0x29c   : > { %v1926_v7 = vpop.f32.mrf.mxu0  ;;  %v14384_v10 = vpop.f32.mrf.mxu1  ;;  %v2747_v12 = vmul.f32 0.3, %v1917_v28 }
 0x29d   : > { %17814 = vst [vmem:[#allocation234_spill] sm:$0xff] %v14384_v10  ;;  %17817 = vst [vmem:[#allocation237_spill] sm:$0xff] %v14391_v36  ;;  %v3084_v61 = vmax.f32 %v1919_v33, %v2748_v14  ;;  %v3368_v33 = vld [vmem:[%s17824_s5] sm:$0x7]  ;;  %v1927_v40 = vadd.f32 %v1926_v7, %v12836_v50 }
 0x29e   : > { %v1928_v5 = vpop.f32.mrf.mxu0  ;;  %v14389_v17 = vpop.f32.mrf.mxu1 }
 0x29f   : > { %17816 = vst [vmem:[#allocation236_spill] sm:$0xff] %v14389_v17  ;;  %v1929_v57 = vadd.f32 %v1928_v5, %v12815_v15  ;;  %v14410_v17 = vpack.c.bf16 %v3077_v55, %v3074_v45 }
 0x2a0   : > { %v14393_v18 = vpop.f32.mrf.mxu0  ;;  %v14395_v53 = vpop.f32.mrf.mxu1  ;;  %4302 = vmatmul.mubr.bf16.gmra.mxu1 %v14387_v34  ;;  %4615 = vmatmul.mubr.bf16.gmra.mxu0 %v13183_v63 }
 0x2a1   : > { %17818 = vst [vmem:[#allocation238_spill] sm:$0xff] %v14395_v53  ;;  %4311 = vmatprep.mubr.bf16.mxu1 %v14391_v36  ;;  %4624 = vmatprep.mubr.bf16.mxu0 %v17608_v54  ;;  %v3081_v53 = vmax.f32 %v1915_v38, %v2745_v43  ;;  %v1925_v36 = vadd.f32 %v1924_v59, %v12815_v15  ;;  %17821 = vst [vmem:[#allocation241_spill] sm:$0xff] %v14410_v17 }
 0x2a2   : > { %v1934_v4 = vpop.f32.mrf.mxu0  ;;  %v14402_v24 = vpop.f32.mrf.mxu1  ;;  %v3083_v59 = vmax.f32 %v1917_v28, %v2747_v12  ;;  %v17828_v12 = vsub.s32 1, %v12777_v51 }
 0x2a3   : > { %17819 = vst [vmem:[#allocation239_spill] sm:$0xff] %v14402_v24  ;;  %v2754_v24 = vmul.f32 0.3, %v1929_v57  ;;  %v14414_v14 = vpack.c.bf16 %v3084_v61, %v3081_v53  ;;  %v2751_v38 = vmul.f32 0.3, %v1925_v36  ;;  %v17827_v61 = vsub.s32 0, %v12777_v51 }
 0x2a4   : > { %v1936_v34 = vpop.f32.mrf.mxu0  ;;  %v14407_v63 = vpop.f32.mrf.mxu1 }
 0x2a5   : > { %17820 = vst [vmem:[#allocation240_spill] sm:$0xff] %v14407_v63  ;;  %17823 = vst [vmem:[#allocation243_spill] sm:$0xff] %v14414_v14  ;;  %v14433_v45 = vrot.slane %v3368_v33, %v17827_v61  ;;  %v3087_v7 = vmax.f32 %v1925_v36, %v2751_v38  ;;  %v2753_v61 = vmul.f32 0.3, %v1927_v40 }
 0x2a6   : > { %v1938_v31 = vpop.f32.mrf.mxu0  ;;  %v14412_v20 = vpop.f32.mrf.mxu1 }
 0x2a7   : > { %17822 = vst [vmem:[#allocation242_spill] sm:$0xff] %v14412_v20  ;;  %v1939_v53 = vadd.f32 %v1938_v31, %v12815_v15  ;;  %v14444_v31 = vrot.slane %v3368_v33, %v17828_v12  ;;  %v17831_v33 = vld [vmem:[#allocation50_spill] sm:$0xff]  ;;  %v3808_v12 = vadd.f32 %v13743_v39, %v14433_v45  ;;  %v3814_v39 = vadd.f32 %v13758_v25, %v14433_v45  ;;  %v17836_v25 = vld [vmem:[#allocation49_spill] sm:$0xff] }
 0x2a8   : > { %v14419_v6 = vpop.f32.mrf.mxu0  ;;  %v14421_v5 = vpop.f32.mrf.mxu1  ;;  %4312 = vmatmul.mubr.bf16.gmra.mxu1 %v14410_v17  ;;  %4625 = vmatmul.mubr.bf16.gmra.mxu0 %v13175_v48  ;;  %v1923_v17 = vadd.f32 %v14370_v13, %v12836_v50  ;;  %v3090_v48 = vmax.f32 %v1929_v57, %v2754_v24  ;;  %v3804_v13 = vadd.f32 %v13729_v41, %v14433_v45 }
 0x2a9   : > { %17825 = vst [vmem:[#allocation244_spill] sm:$0xff] %v14421_v5  ;;  %4321 = vmatprep.mubr.bf16.mxu1 %v14414_v14  ;;  %4634 = vmatprep.mubr.bf16.mxu0 %v17608_v54  ;;  %v3080_v5 = vmax.f32 %v1913_v35, %v2744_v49  ;;  %v1935_v14 = vadd.f32 %v1934_v4, %v12815_v15  ;;  %v2760_v63 = vmul.f32 0.3, %v1939_v53 }
 0x2aa   : > { %v1944_v43 = vpop.f32.mrf.mxu0  ;;  %v14429_v55 = vpop.f32.mrf.mxu1  ;;  %v2750_v4 = vmul.f32 0.3, %v1923_v17  ;;  %v14452_v24 = vpack.c.bf16 %v3090_v48, %v3087_v7  ;;  %v3089_v41 = vmax.f32 %v1927_v40, %v2753_v61  ;;  %v1937_v48 = vadd.f32 %v1936_v34, %v12836_v50 }
 0x2ab   : > { %17826 = vst [vmem:[#allocation245_spill] sm:$0xff] %v14429_v55  ;;  %v14446_v55 = vpack.c.bf16 %v3083_v59, %v3080_v5  ;;  %v2757_v57 = vmul.f32 0.3, %v1935_v14  ;;  %v3806_v5 = vadd.f32 %v13736_v47, %v14444_v31  ;;  %v3096_v38 = vmax.f32 %v1939_v53, %v2760_v63 }
 0x2ac   : > { %v14438_v20 = vpop.f32.mrf.mxu0  ;;  %v14440_v28 = vpop.f32.mrf.mxu1  ;;  %17830 = vst [vmem:[#allocation247_spill] sm:$0xff] %v14452_v24  ;;  %v1945_v51 = vadd.f32 %v1944_v43, %v12815_v15  ;;  %v3810_v63 = vadd.f32 %v13750_v37, %v14444_v31 }
 0x2ad   : > { %17829 = vst [vmem:[#allocation246_spill] sm:$0xff] %v14446_v55 }
 0x2ae   : > { %v1948_v10 = vpop.f32.mrf.mxu0  ;;  %v14448_v27 = vpop.f32.mrf.mxu1 }
 0x2b0   : > { %v14454_v35 = vpop.f32.mrf.mxu1  ;;  %4322 = vmatmul.mubr.bf16.gmra.mxu1 %v14446_v55  ;;  %v4396_v36 = vpop.f32.mrf.mxu0  ;;  %4635 = vmatmul.mubr.bf16.gmra.mxu0 %v17831_v33  ;;  %v3086_v55 = vmax.f32 %v1923_v17, %v2750_v4  ;;  %v2763_v33 = vmul.f32 0.3, %v1945_v51 }
 0x2b1   : > { %v4397_v49 = vadd.f32 %v4396_v36, %v3804_v13  ;;  %4331 = vmatprep.mubr.bf16.mxu1 %v14452_v24  ;;  %4644 = vmatprep.mubr.bf16.mxu0 %v17608_v54  ;;  %v1949_v13 = vadd.f32 %v1948_v10, %v12815_v15  ;;  %v1933_v36 = vadd.f32 %v14393_v18, %v12836_v50  ;;  %v2759_v10 = vmul.f32 0.3, %v1937_v48 }
 0x2b2   : > { %v14463_v59 = vpop.f32.mrf.mxu1  ;;  %v4398_v7 = vpop.f32.mrf.mxu0  ;;  %v3093_v24 = vmax.f32 %v1935_v14, %v2757_v57  ;;  %v14477_v17 = vpack.c.bf16 %v3089_v41, %v3086_v55 }
 0x2b3   : > { %v4399_v47 = vadd.f32 %v4398_v7, %v3806_v5  ;;  %v5917_v53 = vmul.f32 0.3, %v4397_v49  ;;  %v2766_v15 = vmul.f32 0.3, %v1949_v13  ;;  %v2756_v7 = vmul.f32 0.3, %v1933_v36 }
 0x2b4   : > { %v14471_v40 = vpop.f32.mrf.mxu1  ;;  %v4400_v34 = vpop.f32.mrf.mxu0  ;;  %17832 = vst [vmem:[#allocation248_spill] sm:$0xff] %v14477_v17  ;;  %v14481_v14 = vpack.c.bf16 %v3096_v38, %v3093_v24  ;;  %v3816_v24 = vadd.f32 %v13764_v56, %v14444_v31  ;;  %v3818_v38 = vadd.f32 %v13769_v22, %v14433_v45  ;;  %v1943_v56 = vadd.f32 %v14419_v6, %v12836_v50 }
 0x2b5   : > { %v4401_v61 = vadd.f32 %v4400_v34, %v3808_v12  ;;  %v5918_v43 = vmul.f32 0.3, %v4399_v47  ;;  %v6253_v55 = vmax.f32 %v4397_v49, %v5917_v53  ;;  %v3102_v53 = vmax.f32 %v1949_v13, %v2766_v15  ;;  %v17840_v13 = vld [vmem:[#allocation115_spill] sm:$0xff] }
 0x2b6   : > { %v14479_v4 = vpop.f32.mrf.mxu1  ;;  %v4402_v18 = vpop.f32.mrf.mxu0  ;;  %17834 = vst [vmem:[#allocation250_spill] sm:$0xff] %v14481_v14 }
 0x2b7   : > { %17833 = vst [vmem:[#allocation249_spill] sm:$0xff] %v14479_v4  ;;  %v5920_v57 = vmul.f32 0.3, %v4401_v61  ;;  %v4403_v5 = vadd.f32 %v4402_v18, %v3810_v63  ;;  %v3095_v63 = vmax.f32 %v1937_v48, %v2759_v10  ;;  %v1947_v18 = vadd.f32 %v14438_v20, %v12836_v50 }
 0x2b8   : > { %v14483_v37 = vpop.f32.mrf.mxu1  ;;  %4332 = vmatmul.mubr.bf16.gmra.mxu1 %v14477_v17  ;;  %v4406_v12 = vpop.f32.mrf.mxu0  ;;  %4645 = vmatmul.mubr.bf16.gmra.mxu0 %v17836_v25  ;;  %v3099_v20 = vmax.f32 %v1945_v51, %v2763_v33 }
 0x2b9   : > { %17835 = vst [vmem:[#allocation251_spill] sm:$0xff] %v14483_v37  ;;  %v6256_v41 = vmax.f32 %v4401_v61, %v5920_v57  ;;  %v5921_v34 = vmul.f32 0.3, %v4403_v5  ;;  %v4407_v4 = vadd.f32 %v4406_v12, %v3814_v39  ;;  %4341 = vmatprep.mubr.bf16.mxu1 %v14481_v14  ;;  %4654 = vmatprep.mubr.bf16.mxu0 %v17608_v54 }
 0x2ba   : > { %v14495_v17 = vpop.f32.mrf.mxu1  ;;  %v4408_v49 = vpop.f32.mrf.mxu0  ;;  %v6254_v61 = vmax.f32 %v4399_v47, %v5918_v43  ;;  %v3820_v12 = vadd.f32 %v13774_v29, %v14444_v31  ;;  %v3092_v14 = vmax.f32 %v1933_v36, %v2756_v7  ;;  %v3824_v47 = vadd.f32 %v17840_v13, %v14433_v45 }
 0x2bb   : > { %17837 = vst [vmem:[#allocation252_spill] sm:$0xff] %v14495_v17  ;;  %v14497_v39 = vpack.c.bf16 %v6256_v41, %v6253_v55  ;;  %v6257_v57 = vmax.f32 %v4403_v5, %v5921_v34  ;;  %v4409_v22 = vadd.f32 %v4408_v49, %v3816_v24  ;;  %v5923_v25 = vmul.f32 0.3, %v4407_v4  ;;  %v17843_v41 = vld [vmem:[#allocation54_spill] sm:$0xff] }
 0x2bc   : > { %v14503_v48 = vpop.f32.mrf.mxu1  ;;  %v4410_v10 = vpop.f32.mrf.mxu0  ;;  %v14509_v15 = vpack.c.bf16 %v3095_v63, %v3092_v14  ;;  %v2765_v43 = vmul.f32 0.3, %v1947_v18  ;;  %v14513_v7 = vpack.c.bf16 %v3102_v53, %v3099_v20  ;;  %v2762_v55 = vmul.f32 0.3, %v1943_v56  ;;  %v17844_v63 = vld [vmem:[#allocation116_spill] sm:$0xff] }
 0x2bd   : > { %17838 = vst [vmem:[#allocation253_spill] sm:$0xff] %v14497_v39  ;;  %v4411_v17 = vadd.f32 %v4410_v10, %v3818_v38  ;;  %v14505_v37 = vpack.c.bf16 %v6257_v57, %v6254_v61  ;;  %v5924_v5 = vmul.f32 0.3, %v4409_v22  ;;  %v6259_v34 = vmax.f32 %v4407_v4, %v5923_v25 }
 0x2be   : > { %17841 = vst [vmem:[#allocation115_spill] sm:$0xff] %v14509_v15  ;;  %v14511_v29 = vpop.f32.mrf.mxu1  ;;  %v4412_v36 = vpop.f32.mrf.mxu0  ;;  %17842 = vst [vmem:[#allocation255_spill] sm:$0xff] %v14513_v7  ;;  %v3826_v49 = vadd.f32 %v17844_v63, %v14444_v31  ;;  %v3101_v53 = vmax.f32 %v1947_v18, %v2765_v43  ;;  %v3098_v4 = vmax.f32 %v1943_v56, %v2762_v55  ;;  %v12107_v43 = vld [vmem:[%s17580_s22 + $0x1a0] ss:$12 sps:$4 sm:$0xff]  }
 0x2bf   : > { %17839 = vst [vmem:[#allocation254_spill] sm:$0xff] %v14505_v37  ;;  %v5926_v50 = vmul.f32 0.3, %v4411_v17  ;;  %v4413_v6 = vadd.f32 %v4412_v36, %v3820_v12  ;;  %v17845_v12 = vld [vmem:[#allocation117_spill] sm:$0xff]  ;;  %v6260_v20 = vmax.f32 %v4409_v22, %v5924_v5  ;;  %11390 = vmatprep.subr.bf16.mxu0 %v12107_v43 }
 0x2c0   : > { %v14515_v51 = vpop.f32.mrf.mxu1  ;;  %4342 = vmatmul.mubr.bf16.gmra.mxu1 %v14509_v15  ;;  %v4416_v33 = vpop.f32.mrf.mxu0  ;;  %4655 = vmatmul.mubr.bf16.gmra.mxu0 %v17843_v41  ;;  %v3828_v10 = vadd.f32 %v17845_v12, %v14433_v45  ;;  %v14538_v22 = vpack.c.bf16 %v3101_v53, %v3098_v4  ;;  %v17851_v12 = vld [vmem:[#allocation53_spill] sm:$0xff]  ;;  %v17852_v4 = vld [vmem:[#allocation8_spill] sm:$0xff] }
 0x2c1   : > { %v6262_v14 = vmax.f32 %v4411_v17, %v5926_v50  ;;  %v5927_v24 = vmul.f32 0.3, %v4413_v6  ;;  %v4417_v38 = vadd.f32 %v4416_v33, %v3824_v47  ;;  %4351 = vmatprep.mubr.bf16.mxu1 %v14513_v7  ;;  %4664 = vmatprep.mubr.bf16.mxu0 %v17608_v54  ;;  %v17847_v50 = vld [vmem:[#allocation119_spill] sm:$0xff] }
 0x2c2   : > { %v14523_v61 = vpop.f32.mrf.mxu1  ;;  %v4418_v57 = vpop.f32.mrf.mxu0  ;;  %v3830_v33 = vadd.f32 %v17847_v50, %v14444_v31  ;;  %17849 = vst [vmem:[#allocation119_spill] sm:$0xff] %v14538_v22  ;;  %11391 = vmatpush3.bf16.msra.mxu0 %v12107_v43 }
 0x2c3   : > { %v14527_v13 = vpack.c.bf16 %v6262_v14, %v6259_v34  ;;  %v6263_v17 = vmax.f32 %v4413_v6, %v5927_v24  ;;  %v4419_v25 = vadd.f32 %v4418_v57, %v3826_v49  ;;  %v5929_v63 = vmul.f32 0.3, %v4417_v38  ;;  %v17850_v6 = vld [vmem:[#allocation121_spill] sm:$0xff] }
 0x2c4   : > { %v14529_v47 = vpop.f32.mrf.mxu1  ;;  %v4420_v36 = vpop.f32.mrf.mxu0  ;;  %v3834_v55 = vadd.f32 %v17850_v6, %v14433_v45  ;;  %v17854_v6 = vld [vmem:[#allocation123_spill] sm:$0xff] }
 0x2c5   : > { %17846 = vst [vmem:[#allocation116_spill] sm:$0xff] %v14527_v13  ;;  %v4421_v18 = vadd.f32 %v4420_v36, %v3828_v10  ;;  %v14536_v39 = vpack.c.bf16 %v6263_v17, %v6260_v20  ;;  %v5930_v34 = vmul.f32 0.3, %v4419_v25  ;;  %v6265_v10 = vmax.f32 %v4417_v38, %v5929_v63  ;;  %v17853_v36 = vld [vmem:[#allocation122_spill] sm:$0xff] }
 0x2c6   : > { %v14540_v5 = vpop.f32.mrf.mxu1  ;;  %v4422_v56 = vpop.f32.mrf.mxu0  ;;  %v3836_v50 = vadd.f32 %v17853_v36, %v14444_v31  ;;  %v3838_v13 = vadd.f32 %v17854_v6, %v14433_v45  ;;  %v17858_v6 = vld [vmem:[#allocation127_spill] sm:$0xff] }
 0x2c7   : > { %17848 = vst [vmem:[#allocation117_spill] sm:$0xff] %v14536_v39  ;;  %v5932_v14 = vmul.f32 0.3, %v4421_v18  ;;  %v4423_v24 = vadd.f32 %v4422_v56, %v3830_v33  ;;  %v6266_v39 = vmax.f32 %v4419_v25, %v5930_v34  ;;  %v3844_v25 = vadd.f32 %v17858_v6, %v14433_v45  ;;  %v17862_v6 = vld [vmem:[#allocation128_spill] sm:$0xff] }
 0x2c8   : > { %v14544_v49 = vpop.f32.mrf.mxu1  ;;  %4352 = vmatmul.mubr.bf16.gmra.mxu1 %v14538_v22  ;;  %v4426_v57 = vpop.f32.mrf.mxu0  ;;  %4665 = vmatmul.mubr.bf16.gmra.mxu0 %v17851_v12 }
 0x2c9   : > { %v6268_v53 = vmax.f32 %v4421_v18, %v5932_v14  ;;  %v5933_v20 = vmul.f32 0.3, %v4423_v24  ;;  %v4427_v17 = vadd.f32 %v4426_v57, %v3834_v55  ;;  %4987 = vmatprep.mubr.bf16.mxu1 %v17852_v4  ;;  %4674 = vmatprep.mubr.bf16.mxu0 %v17608_v54  ;;  %v17856_v14 = vld [vmem:[#allocation125_spill] sm:$0xff] }
 0x2ca   : > { %v14552_v33 = vpop.f32.mrf.mxu1  ;;  %v4428_v56 = vpop.f32.mrf.mxu0  ;;  %v3840_v57 = vadd.f32 %v17856_v14, %v14444_v31 }
 0x2cb   : > { %v14556_v37 = vpack.c.bf16 %v6268_v53, %v6265_v10  ;;  %v6269_v38 = vmax.f32 %v4423_v24, %v5933_v20  ;;  %v4429_v63 = vadd.f32 %v4428_v56, %v3836_v50  ;;  %v5935_v4 = vmul.f32 0.3, %v4427_v17  ;;  %v17859_v50 = vld [vmem:[#allocation58_spill] sm:$0xff]  ;;  %v17860_v56 = vld [vmem:[#allocation11_spill] sm:$0xff] }
 0x2cc   : > { %v14558_v18 = vpop.f32.mrf.mxu1  ;;  %v4430_v55 = vpop.f32.mrf.mxu0 }
 0x2cd   : > { %17855 = vst [vmem:[#allocation121_spill] sm:$0xff] %v14556_v37  ;;  %v4431_v36 = vadd.f32 %v4430_v55, %v3838_v13  ;;  %v14562_v22 = vpack.c.bf16 %v6269_v38, %v6266_v39  ;;  %v5936_v34 = vmul.f32 0.3, %v4429_v63  ;;  %v6271_v14 = vmax.f32 %v4427_v17, %v5935_v4  ;;  %v17861_v55 = vld [vmem:[#allocation12_spill] sm:$0xff] }
 0x2ce   : > { %v14564_v7 = vpop.f32.mrf.mxu1  ;;  %v4432_v43 = vpop.f32.mrf.mxu0  ;;  %v3846_v37 = vadd.f32 %v17862_v6, %v14444_v31 }
 0x2cf   : > { %17857 = vst [vmem:[#allocation8_spill] sm:$0xff] %v14562_v22  ;;  %v5938_v10 = vmul.f32 0.3, %v4431_v36  ;;  %v4433_v24 = vadd.f32 %v4432_v43, %v3840_v57  ;;  %v3848_v43 = vadd.f32 %v13853_v26, %v14433_v45  ;;  %v6272_v15 = vmax.f32 %v4429_v63, %v5936_v34  ;;  %v17865_v26 = vld [vmem:[#allocation131_spill] sm:$0xff] }
 0x2d0   : > { %v14568_v53 = vpop.f32.mrf.mxu1  ;;  %v4436_v20 = vpop.f32.mrf.mxu0  ;;  %4675 = vmatmul.mubr.bf16.gmra.mxu0 %v17859_v50  ;;  %4988 = vmatmul.mubr.bf16.vlgmr.msra.gmra.mxu1 %v17860_v56  ;;  %v3854_v63 = vadd.f32 %v17865_v26, %v14433_v45  ;;  %v3856_v26 = vadd.f32 %v13871_v23, %v14444_v31 }
 0x2d1   : > { %v6274_v13 = vmax.f32 %v4431_v36, %v5938_v10  ;;  %v5939_v39 = vmul.f32 0.3, %v4433_v24  ;;  %v4437_v38 = vadd.f32 %v4436_v20, %v3844_v25  ;;  %4995 = vmatprep.mubr.bf16.mxu1 %v17861_v55  ;;  %4684 = vmatprep.mubr.bf16.mxu0 %v17608_v54  ;;  %v3850_v10 = vadd.f32 %v13858_v52, %v14444_v31 }
 0x2d2   : > { %v14576_v22 = vpop.f32.mrf.mxu1  ;;  %v4438_v57 = vpop.f32.mrf.mxu0 }
 0x2d3   : > { %v14580_v50 = vpack.c.bf16 %v6274_v13, %v6271_v14  ;;  %v6275_v17 = vmax.f32 %v4433_v24, %v5939_v39  ;;  %v4439_v4 = vadd.f32 %v4438_v57, %v3846_v37  ;;  %v5941_v20 = vmul.f32 0.3, %v4437_v38  ;;  %v17867_v39 = vld [vmem:[#allocation57_spill] sm:$0xff]  ;;  %v17868_v57 = vld [vmem:[#allocation15_spill] sm:$0xff] }
 0x2d4   : > { %v14582_v36 = vpop.f32.mrf.mxu1  ;;  %v4440_v25 = vpop.f32.mrf.mxu0 }
 0x2d5   : > { %17863 = vst [vmem:[#allocation122_spill] sm:$0xff] %v14580_v50  ;;  %v4441_v56 = vadd.f32 %v4440_v25, %v3848_v43  ;;  %v14586_v55 = vpack.c.bf16 %v6275_v17, %v6272_v15  ;;  %v5942_v34 = vmul.f32 0.3, %v4439_v4  ;;  %v6277_v52 = vmax.f32 %v4437_v38, %v5941_v20  ;;  %v17869_v25 = vld [vmem:[#allocation16_spill] sm:$0xff] }
 0x2d6   : > { %v14588_v6 = vpop.f32.mrf.mxu1  ;;  %v4442_v12 = vpop.f32.mrf.mxu0 }
 0x2d7   : > { %17864 = vst [vmem:[#allocation123_spill] sm:$0xff] %v14586_v55  ;;  %v5944_v14 = vmul.f32 0.3, %v4441_v56  ;;  %v4443_v24 = vadd.f32 %v4442_v12, %v3850_v10  ;;  %v17871_v10 = vld [vmem:[#allocation132_spill] sm:$0xff] }
 0x2d8   : > { %v14592_v37 = vpop.f32.mrf.mxu1  ;;  %v4446_v13 = vpop.f32.mrf.mxu0  ;;  %4685 = vmatmul.mubr.bf16.gmra.mxu0 %v17867_v39  ;;  %4996 = vmatmul.mubr.bf16.gmra.mxu1 %v17868_v57  ;;  %v3858_v55 = vadd.f32 %v17871_v10, %v14433_v45  ;;  %v6278_v39 = vmax.f32 %v4439_v4, %v5942_v34  ;;  %v17876_v10 = vld [vmem:[#allocation136_spill] sm:$0xff] }
 0x2d9   : > { %17866 = vst [vmem:[#allocation125_spill] sm:$0xff] %v14592_v37  ;;  %v6280_v43 = vmax.f32 %v4441_v56, %v5944_v14  ;;  %v5945_v15 = vmul.f32 0.3, %v4443_v24  ;;  %v4447_v17 = vadd.f32 %v4446_v13, %v3854_v63  ;;  %5003 = vmatprep.mubr.bf16.mxu1 %v17869_v25  ;;  %4694 = vmatprep.mubr.bf16.mxu0 %v17608_v54  ;;  %v17873_v14 = vld [vmem:[#allocation134_spill] sm:$0xff] }
 0x2da   : > { %v14600_v50 = vpop.f32.mrf.mxu1  ;;  %v4448_v12 = vpop.f32.mrf.mxu0  ;;  %v3860_v13 = vadd.f32 %v17873_v14, %v14444_v31  ;;  %v3864_v4 = vadd.f32 %v17876_v10, %v14433_v45  ;;  %v17881_v10 = vld [vmem:[#allocation137_spill] sm:$0xff] }
 0x2db   : > { %17870 = vst [vmem:[#allocation127_spill] sm:$0xff] %v14600_v50  ;;  %v14604_v41 = vpack.c.bf16 %v6280_v43, %v6277_v52  ;;  %v6281_v38 = vmax.f32 %v4443_v24, %v5945_v15  ;;  %v4449_v20 = vadd.f32 %v4448_v12, %v3856_v26  ;;  %v5947_v57 = vmul.f32 0.3, %v4447_v17  ;;  %v17878_v26 = vld [vmem:[#allocation62_spill] sm:$0xff]  ;;  %v17879_v12 = vld [vmem:[#allocation19_spill] sm:$0xff] }
 0x2dc   : > { %v14606_v56 = vpop.f32.mrf.mxu1  ;;  %v4450_v63 = vpop.f32.mrf.mxu0 }
 0x2dd   : > { %17872 = vst [vmem:[#allocation11_spill] sm:$0xff] %v14604_v41  ;;  %v4451_v25 = vadd.f32 %v4450_v63, %v3858_v55  ;;  %v14610_v23 = vpack.c.bf16 %v6281_v38, %v6278_v39  ;;  %v5948_v34 = vmul.f32 0.3, %v4449_v20  ;;  %v6283_v14 = vmax.f32 %v4447_v17, %v5947_v57  ;;  %v17880_v63 = vld [vmem:[#allocation20_spill] sm:$0xff] }
 0x2de   : > { %v14612_v50 = vpop.f32.mrf.mxu1  ;;  %v4452_v37 = vpop.f32.mrf.mxu0  ;;  %v3866_v41 = vadd.f32 %v17881_v10, %v14444_v31 }
 0x2df   : > { %17874 = vst [vmem:[#allocation12_spill] sm:$0xff] %v14610_v23  ;;  %17875 = vst [vmem:[#allocation128_spill] sm:$0xff] %v14612_v50  ;;  %v5950_v52 = vmul.f32 0.3, %v4451_v25  ;;  %v4453_v24 = vadd.f32 %v4452_v37, %v3860_v13  ;;  %v3868_v13 = vadd.f32 %v13903_v11, %v14433_v45  ;;  %v17887_v11 = vld [vmem:[#allocation141_spill] sm:$0xff] }
 0x2e0   : > { %v14616_v43 = vpop.f32.mrf.mxu1  ;;  %v4456_v15 = vpop.f32.mrf.mxu0  ;;  %4695 = vmatmul.mubr.bf16.gmra.mxu0 %v17878_v26  ;;  %5004 = vmatmul.mubr.bf16.gmra.mxu1 %v17879_v12  ;;  %v6284_v26 = vmax.f32 %v4449_v20, %v5948_v34  ;;  %v3874_v20 = vadd.f32 %v17887_v11, %v14433_v45  ;;  %v17892_v11 = vld [vmem:[#allocation142_spill] sm:$0xff] }
 0x2e1   : > { %17877 = vst [vmem:[#allocation131_spill] sm:$0xff] %v14616_v43  ;;  %v6286_v55 = vmax.f32 %v4451_v25, %v5950_v52  ;;  %v5951_v39 = vmul.f32 0.3, %v4453_v24  ;;  %v4457_v38 = vadd.f32 %v4456_v15, %v3864_v4  ;;  %5011 = vmatprep.mubr.bf16.mxu1 %v17880_v63  ;;  %4704 = vmatprep.mubr.bf16.mxu0 %v17608_v54  ;;  %v17884_v52 = vld [vmem:[#allocation139_spill] sm:$0xff] }
 0x2e2   : > { %v14624_v23 = vpop.f32.mrf.mxu1  ;;  %v4458_v37 = vpop.f32.mrf.mxu0  ;;  %v3870_v15 = vadd.f32 %v17884_v52, %v14444_v31 }
 0x2e3   : > { %17882 = vst [vmem:[#allocation15_spill] sm:$0xff] %v14624_v23  ;;  %v14628_v43 = vpack.c.bf16 %v6286_v55, %v6283_v14  ;;  %v6287_v17 = vmax.f32 %v4453_v24, %v5951_v39  ;;  %v4459_v57 = vadd.f32 %v4458_v37, %v3866_v41  ;;  %v5953_v12 = vmul.f32 0.3, %v4457_v38  ;;  %v17889_v39 = vld [vmem:[#allocation61_spill] sm:$0xff]  ;;  %v17890_v37 = vld [vmem:[#allocation23_spill] sm:$0xff] }
 0x2e4   : > { %v14630_v25 = vpop.f32.mrf.mxu1  ;;  %v4460_v4 = vpop.f32.mrf.mxu0 }
 0x2e5   : > { %17883 = vst [vmem:[#allocation16_spill] sm:$0xff] %v14628_v43  ;;  %v4461_v63 = vadd.f32 %v4460_v4, %v3868_v13  ;;  %v14634_v10 = vpack.c.bf16 %v6287_v17, %v6284_v26  ;;  %v5954_v34 = vmul.f32 0.3, %v4459_v57  ;;  %v6289_v52 = vmax.f32 %v4457_v38, %v5953_v12  ;;  %v17891_v4 = vld [vmem:[#allocation24_spill] sm:$0xff] }
 0x2e6   : > { %v14636_v23 = vpop.f32.mrf.mxu1  ;;  %v4462_v50 = vpop.f32.mrf.mxu0  ;;  %v3876_v43 = vadd.f32 %v17892_v11, %v14444_v31 }
 0x2e7   : > { %17885 = vst [vmem:[#allocation132_spill] sm:$0xff] %v14634_v10  ;;  %17886 = vst [vmem:[#allocation134_spill] sm:$0xff] %v14636_v23  ;;  %v5956_v14 = vmul.f32 0.3, %v4461_v63  ;;  %v4463_v24 = vadd.f32 %v4462_v50, %v3870_v15  ;;  %v3878_v15 = vadd.f32 %v13926_v9, %v14433_v45  ;;  %v17898_v9 = vld [vmem:[#allocation146_spill] sm:$0xff] }
 0x2e8   : > { %v14640_v41 = vpop.f32.mrf.mxu1  ;;  %v4466_v55 = vpop.f32.mrf.mxu0  ;;  %4705 = vmatmul.mubr.bf16.gmra.mxu0 %v17889_v39  ;;  %5012 = vmatmul.mubr.bf16.gmra.mxu1 %v17890_v37  ;;  %v6290_v39 = vmax.f32 %v4459_v57, %v5954_v34  ;;  %v3884_v57 = vadd.f32 %v17898_v9, %v14433_v45  ;;  %v17903_v9 = vld [vmem:[#allocation147_spill] sm:$0xff] }
 0x2e9   : > { %17888 = vst [vmem:[#allocation136_spill] sm:$0xff] %v14640_v41  ;;  %v6292_v13 = vmax.f32 %v4461_v63, %v5956_v14  ;;  %v5957_v26 = vmul.f32 0.3, %v4463_v24  ;;  %v4467_v17 = vadd.f32 %v4466_v55, %v3874_v20  ;;  %5019 = vmatprep.mubr.bf16.mxu1 %v17891_v4  ;;  %4714 = vmatprep.mubr.bf16.mxu0 %v17608_v54  ;;  %v17895_v14 = vld [vmem:[#allocation144_spill] sm:$0xff] }
 0x2ea   : > { %v14648_v10 = vpop.f32.mrf.mxu1  ;;  %v4468_v50 = vpop.f32.mrf.mxu0  ;;  %v3880_v55 = vadd.f32 %v17895_v14, %v14444_v31 }
 0x2eb   : > { %17893 = vst [vmem:[#allocation19_spill] sm:$0xff] %v14648_v10  ;;  %v14652_v41 = vpack.c.bf16 %v6292_v13, %v6289_v52  ;;  %v6293_v38 = vmax.f32 %v4463_v24, %v5957_v26  ;;  %v4469_v12 = vadd.f32 %v4468_v50, %v3876_v43  ;;  %v5959_v37 = vmul.f32 0.3, %v4467_v17  ;;  %v17900_v26 = vld [vmem:[#allocation66_spill] sm:$0xff]  ;;  %v17901_v50 = vld [vmem:[#allocation27_spill] sm:$0xff] }
 0x2ec   : > { %v14654_v63 = vpop.f32.mrf.mxu1  ;;  %v4470_v20 = vpop.f32.mrf.mxu0 }
 0x2ed   : > { %17894 = vst [vmem:[#allocation20_spill] sm:$0xff] %v14652_v41  ;;  %v4471_v4 = vadd.f32 %v4470_v20, %v3878_v15  ;;  %v14658_v11 = vpack.c.bf16 %v6293_v38, %v6290_v39  ;;  %v5960_v34 = vmul.f32 0.3, %v4469_v12  ;;  %v6295_v14 = vmax.f32 %v4467_v17, %v5959_v37  ;;  %v17902_v20 = vld [vmem:[#allocation28_spill] sm:$0xff] }
 0x2ee   : > { %v14660_v10 = vpop.f32.mrf.mxu1  ;;  %v4472_v23 = vpop.f32.mrf.mxu0  ;;  %v3886_v41 = vadd.f32 %v17903_v9, %v14444_v31 }
 0x2ef   : > { %17896 = vst [vmem:[#allocation137_spill] sm:$0xff] %v14658_v11  ;;  %17897 = vst [vmem:[#allocation139_spill] sm:$0xff] %v14660_v10  ;;  %v5962_v52 = vmul.f32 0.3, %v4471_v4  ;;  %v4473_v24 = vadd.f32 %v4472_v23, %v3880_v55  ;;  %v3888_v55 = vadd.f32 %v13949_v16, %v14433_v45  ;;  %v17909_v16 = vld [vmem:[#allocation151_spill] sm:$0xff] }
 0x2f0   : > { %v14664_v43 = vpop.f32.mrf.mxu1  ;;  %v4476_v13 = vpop.f32.mrf.mxu0  ;;  %4715 = vmatmul.mubr.bf16.gmra.mxu0 %v17900_v26  ;;  %5020 = vmatmul.mubr.bf16.gmra.mxu1 %v17901_v50  ;;  %v6296_v26 = vmax.f32 %v4469_v12, %v5960_v34  ;;  %v3894_v12 = vadd.f32 %v17909_v16, %v14433_v45  ;;  %v17914_v16 = vld [vmem:[#allocation152_spill] sm:$0xff] }
 0x2f1   : > { %17899 = vst [vmem:[#allocation141_spill] sm:$0xff] %v14664_v43  ;;  %v6298_v15 = vmax.f32 %v4471_v4, %v5962_v52  ;;  %v5963_v39 = vmul.f32 0.3, %v4473_v24  ;;  %v4477_v38 = vadd.f32 %v4476_v13, %v3884_v57  ;;  %5027 = vmatprep.mubr.bf16.mxu1 %v17902_v20  ;;  %4724 = vmatprep.mubr.bf16.mxu0 %v17608_v54  ;;  %v17906_v52 = vld [vmem:[#allocation149_spill] sm:$0xff] }
 0x2f2   : > { %v14672_v11 = vpop.f32.mrf.mxu1  ;;  %v4478_v23 = vpop.f32.mrf.mxu0  ;;  %v3890_v13 = vadd.f32 %v17906_v52, %v14444_v31 }
 0x2f3   : > { %17904 = vst [vmem:[#allocation23_spill] sm:$0xff] %v14672_v11  ;;  %v14676_v43 = vpack.c.bf16 %v6298_v15, %v6295_v14  ;;  %v6299_v17 = vmax.f32 %v4473_v24, %v5963_v39  ;;  %v4479_v37 = vadd.f32 %v4478_v23, %v3886_v41  ;;  %v5965_v50 = vmul.f32 0.3, %v4477_v38  ;;  %v17911_v39 = vld [vmem:[#allocation65_spill] sm:$0xff]  ;;  %v17912_v23 = vld [vmem:[#allocation31_spill] sm:$0xff] }
 0x2f4   : > { %v14678_v4 = vpop.f32.mrf.mxu1  ;;  %v4480_v57 = vpop.f32.mrf.mxu0 }
 0x2f5   : > { %17905 = vst [vmem:[#allocation24_spill] sm:$0xff] %v14676_v43  ;;  %v4481_v20 = vadd.f32 %v4480_v57, %v3888_v55  ;;  %v14682_v9 = vpack.c.bf16 %v6299_v17, %v6296_v26  ;;  %v5966_v34 = vmul.f32 0.3, %v4479_v37  ;;  %v6301_v52 = vmax.f32 %v4477_v38, %v5965_v50  ;;  %v17913_v57 = vld [vmem:[#allocation32_spill] sm:$0xff] }
 0x2f6   : > { %v14684_v11 = vpop.f32.mrf.mxu1  ;;  %v4482_v10 = vpop.f32.mrf.mxu0  ;;  %v3896_v43 = vadd.f32 %v17914_v16, %v14444_v31  ;;  %v12108_v16 = vld [vmem:[%s17580_s22 + $0x188] ss:$12 sps:$4 sm:$0xff]  }
 0x2f7   : > { %17907 = vst [vmem:[#allocation142_spill] sm:$0xff] %v14682_v9  ;;  %17908 = vst [vmem:[#allocation144_spill] sm:$0xff] %v14684_v11  ;;  %v5968_v14 = vmul.f32 0.3, %v4481_v20  ;;  %v4483_v24 = vadd.f32 %v4482_v10, %v3890_v13  ;;  %v17916_v13 = vld [vmem:[#allocation153_spill] sm:$0xff]  ;;  %11392 = vmatprep.subr.bf16.mxu0 %v12108_v16 }
 0x2f8   : > { %v14688_v41 = vpop.f32.mrf.mxu1  ;;  %v4486_v15 = vpop.f32.mrf.mxu0  ;;  %4725 = vmatmul.mubr.bf16.gmra.mxu0 %v17911_v39  ;;  %5028 = vmatmul.mubr.bf16.gmra.mxu1 %v17912_v23  ;;  %v6302_v39 = vmax.f32 %v4479_v37, %v5966_v34  ;;  %v17920_v34 = vld [vmem:[#allocation157_spill] sm:$0xff] }
 0x2f9   : > { %17910 = vst [vmem:[#allocation146_spill] sm:$0xff] %v14688_v41  ;;  %v6304_v55 = vmax.f32 %v4481_v20, %v5968_v14  ;;  %v5969_v26 = vmul.f32 0.3, %v4483_v24  ;;  %v4487_v17 = vadd.f32 %v4486_v15, %v3894_v12  ;;  %5035 = vmatprep.mubr.bf16.mxu1 %v17913_v57  ;;  %4734 = vmatprep.mubr.bf16.mxu0 %v17608_v54  ;;  %v17918_v14 = vld [vmem:[#allocation155_spill] sm:$0xff] }
 0x2fa   : > { %v14696_v9 = vpop.f32.mrf.mxu1  ;;  %v4488_v10 = vpop.f32.mrf.mxu0  ;;  %v3898_v41 = vadd.f32 %v17916_v13, %v14433_v45  ;;  %v3900_v15 = vadd.f32 %v17918_v14, %v14444_v31  ;;  %11393 = vmatpush3.bf16.msra.mxu0 %v12108_v16 }
 0x2fb   : > { %17915 = vst [vmem:[#allocation27_spill] sm:$0xff] %v14696_v9  ;;  %v14700_v11 = vpack.c.bf16 %v6304_v55, %v6301_v52  ;;  %v6305_v38 = vmax.f32 %v4483_v24, %v5969_v26  ;;  %v4489_v50 = vadd.f32 %v4488_v10, %v3896_v43  ;;  %v5971_v23 = vmul.f32 0.3, %v4487_v17  ;;  %6956 = vmatprep.subr.bf16.mxu0 %v17608_v54 }
 0x2fc   : > { %v14702_v20 = vpop.f32.mrf.mxu1  ;;  %v4490_v12 = vpop.f32.mrf.mxu0  ;;  %v3904_v43 = vadd.f32 %v17920_v34, %v14433_v45  ;;  %v3906_v34 = vadd.f32 %v13997_v46, %v14444_v31 }
 0x2fd   : > { %17917 = vst [vmem:[#allocation28_spill] sm:$0xff] %v14700_v11  ;;  %v4491_v57 = vadd.f32 %v4490_v12, %v3898_v41  ;;  %v14709_v9 = vpack.c.bf16 %v6305_v38, %v6302_v39  ;;  %v5972_v24 = vmul.f32 0.3, %v4489_v50  ;;  %v17922_v41 = vld [vmem:[#allocation70_spill] sm:$0xff]  ;;  %v17923_v12 = vld [vmem:[#allocation35_spill] sm:$0xff]  ;;  %v6307_v14 = vmax.f32 %v4487_v17, %v5971_v23 }
 0x2fe   : > { %v14711_v13 = vpop.f32.mrf.mxu1  ;;  %v4492_v37 = vpop.f32.mrf.mxu0 }
 0x2ff   : > { %17919 = vst [vmem:[#allocation147_spill] sm:$0xff] %v14709_v9  ;;  %v5974_v52 = vmul.f32 0.3, %v4491_v57  ;;  %v4493_v55 = vadd.f32 %v4492_v37, %v3900_v15  ;;  %v17924_v9 = vld [vmem:[#allocation36_spill] sm:$0xff] }
 0x300   : > { %v14715_v26 = vpop.f32.mrf.mxu1  ;;  %v4496_v10 = vpop.f32.mrf.mxu0  ;;  %4735 = vmatmul.mubr.bf16.gmra.mxu0 %v17922_v41  ;;  %5036 = vmatmul.mubr.bf16.gmra.mxu1 %v17923_v12  ;;  %v3908_v41 = vadd.f32 %v14002_v21, %v14433_v45 }
 0x301   : > { %17921 = vst [vmem:[#allocation149_spill] sm:$0xff] %v14715_v26  ;;  %v6310_v39 = vmax.f32 %v4491_v57, %v5974_v52  ;;  %v5975_v38 = vmul.f32 0.3, %v4493_v55  ;;  %v4497_v11 = vadd.f32 %v4496_v10, %v3904_v43  ;;  %5043 = vmatprep.mubr.bf16.mxu1 %v17924_v9  ;;  %4744 = vmatprep.mubr.bf16.mxu0 %v17608_v54  ;;  %v17927_v43 = vld [vmem:[#allocation159_spill] sm:$0xff] }
 0x302   : > { %v14723_v15 = vpop.f32.mrf.mxu1  ;;  %v4498_v37 = vpop.f32.mrf.mxu0  ;;  %v6308_v26 = vmax.f32 %v4489_v50, %v5972_v24  ;;  %v3910_v46 = vadd.f32 %v17927_v43, %v14444_v31  ;;  %v17930_v50 = vld [vmem:[#allocation161_spill] sm:$0xff] }
 0x303   : > { %17925 = vst [vmem:[#allocation151_spill] sm:$0xff] %v14723_v15  ;;  %v14727_v12 = vpack.c.bf16 %v6310_v39, %v6307_v14  ;;  %v6311_v17 = vmax.f32 %v4493_v55, %v5975_v38  ;;  %v4499_v23 = vadd.f32 %v4498_v37, %v3906_v34  ;;  %v5977_v52 = vmul.f32 0.3, %v4497_v11  ;;  %v17932_v37 = vld [vmem:[#allocation69_spill] sm:$0xff] }
 0x304   : > { %v14730_v9 = vpop.f32.mrf.mxu1  ;;  %v4500_v57 = vpop.f32.mrf.mxu0  ;;  %v3914_v24 = vadd.f32 %v17930_v50, %v14433_v45  ;;  %v17935_v50 = vld [vmem:[#allocation162_spill] sm:$0xff] }
 0x305   : > { %17926 = vst [vmem:[#allocation31_spill] sm:$0xff] %v14727_v12  ;;  %v4501_v10 = vadd.f32 %v4500_v57, %v3908_v41  ;;  %v14734_v15 = vpack.c.bf16 %v6311_v17, %v6308_v26  ;;  %v5978_v55 = vmul.f32 0.3, %v4499_v23  ;;  %v17933_v12 = vld [vmem:[#allocation39_spill] sm:$0xff]  ;;  %v6313_v43 = vmax.f32 %v4497_v11, %v5977_v52  ;;  %v17934_v57 = vld [vmem:[#allocation40_spill] sm:$0xff] }
 0x306   : > { %v14736_v16 = vpop.f32.mrf.mxu1  ;;  %v4502_v21 = vpop.f32.mrf.mxu0 }
 0x307   : > { %17928 = vst [vmem:[#allocation32_spill] sm:$0xff] %v14734_v15  ;;  %17929 = vst [vmem:[#allocation152_spill] sm:$0xff] %v14736_v16  ;;  %v5980_v14 = vmul.f32 0.3, %v4501_v10  ;;  %v4503_v39 = vadd.f32 %v4502_v21, %v3910_v46  ;;  %v3916_v15 = vadd.f32 %v17935_v50, %v14444_v31  ;;  %v3918_v21 = vadd.f32 %v14025_v62, %v14433_v45 }
 0x308   : > { %v14740_v38 = vpop.f32.mrf.mxu1  ;;  %v4506_v34 = vpop.f32.mrf.mxu0  ;;  %4745 = vmatmul.mubr.bf16.gmra.mxu0 %v17932_v37  ;;  %5044 = vmatmul.mubr.bf16.gmra.mxu1 %v17933_v12  ;;  %v6314_v37 = vmax.f32 %v4499_v23, %v5978_v55  ;;  %v3924_v62 = vadd.f32 %v14036_v44, %v14433_v45  ;;  %v17943_v44 = vld [vmem:[#allocation165_spill] sm:$0xff] }
 0x309   : > { %17931 = vst [vmem:[#allocation153_spill] sm:$0xff] %v14740_v38  ;;  %v6316_v41 = vmax.f32 %v4501_v10, %v5980_v14  ;;  %v5981_v26 = vmul.f32 0.3, %v4503_v39  ;;  %v4507_v17 = vadd.f32 %v4506_v34, %v3914_v24  ;;  %5051 = vmatprep.mubr.bf16.mxu1 %v17934_v57  ;;  %4754 = vmatprep.mubr.bf16.mxu0 %v17608_v54 }
 0x30a   : > { %v14748_v16 = vpop.f32.mrf.mxu1  ;;  %v4508_v46 = vpop.f32.mrf.mxu0  ;;  %v3920_v24 = vadd.f32 %v14030_v42, %v14444_v31 }
 0x30b   : > { %17936 = vst [vmem:[#allocation155_spill] sm:$0xff] %v14748_v16  ;;  %v14752_v38 = vpack.c.bf16 %v6316_v41, %v6313_v43  ;;  %v6317_v11 = vmax.f32 %v4503_v39, %v5981_v26  ;;  %v4509_v12 = vadd.f32 %v4508_v46, %v3916_v15  ;;  %v5983_v14 = vmul.f32 0.3, %v4507_v17  ;;  %v17940_v41 = vld [vmem:[#allocation74_spill] sm:$0xff] }
 0x30c   : > { %v14754_v52 = vpop.f32.mrf.mxu1  ;;  %v4510_v10 = vpop.f32.mrf.mxu0  ;;  %v17941_v26 = vld [vmem:[#allocation42_spill] sm:$0xff] }
 0x30d   : > { %17937 = vst [vmem:[#allocation157_spill] sm:$0xff] %v14752_v38  ;;  %v4511_v34 = vadd.f32 %v4510_v10, %v3918_v21  ;;  %v14758_v57 = vpack.c.bf16 %v6317_v11, %v6314_v37  ;;  %v5984_v23 = vmul.f32 0.3, %v4509_v12  ;;  %v6319_v42 = vmax.f32 %v4507_v17, %v5983_v14  ;;  %v17942_v11 = vld [vmem:[#allocation44_spill] sm:$0xff]  ;;  %v12109_v14 = vld [vmem:[%s17946_s3 + $0xb8] sm:$0xff]  }
 0x30e   : > { %v14760_v50 = vpop.f32.mrf.mxu1  ;;  %v4512_v16 = vpop.f32.mrf.mxu0  ;;  %v3926_v10 = vadd.f32 %v17943_v44, %v14444_v31  ;;  %11506 = vmatprep.subr.bf16.mxu1 %v12109_v14 }
 0x30f   : > { %17938 = vst [vmem:[#allocation35_spill] sm:$0xff] %v14758_v57  ;;  %v5986_v55 = vmul.f32 0.3, %v4511_v34  ;;  %v4513_v39 = vadd.f32 %v4512_v16, %v3920_v24  ;;  %v17944_v24 = vld [vmem:[#allocation166_spill] sm:$0xff]  ;;  %11507 = vmatpush3.bf16.msra.mxu1 %v12109_v14 }
 0x310   : > { %v14764_v15 = vpop.f32.mrf.mxu1  ;;  %v4516_v43 = vpop.f32.mrf.mxu0  ;;  %4755 = vmatmul.mubr.bf16.gmra.mxu0 %v17940_v41  ;;  %5052 = vmatmul.mubr.bf16.gmra.mxu1 %v17941_v26  ;;  %v3928_v57 = vadd.f32 %v17944_v24, %v14433_v45  ;;  %v6320_v41 = vmax.f32 %v4509_v12, %v5984_v23  ;;  %v17955_v14 = vld [vmem:[#allocation170_spill] sm:$0xff] }
 0x311   : > { %17939 = vst [vmem:[#allocation36_spill] sm:$0xff] %v14764_v15  ;;  %v6322_v46 = vmax.f32 %v4511_v34, %v5986_v55  ;;  %v5987_v37 = vmul.f32 0.3, %v4513_v39  ;;  %v4517_v21 = vadd.f32 %v4516_v43, %v3924_v62  ;;  %5059 = vmatprep.mubr.bf16.mxu1 %v17942_v11  ;;  %4764 = vmatprep.mubr.bf16.mxu0 %v17608_v54 }
 0x312   : > { %v14772_v38 = vpop.f32.mrf.mxu1  ;;  %v4518_v16 = vpop.f32.mrf.mxu0  ;;  %v3930_v43 = vadd.f32 %v14060_v19, %v14444_v31  ;;  %v17953_v19 = vld [vmem:[#allocation47_spill] sm:$0xff] }
 0x313   : > { %v14776_v15 = vpack.c.bf16 %v6322_v46, %v6319_v42  ;;  %v6323_v17 = vmax.f32 %v4513_v39, %v5987_v37  ;;  %v4519_v34 = vadd.f32 %v4518_v16, %v3926_v10  ;;  %v5989_v26 = vmul.f32 0.3, %v4517_v21  ;;  %v17950_v39 = vld [vmem:[#allocation169_spill] sm:$0xff] }
 0x314   : > { %v14781_v62 = vpop.f32.mrf.mxu1  ;;  %v4520_v55 = vpop.f32.mrf.mxu0  ;;  %v3934_v42 = vadd.f32 %v17950_v39, %v14433_v45  ;;  %v3936_v39 = vadd.f32 %v17955_v14, %v14444_v31 }
 0x315   : > { %17945 = vst [vmem:[#allocation159_spill] sm:$0xff] %v14776_v15  ;;  %17947 = vst [vmem:[#allocation161_spill] sm:$0xff] %v14781_v62  ;;  %v4521_v11 = vadd.f32 %v4520_v55, %v3928_v57  ;;  %v14785_v44 = vpack.c.bf16 %v6323_v17, %v6320_v41  ;;  %v5990_v46 = vmul.f32 0.3, %v4519_v34  ;;  %v17952_v15 = vld [vmem:[#allocation73_spill] sm:$0xff]  ;;  %v6325_v57 = vmax.f32 %v4517_v21, %v5989_v26 }
 0x316   : > { %v14787_v12 = vpop.f32.mrf.mxu1  ;;  %v4522_v23 = vpop.f32.mrf.mxu0 }
 0x317   : > { %17948 = vst [vmem:[#allocation39_spill] sm:$0xff] %v14785_v44  ;;  %17949 = vst [vmem:[#allocation40_spill] sm:$0xff] %v14787_v12  ;;  %v5992_v37 = vmul.f32 0.3, %v4521_v11  ;;  %v4523_v10 = vadd.f32 %v4522_v23, %v3930_v43  ;;  %v17954_v44 = vld [vmem:[#allocation48_spill] sm:$0xff]  ;;  %v17957_v23 = vld [vmem:[#allocation171_spill] sm:$0xff] }
 0x318   : > { %v14791_v16 = vpop.f32.mrf.mxu1  ;;  %v4526_v24 = vpop.f32.mrf.mxu0  ;;  %4765 = vmatmul.mubr.bf16.gmra.mxu0 %v17952_v15  ;;  %5060 = vmatmul.mubr.bf16.gmra.mxu1 %v17953_v19  ;;  %v6326_v15 = vmax.f32 %v4519_v34, %v5990_v46 }
 0x319   : > { %17951 = vst [vmem:[#allocation162_spill] sm:$0xff] %v14791_v16  ;;  %v6328_v41 = vmax.f32 %v4521_v11, %v5992_v37  ;;  %v5993_v17 = vmul.f32 0.3, %v4523_v10  ;;  %v4527_v55 = vadd.f32 %v4526_v24, %v3934_v42  ;;  %5067 = vmatprep.mubr.bf16.mxu1 %v17954_v44  ;;  %4774 = vmatprep.mubr.bf16.mxu0 %v17608_v54 }
 0x31a   : > { %v14799_v12 = vpop.f32.mrf.mxu1  ;;  %v4528_v43 = vpop.f32.mrf.mxu0  ;;  %v3938_v16 = vadd.f32 %v17957_v23, %v14433_v45  ;;  %v3940_v44 = vadd.f32 %v14091_v32, %v14444_v31  ;;  %v17962_v23 = vld [vmem:[#allocation174_spill] sm:$0xff] }
 0x31b   : > { %17956 = vst [vmem:[#allocation42_spill] sm:$0xff] %v14799_v12  ;;  %v14803_v62 = vpack.c.bf16 %v6328_v41, %v6325_v57  ;;  %v6329_v21 = vmax.f32 %v4523_v10, %v5993_v17  ;;  %v4529_v26 = vadd.f32 %v4528_v43, %v3936_v39  ;;  %v5995_v37 = vmul.f32 0.3, %v4527_v55  ;;  %v17964_v39 = vld [vmem:[#allocation78_spill] sm:$0xff]  ;;  %v17965_v43 = vld [vmem:[#allocation51_spill] sm:$0xff] }
 0x31c   : > { %v14805_v11 = vpop.f32.mrf.mxu1  ;;  %v4530_v42 = vpop.f32.mrf.mxu0  ;;  %v3944_v34 = vadd.f32 %v17962_v23, %v14433_v45  ;;  %v17967_v23 = vld [vmem:[#allocation175_spill] sm:$0xff] }
 0x31d   : > { %17958 = vst [vmem:[#allocation44_spill] sm:$0xff] %v14803_v62  ;;  %17959 = vst [vmem:[#allocation165_spill] sm:$0xff] %v14805_v11  ;;  %v4531_v24 = vadd.f32 %v4530_v42, %v3938_v16  ;;  %v14809_v19 = vpack.c.bf16 %v6329_v21, %v6326_v15  ;;  %v5996_v46 = vmul.f32 0.3, %v4529_v26  ;;  %v6331_v32 = vmax.f32 %v4527_v55, %v5995_v37  ;;  %v17966_v42 = vld [vmem:[#allocation52_spill] sm:$0xff] }
 0x31e   : > { %v14811_v14 = vpop.f32.mrf.mxu1  ;;  %v4532_v12 = vpop.f32.mrf.mxu0  ;;  %v3946_v62 = vadd.f32 %v17967_v23, %v14444_v31 }
 0x31f   : > { %17960 = vst [vmem:[#allocation166_spill] sm:$0xff] %v14809_v19  ;;  %17961 = vst [vmem:[#allocation169_spill] sm:$0xff] %v14811_v14  ;;  %v5998_v57 = vmul.f32 0.3, %v4531_v24  ;;  %v4533_v10 = vadd.f32 %v4532_v12, %v3940_v44  ;;  %v17969_v44 = vld [vmem:[#allocation176_spill] sm:$0xff] }
 0x320   : > { %v14815_v41 = vpop.f32.mrf.mxu1  ;;  %v4536_v17 = vpop.f32.mrf.mxu0  ;;  %4775 = vmatmul.mubr.bf16.gmra.mxu0 %v17964_v39  ;;  %5068 = vmatmul.mubr.bf16.gmra.mxu1 %v17965_v43  ;;  %v6332_v39 = vmax.f32 %v4529_v26, %v5996_v46 }
 0x321   : > { %17963 = vst [vmem:[#allocation47_spill] sm:$0xff] %v14815_v41  ;;  %v6334_v16 = vmax.f32 %v4531_v24, %v5998_v57  ;;  %v5999_v15 = vmul.f32 0.3, %v4533_v10  ;;  %v4537_v21 = vadd.f32 %v4536_v17, %v3944_v34  ;;  %5075 = vmatprep.mubr.bf16.mxu1 %v17966_v42  ;;  %4784 = vmatprep.mubr.bf16.mxu0 %v17608_v54  ;;  %v17972_v57 = vld [vmem:[#allocation178_spill] sm:$0xff] }
 0x322   : > { %v14823_v19 = vpop.f32.mrf.mxu1  ;;  %v4538_v12 = vpop.f32.mrf.mxu0  ;;  %v3948_v41 = vadd.f32 %v17969_v44, %v14433_v45  ;;  %v3950_v17 = vadd.f32 %v17972_v57, %v14444_v31  ;;  %v17975_v44 = vld [vmem:[#allocation180_spill] sm:$0xff] }
 0x323   : > { %17968 = vst [vmem:[#allocation48_spill] sm:$0xff] %v14823_v19  ;;  %v14827_v14 = vpack.c.bf16 %v6334_v16, %v6331_v32  ;;  %v6335_v55 = vmax.f32 %v4533_v10, %v5999_v15  ;;  %v4539_v37 = vadd.f32 %v4538_v12, %v3946_v62  ;;  %v6001_v43 = vmul.f32 0.3, %v4537_v21  ;;  %v17977_v15 = vld [vmem:[#allocation77_spill] sm:$0xff]  ;;  %v17978_v12 = vld [vmem:[#allocation55_spill] sm:$0xff] }
 0x324   : > { %v14829_v24 = vpop.f32.mrf.mxu1  ;;  %v4540_v34 = vpop.f32.mrf.mxu0  ;;  %v3954_v26 = vadd.f32 %v17975_v44, %v14433_v45  ;;  %v17980_v44 = vld [vmem:[#allocation181_spill] sm:$0xff] }
 0x325   : > { %17970 = vst [vmem:[#allocation170_spill] sm:$0xff] %v14827_v14  ;;  %17971 = vst [vmem:[#allocation171_spill] sm:$0xff] %v14829_v24  ;;  %v4541_v42 = vadd.f32 %v4540_v34, %v3948_v41  ;;  %v14833_v23 = vpack.c.bf16 %v6335_v55, %v6332_v39  ;;  %v6002_v46 = vmul.f32 0.3, %v4539_v37  ;;  %v6337_v57 = vmax.f32 %v4537_v21, %v6001_v43  ;;  %v17979_v34 = vld [vmem:[#allocation56_spill] sm:$0xff] }
 0x326   : > { %v14835_v19 = vpop.f32.mrf.mxu1  ;;  %v4542_v11 = vpop.f32.mrf.mxu0  ;;  %v3956_v14 = vadd.f32 %v17980_v44, %v14444_v31 }
 0x327   : > { %17973 = vst [vmem:[#allocation174_spill] sm:$0xff] %v14833_v23  ;;  %17974 = vst [vmem:[#allocation51_spill] sm:$0xff] %v14835_v19  ;;  %v6004_v32 = vmul.f32 0.3, %v4541_v42  ;;  %v4543_v10 = vadd.f32 %v4542_v11, %v3950_v17  ;;  %v17982_v17 = vld [vmem:[#allocation182_spill] sm:$0xff] }
 0x328   : > { %v14839_v62 = vpop.f32.mrf.mxu1  ;;  %v4546_v16 = vpop.f32.mrf.mxu0  ;;  %4785 = vmatmul.mubr.bf16.gmra.mxu0 %v17977_v15  ;;  %5076 = vmatmul.mubr.bf16.gmra.mxu1 %v17978_v12  ;;  %v6338_v15 = vmax.f32 %v4539_v37, %v6002_v46 }
 0x329   : > { %17976 = vst [vmem:[#allocation52_spill] sm:$0xff] %v14839_v62  ;;  %v6340_v41 = vmax.f32 %v4541_v42, %v6004_v32  ;;  %v6005_v39 = vmul.f32 0.3, %v4543_v10  ;;  %v4547_v55 = vadd.f32 %v4546_v16, %v3954_v26  ;;  %5083 = vmatprep.mubr.bf16.mxu1 %v17979_v34  ;;  %4794 = vmatprep.mubr.bf16.mxu0 %v17608_v54  ;;  %v17985_v32 = vld [vmem:[#allocation184_spill] sm:$0xff] }
 0x32a   : > { %v14847_v23 = vpop.f32.mrf.mxu1  ;;  %v4548_v11 = vpop.f32.mrf.mxu0  ;;  %v3958_v62 = vadd.f32 %v17982_v17, %v14433_v45  ;;  %v3960_v16 = vadd.f32 %v17985_v32, %v14444_v31  ;;  %v17988_v17 = vld [vmem:[#allocation186_spill] sm:$0xff] }
 0x32b   : > { %17981 = vst [vmem:[#allocation175_spill] sm:$0xff] %v14847_v23  ;;  %v14851_v19 = vpack.c.bf16 %v6340_v41, %v6337_v57  ;;  %v6341_v21 = vmax.f32 %v4543_v10, %v6005_v39  ;;  %v4549_v43 = vadd.f32 %v4548_v11, %v3956_v14  ;;  %v6007_v12 = vmul.f32 0.3, %v4547_v55  ;;  %v17990_v39 = vld [vmem:[#allocation82_spill] sm:$0xff]  ;;  %v17991_v11 = vld [vmem:[#allocation59_spill] sm:$0xff] }
 0x32c   : > { %v14853_v42 = vpop.f32.mrf.mxu1  ;;  %v4550_v26 = vpop.f32.mrf.mxu0  ;;  %v3964_v37 = vadd.f32 %v17988_v17, %v14433_v45  ;;  %v17993_v17 = vld [vmem:[#allocation187_spill] sm:$0xff] }
 0x32d   : > { %17983 = vst [vmem:[#allocation176_spill] sm:$0xff] %v14851_v19  ;;  %17984 = vst [vmem:[#allocation178_spill] sm:$0xff] %v14853_v42  ;;  %v4551_v34 = vadd.f32 %v4550_v26, %v3958_v62  ;;  %v14857_v44 = vpack.c.bf16 %v6341_v21, %v6338_v15  ;;  %v6008_v46 = vmul.f32 0.3, %v4549_v43  ;;  %v6343_v32 = vmax.f32 %v4547_v55, %v6007_v12  ;;  %v17992_v26 = vld [vmem:[#allocation60_spill] sm:$0xff] }
 0x32e   : > { %v14859_v23 = vpop.f32.mrf.mxu1  ;;  %v4552_v24 = vpop.f32.mrf.mxu0  ;;  %v3966_v19 = vadd.f32 %v17993_v17, %v14444_v31 }
 0x32f   : > { %17986 = vst [vmem:[#allocation180_spill] sm:$0xff] %v14857_v44  ;;  %17987 = vst [vmem:[#allocation55_spill] sm:$0xff] %v14859_v23  ;;  %v6010_v57 = vmul.f32 0.3, %v4551_v34  ;;  %v4553_v10 = vadd.f32 %v4552_v24, %v3960_v16  ;;  %v17995_v16 = vld [vmem:[#allocation188_spill] sm:$0xff] }
 0x330   : > { %v14863_v14 = vpop.f32.mrf.mxu1  ;;  %v4556_v41 = vpop.f32.mrf.mxu0  ;;  %4795 = vmatmul.mubr.bf16.gmra.mxu0 %v17990_v39  ;;  %5084 = vmatmul.mubr.bf16.gmra.mxu1 %v17991_v11  ;;  %v6344_v39 = vmax.f32 %v4549_v43, %v6008_v46 }
 0x331   : > { %17989 = vst [vmem:[#allocation56_spill] sm:$0xff] %v14863_v14  ;;  %v6346_v62 = vmax.f32 %v4551_v34, %v6010_v57  ;;  %v6011_v15 = vmul.f32 0.3, %v4553_v10  ;;  %v4557_v21 = vadd.f32 %v4556_v41, %v3964_v37  ;;  %5091 = vmatprep.mubr.bf16.mxu1 %v17992_v26  ;;  %4804 = vmatprep.mubr.bf16.mxu0 %v17608_v54  ;;  %v17997_v57 = vld [vmem:[#allocation190_spill] sm:$0xff] }
 0x332   : > { %v14871_v44 = vpop.f32.mrf.mxu1  ;;  %v4558_v24 = vpop.f32.mrf.mxu0  ;;  %v3968_v14 = vadd.f32 %v17995_v16, %v14433_v45  ;;  %v3970_v41 = vadd.f32 %v17997_v57, %v14444_v31  ;;  %v17999_v16 = vld [vmem:[#allocation192_spill] sm:$0xff] }
 0x333   : > { %17994 = vst [vmem:[#allocation181_spill] sm:$0xff] %v14871_v44  ;;  %v14875_v23 = vpack.c.bf16 %v6346_v62, %v6343_v32  ;;  %v6347_v55 = vmax.f32 %v4553_v10, %v6011_v15  ;;  %v4559_v12 = vadd.f32 %v4558_v24, %v3966_v19  ;;  %v6013_v11 = vmul.f32 0.3, %v4557_v21  ;;  %v18001_v15 = vld [vmem:[#allocation81_spill] sm:$0xff]  ;;  %v18002_v24 = vld [vmem:[#allocation63_spill] sm:$0xff] }
 0x334   : > { %v14877_v34 = vpop.f32.mrf.mxu1  ;;  %v4560_v37 = vpop.f32.mrf.mxu0  ;;  %v3974_v43 = vadd.f32 %v17999_v16, %v14433_v45  ;;  %v3976_v16 = vadd.f32 %v14192_v8, %v14444_v31 }
 0x335   : > { %17996 = vst [vmem:[#allocation182_spill] sm:$0xff] %v14875_v23  ;;  %v4561_v26 = vadd.f32 %v4560_v37, %v3968_v14  ;;  %v14881_v17 = vpack.c.bf16 %v6347_v55, %v6344_v39  ;;  %v6014_v46 = vmul.f32 0.3, %v4559_v12  ;;  %v6349_v57 = vmax.f32 %v4557_v21, %v6013_v11  ;;  %v18003_v37 = vld [vmem:[#allocation64_spill] sm:$0xff] }
 0x336   : > { %v14883_v44 = vpop.f32.mrf.mxu1  ;;  %v4562_v42 = vpop.f32.mrf.mxu0 }
 0x337   : > { %17998 = vst [vmem:[#allocation184_spill] sm:$0xff] %v14881_v17  ;;  %v6016_v32 = vmul.f32 0.3, %v4561_v26  ;;  %v4563_v10 = vadd.f32 %v4562_v42, %v3970_v41  ;;  %v3978_v41 = vadd.f32 %v14197_v3, %v14433_v45  ;;  %v6350_v17 = vmax.f32 %v4559_v12, %v6014_v46  ;;  %v18009_v3 = vld [vmem:[#allocation196_spill] sm:$0xff] }
 0x338   : > { %v14887_v19 = vpop.f32.mrf.mxu1  ;;  %v4566_v62 = vpop.f32.mrf.mxu0  ;;  %4805 = vmatmul.mubr.bf16.gmra.mxu0 %v18001_v15  ;;  %5092 = vmatmul.mubr.bf16.gmra.mxu1 %v18002_v24  ;;  %v3984_v12 = vadd.f32 %v18009_v3, %v14433_v45  ;;  %v18014_v3 = vld [vmem:[#allocation197_spill] sm:$0xff] }
 0x339   : > { %18000 = vst [vmem:[#allocation186_spill] sm:$0xff] %v14887_v19  ;;  %v6352_v14 = vmax.f32 %v4561_v26, %v6016_v32  ;;  %v6017_v39 = vmul.f32 0.3, %v4563_v10  ;;  %v4567_v55 = vadd.f32 %v4566_v62, %v3974_v43  ;;  %5099 = vmatprep.mubr.bf16.mxu1 %v18003_v37  ;;  %4814 = vmatprep.mubr.bf16.mxu0 %v17608_v54  ;;  %v18006_v32 = vld [vmem:[#allocation194_spill] sm:$0xff] }
 0x33a   : > { %v14895_v23 = vpop.f32.mrf.mxu1  ;;  %v4568_v42 = vpop.f32.mrf.mxu0  ;;  %v3980_v62 = vadd.f32 %v18006_v32, %v14444_v31 }
 0x33b   : > { %18004 = vst [vmem:[#allocation59_spill] sm:$0xff] %v14895_v23  ;;  %v14899_v15 = vpack.c.bf16 %v6352_v14, %v6349_v57  ;;  %v6353_v21 = vmax.f32 %v4563_v10, %v6017_v39  ;;  %v4569_v11 = vadd.f32 %v4568_v42, %v3976_v16  ;;  %v6019_v24 = vmul.f32 0.3, %v4567_v55  ;;  %v18011_v16 = vld [vmem:[#allocation86_spill] sm:$0xff]  ;;  %v18012_v42 = vld [vmem:[#allocation67_spill] sm:$0xff] }
 0x33c   : > { %v14901_v26 = vpop.f32.mrf.mxu1  ;;  %v4570_v43 = vpop.f32.mrf.mxu0 }
 0x33d   : > { %18005 = vst [vmem:[#allocation60_spill] sm:$0xff] %v14899_v15  ;;  %v4571_v37 = vadd.f32 %v4570_v43, %v3978_v41  ;;  %v14905_v8 = vpack.c.bf16 %v6353_v21, %v6350_v17  ;;  %v6020_v46 = vmul.f32 0.3, %v4569_v11  ;;  %v6355_v32 = vmax.f32 %v4567_v55, %v6019_v24  ;;  %v18013_v43 = vld [vmem:[#allocation68_spill] sm:$0xff] }
 0x33e   : > { %v14907_v23 = vpop.f32.mrf.mxu1  ;;  %v4572_v19 = vpop.f32.mrf.mxu0  ;;  %v3986_v15 = vadd.f32 %v18014_v3, %v14444_v31 }
 0x33f   : > { %18007 = vst [vmem:[#allocation187_spill] sm:$0xff] %v14905_v8  ;;  %18008 = vst [vmem:[#allocation188_spill] sm:$0xff] %v14907_v23  ;;  %v6022_v57 = vmul.f32 0.3, %v4571_v37  ;;  %v4573_v10 = vadd.f32 %v4572_v19, %v3980_v62  ;;  %v3988_v62 = vadd.f32 %v14220_v2, %v14433_v45  ;;  %v18019_v2 = vld [vmem:[#allocation201_spill] sm:$0xff] }
 0x340   : > { %v14911_v14 = vpop.f32.mrf.mxu1  ;;  %v4576_v39 = vpop.f32.mrf.mxu0  ;;  %4815 = vmatmul.mubr.bf16.gmra.mxu0 %v18011_v16  ;;  %5100 = vmatmul.mubr.bf16.gmra.mxu1 %v18012_v42  ;;  %v6356_v16 = vmax.f32 %v4569_v11, %v6020_v46  ;;  %v3994_v11 = vadd.f32 %v18019_v2, %v14433_v45  ;;  %v18024_v2 = vld [vmem:[#allocation202_spill] sm:$0xff] }
 0x341   : > { %18010 = vst [vmem:[#allocation190_spill] sm:$0xff] %v14911_v14  ;;  %v6358_v41 = vmax.f32 %v4571_v37, %v6022_v57  ;;  %v6023_v17 = vmul.f32 0.3, %v4573_v10  ;;  %v4577_v21 = vadd.f32 %v4576_v39, %v3984_v12  ;;  %5107 = vmatprep.mubr.bf16.mxu1 %v18013_v43  ;;  %4824 = vmatprep.mubr.bf16.mxu0 %v17608_v54  ;;  %v18017_v57 = vld [vmem:[#allocation199_spill] sm:$0xff] }
 0x342   : > { %v14919_v8 = vpop.f32.mrf.mxu1  ;;  %v4578_v19 = vpop.f32.mrf.mxu0  ;;  %v3990_v39 = vadd.f32 %v18017_v57, %v14444_v31 }
 0x343   : > { %18015 = vst [vmem:[#allocation192_spill] sm:$0xff] %v14919_v8  ;;  %v14923_v14 = vpack.c.bf16 %v6358_v41, %v6355_v32  ;;  %v6359_v55 = vmax.f32 %v4573_v10, %v6023_v17  ;;  %v4579_v24 = vadd.f32 %v4578_v19, %v3986_v15  ;;  %v6025_v42 = vmul.f32 0.3, %v4577_v21  ;;  %v18021_v17 = vld [vmem:[#allocation85_spill] sm:$0xff]  ;;  %v18022_v19 = vld [vmem:[#allocation71_spill] sm:$0xff] }
 0x344   : > { %v14925_v37 = vpop.f32.mrf.mxu1  ;;  %v4580_v12 = vpop.f32.mrf.mxu0 }
 0x345   : > { %18016 = vst [vmem:[#allocation63_spill] sm:$0xff] %v14923_v14  ;;  %v4581_v43 = vadd.f32 %v4580_v12, %v3988_v62  ;;  %v14929_v3 = vpack.c.bf16 %v6359_v55, %v6356_v16  ;;  %v6026_v46 = vmul.f32 0.3, %v4579_v24  ;;  %v6361_v57 = vmax.f32 %v4577_v21, %v6025_v42  ;;  %v18023_v12 = vld [vmem:[#allocation72_spill] sm:$0xff] }
 0x346   : > { %v14931_v8 = vpop.f32.mrf.mxu1  ;;  %v4582_v23 = vpop.f32.mrf.mxu0  ;;  %v3996_v14 = vadd.f32 %v18024_v2, %v14444_v31  ;;  %v12112_v42 = vld [vmem:[%s17946_s3 + $0xb0] sm:$0xff]  }
 0x347   : > { %18018 = vst [vmem:[#allocation64_spill] sm:$0xff] %v14929_v3  ;;  %v6028_v32 = vmul.f32 0.3, %v4581_v43  ;;  %v4583_v10 = vadd.f32 %v4582_v23, %v3990_v39  ;;  %v3998_v39 = vadd.f32 %v14243_v60, %v14433_v45  ;;  %11508 = vmatprep.subr.bf16.mxu1 %v12112_v42 }
 0x348   : > { %v14935_v15 = vpop.f32.mrf.mxu1  ;;  %v4586_v41 = vpop.f32.mrf.mxu0  ;;  %4825 = vmatmul.mubr.bf16.gmra.mxu0 %v18021_v17  ;;  %5108 = vmatmul.mubr.bf16.gmra.mxu1 %v18022_v19  ;;  %v6362_v17 = vmax.f32 %v4579_v24, %v6026_v46  ;;  %v18031_v46 = vld [vmem:[#allocation206_spill] sm:$0xff] }
 0x349   : > { %18020 = vst [vmem:[#allocation194_spill] sm:$0xff] %v14935_v15  ;;  %v6364_v62 = vmax.f32 %v4581_v43, %v6028_v32  ;;  %v6029_v16 = vmul.f32 0.3, %v4583_v10  ;;  %v4587_v55 = vadd.f32 %v4586_v41, %v3994_v11  ;;  %5115 = vmatprep.mubr.bf16.mxu1 %v18023_v12  ;;  %4834 = vmatprep.mubr.bf16.mxu0 %v17608_v54  ;;  %v18028_v41 = vld [vmem:[#allocation204_spill] sm:$0xff] }
 0x34a   : > { %v14943_v3 = vpop.f32.mrf.mxu1  ;;  %v4588_v23 = vpop.f32.mrf.mxu0  ;;  %v4000_v19 = vadd.f32 %v18028_v41, %v14444_v31  ;;  %11509 = vmatpush3.bf16.msra.mxu1 %v12112_v42  ;;  %v18034_v41 = vld [vmem:[#allocation75_spill] sm:$0xff] }
 0x34b   : > { %18025 = vst [vmem:[#allocation196_spill] sm:$0xff] %v14943_v3  ;;  %v14947_v15 = vpack.c.bf16 %v6364_v62, %v6361_v57  ;;  %v6365_v21 = vmax.f32 %v4583_v10, %v6029_v16  ;;  %v4589_v43 = vadd.f32 %v4588_v23, %v3996_v14  ;;  %v6031_v12 = vmul.f32 0.3, %v4587_v55  ;;  %v18036_v42 = vld [vmem:[#allocation207_spill] sm:$0xff] }
 0x34c   : > { %v14952_v11 = vpop.f32.mrf.mxu1  ;;  %v4590_v32 = vpop.f32.mrf.mxu0  ;;  %v4004_v10 = vadd.f32 %v18031_v46, %v14433_v45  ;;  %v4006_v46 = vadd.f32 %v18036_v42, %v14444_v31 }
 0x34d   : > { %18026 = vst [vmem:[#allocation67_spill] sm:$0xff] %v14947_v15  ;;  %18027 = vst [vmem:[#allocation68_spill] sm:$0xff] %v14952_v11  ;;  %v4591_v2 = vadd.f32 %v4590_v32, %v3998_v39  ;;  %v14956_v3 = vpack.c.bf16 %v6365_v21, %v6362_v17  ;;  %v6032_v57 = vmul.f32 0.3, %v4589_v43  ;;  %v18033_v15 = vld [vmem:[#allocation90_spill] sm:$0xff]  ;;  %v6367_v39 = vmax.f32 %v4587_v55, %v6031_v12 }
 0x34e   : > { %v14958_v60 = vpop.f32.mrf.mxu1  ;;  %v4592_v24 = vpop.f32.mrf.mxu0 }
 0x34f   : > { %18029 = vst [vmem:[#allocation197_spill] sm:$0xff] %v14956_v3  ;;  %18030 = vst [vmem:[#allocation199_spill] sm:$0xff] %v14958_v60  ;;  %v6034_v14 = vmul.f32 0.3, %v4591_v2  ;;  %v4593_v62 = vadd.f32 %v4592_v24, %v4000_v19  ;;  %v18035_v3 = vld [vmem:[#allocation76_spill] sm:$0xff]  ;;  %v4008_v24 = vadd.f32 %v14266_v30, %v14433_v45  ;;  %v18042_v30 = vld [vmem:[#allocation211_spill] sm:$0xff] }
 0x350   : > { %v14962_v16 = vpop.f32.mrf.mxu1  ;;  %v4596_v23 = vpop.f32.mrf.mxu0  ;;  %4835 = vmatmul.mubr.bf16.gmra.mxu0 %v18033_v15  ;;  %5116 = vmatmul.mubr.bf16.gmra.mxu1 %v18034_v41  ;;  %v6368_v15 = vmax.f32 %v4589_v43, %v6032_v57  ;;  %v4014_v43 = vadd.f32 %v18042_v30, %v14433_v45  ;;  %v18047_v30 = vld [vmem:[#allocation212_spill] sm:$0xff] }
 0x351   : > { %18032 = vst [vmem:[#allocation201_spill] sm:$0xff] %v14962_v16  ;;  %v6370_v17 = vmax.f32 %v4591_v2, %v6034_v14  ;;  %v6035_v21 = vmul.f32 0.3, %v4593_v62  ;;  %v4597_v32 = vadd.f32 %v4596_v23, %v4004_v10  ;;  %5123 = vmatprep.mubr.bf16.mxu1 %v18035_v3  ;;  %4844 = vmatprep.mubr.bf16.mxu0 %v17608_v54  ;;  %v18039_v3 = vld [vmem:[#allocation209_spill] sm:$0xff] }
 0x352   : > { %v14970_v60 = vpop.f32.mrf.mxu1  ;;  %v4598_v19 = vpop.f32.mrf.mxu0  ;;  %v4010_v14 = vadd.f32 %v18039_v3, %v14444_v31 }
 0x353   : > { %18037 = vst [vmem:[#allocation71_spill] sm:$0xff] %v14970_v60  ;;  %v14974_v16 = vpack.c.bf16 %v6370_v17, %v6367_v39  ;;  %v6371_v55 = vmax.f32 %v4593_v62, %v6035_v21  ;;  %v4599_v12 = vadd.f32 %v4598_v19, %v4006_v46  ;;  %v6037_v23 = vmul.f32 0.3, %v4597_v32  ;;  %v18044_v46 = vld [vmem:[#allocation89_spill] sm:$0xff]  ;;  %v18045_v19 = vld [vmem:[#allocation79_spill] sm:$0xff] }
 0x354   : > { %v14976_v2 = vpop.f32.mrf.mxu1  ;;  %v4600_v10 = vpop.f32.mrf.mxu0 }
 0x355   : > { %18038 = vst [vmem:[#allocation72_spill] sm:$0xff] %v14974_v16  ;;  %v4601_v41 = vadd.f32 %v4600_v10, %v4008_v24  ;;  %v14980_v42 = vpack.c.bf16 %v6371_v55, %v6368_v15  ;;  %v6038_v57 = vmul.f32 0.3, %v4599_v12  ;;  %v6373_v3 = vmax.f32 %v4597_v32, %v6037_v23  ;;  %v18046_v10 = vld [vmem:[#allocation80_spill] sm:$0xff] }
 0x356   : > { %v14982_v60 = vpop.f32.mrf.mxu1  ;;  %v4602_v11 = vpop.f32.mrf.mxu0  ;;  %v4016_v16 = vadd.f32 %v18047_v30, %v14444_v31 }
 0x357   : > { %18040 = vst [vmem:[#allocation202_spill] sm:$0xff] %v14980_v42  ;;  %18041 = vst [vmem:[#allocation204_spill] sm:$0xff] %v14982_v60  ;;  %v6040_v39 = vmul.f32 0.3, %v4601_v41  ;;  %v4603_v62 = vadd.f32 %v4602_v11, %v4010_v14  ;;  %v4018_v14 = vadd.f32 %v14289_v0, %v14433_v45  ;;  %v18053_v0 = vld [vmem:[#allocation216_spill] sm:$0xff] }
 0x358   : > { %v14986_v17 = vpop.f32.mrf.mxu1  ;;  %v4606_v21 = vpop.f32.mrf.mxu0  ;;  %4845 = vmatmul.mubr.bf16.gmra.mxu0 %v18044_v46  ;;  %5124 = vmatmul.mubr.bf16.gmra.mxu1 %v18045_v19  ;;  %v6374_v46 = vmax.f32 %v4599_v12, %v6038_v57  ;;  %v4024_v12 = vadd.f32 %v18053_v0, %v14433_v45  ;;  %v18058_v0 = vld [vmem:[#allocation217_spill] sm:$0xff] }
 0x359   : > { %18043 = vst [vmem:[#allocation206_spill] sm:$0xff] %v14986_v17  ;;  %v6376_v24 = vmax.f32 %v4601_v41, %v6040_v39  ;;  %v6041_v15 = vmul.f32 0.3, %v4603_v62  ;;  %v4607_v55 = vadd.f32 %v4606_v21, %v4014_v43  ;;  %5131 = vmatprep.mubr.bf16.mxu1 %v18046_v10  ;;  %4854 = vmatprep.mubr.bf16.mxu0 %v17608_v54  ;;  %v18050_v39 = vld [vmem:[#allocation214_spill] sm:$0xff] }
 0x35a   : > { %v14994_v42 = vpop.f32.mrf.mxu1  ;;  %v4608_v11 = vpop.f32.mrf.mxu0  ;;  %v4020_v21 = vadd.f32 %v18050_v39, %v14444_v31 }
 0x35b   : > { %18048 = vst [vmem:[#allocation75_spill] sm:$0xff] %v14994_v42  ;;  %v14998_v17 = vpack.c.bf16 %v6376_v24, %v6373_v3  ;;  %v6377_v32 = vmax.f32 %v4603_v62, %v6041_v15  ;;  %v4609_v23 = vadd.f32 %v4608_v11, %v4016_v16  ;;  %v6043_v19 = vmul.f32 0.3, %v4607_v55  ;;  %v18055_v15 = vld [vmem:[#allocation94_spill] sm:$0xff]  ;;  %v18056_v11 = vld [vmem:[#allocation83_spill] sm:$0xff] }
 0x35c   : > { %v15000_v41 = vpop.f32.mrf.mxu1  ;;  %v4610_v43 = vpop.f32.mrf.mxu0 }
 0x35d   : > { %18049 = vst [vmem:[#allocation76_spill] sm:$0xff] %v14998_v17  ;;  %v4611_v10 = vadd.f32 %v4610_v43, %v4018_v14  ;;  %v15004_v30 = vpack.c.bf16 %v6377_v32, %v6374_v46  ;;  %v6044_v57 = vmul.f32 0.3, %v4609_v23  ;;  %v6379_v39 = vmax.f32 %v4607_v55, %v6043_v19  ;;  %v18057_v43 = vld [vmem:[#allocation84_spill] sm:$0xff] }
 0x35e   : > { %v15006_v42 = vpop.f32.mrf.mxu1  ;;  %v4612_v60 = vpop.f32.mrf.mxu0  ;;  %v4026_v17 = vadd.f32 %v18058_v0, %v14444_v31 }
 0x35f   : > { %18051 = vst [vmem:[#allocation207_spill] sm:$0xff] %v15004_v30  ;;  %18052 = vst [vmem:[#allocation209_spill] sm:$0xff] %v15006_v42  ;;  %v6046_v3 = vmul.f32 0.3, %v4611_v10  ;;  %v4613_v62 = vadd.f32 %v4612_v60, %v4020_v21  ;;  %v4028_v21 = vadd.f32 %v14312_v58, %v14433_v45  ;;  %v18065_v58 = vld [vmem:[#allocation221_spill] sm:$0xff] }
 0x360   : > { %v15010_v16 = vpop.f32.mrf.mxu1  ;;  %v4616_v24 = vpop.f32.mrf.mxu0  ;;  %4855 = vmatmul.mubr.bf16.gmra.mxu0 %v18055_v15  ;;  %5132 = vmatmul.mubr.bf16.gmra.mxu1 %v18056_v11  ;;  %v6380_v15 = vmax.f32 %v4609_v23, %v6044_v57  ;;  %v4034_v23 = vadd.f32 %v18065_v58, %v14433_v45  ;;  %v18070_v58 = vld [vmem:[#allocation222_spill] sm:$0xff] }
 0x361   : > { %18054 = vst [vmem:[#allocation211_spill] sm:$0xff] %v15010_v16  ;;  %v6382_v14 = vmax.f32 %v4611_v10, %v6046_v3  ;;  %v6047_v46 = vmul.f32 0.3, %v4613_v62  ;;  %v4617_v32 = vadd.f32 %v4616_v24, %v4024_v12  ;;  %5139 = vmatprep.mubr.bf16.mxu1 %v18057_v43  ;;  %4864 = vmatprep.mubr.bf16.mxu0 %v17608_v54  ;;  %v18062_v3 = vld [vmem:[#allocation219_spill] sm:$0xff] }
 0x362   : > { %v15018_v30 = vpop.f32.mrf.mxu1  ;;  %v4618_v60 = vpop.f32.mrf.mxu0  ;;  %v4030_v24 = vadd.f32 %v18062_v3, %v14444_v31 }
 0x363   : > { %18059 = vst [vmem:[#allocation79_spill] sm:$0xff] %v15018_v30  ;;  %v15022_v16 = vpack.c.bf16 %v6382_v14, %v6379_v39  ;;  %v6383_v55 = vmax.f32 %v4613_v62, %v6047_v46  ;;  %v4619_v19 = vadd.f32 %v4618_v60, %v4026_v17  ;;  %v6049_v11 = vmul.f32 0.3, %v4617_v32  ;;  %v18067_v46 = vld [vmem:[#allocation93_spill] sm:$0xff]  ;;  %v18068_v60 = vld [vmem:[#allocation87_spill] sm:$0xff] }
 0x364   : > { %v15024_v10 = vpop.f32.mrf.mxu1  ;;  %v4620_v12 = vpop.f32.mrf.mxu0 }
 0x365   : > { %18060 = vst [vmem:[#allocation80_spill] sm:$0xff] %v15022_v16  ;;  %18061 = vst [vmem:[#allocation212_spill] sm:$0xff] %v15024_v10  ;;  %v4621_v43 = vadd.f32 %v4620_v12, %v4028_v21  ;;  %v15028_v0 = vpack.c.bf16 %v6383_v55, %v6380_v15  ;;  %v6050_v57 = vmul.f32 0.3, %v4619_v19  ;;  %v6385_v3 = vmax.f32 %v4617_v32, %v6049_v11  ;;  %v18069_v12 = vld [vmem:[#allocation88_spill] sm:$0xff] }
 0x366   : > { %v15030_v30 = vpop.f32.mrf.mxu1  ;;  %v4622_v42 = vpop.f32.mrf.mxu0  ;;  %v4036_v16 = vadd.f32 %v18070_v58, %v14444_v31 }
 0x367   : > { %18063 = vst [vmem:[#allocation214_spill] sm:$0xff] %v15028_v0  ;;  %18064 = vst [vmem:[#allocation216_spill] sm:$0xff] %v15030_v30  ;;  %v6052_v39 = vmul.f32 0.3, %v4621_v43  ;;  %v4623_v62 = vadd.f32 %v4622_v42, %v4030_v24  ;;  %v18072_v24 = vld [vmem:[#allocation223_spill] sm:$0xff] }
 0x368   : > { %v15034_v17 = vpop.f32.mrf.mxu1  ;;  %v4626_v14 = vpop.f32.mrf.mxu0  ;;  %4865 = vmatmul.mubr.bf16.gmra.mxu0 %v18067_v46  ;;  %5140 = vmatmul.mubr.bf16.gmra.mxu1 %v18068_v60  ;;  %v6386_v46 = vmax.f32 %v4619_v19, %v6050_v57 }
 0x369   : > { %18066 = vst [vmem:[#allocation83_spill] sm:$0xff] %v15034_v17  ;;  %v6388_v21 = vmax.f32 %v4621_v43, %v6052_v39  ;;  %v6053_v15 = vmul.f32 0.3, %v4623_v62  ;;  %v4627_v55 = vadd.f32 %v4626_v14, %v4034_v23  ;;  %5147 = vmatprep.mubr.bf16.mxu1 %v18069_v12  ;;  %4874 = vmatprep.mubr.bf16.mxu0 %v17608_v54  ;;  %v18074_v39 = vld [vmem:[#allocation225_spill] sm:$0xff] }
 0x36a   : > { %v15042_v0 = vpop.f32.mrf.mxu1  ;;  %v4628_v42 = vpop.f32.mrf.mxu0  ;;  %v4038_v17 = vadd.f32 %v18072_v24, %v14433_v45  ;;  %v4040_v14 = vadd.f32 %v18074_v39, %v14444_v31  ;;  %v18077_v24 = vld [vmem:[#allocation227_spill] sm:$0xff] }
 0x36b   : > { %18071 = vst [vmem:[#allocation84_spill] sm:$0xff] %v15042_v0  ;;  %v15046_v30 = vpack.c.bf16 %v6388_v21, %v6385_v3  ;;  %v6389_v32 = vmax.f32 %v4623_v62, %v6053_v15  ;;  %v4629_v11 = vadd.f32 %v4628_v42, %v4036_v16  ;;  %v6055_v60 = vmul.f32 0.3, %v4627_v55  ;;  %v18079_v15 = vld [vmem:[#allocation98_spill] sm:$0xff]  ;;  %v18080_v42 = vld [vmem:[#allocation91_spill] sm:$0xff] }
 0x36c   : > { %v15048_v43 = vpop.f32.mrf.mxu1  ;;  %v4630_v23 = vpop.f32.mrf.mxu0  ;;  %v4044_v19 = vadd.f32 %v18077_v24, %v14433_v45  ;;  %v4046_v24 = vadd.f32 %v14356_v1, %v14444_v31 }
 0x36d   : > { %18073 = vst [vmem:[#allocation217_spill] sm:$0xff] %v15046_v30  ;;  %v4631_v12 = vadd.f32 %v4630_v23, %v4038_v17  ;;  %v15052_v58 = vpack.c.bf16 %v6389_v32, %v6386_v46  ;;  %v6056_v57 = vmul.f32 0.3, %v4629_v11  ;;  %v6391_v39 = vmax.f32 %v4627_v55, %v6055_v60  ;;  %v18081_v23 = vld [vmem:[#allocation92_spill] sm:$0xff] }
 0x36e   : > { %v15054_v0 = vpop.f32.mrf.mxu1  ;;  %v4632_v10 = vpop.f32.mrf.mxu0 }
 0x36f   : > { %18075 = vst [vmem:[#allocation219_spill] sm:$0xff] %v15052_v58  ;;  %18076 = vst [vmem:[#allocation221_spill] sm:$0xff] %v15054_v0  ;;  %v6058_v3 = vmul.f32 0.3, %v4631_v12  ;;  %v4633_v62 = vadd.f32 %v4632_v10, %v4040_v14  ;;  %v18083_v14 = vld [vmem:[#allocation228_spill] sm:$0xff] }
 0x370   : > { %v15058_v16 = vpop.f32.mrf.mxu1  ;;  %v4636_v21 = vpop.f32.mrf.mxu0  ;;  %4875 = vmatmul.mubr.bf16.gmra.mxu0 %v18079_v15  ;;  %5148 = vmatmul.mubr.bf16.gmra.mxu1 %v18080_v42  ;;  %v4048_v58 = vadd.f32 %v18083_v14, %v14433_v45  ;;  %v6392_v15 = vmax.f32 %v4629_v11, %v6056_v57  ;;  %v18089_v14 = vld [vmem:[#allocation232_spill] sm:$0xff] }
 0x371   : > { %18078 = vst [vmem:[#allocation87_spill] sm:$0xff] %v15058_v16  ;;  %v6394_v17 = vmax.f32 %v4631_v12, %v6058_v3  ;;  %v6059_v46 = vmul.f32 0.3, %v4633_v62  ;;  %v4637_v32 = vadd.f32 %v4636_v21, %v4044_v19  ;;  %5155 = vmatprep.mubr.bf16.mxu1 %v18081_v23  ;;  %4884 = vmatprep.mubr.bf16.mxu0 %v17608_v54  ;;  %v18086_v3 = vld [vmem:[#allocation230_spill] sm:$0xff] }
 0x372   : > { %v15066_v30 = vpop.f32.mrf.mxu1  ;;  %v4638_v10 = vpop.f32.mrf.mxu0  ;;  %v4050_v21 = vadd.f32 %v18086_v3, %v14444_v31  ;;  %v4054_v11 = vadd.f32 %v18089_v14, %v14433_v45  ;;  %v18094_v14 = vld [vmem:[#allocation233_spill] sm:$0xff] }
 0x373   : > { %18082 = vst [vmem:[#allocation88_spill] sm:$0xff] %v15066_v30  ;;  %v15070_v16 = vpack.c.bf16 %v6394_v17, %v6391_v39  ;;  %v6395_v55 = vmax.f32 %v4633_v62, %v6059_v46  ;;  %v4639_v60 = vadd.f32 %v4638_v10, %v4046_v24  ;;  %v6061_v42 = vmul.f32 0.3, %v4637_v32  ;;  %v18091_v24 = vld [vmem:[#allocation97_spill] sm:$0xff]  ;;  %v18092_v10 = vld [vmem:[#allocation95_spill] sm:$0xff] }
 0x374   : > { %v15072_v12 = vpop.f32.mrf.mxu1  ;;  %v4640_v19 = vpop.f32.mrf.mxu0 }
 0x375   : > { %18084 = vst [vmem:[#allocation222_spill] sm:$0xff] %v15070_v16  ;;  %18085 = vst [vmem:[#allocation223_spill] sm:$0xff] %v15072_v12  ;;  %v4641_v23 = vadd.f32 %v4640_v19, %v4048_v58  ;;  %v15076_v1 = vpack.c.bf16 %v6395_v55, %v6392_v15  ;;  %v6062_v57 = vmul.f32 0.3, %v4639_v60  ;;  %v6397_v3 = vmax.f32 %v4637_v32, %v6061_v42  ;;  %v18093_v19 = vld [vmem:[#allocation96_spill] sm:$0xff] }
 0x376   : > { %v15078_v30 = vpop.f32.mrf.mxu1  ;;  %v4642_v0 = vpop.f32.mrf.mxu0  ;;  %v4056_v16 = vadd.f32 %v18094_v14, %v14444_v31 }
 0x377   : > { %18087 = vst [vmem:[#allocation225_spill] sm:$0xff] %v15076_v1  ;;  %18088 = vst [vmem:[#allocation227_spill] sm:$0xff] %v15078_v30  ;;  %v6064_v39 = vmul.f32 0.3, %v4641_v23  ;;  %v4643_v62 = vadd.f32 %v4642_v0, %v4050_v21  ;;  %v18096_v21 = vld [vmem:[#allocation234_spill] sm:$0xff] }
 0x378   : > { %v15082_v17 = vpop.f32.mrf.mxu1  ;;  %v4646_v46 = vpop.f32.mrf.mxu0  ;;  %4885 = vmatmul.mubr.bf16.gmra.mxu0 %v18091_v24  ;;  %5156 = vmatmul.mubr.bf16.gmra.mxu1 %v18092_v10  ;;  %v6398_v24 = vmax.f32 %v4639_v60, %v6062_v57 }
 0x379   : > { %18090 = vst [vmem:[#allocation91_spill] sm:$0xff] %v15082_v17  ;;  %v6400_v58 = vmax.f32 %v4641_v23, %v6064_v39  ;;  %v6065_v15 = vmul.f32 0.3, %v4643_v62  ;;  %v4647_v55 = vadd.f32 %v4646_v46, %v4054_v11  ;;  %5163 = vmatprep.mubr.bf16.mxu1 %v18093_v19  ;;  %4894 = vmatprep.mubr.bf16.mxu0 %v17608_v54  ;;  %v18098_v39 = vld [vmem:[#allocation236_spill] sm:$0xff] }
 0x37a   : > { %v15090_v1 = vpop.f32.mrf.mxu1  ;;  %v4648_v0 = vpop.f32.mrf.mxu0  ;;  %v4058_v17 = vadd.f32 %v18096_v21, %v14433_v45  ;;  %v4060_v46 = vadd.f32 %v18098_v39, %v14444_v31  ;;  %v18101_v21 = vld [vmem:[#allocation238_spill] sm:$0xff] }
 0x37b   : > { %18095 = vst [vmem:[#allocation92_spill] sm:$0xff] %v15090_v1  ;;  %v15094_v30 = vpack.c.bf16 %v6400_v58, %v6397_v3  ;;  %v6401_v32 = vmax.f32 %v4643_v62, %v6065_v15  ;;  %v4649_v42 = vadd.f32 %v4648_v0, %v4056_v16  ;;  %v6067_v10 = vmul.f32 0.3, %v4647_v55  ;;  %v18103_v15 = vld [vmem:[#allocation102_spill] sm:$0xff]  ;;  %v18104_v0 = vld [vmem:[#allocation99_spill] sm:$0xff] }
 0x37c   : > { %v15096_v23 = vpop.f32.mrf.mxu1  ;;  %v4650_v11 = vpop.f32.mrf.mxu0  ;;  %v4064_v60 = vadd.f32 %v18101_v21, %v14433_v45  ;;  %v18106_v21 = vld [vmem:[#allocation239_spill] sm:$0xff] }
 0x37d   : > { %18097 = vst [vmem:[#allocation228_spill] sm:$0xff] %v15094_v30  ;;  %v4651_v19 = vadd.f32 %v4650_v11, %v4058_v17  ;;  %v15100_v14 = vpack.c.bf16 %v6401_v32, %v6398_v24  ;;  %v6068_v57 = vmul.f32 0.3, %v4649_v42  ;;  %v6403_v39 = vmax.f32 %v4647_v55, %v6067_v10  ;;  %v18105_v11 = vld [vmem:[#allocation100_spill] sm:$0xff] }
 0x37e   : > { %v15102_v1 = vpop.f32.mrf.mxu1  ;;  %v4652_v12 = vpop.f32.mrf.mxu0  ;;  %v4066_v30 = vadd.f32 %v18106_v21, %v14444_v31  ;;  %v12117_v10 = vld [vmem:[%s17946_s3 + $0xa8] sm:$0xff]  }
 0x37f   : > { %18099 = vst [vmem:[#allocation230_spill] sm:$0xff] %v15100_v14  ;;  %18100 = vst [vmem:[#allocation232_spill] sm:$0xff] %v15102_v1  ;;  %v6070_v3 = vmul.f32 0.3, %v4651_v19  ;;  %v4653_v62 = vadd.f32 %v4652_v12, %v4060_v46  ;;  %v18108_v46 = vld [vmem:[#allocation240_spill] sm:$0xff]  ;;  %11510 = vmatprep.subr.bf16.mxu1 %v12117_v10 }
 0x380   : > { %v15106_v16 = vpop.f32.mrf.mxu1  ;;  %v4656_v58 = vpop.f32.mrf.mxu0  ;;  %4895 = vmatmul.mubr.bf16.gmra.mxu0 %v18103_v15  ;;  %5164 = vmatmul.mubr.bf16.gmra.mxu1 %v18104_v0  ;;  %v6404_v15 = vmax.f32 %v4649_v42, %v6068_v57 }
 0x381   : > { %18102 = vst [vmem:[#allocation95_spill] sm:$0xff] %v15106_v16  ;;  %v6406_v17 = vmax.f32 %v4651_v19, %v6070_v3  ;;  %v6071_v24 = vmul.f32 0.3, %v4653_v62  ;;  %v4657_v32 = vadd.f32 %v4656_v58, %v4064_v60  ;;  %5171 = vmatprep.mubr.bf16.mxu1 %v18105_v11  ;;  %4904 = vmatprep.mubr.bf16.mxu0 %v17608_v54  ;;  %v18110_v58 = vld [vmem:[#allocation242_spill] sm:$0xff] }
 0x382   : > { %v15114_v14 = vpop.f32.mrf.mxu1  ;;  %v4658_v12 = vpop.f32.mrf.mxu0  ;;  %v4068_v16 = vadd.f32 %v18108_v46, %v14433_v45  ;;  %v4070_v0 = vadd.f32 %v18110_v58, %v14444_v31  ;;  %11511 = vmatpush3.bf16.msra.mxu1 %v12117_v10  ;;  %v18116_v58 = vld [vmem:[#allocation103_spill] sm:$0xff]  ;;  %v18118_v10 = vld [vmem:[#allocation245_spill] sm:$0xff] }
 0x383   : > { %18107 = vst [vmem:[#allocation96_spill] sm:$0xff] %v15114_v14  ;;  %v15118_v1 = vpack.c.bf16 %v6406_v17, %v6403_v39  ;;  %v6407_v55 = vmax.f32 %v4653_v62, %v6071_v24  ;;  %v4659_v19 = vadd.f32 %v4658_v12, %v4066_v30  ;;  %v6073_v11 = vmul.f32 0.3, %v4657_v32  ;;  %v18113_v62 = vld [vmem:[#allocation244_spill] sm:$0xff] }
 0x384   : > { %v15123_v60 = vpop.f32.mrf.mxu1  ;;  %v4660_v3 = vpop.f32.mrf.mxu0  ;;  %v4074_v39 = vadd.f32 %v18113_v62, %v14433_v45  ;;  %v4076_v62 = vadd.f32 %v18118_v10, %v14444_v31 }
 0x385   : > { %18109 = vst [vmem:[#allocation233_spill] sm:$0xff] %v15118_v1  ;;  %v4661_v21 = vadd.f32 %v4660_v3, %v4068_v16  ;;  %v15127_v14 = vpack.c.bf16 %v6407_v55, %v6404_v15  ;;  %v6074_v17 = vmul.f32 0.3, %v4659_v19  ;;  %v18115_v1 = vld [vmem:[#allocation101_spill] sm:$0xff]  ;;  %v6409_v16 = vmax.f32 %v4657_v32, %v6073_v11 }
 0x386   : > { %v15129_v42 = vpop.f32.mrf.mxu1  ;;  %v4662_v57 = vpop.f32.mrf.mxu0 }
 0x387   : > { %18111 = vst [vmem:[#allocation234_spill] sm:$0xff] %v15127_v14  ;;  %18112 = vst [vmem:[#allocation236_spill] sm:$0xff] %v15129_v42  ;;  %v6076_v30 = vmul.f32 0.3, %v4661_v21  ;;  %v4663_v24 = vadd.f32 %v4662_v57, %v4070_v0  ;;  %v18117_v14 = vld [vmem:[#allocation104_spill] sm:$0xff]  ;;  %v4078_v57 = vadd.f32 %v14440_v28, %v14433_v45  ;;  %v4084_v28 = vadd.f32 %v14454_v35, %v14433_v45 }
 0x388   : > { %v15133_v12 = vpop.f32.mrf.mxu1  ;;  %v4666_v46 = vpop.f32.mrf.mxu0  ;;  %4905 = vmatmul.mubr.bf16.gmra.mxu0 %v18115_v1  ;;  %5172 = vmatmul.mubr.bf16.gmra.mxu1 %v18116_v58  ;;  %v6410_v1 = vmax.f32 %v4659_v19, %v6074_v17 }
 0x389   : > { %18114 = vst [vmem:[#allocation238_spill] sm:$0xff] %v15133_v12  ;;  %v6412_v15 = vmax.f32 %v4661_v21, %v6076_v30  ;;  %v6077_v55 = vmul.f32 0.3, %v4663_v24  ;;  %v4667_v3 = vadd.f32 %v4666_v46, %v4074_v39  ;;  %5179 = vmatprep.mubr.bf16.mxu1 %v18117_v14  ;;  %4914 = vmatprep.mubr.bf16.mxu0 %v17608_v54 }
 0x38a   : > { %v15141_v42 = vpop.f32.mrf.mxu1  ;;  %v4668_v0 = vpop.f32.mrf.mxu0  ;;  %v4080_v14 = vadd.f32 %v14448_v27, %v14444_v31 }
 0x38b   : > { %18119 = vst [vmem:[#allocation99_spill] sm:$0xff] %v15141_v42  ;;  %v15145_v12 = vpack.c.bf16 %v6412_v15, %v6409_v16  ;;  %v6413_v32 = vmax.f32 %v4663_v24, %v6077_v55  ;;  %v4669_v11 = vadd.f32 %v4668_v0, %v4076_v62  ;;  %v6079_v30 = vmul.f32 0.3, %v4667_v3  ;;  %v18122_v55 = vld [vmem:[#allocation106_spill] sm:$0xff]  ;;  %v18124_v62 = vld [vmem:[#allocation107_spill] sm:$0xff] }
 0x38c   : > { %v15147_v21 = vpop.f32.mrf.mxu1  ;;  %v4670_v39 = vpop.f32.mrf.mxu0  ;;  %v4086_v24 = vadd.f32 %v14463_v59, %v14444_v31  ;;  %v4088_v59 = vadd.f32 %v14471_v40, %v14433_v45 }
 0x38d   : > { %18120 = vst [vmem:[#allocation100_spill] sm:$0xff] %v15145_v12  ;;  %v4671_v46 = vadd.f32 %v4670_v39, %v4078_v57  ;;  %v15151_v58 = vpack.c.bf16 %v6413_v32, %v6410_v1  ;;  %v6080_v16 = vmul.f32 0.3, %v4669_v11  ;;  %v6415_v1 = vmax.f32 %v4667_v3, %v6079_v30  ;;  %v18125_v39 = vld [vmem:[#allocation108_spill] sm:$0xff]  ;;  %v18128_v3 = vld [vmem:[#allocation249_spill] sm:$0xff] }
 0x38e   : > { %v15153_v10 = vpop.f32.mrf.mxu1  ;;  %v4672_v42 = vpop.f32.mrf.mxu0  ;;  %v4090_v30 = vadd.f32 %v18128_v3, %v14444_v31  ;;  %v18133_v3 = vld [vmem:[#allocation111_spill] sm:$0xff] }
 0x38f   : > { %18121 = vst [vmem:[#allocation239_spill] sm:$0xff] %v15151_v58  ;;  %v6082_v19 = vmul.f32 0.3, %v4671_v46  ;;  %v4673_v17 = vadd.f32 %v4672_v42, %v4080_v14 }
 0x390   : > { %v4676_v15 = vpop.f32.mrf.mxu0  ;;  %4915 = vmatmul.mubr.bf16.gmra.mxu0 %v18122_v55  ;;  %v15160_v27 = vpop.f32.mrf.mxu1  ;;  %5180 = vmatmul.mubr.bf16.gmra.mxu1 %v18124_v62  ;;  %v6416_v55 = vmax.f32 %v4669_v11, %v6080_v16 }
 0x391   : > { %18123 = vst [vmem:[#allocation240_spill] sm:$0xff] %v15160_v27  ;;  %v6418_v0 = vmax.f32 %v4671_v46, %v6082_v19  ;;  %v6083_v57 = vmul.f32 0.3, %v4673_v17  ;;  %v4677_v32 = vadd.f32 %v4676_v15, %v4084_v28  ;;  %5187 = vmatprep.mubr.bf16.mxu1 %v18125_v39  ;;  %4924 = vmatprep.mubr.bf16.mxu0 %v17608_v54 }
 0x392   : > { %v4678_v35 = vpop.f32.mrf.mxu0  ;;  %v4991_v42 = vpop.f32.mrf.mxu1 }
 0x393   : > { %v15167_v14 = vpack.c.bf16 %v6418_v0, %v6415_v1  ;;  %v6419_v12 = vmax.f32 %v4673_v17, %v6083_v57  ;;  %v4679_v58 = vadd.f32 %v4678_v35, %v4086_v24  ;;  %v6085_v46 = vmul.f32 0.3, %v4677_v32  ;;  %v18130_v42 = vld [vmem:[#allocation251_spill] sm:$0xff]  ;;  %v18131_v17 = vld [vmem:[#allocation252_spill] sm:$0xff]  ;;  %v18132_v57 = vld [vmem:[#allocation105_spill] sm:$0xff] }
 0x394   : > { %v4680_v27 = vpop.f32.mrf.mxu0  ;;  %v15169_v62 = vpop.f32.mrf.mxu1  ;;  %v4094_v40 = vadd.f32 %v18130_v42, %v14433_v45  ;;  %v4096_v11 = vadd.f32 %v18131_v17, %v14444_v31  ;;  %v4098_v42 = vadd.f32 %v14503_v48, %v14433_v45  ;;  %v4104_v48 = vadd.f32 %v14515_v51, %v14433_v45 }
 0x395   : > { %18126 = vst [vmem:[#allocation242_spill] sm:$0xff] %v15167_v14  ;;  %18127 = vst [vmem:[#allocation244_spill] sm:$0xff] %v15169_v62  ;;  %v4681_v28 = vadd.f32 %v4680_v27, %v4088_v59  ;;  %v15173_v39 = vpack.c.bf16 %v6419_v12, %v6416_v55  ;;  %v6086_v24 = vmul.f32 0.3, %v4679_v58  ;;  %v6421_v27 = vmax.f32 %v4677_v32, %v6085_v46 }
 0x396   : > { %v4682_v19 = vpop.f32.mrf.mxu0  ;;  %v4994_v15 = vpop.f32.mrf.mxu1  ;;  %v4100_v32 = vadd.f32 %v14511_v29, %v14444_v31  ;;  %v18138_v29 = vld [vmem:[#allocation113_spill] sm:$0xff] }
 0x397   : > { %18129 = vst [vmem:[#allocation103_spill] sm:$0xff] %v15173_v39  ;;  %v6088_v1 = vmul.f32 0.3, %v4681_v28  ;;  %v4683_v0 = vadd.f32 %v4682_v19, %v4090_v30  ;;  %v18134_v15 = vld [vmem:[#allocation112_spill] sm:$0xff] }
 0x398   : > { %v4686_v16 = vpop.f32.mrf.mxu0  ;;  %4925 = vmatmul.mubr.bf16.gmra.mxu0 %v18132_v57  ;;  %v15180_v35 = vpop.f32.mrf.mxu1  ;;  %5188 = vmatmul.mubr.bf16.gmra.mxu1 %v18133_v3  ;;  %v6422_v57 = vmax.f32 %v4679_v58, %v6086_v24  ;;  %v4106_v58 = vadd.f32 %v14523_v61, %v14444_v31  ;;  %v18137_v24 = vld [vmem:[#allocation110_spill] sm:$0xff]  ;;  %v4108_v61 = vadd.f32 %v14529_v47, %v14433_v45 }
 0x399   : > { %v6424_v59 = vmax.f32 %v4681_v28, %v6088_v1  ;;  %v6089_v12 = vmul.f32 0.3, %v4683_v0  ;;  %v4687_v55 = vadd.f32 %v4686_v16, %v4094_v40  ;;  %5195 = vmatprep.mubr.bf16.mxu1 %v18134_v15  ;;  %4934 = vmatprep.mubr.bf16.mxu0 %v17608_v54  ;;  %v4114_v47 = vadd.f32 %v14544_v49, %v14433_v45  ;;  %v18145_v49 = vld [vmem:[#allocation5_spill] sm:$0xff] }
 0x39a   : > { %v4688_v30 = vpop.f32.mrf.mxu0  ;;  %v4999_v19 = vpop.f32.mrf.mxu1 }
 0x39b   : > { %v15187_v17 = vpack.c.bf16 %v6424_v59, %v6421_v27  ;;  %v6425_v14 = vmax.f32 %v4683_v0, %v6089_v12  ;;  %v4689_v39 = vadd.f32 %v4688_v30, %v4096_v11  ;;  %v6091_v46 = vmul.f32 0.3, %v4687_v55  ;;  %v18139_v30 = vld [vmem:[#allocation114_spill] sm:$0xff] }
 0x39c   : > { %v4690_v62 = vpop.f32.mrf.mxu0  ;;  %v15189_v3 = vpop.f32.mrf.mxu1 }
 0x39d   : > { %18135 = vst [vmem:[#allocation104_spill] sm:$0xff] %v15187_v17  ;;  %v4691_v28 = vadd.f32 %v4690_v62, %v4098_v42  ;;  %v15193_v16 = vpack.c.bf16 %v6425_v14, %v6422_v57  ;;  %v6092_v0 = vmul.f32 0.3, %v4689_v39  ;;  %v6427_v62 = vmax.f32 %v4687_v55, %v6091_v46 }
 0x39e   : > { %v4692_v40 = vpop.f32.mrf.mxu0  ;;  %v5002_v1 = vpop.f32.mrf.mxu1  ;;  %v4110_v55 = vadd.f32 %v14540_v5, %v14444_v31  ;;  %v18143_v5 = vld [vmem:[#allocation118_spill] sm:$0xff] }
 0x39f   : > { %18136 = vst [vmem:[#allocation245_spill] sm:$0xff] %v15193_v16  ;;  %v6094_v27 = vmul.f32 0.3, %v4691_v28  ;;  %v4693_v59 = vadd.f32 %v4692_v40, %v4100_v32  ;;  %v6428_v1 = vmax.f32 %v4689_v39, %v6092_v0  ;;  %v4116_v39 = vadd.f32 %v14552_v33, %v14444_v31  ;;  %v18142_v0 = vld [vmem:[#allocation109_spill] sm:$0xff] }
 0x3a0   : > { %v4696_v11 = vpop.f32.mrf.mxu0  ;;  %4935 = vmatmul.mubr.bf16.gmra.mxu0 %v18137_v24  ;;  %v15200_v12 = vpop.f32.mrf.mxu1  ;;  %5196 = vmatmul.mubr.bf16.gmra.mxu1 %v18138_v29  ;;  %v4118_v33 = vadd.f32 %v14558_v18, %v14433_v45 }
 0x3a1   : > { %v6430_v15 = vmax.f32 %v4691_v28, %v6094_v27  ;;  %v6095_v14 = vmul.f32 0.3, %v4693_v59  ;;  %v4697_v57 = vadd.f32 %v4696_v11, %v4104_v48  ;;  %5203 = vmatprep.mubr.bf16.mxu1 %v18139_v30  ;;  %4944 = vmatprep.mubr.bf16.mxu0 %v17608_v54 }
 0x3a2   : > { %v4698_v51 = vpop.f32.mrf.mxu0  ;;  %v5007_v19 = vpop.f32.mrf.mxu1 }
 0x3a3   : > { %v15207_v42 = vpack.c.bf16 %v6430_v15, %v6427_v62  ;;  %v6431_v32 = vmax.f32 %v4693_v59, %v6095_v14  ;;  %v4699_v40 = vadd.f32 %v4698_v51, %v4106_v58  ;;  %v6097_v46 = vmul.f32 0.3, %v4697_v57 }
 0x3a4   : > { %v4700_v17 = vpop.f32.mrf.mxu0  ;;  %v15209_v29 = vpop.f32.mrf.mxu1 }
 0x3a5   : > { %18140 = vst [vmem:[#allocation107_spill] sm:$0xff] %v15207_v42  ;;  %v4701_v28 = vadd.f32 %v4700_v17, %v4108_v61  ;;  %v15213_v11 = vpack.c.bf16 %v6431_v32, %v6428_v1  ;;  %v6098_v59 = vmul.f32 0.3, %v4699_v40  ;;  %v6433_v17 = vmax.f32 %v4697_v57, %v6097_v46  ;;  %v18144_v61 = vld [vmem:[#allocation120_spill] sm:$0xff] }
 0x3a6   : > { %v4702_v48 = vpop.f32.mrf.mxu0  ;;  %v5010_v27 = vpop.f32.mrf.mxu1  ;;  %v4120_v57 = vadd.f32 %v14564_v7, %v14444_v31 }
 0x3a7   : > { %18141 = vst [vmem:[#allocation108_spill] sm:$0xff] %v15213_v11  ;;  %v6100_v62 = vmul.f32 0.3, %v4701_v28  ;;  %v4703_v15 = vadd.f32 %v4702_v48, %v4110_v55  ;;  %v6434_v42 = vmax.f32 %v4699_v40, %v6098_v59  ;;  %v4126_v59 = vadd.f32 %v14576_v22, %v14444_v31  ;;  %v12111_v22 = vld [vmem:[%s17946_s3 + $0x30] sm:$0xff]  }
 0x3a8   : > { %v4706_v58 = vpop.f32.mrf.mxu0  ;;  %4945 = vmatmul.mubr.bf16.gmra.mxu0 %v18142_v0  ;;  %v15220_v14 = vpop.f32.mrf.mxu1  ;;  %5204 = vmatmul.mubr.bf16.gmra.mxu1 %v18143_v5 }
 0x3a9   : > { %v6436_v30 = vmax.f32 %v4701_v28, %v6100_v62  ;;  %v6101_v51 = vmul.f32 0.3, %v4703_v15  ;;  %v4707_v19 = vadd.f32 %v4706_v58, %v4114_v47  ;;  %5211 = vmatprep.mubr.bf16.mxu1 %v18144_v61  ;;  %11394 = vmatprep.mubr.bf16.mxu0 %v18145_v49  ;;  %v12110_v58 = vld [vmem:[%s17946_s3 + $0x38] sm:$0xff]  }
 0x3aa   : > { %v4708_v32 = vpop.f32.mrf.mxu0  ;;  %v5015_v1 = vpop.f32.mrf.mxu1 }
 0x3ab   : > { %v15227_v55 = vpack.c.bf16 %v6436_v30, %v6433_v17  ;;  %v6437_v48 = vmax.f32 %v4703_v15, %v6101_v51  ;;  %v4709_v27 = vadd.f32 %v4708_v32, %v4116_v39  ;;  %v6103_v46 = vmul.f32 0.3, %v4707_v19  ;;  %v18149_v51 = vld [vmem:[#allocation4_spill] sm:$0xff]  ;;  %v18150_v1 = vld [vmem:[#allocation126_spill] sm:$0xff] }
 0x3ac   : > { %v4710_v11 = vpop.f32.mrf.mxu0  ;;  %v15229_v5 = vpop.f32.mrf.mxu1  ;;  %v4124_v15 = vadd.f32 %v14568_v53, %v14433_v45  ;;  %v18151_v53 = vld [vmem:[#allocation7_spill] sm:$0xff] }
 0x3ad   : > { %18146 = vst [vmem:[#allocation249_spill] sm:$0xff] %v15227_v55  ;;  %v4711_v28 = vadd.f32 %v4710_v11, %v4118_v33  ;;  %v15236_v18 = vpack.c.bf16 %v6437_v48, %v6434_v42  ;;  %v6104_v17 = vmul.f32 0.3, %v4709_v27  ;;  %v18148_v11 = vld [vmem:[#allocation124_spill] sm:$0xff]  ;;  %v6439_v61 = vmax.f32 %v4707_v19, %v6103_v46 }
 0x3ae   : > { %v4712_v47 = vpop.f32.mrf.mxu0  ;;  %v5018_v62 = vpop.f32.mrf.mxu1 }
 0x3af   : > { %18147 = vst [vmem:[#allocation251_spill] sm:$0xff] %v15236_v18  ;;  %v6106_v40 = vmul.f32 0.3, %v4711_v28  ;;  %v4713_v39 = vadd.f32 %v4712_v47, %v4120_v57  ;;  %v4128_v57 = vadd.f32 %v14582_v36, %v14433_v45  ;;  %v12113_v36 = vld [vmem:[%s17946_s3 + $0x28] sm:$0xff]  }
 0x3b0   : > { %v4716_v7 = vpop.f32.mrf.mxu0  ;;  %v15242_v30 = vpop.f32.mrf.mxu1  ;;  %5212 = vmatmul.mubr.bf16.gmra.mxu1 %v18148_v11  ;;  %11395 = vmatmul.mubr.bf16.vlgmr.msra.gmra.mxu0 %v18149_v51 }
 0x3b1   : > { %v6442_v49 = vmax.f32 %v4711_v28, %v6106_v40  ;;  %v6107_v42 = vmul.f32 0.3, %v4713_v39  ;;  %v4717_v32 = vadd.f32 %v4716_v7, %v4124_v15  ;;  %5219 = vmatprep.mubr.bf16.mxu1 %v18150_v1  ;;  %11398 = vmatprep.mubr.bf16.mxu0 %v18151_v53  ;;  %v6440_v28 = vmax.f32 %v4709_v27, %v6104_v17 }
 0x3b2   : > { %6957 = vmatpush1.bf16.msra.mxu0 %v12110_v58  ;;  %v4718_v33 = vpop.f32.mrf.mxu0  ;;  %v5023_v48 = vpop.f32.mrf.mxu1  ;;  %v4130_v58 = vadd.f32 %v14588_v6, %v14444_v31  ;;  %v18155_v6 = vld [vmem:[#allocation127_spill] sm:$0xff] }
 0x3b3   : > { %v15253_v47 = vpack.c.bf16 %v6442_v49, %v6439_v61  ;;  %v6443_v19 = vmax.f32 %v4713_v39, %v6107_v42  ;;  %v4719_v46 = vadd.f32 %v4718_v33, %v4126_v59  ;;  %6958 = vmatprep.subr.bf16.mxu0 %v17608_v54  ;;  %v6109_v40 = vmul.f32 0.3, %v4717_v32  ;;  %v18154_v59 = vld [vmem:[#allocation125_spill] sm:$0xff]  ;;  %v18157_v48 = vld [vmem:[#allocation6_spill] sm:$0xff] }
 0x3b4   : > { %v4720_v62 = vpop.f32.mrf.mxu0  ;;  %v15256_v15 = vpop.f32.mrf.mxu1  ;;  %v4134_v27 = vadd.f32 %v18154_v59, %v14433_v45  ;;  %v4136_v49 = vadd.f32 %v18155_v6, %v14444_v31  ;;  %v18156_v33 = vld [vmem:[#allocation129_spill] sm:$0xff]  ;;  %v12114_v59 = vld [vmem:[%s17946_s3 + $0x20] sm:$0xff]   ;;  %v4138_v6 = vadd.f32 %v14606_v56, %v14433_v45 }
 0x3b5   : > { %18152 = vst [vmem:[#allocation252_spill] sm:$0xff] %v15253_v47  ;;  %v4721_v7 = vadd.f32 %v4720_v62, %v4128_v57  ;;  %v15263_v39 = vpack.c.bf16 %v6443_v19, %v6440_v28  ;;  %v6110_v42 = vmul.f32 0.3, %v4719_v46  ;;  %v18158_v62 = vld [vmem:[#allocation130_spill] sm:$0xff] }
 0x3b6   : > { %v4722_v11 = vpop.f32.mrf.mxu0  ;;  %v5026_v51 = vpop.f32.mrf.mxu1  ;;  %6959 = vmatpush1.bf16.msra.mxu0 %v12111_v22  ;;  %v6445_v22 = vmax.f32 %v4717_v32, %v6109_v40 }
 0x3b7   : > { %18153 = vst [vmem:[#allocation111_spill] sm:$0xff] %v15263_v39  ;;  %v6112_v17 = vmul.f32 0.3, %v4721_v7  ;;  %v4723_v61 = vadd.f32 %v4722_v11, %v4130_v58  ;;  %6960 = vmatprep.subr.bf16.mxu0 %v17608_v54  ;;  %v18159_v58 = vld [vmem:[#allocation10_spill] sm:$0xff] }
 0x3b8   : > { %v4726_v1 = vpop.f32.mrf.mxu0  ;;  %v15270_v53 = vpop.f32.mrf.mxu1  ;;  %5220 = vmatmul.mubr.bf16.gmra.mxu1 %v18156_v33  ;;  %11399 = vmatmul.mubr.bf16.gmra.mxu0 %v18157_v48 }
 0x3b9   : > { %v6448_v57 = vmax.f32 %v4721_v7, %v6112_v17  ;;  %v6113_v19 = vmul.f32 0.3, %v4723_v61  ;;  %v4727_v28 = vadd.f32 %v4726_v1, %v4134_v27  ;;  %5227 = vmatprep.mubr.bf16.mxu1 %v18158_v62  ;;  %11402 = vmatprep.mubr.bf16.mxu0 %v18159_v58  ;;  %v12122_v7 = vld [vmem:[%s17946_s3 + $0xa0] sm:$0xff]   ;;  %v6446_v27 = vmax.f32 %v4719_v46, %v6110_v42  ;;  %v18161_v1 = vld [vmem:[#allocation128_spill] sm:$0xff] }
 0x3ba   : > { %v4728_v11 = vpop.f32.mrf.mxu0  ;;  %v5031_v51 = vpop.f32.mrf.mxu1  ;;  %6961 = vmatpush1.bf16.msra.mxu0 %v12113_v36  ;;  %v4140_v48 = vadd.f32 %v18161_v1, %v14444_v31  ;;  %11512 = vmatprep.subr.bf16.mxu1 %v12122_v7  ;;  %v18163_v46 = vld [vmem:[#allocation131_spill] sm:$0xff]  ;;  %v18165_v1 = vld [vmem:[#allocation133_spill] sm:$0xff] }
 0x3bb   : > { %v15281_v33 = vpack.c.bf16 %v6448_v57, %v6445_v22  ;;  %v6449_v32 = vmax.f32 %v4723_v61, %v6113_v19  ;;  %v4729_v40 = vadd.f32 %v4728_v11, %v4136_v49  ;;  %6962 = vmatprep.subr.bf16.mxu0 %v17608_v54  ;;  %v6115_v62 = vmul.f32 0.3, %v4727_v28  ;;  %v12115_v61 = vld [vmem:[%s17946_s3 + $0x18] sm:$0xff]   ;;  %11513 = vmatpush3.bf16.msra.mxu1 %v12122_v7  ;;  %v18164_v11 = vld [vmem:[#allocation15_spill] sm:$0xff] }
 0x3bc   : > { %v4730_v17 = vpop.f32.mrf.mxu0  ;;  %v15287_v36 = vpop.f32.mrf.mxu1  ;;  %v4144_v42 = vadd.f32 %v18163_v46, %v14433_v45  ;;  %v4146_v51 = vadd.f32 %v18164_v11, %v14444_v31  ;;  %v18167_v46 = vld [vmem:[#allocation135_spill] sm:$0xff]  ;;  %v12116_v11 = vld [vmem:[%s17946_s3 + $0x10] sm:$0xff]  }
 0x3bd   : > { %18160 = vst [vmem:[#allocation112_spill] sm:$0xff] %v15281_v33  ;;  %v4731_v58 = vadd.f32 %v4730_v17, %v4138_v6  ;;  %v15294_v49 = vpack.c.bf16 %v6449_v32, %v6446_v27  ;;  %v6116_v6 = vmul.f32 0.3, %v4729_v40  ;;  %v6451_v32 = vmax.f32 %v4727_v28, %v6115_v62 }
 0x3be   : > { %v4732_v56 = vpop.f32.mrf.mxu0  ;;  %v5034_v22 = vpop.f32.mrf.mxu1  ;;  %6963 = vmatpush1.bf16.msra.mxu0 %v12114_v59 }
 0x3bf   : > { %18162 = vst [vmem:[#allocation110_spill] sm:$0xff] %v15294_v49  ;;  %v6118_v57 = vmul.f32 0.3, %v4731_v58  ;;  %v4733_v19 = vadd.f32 %v4732_v56, %v4140_v48  ;;  %6964 = vmatprep.subr.bf16.mxu0 %v17608_v54  ;;  %v18166_v22 = vld [vmem:[#allocation9_spill] sm:$0xff]  ;;  %v18168_v48 = vld [vmem:[#allocation14_spill] sm:$0xff] }
 0x3c0   : > { %v4736_v17 = vpop.f32.mrf.mxu0  ;;  %v15301_v59 = vpop.f32.mrf.mxu1  ;;  %5228 = vmatmul.mubr.bf16.gmra.mxu1 %v18165_v1  ;;  %11403 = vmatmul.mubr.bf16.gmra.mxu0 %v18166_v22  ;;  %v4148_v1 = vadd.f32 %v14630_v25, %v14433_v45  ;;  %v12118_v25 = vld [vmem:[%s17946_s3 + $0x8] sm:$0xff]  }
 0x3c1   : > { %v6454_v7 = vmax.f32 %v4731_v58, %v6118_v57  ;;  %v6119_v27 = vmul.f32 0.3, %v4733_v19  ;;  %v4737_v33 = vadd.f32 %v4736_v17, %v4144_v42  ;;  %5235 = vmatprep.mubr.bf16.mxu1 %v18167_v46  ;;  %11406 = vmatprep.mubr.bf16.mxu0 %v18168_v48  ;;  %v6452_v58 = vmax.f32 %v4729_v40, %v6116_v6 }
 0x3c2   : > { %v4738_v56 = vpop.f32.mrf.mxu0  ;;  %v5039_v49 = vpop.f32.mrf.mxu1  ;;  %6965 = vmatpush1.bf16.msra.mxu0 %v12115_v61 }
 0x3c3   : > { %v15312_v47 = vpack.c.bf16 %v6454_v7, %v6451_v32  ;;  %v6455_v28 = vmax.f32 %v4733_v19, %v6119_v27  ;;  %v4739_v62 = vadd.f32 %v4738_v56, %v4146_v51  ;;  %6966 = vmatprep.subr.bf16.mxu0 %v17608_v54  ;;  %v18170_v49 = vld [vmem:[#allocation134_spill] sm:$0xff]  ;;  %v6121_v17 = vmul.f32 0.3, %v4737_v33  ;;  %v18172_v51 = vld [vmem:[#allocation136_spill] sm:$0xff]  ;;  %v18173_v7 = vld [vmem:[#allocation19_spill] sm:$0xff] }
 0x3c4   : > { %v4740_v42 = vpop.f32.mrf.mxu0  ;;  %v15315_v57 = vpop.f32.mrf.mxu1  ;;  %v4150_v61 = vadd.f32 %v18170_v49, %v14444_v31  ;;  %v4154_v40 = vadd.f32 %v18172_v51, %v14433_v45  ;;  %v4156_v27 = vadd.f32 %v18173_v7, %v14444_v31  ;;  %v18175_v49 = vld [vmem:[#allocation13_spill] sm:$0xff]  ;;  %v18176_v51 = vld [vmem:[#allocation140_spill] sm:$0xff]  ;;  %v12119_v7 = vld [vmem:[%s17946_s3] sm:$0xff]  }
 0x3c5   : > { %18169 = vst [vmem:[#allocation113_spill] sm:$0xff] %v15312_v47  ;;  %v4741_v22 = vadd.f32 %v4740_v42, %v4148_v1  ;;  %v15322_v19 = vpack.c.bf16 %v6455_v28, %v6452_v58  ;;  %v6122_v56 = vmul.f32 0.3, %v4739_v62  ;;  %v6457_v28 = vmax.f32 %v4737_v33, %v6121_v17 }
 0x3c6   : > { %v4742_v46 = vpop.f32.mrf.mxu0  ;;  %v5042_v48 = vpop.f32.mrf.mxu1  ;;  %6967 = vmatpush1.bf16.msra.mxu0 %v12116_v11  ;;  %v18174_v11 = vld [vmem:[#allocation138_spill] sm:$0xff] }
 0x3c7   : > { %18171 = vst [vmem:[#allocation114_spill] sm:$0xff] %v15322_v19  ;;  %v6124_v6 = vmul.f32 0.3, %v4741_v22  ;;  %v4743_v32 = vadd.f32 %v4742_v46, %v4150_v61  ;;  %6968 = vmatprep.subr.bf16.mxu0 %v17608_v54  ;;  %v18177_v61 = vld [vmem:[#allocation18_spill] sm:$0xff] }
 0x3c8   : > { %v4746_v1 = vpop.f32.mrf.mxu0  ;;  %v15329_v42 = vpop.f32.mrf.mxu1  ;;  %5236 = vmatmul.mubr.bf16.gmra.mxu1 %v18174_v11  ;;  %11407 = vmatmul.mubr.bf16.gmra.mxu0 %v18175_v49  ;;  %v4158_v11 = vadd.f32 %v14654_v63, %v14433_v45  ;;  %v12120_v63 = vld [vmem:[%s17946_s3 + $0x78] sm:$0xff]  }
 0x3c9   : > { %v6460_v58 = vmax.f32 %v4741_v22, %v6124_v6  ;;  %v6125_v48 = vmul.f32 0.3, %v4743_v32  ;;  %v4747_v47 = vadd.f32 %v4746_v1, %v4154_v40  ;;  %5243 = vmatprep.mubr.bf16.mxu1 %v18176_v51  ;;  %11410 = vmatprep.mubr.bf16.mxu0 %v18177_v61  ;;  %v6458_v22 = vmax.f32 %v4739_v62, %v6122_v56 }
 0x3ca   : > { %v4748_v46 = vpop.f32.mrf.mxu0  ;;  %v5047_v19 = vpop.f32.mrf.mxu1  ;;  %6969 = vmatpush1.bf16.msra.mxu0 %v12118_v25 }
 0x3cb   : > { %v15340_v39 = vpack.c.bf16 %v6460_v58, %v6457_v28  ;;  %v6461_v33 = vmax.f32 %v4743_v32, %v6125_v48  ;;  %v4749_v17 = vadd.f32 %v4748_v46, %v4156_v27  ;;  %6970 = vmatprep.subr.bf16.mxu0 %v17608_v54  ;;  %v18179_v19 = vld [vmem:[#allocation139_spill] sm:$0xff]  ;;  %v6127_v1 = vmul.f32 0.3, %v4747_v47  ;;  %v18181_v27 = vld [vmem:[#allocation141_spill] sm:$0xff] }
 0x3cc   : > { %v4750_v40 = vpop.f32.mrf.mxu0  ;;  %v15343_v6 = vpop.f32.mrf.mxu1  ;;  %v4160_v25 = vadd.f32 %v18179_v19, %v14444_v31  ;;  %v4164_v62 = vadd.f32 %v18181_v27, %v14433_v45  ;;  %v18182_v58 = vld [vmem:[#allocation23_spill] sm:$0xff]  ;;  %v18184_v19 = vld [vmem:[#allocation17_spill] sm:$0xff] }
 0x3cd   : > { %18178 = vst [vmem:[#allocation109_spill] sm:$0xff] %v15340_v39  ;;  %v4751_v49 = vadd.f32 %v4750_v40, %v4158_v11  ;;  %v15350_v32 = vpack.c.bf16 %v6461_v33, %v6458_v22  ;;  %v4166_v48 = vadd.f32 %v18182_v58, %v14444_v31  ;;  %v6128_v46 = vmul.f32 0.3, %v4749_v17  ;;  %v18185_v27 = vld [vmem:[#allocation145_spill] sm:$0xff] }
 0x3ce   : > { %v4752_v51 = vpop.f32.mrf.mxu0  ;;  %v5050_v61 = vpop.f32.mrf.mxu1  ;;  %6971 = vmatpush1.bf16.msra.mxu0 %v12119_v7  ;;  %v18183_v7 = vld [vmem:[#allocation143_spill] sm:$0xff]  ;;  %v6463_v33 = vmax.f32 %v4747_v47, %v6127_v1  ;;  %v12121_v58 = vld [vmem:[%s17946_s3 + $0x70] sm:$0xff]  }
 0x3cf   : > { %18180 = vst [vmem:[#allocation118_spill] sm:$0xff] %v15350_v32  ;;  %v6130_v56 = vmul.f32 0.3, %v4751_v49  ;;  %v4753_v28 = vadd.f32 %v4752_v51, %v4160_v25  ;;  %6972 = vmatprep.subr.bf16.mxu0 %v17608_v54  ;;  %v18186_v25 = vld [vmem:[#allocation22_spill] sm:$0xff] }
 0x3d0   : > { %v4756_v11 = vpop.f32.mrf.mxu0  ;;  %v15357_v40 = vpop.f32.mrf.mxu1  ;;  %5244 = vmatmul.mubr.bf16.gmra.mxu1 %v18183_v7  ;;  %11411 = vmatmul.mubr.bf16.gmra.mxu0 %v18184_v19  ;;  %v4168_v7 = vadd.f32 %v14678_v4, %v14433_v45  ;;  %v12123_v4 = vld [vmem:[%s17946_s3 + $0x68] sm:$0xff]  }
 0x3d1   : > { %v6466_v22 = vmax.f32 %v4751_v49, %v6130_v56  ;;  %v6131_v61 = vmul.f32 0.3, %v4753_v28  ;;  %v4757_v39 = vadd.f32 %v4756_v11, %v4164_v62  ;;  %5251 = vmatprep.mubr.bf16.mxu1 %v18185_v27  ;;  %11414 = vmatprep.mubr.bf16.mxu0 %v18186_v25  ;;  %v6464_v49 = vmax.f32 %v4749_v17, %v6128_v46 }
 0x3d2   : > { %v4758_v51 = vpop.f32.mrf.mxu0  ;;  %v5055_v32 = vpop.f32.mrf.mxu1  ;;  %6973 = vmatpush2.bf16.msra.mxu0 %v12120_v63 }
 0x3d3   : > { %v15368_v55 = vpack.c.bf16 %v6466_v22, %v6463_v33  ;;  %v6467_v47 = vmax.f32 %v4753_v28, %v6131_v61  ;;  %v4759_v1 = vadd.f32 %v4758_v51, %v4166_v48  ;;  %6974 = vmatprep.subr.bf16.mxu0 %v17608_v54  ;;  %v18188_v32 = vld [vmem:[#allocation144_spill] sm:$0xff]  ;;  %v6133_v11 = vmul.f32 0.3, %v4757_v39  ;;  %v18190_v48 = vld [vmem:[#allocation146_spill] sm:$0xff]  ;;  %v18191_v22 = vld [vmem:[#allocation27_spill] sm:$0xff] }
 0x3d4   : > { %v4760_v62 = vpop.f32.mrf.mxu0  ;;  %v15371_v56 = vpop.f32.mrf.mxu1  ;;  %v4170_v63 = vadd.f32 %v18188_v32, %v14444_v31  ;;  %v4174_v17 = vadd.f32 %v18190_v48, %v14433_v45  ;;  %v4176_v61 = vadd.f32 %v18191_v22, %v14444_v31  ;;  %v18193_v32 = vld [vmem:[#allocation21_spill] sm:$0xff]  ;;  %v18194_v48 = vld [vmem:[#allocation150_spill] sm:$0xff] }
 0x3d5   : > { %18187 = vst [vmem:[#allocation120_spill] sm:$0xff] %v15368_v55  ;;  %v4761_v19 = vadd.f32 %v4760_v62, %v4168_v7  ;;  %v15378_v28 = vpack.c.bf16 %v6467_v47, %v6464_v49  ;;  %v6134_v51 = vmul.f32 0.3, %v4759_v1  ;;  %v6469_v47 = vmax.f32 %v4757_v39, %v6133_v11  ;;  %v12124_v22 = vld [vmem:[%s17946_s3 + $0x60] sm:$0xff]  }
 0x3d6   : > { %v4762_v27 = vpop.f32.mrf.mxu0  ;;  %v5058_v25 = vpop.f32.mrf.mxu1  ;;  %6975 = vmatpush2.bf16.msra.mxu0 %v12121_v58  ;;  %v18192_v58 = vld [vmem:[#allocation148_spill] sm:$0xff] }
 0x3d7   : > { %18189 = vst [vmem:[#allocation5_spill] sm:$0xff] %v15378_v28  ;;  %v6136_v46 = vmul.f32 0.3, %v4761_v19  ;;  %v4763_v33 = vadd.f32 %v4762_v27, %v4170_v63  ;;  %6976 = vmatprep.subr.bf16.mxu0 %v17608_v54  ;;  %v18195_v63 = vld [vmem:[#allocation26_spill] sm:$0xff] }
 0x3d8   : > { %v4766_v7 = vpop.f32.mrf.mxu0  ;;  %v15385_v62 = vpop.f32.mrf.mxu1  ;;  %5252 = vmatmul.mubr.bf16.gmra.mxu1 %v18192_v58  ;;  %11415 = vmatmul.mubr.bf16.gmra.mxu0 %v18193_v32  ;;  %v4178_v58 = vadd.f32 %v14702_v20, %v14433_v45  ;;  %v12125_v20 = vld [vmem:[%s17946_s3 + $0x58] sm:$0xff]  }
 0x3d9   : > { %v6472_v49 = vmax.f32 %v4761_v19, %v6136_v46  ;;  %v6137_v25 = vmul.f32 0.3, %v4763_v33  ;;  %v4767_v55 = vadd.f32 %v4766_v7, %v4174_v17  ;;  %5259 = vmatprep.mubr.bf16.mxu1 %v18194_v48  ;;  %11418 = vmatprep.mubr.bf16.mxu0 %v18195_v63  ;;  %v6470_v19 = vmax.f32 %v4759_v1, %v6134_v51 }
 0x3da   : > { %v4768_v27 = vpop.f32.mrf.mxu0  ;;  %v5063_v28 = vpop.f32.mrf.mxu1  ;;  %6977 = vmatpush2.bf16.msra.mxu0 %v12123_v4  ;;  %v4180_v4 = vadd.f32 %v14711_v13, %v14444_v31  ;;  %v18199_v13 = vld [vmem:[#allocation151_spill] sm:$0xff] }
 0x3db   : > { %v15396_v18 = vpack.c.bf16 %v6472_v49, %v6469_v47  ;;  %v6473_v39 = vmax.f32 %v4763_v33, %v6137_v25  ;;  %v4769_v11 = vadd.f32 %v4768_v27, %v4176_v61  ;;  %6978 = vmatprep.subr.bf16.mxu0 %v17608_v54  ;;  %v6139_v28 = vmul.f32 0.3, %v4767_v55  ;;  %v18198_v61 = vld [vmem:[#allocation149_spill] sm:$0xff] }
 0x3dc   : > { %v4770_v17 = vpop.f32.mrf.mxu0  ;;  %v15399_v46 = vpop.f32.mrf.mxu1  ;;  %v4184_v1 = vadd.f32 %v18198_v61, %v14433_v45  ;;  %v4186_v49 = vadd.f32 %v18199_v13, %v14444_v31  ;;  %v18202_v61 = vld [vmem:[#allocation156_spill] sm:$0xff]  ;;  %v4188_v13 = vadd.f32 %v14730_v9, %v14433_v45  ;;  %v18208_v9 = vld [vmem:[#allocation153_spill] sm:$0xff] }
 0x3dd   : > { %18196 = vst [vmem:[#allocation124_spill] sm:$0xff] %v15396_v18  ;;  %v4771_v7 = vadd.f32 %v4770_v17, %v4178_v58  ;;  %v15406_v33 = vpack.c.bf16 %v6473_v39, %v6470_v19  ;;  %v6140_v25 = vmul.f32 0.3, %v4769_v11  ;;  %v18201_v58 = vld [vmem:[#allocation25_spill] sm:$0xff]  ;;  %v6475_v39 = vmax.f32 %v4767_v55, %v6139_v28 }
 0x3de   : > { %v4772_v32 = vpop.f32.mrf.mxu0  ;;  %v5066_v48 = vpop.f32.mrf.mxu1  ;;  %6979 = vmatpush2.bf16.msra.mxu0 %v12124_v22  ;;  %v18200_v22 = vld [vmem:[#allocation154_spill] sm:$0xff] }
 0x3df   : > { %18197 = vst [vmem:[#allocation4_spill] sm:$0xff] %v15406_v33  ;;  %v6142_v51 = vmul.f32 0.3, %v4771_v7  ;;  %v4773_v47 = vadd.f32 %v4772_v32, %v4180_v4  ;;  %6980 = vmatprep.subr.bf16.mxu0 %v17608_v54  ;;  %v18203_v4 = vld [vmem:[#allocation30_spill] sm:$0xff]  ;;  %v6476_v55 = vmax.f32 %v4769_v11, %v6140_v25 }
 0x3e0   : > { %v4776_v63 = vpop.f32.mrf.mxu0  ;;  %v15413_v27 = vpop.f32.mrf.mxu1  ;;  %5260 = vmatmul.mubr.bf16.gmra.mxu1 %v18200_v22  ;;  %11419 = vmatmul.mubr.bf16.gmra.mxu0 %v18201_v58 }
 0x3e1   : > { %v6478_v19 = vmax.f32 %v4771_v7, %v6142_v51  ;;  %v6143_v17 = vmul.f32 0.3, %v4773_v47  ;;  %v4777_v48 = vadd.f32 %v4776_v63, %v4184_v1  ;;  %5267 = vmatprep.mubr.bf16.mxu1 %v18202_v61  ;;  %11422 = vmatprep.mubr.bf16.mxu0 %v18203_v4  ;;  %v18206_v1 = vld [vmem:[#allocation152_spill] sm:$0xff] }
 0x3e2   : > { %v4778_v32 = vpop.f32.mrf.mxu0  ;;  %v5071_v18 = vpop.f32.mrf.mxu1  ;;  %6981 = vmatpush2.bf16.msra.mxu0 %v12125_v20  ;;  %v4190_v51 = vadd.f32 %v18206_v1, %v14444_v31  ;;  %v18211_v1 = vld [vmem:[#allocation29_spill] sm:$0xff] }
 0x3e3   : > { %v15421_v33 = vpack.c.bf16 %v6478_v19, %v6475_v39  ;;  %v6479_v16 = vmax.f32 %v4773_v47, %v6143_v17  ;;  %v4779_v22 = vadd.f32 %v4778_v32, %v4186_v49  ;;  %6982 = vmatprep.subr.bf16.mxu0 %v17608_v54  ;;  %v6145_v63 = vmul.f32 0.3, %v4777_v48  ;;  %v18209_v19 = vld [vmem:[#allocation155_spill] sm:$0xff]  ;;  %v18210_v32 = vld [vmem:[#allocation158_spill] sm:$0xff] }
 0x3e4   : > { %v4780_v28 = vpop.f32.mrf.mxu0  ;;  %v15424_v7 = vpop.f32.mrf.mxu1  ;;  %v4194_v39 = vadd.f32 %v18208_v9, %v14433_v45  ;;  %v4196_v11 = vadd.f32 %v18209_v19, %v14444_v31  ;;  %v18213_v9 = vld [vmem:[#allocation34_spill] sm:$0xff]  ;;  %v4198_v19 = vadd.f32 %v14754_v52, %v14433_v45 }
 0x3e5   : > { %18204 = vst [vmem:[#allocation126_spill] sm:$0xff] %v15421_v33  ;;  %18205 = vst [vmem:[#allocation7_spill] sm:$0xff] %v15424_v7  ;;  %v4781_v58 = vadd.f32 %v4780_v28, %v4188_v13  ;;  %v15428_v61 = vpack.c.bf16 %v6479_v16, %v6476_v55  ;;  %v6146_v25 = vmul.f32 0.3, %v4779_v22  ;;  %v6481_v13 = vmax.f32 %v4777_v48, %v6145_v63  ;;  %v12126_v48 = vld [vmem:[%s17946_s3 + $0x50] sm:$0xff]  }
 0x3e6   : > { %v4782_v18 = vpop.f32.mrf.mxu0  ;;  %v5074_v20 = vpop.f32.mrf.mxu1  ;;  %6983 = vmatpush2.bf16.msra.mxu0 %v12126_v48 }
 0x3e7   : > { %18207 = vst [vmem:[#allocation125_spill] sm:$0xff] %v15428_v61  ;;  %v6148_v47 = vmul.f32 0.3, %v4781_v58  ;;  %v4783_v49 = vadd.f32 %v4782_v18, %v4190_v51  ;;  %v18212_v20 = vld [vmem:[#allocation160_spill] sm:$0xff]  ;;  %v6482_v63 = vmax.f32 %v4779_v22, %v6146_v25  ;;  %6984 = vmatprep.subr.bf16.mxu0 %v17608_v54  ;;  %v4206_v25 = vadd.f32 %v14772_v38, %v14444_v31  ;;  %v18222_v38 = vld [vmem:[#allocation161_spill] sm:$0xff] }
 0x3e8   : > { %v4786_v17 = vpop.f32.mrf.mxu0  ;;  %v15434_v4 = vpop.f32.mrf.mxu1  ;;  %5268 = vmatmul.mubr.bf16.gmra.mxu1 %v18210_v32  ;;  %11423 = vmatmul.mubr.bf16.gmra.mxu0 %v18211_v1 }
 0x3e9   : > { %v6484_v28 = vmax.f32 %v4781_v58, %v6148_v47  ;;  %v6149_v16 = vmul.f32 0.3, %v4783_v49  ;;  %v4787_v55 = vadd.f32 %v4786_v17, %v4194_v39  ;;  %5275 = vmatprep.mubr.bf16.mxu1 %v18212_v20  ;;  %11426 = vmatprep.mubr.bf16.mxu0 %v18213_v9  ;;  %v4200_v47 = vadd.f32 %v14760_v50, %v14444_v31  ;;  %v18218_v9 = vld [vmem:[#allocation163_spill] sm:$0xff] }
 0x3ea   : > { %v4788_v51 = vpop.f32.mrf.mxu0  ;;  %v5079_v18 = vpop.f32.mrf.mxu1 }
 0x3eb   : > { %v15442_v33 = vpack.c.bf16 %v6484_v28, %v6481_v13  ;;  %v6485_v61 = vmax.f32 %v4783_v49, %v6149_v16  ;;  %v4789_v7 = vadd.f32 %v4788_v51, %v4196_v11  ;;  %v6151_v17 = vmul.f32 0.3, %v4787_v55  ;;  %v18216_v11 = vld [vmem:[#allocation36_spill] sm:$0xff]  ;;  %v18219_v51 = vld [vmem:[#allocation33_spill] sm:$0xff] }
 0x3ec   : > { %v4790_v58 = vpop.f32.mrf.mxu0  ;;  %v15447_v39 = vpop.f32.mrf.mxu1  ;;  %v4204_v13 = vadd.f32 %v18216_v11, %v14433_v45 }
 0x3ed   : > { %18214 = vst [vmem:[#allocation127_spill] sm:$0xff] %v15442_v33  ;;  %v4791_v32 = vadd.f32 %v4790_v58, %v4198_v19  ;;  %v15452_v49 = vpack.c.bf16 %v6485_v61, %v6482_v63  ;;  %v6152_v16 = vmul.f32 0.3, %v4789_v7  ;;  %v6487_v18 = vmax.f32 %v4787_v55, %v6151_v17  ;;  %v18220_v63 = vld [vmem:[#allocation164_spill] sm:$0xff]  ;;  %v18221_v58 = vld [vmem:[#allocation38_spill] sm:$0xff] }
 0x3ee   : > { %v4792_v1 = vpop.f32.mrf.mxu0  ;;  %v5082_v52 = vpop.f32.mrf.mxu1  ;;  %v12127_v55 = vld [vmem:[%s17946_s3 + $0x98] sm:$0xff]  }
 0x3ef   : > { %18215 = vst [vmem:[#allocation129_spill] sm:$0xff] %v15452_v49  ;;  %v6154_v28 = vmul.f32 0.3, %v4791_v32  ;;  %v4793_v22 = vadd.f32 %v4792_v1, %v4200_v47  ;;  %v4208_v52 = vadd.f32 %v18222_v38, %v14433_v45  ;;  %v6488_v17 = vmax.f32 %v4789_v7, %v6152_v16  ;;  %11514 = vmatprep.subr.bf16.mxu1 %v12127_v55  ;;  %v18228_v7 = vld [vmem:[#allocation42_spill] sm:$0xff] }
 0x3f0   : > { %v4796_v20 = vpop.f32.mrf.mxu0  ;;  %v15458_v50 = vpop.f32.mrf.mxu1  ;;  %5276 = vmatmul.mubr.bf16.gmra.mxu1 %v18218_v9  ;;  %11427 = vmatmul.mubr.bf16.gmra.mxu0 %v18219_v51  ;;  %v4216_v16 = vadd.f32 %v18228_v7, %v14444_v31  ;;  %v18233_v7 = vld [vmem:[#allocation165_spill] sm:$0xff] }
 0x3f1   : > { %18217 = vst [vmem:[#allocation6_spill] sm:$0xff] %v15458_v50  ;;  %v6490_v19 = vmax.f32 %v4791_v32, %v6154_v28  ;;  %v6155_v61 = vmul.f32 0.3, %v4793_v22  ;;  %v4797_v48 = vadd.f32 %v4796_v20, %v4204_v13  ;;  %5283 = vmatprep.mubr.bf16.mxu1 %v18220_v63  ;;  %11430 = vmatprep.mubr.bf16.mxu0 %v18221_v58  ;;  %v18225_v28 = vld [vmem:[#allocation40_spill] sm:$0xff] }
 0x3f2   : > { %v4798_v47 = vpop.f32.mrf.mxu0  ;;  %v5087_v1 = vpop.f32.mrf.mxu1  ;;  %v4210_v20 = vadd.f32 %v18225_v28, %v14444_v31  ;;  %11515 = vmatpush3.bf16.msra.mxu1 %v12127_v55  ;;  %v18229_v28 = vld [vmem:[#allocation167_spill] sm:$0xff] }
 0x3f3   : > { %v15466_v11 = vpack.c.bf16 %v6490_v19, %v6487_v18  ;;  %v6491_v33 = vmax.f32 %v4793_v22, %v6155_v61  ;;  %v4799_v49 = vadd.f32 %v4798_v47, %v4206_v25  ;;  %v6157_v9 = vmul.f32 0.3, %v4797_v48  ;;  %v18227_v22 = vld [vmem:[#allocation162_spill] sm:$0xff] }
 0x3f4   : > { %v4800_v32 = vpop.f32.mrf.mxu0  ;;  %v15471_v13 = vpop.f32.mrf.mxu1  ;;  %v4214_v25 = vadd.f32 %v18227_v22, %v14433_v45  ;;  %v18232_v22 = vld [vmem:[#allocation43_spill] sm:$0xff] }
 0x3f5   : > { %18223 = vst [vmem:[#allocation130_spill] sm:$0xff] %v15466_v11  ;;  %18224 = vst [vmem:[#allocation10_spill] sm:$0xff] %v15471_v13  ;;  %v4801_v51 = vadd.f32 %v4800_v32, %v4208_v52  ;;  %v15475_v18 = vpack.c.bf16 %v6491_v33, %v6488_v17  ;;  %v6158_v47 = vmul.f32 0.3, %v4799_v49  ;;  %v18230_v52 = vld [vmem:[#allocation37_spill] sm:$0xff]  ;;  %v6493_v32 = vmax.f32 %v4797_v48, %v6157_v9  ;;  %v12128_v48 = vld [vmem:[%s17946_s3 + $0x48] sm:$0xff]  }
 0x3f6   : > { %v4802_v63 = vpop.f32.mrf.mxu0  ;;  %v5090_v58 = vpop.f32.mrf.mxu1  ;;  %v4218_v11 = vadd.f32 %v18233_v7, %v14433_v45  ;;  %6985 = vmatpush2.bf16.msra.mxu0 %v12128_v48  ;;  %v18242_v48 = vld [vmem:[#allocation41_spill] sm:$0xff] }
 0x3f7   : > { %18226 = vst [vmem:[#allocation128_spill] sm:$0xff] %v15475_v18  ;;  %v6160_v19 = vmul.f32 0.3, %v4801_v51  ;;  %v4803_v61 = vadd.f32 %v4802_v63, %v4210_v20  ;;  %v18231_v58 = vld [vmem:[#allocation168_spill] sm:$0xff]  ;;  %v6494_v9 = vmax.f32 %v4799_v49, %v6158_v47  ;;  %6986 = vmatprep.subr.bf16.mxu0 %v17608_v54 }
 0x3f8   : > { %v4806_v1 = vpop.f32.mrf.mxu0  ;;  %v15481_v38 = vpop.f32.mrf.mxu1  ;;  %5284 = vmatmul.mubr.bf16.gmra.mxu1 %v18229_v28  ;;  %11431 = vmatmul.mubr.bf16.gmra.mxu0 %v18230_v52  ;;  %v18239_v47 = vld [vmem:[#allocation48_spill] sm:$0xff] }
 0x3f9   : > { %v6496_v55 = vmax.f32 %v4801_v51, %v6160_v19  ;;  %v6161_v33 = vmul.f32 0.3, %v4803_v61  ;;  %v4807_v17 = vadd.f32 %v4806_v1, %v4214_v25  ;;  %5291 = vmatprep.mubr.bf16.mxu1 %v18231_v58  ;;  %11434 = vmatprep.mubr.bf16.mxu0 %v18232_v22  ;;  %v18236_v19 = vld [vmem:[#allocation169_spill] sm:$0xff] }
 0x3fa   : > { %v4808_v20 = vpop.f32.mrf.mxu0  ;;  %v5095_v63 = vpop.f32.mrf.mxu1  ;;  %v4220_v1 = vadd.f32 %v18236_v19, %v14444_v31  ;;  %v18243_v19 = vld [vmem:[#allocation173_spill] sm:$0xff] }
 0x3fb   : > { %v15489_v18 = vpack.c.bf16 %v6496_v55, %v6493_v32  ;;  %v6497_v13 = vmax.f32 %v4803_v61, %v6161_v33  ;;  %v4809_v50 = vadd.f32 %v4808_v20, %v4216_v16  ;;  %v6163_v28 = vmul.f32 0.3, %v4807_v17  ;;  %v18238_v16 = vld [vmem:[#allocation47_spill] sm:$0xff] }
 0x3fc   : > { %v4810_v51 = vpop.f32.mrf.mxu0  ;;  %v15494_v25 = vpop.f32.mrf.mxu1  ;;  %v4224_v32 = vadd.f32 %v18238_v16, %v14433_v45  ;;  %v4226_v33 = vadd.f32 %v18239_v47, %v14444_v31  ;;  %v18245_v16 = vld [vmem:[#allocation171_spill] sm:$0xff] }
 0x3fd   : > { %18234 = vst [vmem:[#allocation131_spill] sm:$0xff] %v15489_v18  ;;  %18235 = vst [vmem:[#allocation15_spill] sm:$0xff] %v15494_v25  ;;  %v4811_v52 = vadd.f32 %v4810_v51, %v4218_v11  ;;  %v15499_v61 = vpack.c.bf16 %v6497_v13, %v6494_v9  ;;  %v6164_v20 = vmul.f32 0.3, %v4809_v50  ;;  %v18241_v11 = vld [vmem:[#allocation172_spill] sm:$0xff]  ;;  %v6499_v51 = vmax.f32 %v4807_v17, %v6163_v28 }
 0x3fe   : > { %v4812_v58 = vpop.f32.mrf.mxu0  ;;  %v5098_v22 = vpop.f32.mrf.mxu1  ;;  %v4228_v47 = vadd.f32 %v18245_v16, %v14433_v45  ;;  %v12130_v17 = vld [vmem:[%s17946_s3 + $0x90] sm:$0xff]  }
 0x3ff   : > { %18237 = vst [vmem:[#allocation133_spill] sm:$0xff] %v15499_v61  ;;  %v6166_v55 = vmul.f32 0.3, %v4811_v52  ;;  %v4813_v49 = vadd.f32 %v4812_v58, %v4220_v1  ;;  %v18244_v22 = vld [vmem:[#allocation46_spill] sm:$0xff]  ;;  %v6500_v28 = vmax.f32 %v4809_v50, %v6164_v20  ;;  %11516 = vmatprep.subr.bf16.mxu1 %v12130_v17  ;;  %v12131_v20 = vld [vmem:[%s17946_s3 + $0x88] sm:$0xff]  }
 0x400   : > { %v4816_v63 = vpop.f32.mrf.mxu0  ;;  %v15505_v7 = vpop.f32.mrf.mxu1  ;;  %5292 = vmatmul.mubr.bf16.gmra.mxu1 %v18241_v11  ;;  %11435 = vmatmul.mubr.bf16.gmra.mxu0 %v18242_v48  ;;  %v12129_v50 = vld [vmem:[%s17946_s3 + $0x40] sm:$0xff]  }
 0x401   : > { %18240 = vst [vmem:[#allocation9_spill] sm:$0xff] %v15505_v7  ;;  %v6502_v54 = vmax.f32 %v4811_v52, %v6166_v55  ;;  %v6167_v13 = vmul.f32 0.3, %v4813_v49  ;;  %v4817_v9 = vadd.f32 %v4816_v63, %v4224_v32  ;;  %5299 = vmatprep.mubr.bf16.mxu1 %v18243_v19  ;;  %11438 = vmatprep.mubr.bf16.mxu0 %v18244_v22  ;;  %v18248_v55 = vld [vmem:[#allocation51_spill] sm:$0xff] }
 0x402   : > { %v4818_v1 = vpop.f32.mrf.mxu0  ;;  %v5103_v58 = vpop.f32.mrf.mxu1  ;;  %v4230_v63 = vadd.f32 %v18248_v55, %v14444_v31  ;;  %11517 = vmatpush3.bf16.msra.mxu1 %v12130_v17  ;;  %v18253_v17 = vld [vmem:[#allocation177_spill] sm:$0xff]  ;;  %6987 = vmatpush2.bf16.msra.mxu0 %v12129_v50 }
 0x403   : > { %v15513_v18 = vpack.c.bf16 %v6502_v54, %v6499_v51  ;;  %v6503_v61 = vmax.f32 %v4813_v49, %v6167_v13  ;;  %v4819_v7 = vadd.f32 %v4818_v1, %v4226_v33  ;;  %v6169_v11 = vmul.f32 0.3, %v4817_v9  ;;  %v18250_v49 = vld [vmem:[#allocation52_spill] sm:$0xff]  ;;  %v18251_v1 = vld [vmem:[#allocation175_spill] sm:$0xff]  ;;  %11518 = vmatprep.subr.bf16.mxu1 %v12131_v20 }
 0x404   : > { %v4820_v52 = vpop.f32.mrf.mxu0  ;;  %v15518_v32 = vpop.f32.mrf.mxu1  ;;  %v4234_v33 = vadd.f32 %v18250_v49, %v14433_v45  ;;  %v4236_v58 = vadd.f32 %v18251_v1, %v14444_v31  ;;  %v18256_v49 = vld [vmem:[#allocation50_spill] sm:$0xff] }
 0x405   : > { %18246 = vst [vmem:[#allocation135_spill] sm:$0xff] %v15513_v18  ;;  %18247 = vst [vmem:[#allocation14_spill] sm:$0xff] %v15518_v32  ;;  %v4821_v48 = vadd.f32 %v4820_v52, %v4228_v47  ;;  %v15522_v51 = vpack.c.bf16 %v6503_v61, %v6500_v28  ;;  %v6170_v16 = vmul.f32 0.3, %v4819_v7  ;;  %v18254_v28 = vld [vmem:[#allocation45_spill] sm:$0xff]  ;;  %v6505_v52 = vmax.f32 %v4817_v9, %v6169_v11  ;;  %v18257_v1 = vld [vmem:[#allocation178_spill] sm:$0xff] }
 0x406   : > { %v4822_v19 = vpop.f32.mrf.mxu0  ;;  %v5106_v22 = vpop.f32.mrf.mxu1  ;;  %v4238_v32 = vadd.f32 %v18257_v1, %v14433_v45  ;;  %11519 = vmatpush3.bf16.msra.mxu1 %v12131_v20  ;;  %v12132_v9 = vld [vmem:[%s17946_s3 + $0x80] sm:$0xff]  }
 0x407   : > { %18249 = vst [vmem:[#allocation134_spill] sm:$0xff] %v15522_v51  ;;  %v6172_v54 = vmul.f32 0.3, %v4821_v48  ;;  %v4823_v13 = vadd.f32 %v4822_v19, %v4230_v63  ;;  %v18255_v22 = vld [vmem:[#allocation179_spill] sm:$0xff]  ;;  %v6506_v11 = vmax.f32 %v4819_v7, %v6170_v16  ;;  %11520 = vmatprep.subr.bf16.mxu1 %v12132_v9  ;;  %v18262_v7 = vld [vmem:[#allocation181_spill] sm:$0xff] }
 0x408   : > { %v4826_v47 = vpop.f32.mrf.mxu0  ;;  %v15534_v61 = vpop.f32.mrf.mxu1  ;;  %5300 = vmatmul.mubr.bf16.gmra.mxu1 %v18253_v17  ;;  %11439 = vmatmul.mubr.bf16.gmra.mxu0 %v18254_v28  ;;  %v4246_v16 = vadd.f32 %v18262_v7, %v14444_v31  ;;  %v18264_v1 = vld [vmem:[#allocation183_spill] sm:$0xff] }
 0x409   : > { %18252 = vst [vmem:[#allocation136_spill] sm:$0xff] %v15534_v61  ;;  %v6508_v55 = vmax.f32 %v4821_v48, %v6172_v54  ;;  %v6173_v63 = vmul.f32 0.3, %v4823_v13  ;;  %v4827_v19 = vadd.f32 %v4826_v47, %v4234_v33  ;;  %5307 = vmatprep.mubr.bf16.mxu1 %v18255_v22  ;;  %11442 = vmatprep.mubr.bf16.mxu0 %v18256_v49 }
 0x40a   : > { %v4828_v18 = vpop.f32.mrf.mxu0  ;;  %v5111_v51 = vpop.f32.mrf.mxu1  ;;  %11521 = vmatpush3.bf16.msra.mxu1 %v12132_v9 }
 0x40b   : > { %v15542_v61 = vpack.c.bf16 %v6508_v55, %v6505_v52  ;;  %v6509_v17 = vmax.f32 %v4823_v13, %v6173_v63  ;;  %v4829_v25 = vadd.f32 %v4828_v18, %v4236_v58  ;;  %v18259_v51 = vld [vmem:[#allocation55_spill] sm:$0xff]  ;;  %v6175_v50 = vmul.f32 0.3, %v4827_v19  ;;  %v18261_v18 = vld [vmem:[#allocation56_spill] sm:$0xff] }
 0x40c   : > { %v4830_v48 = vpop.f32.mrf.mxu0  ;;  %v15547_v33 = vpop.f32.mrf.mxu1  ;;  %v4240_v54 = vadd.f32 %v18259_v51, %v14444_v31  ;;  %v4244_v13 = vadd.f32 %v18261_v18, %v14433_v45  ;;  %v18267_v18 = vld [vmem:[#allocation54_spill] sm:$0xff] }
 0x40d   : > { %18258 = vst [vmem:[#allocation19_spill] sm:$0xff] %v15542_v61  ;;  %v4831_v47 = vadd.f32 %v4830_v48, %v4238_v32  ;;  %v15551_v55 = vpack.c.bf16 %v6509_v17, %v6506_v11  ;;  %v6176_v63 = vmul.f32 0.3, %v4829_v25  ;;  %v18265_v32 = vld [vmem:[#allocation49_spill] sm:$0xff]  ;;  %v6511_v48 = vmax.f32 %v4827_v19, %v6175_v50 }
 0x40e   : > { %v4832_v28 = vpop.f32.mrf.mxu0  ;;  %v5114_v52 = vpop.f32.mrf.mxu1  ;;  %v4250_v19 = vadd.f32 %v14883_v44, %v14444_v31  ;;  %v18273_v44 = vld [vmem:[#allocation53_spill] sm:$0xff] }
 0x40f   : > { %18260 = vst [vmem:[#allocation138_spill] sm:$0xff] %v15551_v55  ;;  %v6178_v20 = vmul.f32 0.3, %v4831_v47  ;;  %v4833_v58 = vadd.f32 %v4832_v28, %v4240_v54  ;;  %v18266_v52 = vld [vmem:[#allocation185_spill] sm:$0xff]  ;;  %v4248_v28 = vadd.f32 %v14877_v34, %v14433_v45 }
 0x410   : > { %v4836_v22 = vpop.f32.mrf.mxu0  ;;  %v15557_v49 = vpop.f32.mrf.mxu1  ;;  %5308 = vmatmul.mubr.bf16.gmra.mxu1 %v18264_v1  ;;  %11443 = vmatmul.mubr.bf16.gmra.mxu0 %v18265_v32  ;;  %v6512_v1 = vmax.f32 %v4829_v25, %v6176_v63 }
 0x411   : > { %18263 = vst [vmem:[#allocation13_spill] sm:$0xff] %v15557_v49  ;;  %v6514_v17 = vmax.f32 %v4831_v47, %v6178_v20  ;;  %v6179_v11 = vmul.f32 0.3, %v4833_v58  ;;  %v4837_v51 = vadd.f32 %v4836_v22, %v4244_v13  ;;  %5315 = vmatprep.mubr.bf16.mxu1 %v18266_v52  ;;  %11446 = vmatprep.mubr.bf16.mxu0 %v18267_v18  ;;  %v18270_v52 = vld [vmem:[#allocation186_spill] sm:$0xff]  ;;  %v18272_v18 = vld [vmem:[#allocation189_spill] sm:$0xff] }
 0x412   : > { %v4838_v9 = vpop.f32.mrf.mxu0  ;;  %v5119_v54 = vpop.f32.mrf.mxu1  ;;  %v4254_v34 = vadd.f32 %v18270_v52, %v14433_v45 }
 0x413   : > { %v15565_v7 = vpack.c.bf16 %v6514_v17, %v6511_v48  ;;  %v6515_v61 = vmax.f32 %v4833_v58, %v6179_v11  ;;  %v4839_v55 = vadd.f32 %v4838_v9, %v4246_v16  ;;  %v6181_v50 = vmul.f32 0.3, %v4837_v51  ;;  %v18271_v58 = vld [vmem:[#allocation59_spill] sm:$0xff] }
 0x414   : > { %v4840_v49 = vpop.f32.mrf.mxu0  ;;  %v15567_v32 = vpop.f32.mrf.mxu1  ;;  %v4256_v25 = vadd.f32 %v18271_v58, %v14444_v31 }
 0x415   : > { %18268 = vst [vmem:[#allocation140_spill] sm:$0xff] %v15565_v7  ;;  %v4841_v47 = vadd.f32 %v4840_v49, %v4248_v28  ;;  %v15571_v22 = vpack.c.bf16 %v6515_v61, %v6512_v1  ;;  %v6182_v16 = vmul.f32 0.3, %v4839_v55  ;;  %v6517_v49 = vmax.f32 %v4837_v51, %v6181_v50  ;;  %v18274_v28 = vld [vmem:[#allocation191_spill] sm:$0xff]  ;;  %v18275_v1 = vld [vmem:[#allocation58_spill] sm:$0xff]  ;;  %v18277_v51 = vld [vmem:[#allocation188_spill] sm:$0xff] }
 0x416   : > { %v4842_v13 = vpop.f32.mrf.mxu0  ;;  %v5122_v20 = vpop.f32.mrf.mxu1  ;;  %v4260_v50 = vadd.f32 %v18277_v51, %v14444_v31  ;;  %v18284_v51 = vld [vmem:[#allocation195_spill] sm:$0xff] }
 0x417   : > { %18269 = vst [vmem:[#allocation18_spill] sm:$0xff] %v15571_v22  ;;  %v6184_v48 = vmul.f32 0.3, %v4841_v47  ;;  %v4843_v17 = vadd.f32 %v4842_v13, %v4250_v19  ;;  %v4258_v20 = vadd.f32 %v14901_v26, %v14433_v45 }
 0x418   : > { %v4846_v63 = vpop.f32.mrf.mxu0  ;;  %v15577_v11 = vpop.f32.mrf.mxu1  ;;  %5316 = vmatmul.mubr.bf16.gmra.mxu1 %v18272_v18  ;;  %11447 = vmatmul.mubr.bf16.gmra.mxu0 %v18273_v44  ;;  %v6518_v18 = vmax.f32 %v4839_v55, %v6182_v16 }
 0x419   : > { %v6520_v9 = vmax.f32 %v4841_v47, %v6184_v48  ;;  %v6185_v61 = vmul.f32 0.3, %v4843_v17  ;;  %v4847_v54 = vadd.f32 %v4846_v63, %v4254_v34  ;;  %5323 = vmatprep.mubr.bf16.mxu1 %v18274_v28  ;;  %11450 = vmatprep.mubr.bf16.mxu0 %v18275_v1  ;;  %v18279_v1 = vld [vmem:[#allocation190_spill] sm:$0xff] }
 0x41a   : > { %v4848_v19 = vpop.f32.mrf.mxu0  ;;  %v5127_v13 = vpop.f32.mrf.mxu1  ;;  %v4264_v26 = vadd.f32 %v18279_v1, %v14433_v45  ;;  %v4268_v1 = vadd.f32 %v14925_v37, %v14433_v45 }
 0x41b   : > { %v15585_v52 = vpack.c.bf16 %v6520_v9, %v6517_v49  ;;  %v6521_v58 = vmax.f32 %v4843_v17, %v6185_v61  ;;  %v4849_v7 = vadd.f32 %v4848_v19, %v4256_v25  ;;  %v6187_v47 = vmul.f32 0.3, %v4847_v54  ;;  %v18280_v17 = vld [vmem:[#allocation192_spill] sm:$0xff]  ;;  %v18282_v19 = vld [vmem:[#allocation193_spill] sm:$0xff] }
 0x41c   : > { %v4850_v22 = vpop.f32.mrf.mxu0  ;;  %v15587_v44 = vpop.f32.mrf.mxu1  ;;  %v4266_v55 = vadd.f32 %v18280_v17, %v14444_v31  ;;  %v18283_v13 = vld [vmem:[#allocation57_spill] sm:$0xff] }
 0x41d   : > { %18276 = vst [vmem:[#allocation139_spill] sm:$0xff] %v15585_v52  ;;  %v4851_v34 = vadd.f32 %v4850_v22, %v4258_v20  ;;  %v15591_v28 = vpack.c.bf16 %v6521_v58, %v6518_v18  ;;  %v6188_v25 = vmul.f32 0.3, %v4849_v7  ;;  %v6523_v22 = vmax.f32 %v4847_v54, %v6187_v47 }
 0x41e   : > { %v4852_v48 = vpop.f32.mrf.mxu0  ;;  %v5130_v63 = vpop.f32.mrf.mxu1  ;;  %v4270_v54 = vadd.f32 %v14931_v8, %v14444_v31  ;;  %v18292_v8 = vld [vmem:[#allocation61_spill] sm:$0xff] }
 0x41f   : > { %18278 = vst [vmem:[#allocation141_spill] sm:$0xff] %v15591_v28  ;;  %v6190_v49 = vmul.f32 0.3, %v4851_v34  ;;  %v4853_v9 = vadd.f32 %v4852_v48, %v4260_v50  ;;  %v18285_v63 = vld [vmem:[#allocation62_spill] sm:$0xff] }
 0x420   : > { %v4856_v16 = vpop.f32.mrf.mxu0  ;;  %v15597_v61 = vpop.f32.mrf.mxu1  ;;  %5324 = vmatmul.mubr.bf16.gmra.mxu1 %v18282_v19  ;;  %11451 = vmatmul.mubr.bf16.gmra.mxu0 %v18283_v13  ;;  %v6524_v19 = vmax.f32 %v4849_v7, %v6188_v25 }
 0x421   : > { %18281 = vst [vmem:[#allocation23_spill] sm:$0xff] %v15597_v61  ;;  %v6526_v20 = vmax.f32 %v4851_v34, %v6190_v49  ;;  %v6191_v58 = vmul.f32 0.3, %v4853_v9  ;;  %v4857_v18 = vadd.f32 %v4856_v16, %v4264_v26  ;;  %5331 = vmatprep.mubr.bf16.mxu1 %v18284_v51  ;;  %11454 = vmatprep.mubr.bf16.mxu0 %v18285_v63  ;;  %v18289_v51 = vld [vmem:[#allocation194_spill] sm:$0xff] }
 0x422   : > { %v4858_v50 = vpop.f32.mrf.mxu0  ;;  %v5135_v48 = vpop.f32.mrf.mxu1  ;;  %v4274_v37 = vadd.f32 %v18289_v51, %v14433_v45  ;;  %v18291_v63 = vld [vmem:[#allocation198_spill] sm:$0xff] }
 0x423   : > { %v15605_v17 = vpack.c.bf16 %v6526_v20, %v6523_v22  ;;  %v6527_v52 = vmax.f32 %v4853_v9, %v6191_v58  ;;  %v4859_v28 = vadd.f32 %v4858_v50, %v4266_v55  ;;  %v6193_v47 = vmul.f32 0.3, %v4857_v18  ;;  %v18290_v9 = vld [vmem:[#allocation196_spill] sm:$0xff] }
 0x424   : > { %v4860_v61 = vpop.f32.mrf.mxu0  ;;  %v15607_v13 = vpop.f32.mrf.mxu1  ;;  %v4276_v7 = vadd.f32 %v18290_v9, %v14444_v31 }
 0x425   : > { %18286 = vst [vmem:[#allocation143_spill] sm:$0xff] %v15605_v17  ;;  %18287 = vst [vmem:[#allocation17_spill] sm:$0xff] %v15607_v13  ;;  %v4861_v34 = vadd.f32 %v4860_v61, %v4268_v1  ;;  %v15611_v16 = vpack.c.bf16 %v6527_v52, %v6524_v19  ;;  %v6194_v55 = vmul.f32 0.3, %v4859_v28  ;;  %v6529_v61 = vmax.f32 %v4857_v18, %v6193_v47  ;;  %v18293_v1 = vld [vmem:[#allocation200_spill] sm:$0xff]  ;;  %v18294_v19 = vld [vmem:[#allocation66_spill] sm:$0xff] }
 0x426   : > { %v4862_v26 = vpop.f32.mrf.mxu0  ;;  %v5138_v49 = vpop.f32.mrf.mxu1  ;;  %v18297_v18 = vld [vmem:[#allocation199_spill] sm:$0xff] }
 0x427   : > { %18288 = vst [vmem:[#allocation145_spill] sm:$0xff] %v15611_v16  ;;  %v6196_v22 = vmul.f32 0.3, %v4861_v34  ;;  %v4863_v20 = vadd.f32 %v4862_v26, %v4270_v54  ;;  %v18295_v49 = vld [vmem:[#allocation68_spill] sm:$0xff]  ;;  %v4280_v47 = vadd.f32 %v18297_v18, %v14444_v31  ;;  %v18304_v18 = vld [vmem:[#allocation205_spill] sm:$0xff] }
 0x428   : > { %v4866_v25 = vpop.f32.mrf.mxu0  ;;  %v15617_v58 = vpop.f32.mrf.mxu1  ;;  %5332 = vmatmul.mubr.bf16.gmra.mxu1 %v18291_v63  ;;  %11455 = vmatmul.mubr.bf16.gmra.mxu0 %v18292_v8  ;;  %v4278_v51 = vadd.f32 %v18295_v49, %v14433_v45  ;;  %v6530_v63 = vmax.f32 %v4859_v28, %v6194_v55  ;;  %v18303_v49 = vld [vmem:[#allocation65_spill] sm:$0xff] }
 0x429   : > { %v6532_v50 = vmax.f32 %v4861_v34, %v6196_v22  ;;  %v6197_v52 = vmul.f32 0.3, %v4863_v20  ;;  %v4867_v48 = vadd.f32 %v4866_v25, %v4274_v37  ;;  %5339 = vmatprep.mubr.bf16.mxu1 %v18293_v1  ;;  %11458 = vmatprep.mubr.bf16.mxu0 %v18294_v19  ;;  %v18299_v19 = vld [vmem:[#allocation201_spill] sm:$0xff] }
 0x42a   : > { %v4868_v54 = vpop.f32.mrf.mxu0  ;;  %v5143_v26 = vpop.f32.mrf.mxu1 }
 0x42b   : > { %v15625_v9 = vpack.c.bf16 %v6532_v50, %v6529_v61  ;;  %v6533_v17 = vmax.f32 %v4863_v20, %v6197_v52  ;;  %v4869_v16 = vadd.f32 %v4868_v54, %v4276_v7  ;;  %v6199_v34 = vmul.f32 0.3, %v4867_v48  ;;  %v18300_v20 = vld [vmem:[#allocation71_spill] sm:$0xff] }
 0x42c   : > { %v4870_v13 = vpop.f32.mrf.mxu0  ;;  %v15627_v8 = vpop.f32.mrf.mxu1  ;;  %v4284_v26 = vadd.f32 %v18299_v19, %v14433_v45  ;;  %v4286_v28 = vadd.f32 %v18300_v20, %v14444_v31  ;;  %v18302_v54 = vld [vmem:[#allocation203_spill] sm:$0xff]  ;;  %v4288_v19 = vadd.f32 %v14976_v2, %v14433_v45 }
 0x42d   : > { %18296 = vst [vmem:[#allocation22_spill] sm:$0xff] %v15625_v9  ;;  %v4871_v37 = vadd.f32 %v4870_v13, %v4278_v51  ;;  %v15631_v1 = vpack.c.bf16 %v6533_v17, %v6530_v63  ;;  %v6200_v7 = vmul.f32 0.3, %v4869_v16  ;;  %v6535_v13 = vmax.f32 %v4867_v48, %v6199_v34  ;;  %v18308_v48 = vld [vmem:[#allocation204_spill] sm:$0xff] }
 0x42e   : > { %v4872_v22 = vpop.f32.mrf.mxu0  ;;  %v5146_v25 = vpop.f32.mrf.mxu1  ;;  %v4290_v34 = vadd.f32 %v18308_v48, %v14444_v31  ;;  %v18314_v48 = vld [vmem:[#allocation210_spill] sm:$0xff] }
 0x42f   : > { %18298 = vst [vmem:[#allocation144_spill] sm:$0xff] %v15631_v1  ;;  %v6202_v61 = vmul.f32 0.3, %v4871_v37  ;;  %v4873_v50 = vadd.f32 %v4872_v22, %v4280_v47  ;;  %v18305_v25 = vld [vmem:[#allocation70_spill] sm:$0xff] }
 0x430   : > { %v4876_v55 = vpop.f32.mrf.mxu0  ;;  %v15637_v52 = vpop.f32.mrf.mxu1  ;;  %5340 = vmatmul.mubr.bf16.gmra.mxu1 %v18302_v54  ;;  %11459 = vmatmul.mubr.bf16.gmra.mxu0 %v18303_v49  ;;  %v6536_v54 = vmax.f32 %v4869_v16, %v6200_v7 }
 0x431   : > { %18301 = vst [vmem:[#allocation146_spill] sm:$0xff] %v15637_v52  ;;  %v6538_v51 = vmax.f32 %v4871_v37, %v6202_v61  ;;  %v6203_v17 = vmul.f32 0.3, %v4873_v50  ;;  %v4877_v63 = vadd.f32 %v4876_v55, %v4284_v26  ;;  %5347 = vmatprep.mubr.bf16.mxu1 %v18304_v18  ;;  %11462 = vmatprep.mubr.bf16.mxu0 %v18305_v25  ;;  %v18310_v25 = vld [vmem:[#allocation206_spill] sm:$0xff] }
 0x432   : > { %v4878_v47 = vpop.f32.mrf.mxu0  ;;  %v5151_v22 = vpop.f32.mrf.mxu1  ;;  %v4294_v2 = vadd.f32 %v18310_v25, %v14433_v45  ;;  %v4298_v25 = vadd.f32 %v15000_v41, %v14433_v45 }
 0x433   : > { %v15645_v20 = vpack.c.bf16 %v6538_v51, %v6535_v13  ;;  %v6539_v9 = vmax.f32 %v4873_v50, %v6203_v17  ;;  %v4879_v1 = vadd.f32 %v4878_v47, %v4286_v28  ;;  %v6205_v37 = vmul.f32 0.3, %v4877_v63  ;;  %v18311_v50 = vld [vmem:[#allocation75_spill] sm:$0xff]  ;;  %v18312_v47 = vld [vmem:[#allocation208_spill] sm:$0xff]  ;;  %v18313_v22 = vld [vmem:[#allocation69_spill] sm:$0xff] }
 0x434   : > { %v4880_v52 = vpop.f32.mrf.mxu0  ;;  %v15647_v49 = vpop.f32.mrf.mxu1  ;;  %v4296_v16 = vadd.f32 %v18311_v50, %v14444_v31 }
 0x435   : > { %18306 = vst [vmem:[#allocation27_spill] sm:$0xff] %v15645_v20  ;;  %18307 = vst [vmem:[#allocation148_spill] sm:$0xff] %v15647_v49  ;;  %v4881_v26 = vadd.f32 %v4880_v52, %v4288_v19  ;;  %v15651_v18 = vpack.c.bf16 %v6539_v9, %v6536_v54  ;;  %v6206_v28 = vmul.f32 0.3, %v4879_v1  ;;  %v6541_v52 = vmax.f32 %v4877_v63, %v6205_v37  ;;  %v18318_v63 = vld [vmem:[#allocation209_spill] sm:$0xff] }
 0x436   : > { %v4882_v61 = vpop.f32.mrf.mxu0  ;;  %v5154_v55 = vpop.f32.mrf.mxu1  ;;  %v4300_v37 = vadd.f32 %v18318_v63, %v14444_v31  ;;  %v18325_v63 = vld [vmem:[#allocation215_spill] sm:$0xff] }
 0x437   : > { %18309 = vst [vmem:[#allocation21_spill] sm:$0xff] %v15651_v18  ;;  %v6208_v13 = vmul.f32 0.3, %v4881_v26  ;;  %v4883_v51 = vadd.f32 %v4882_v61, %v4290_v34  ;;  %v18315_v55 = vld [vmem:[#allocation74_spill] sm:$0xff] }
 0x438   : > { %v4886_v7 = vpop.f32.mrf.mxu0  ;;  %v15657_v17 = vpop.f32.mrf.mxu1  ;;  %5348 = vmatmul.mubr.bf16.gmra.mxu1 %v18312_v47  ;;  %11463 = vmatmul.mubr.bf16.gmra.mxu0 %v18313_v22  ;;  %v6542_v47 = vmax.f32 %v4879_v1, %v6206_v28 }
 0x439   : > { %v6544_v19 = vmax.f32 %v4881_v26, %v6208_v13  ;;  %v6209_v9 = vmul.f32 0.3, %v4883_v51  ;;  %v4887_v54 = vadd.f32 %v4886_v7, %v4294_v2  ;;  %5355 = vmatprep.mubr.bf16.mxu1 %v18314_v48  ;;  %11466 = vmatprep.mubr.bf16.mxu0 %v18315_v55  ;;  %v18320_v55 = vld [vmem:[#allocation211_spill] sm:$0xff] }
 0x43a   : > { %v4888_v34 = vpop.f32.mrf.mxu0  ;;  %v5159_v61 = vpop.f32.mrf.mxu1  ;;  %v4304_v41 = vadd.f32 %v18320_v55, %v14433_v45  ;;  %v18327_v55 = vld [vmem:[#allocation212_spill] sm:$0xff] }
 0x43b   : > { %v15665_v50 = vpack.c.bf16 %v6544_v19, %v6541_v52  ;;  %v6545_v20 = vmax.f32 %v4883_v51, %v6209_v9  ;;  %v4889_v18 = vadd.f32 %v4888_v34, %v4296_v16  ;;  %v6211_v26 = vmul.f32 0.3, %v4887_v54  ;;  %v18321_v51 = vld [vmem:[#allocation79_spill] sm:$0xff]  ;;  %v18323_v34 = vld [vmem:[#allocation213_spill] sm:$0xff] }
 0x43c   : > { %v4890_v49 = vpop.f32.mrf.mxu0  ;;  %v15667_v22 = vpop.f32.mrf.mxu1  ;;  %v4306_v1 = vadd.f32 %v18321_v51, %v14444_v31  ;;  %v18324_v61 = vld [vmem:[#allocation73_spill] sm:$0xff]  ;;  %v4308_v51 = vadd.f32 %v18327_v55, %v14433_v45 }
 0x43d   : > { %18316 = vst [vmem:[#allocation150_spill] sm:$0xff] %v15665_v50  ;;  %18317 = vst [vmem:[#allocation26_spill] sm:$0xff] %v15667_v22  ;;  %v4891_v2 = vadd.f32 %v4890_v49, %v4298_v25  ;;  %v15671_v48 = vpack.c.bf16 %v6545_v20, %v6542_v47  ;;  %v6212_v16 = vmul.f32 0.3, %v4889_v18  ;;  %v6547_v49 = vmax.f32 %v4887_v54, %v6211_v26  ;;  %v18330_v54 = vld [vmem:[#allocation216_spill] sm:$0xff]  ;;  %v18335_v55 = vld [vmem:[#allocation77_spill] sm:$0xff] }
 0x43e   : > { %v4892_v13 = vpop.f32.mrf.mxu0  ;;  %v5162_v7 = vpop.f32.mrf.mxu1  ;;  %v4310_v26 = vadd.f32 %v18330_v54, %v14444_v31  ;;  %v18336_v54 = vld [vmem:[#allocation220_spill] sm:$0xff] }
 0x43f   : > { %18319 = vst [vmem:[#allocation149_spill] sm:$0xff] %v15671_v48  ;;  %v6214_v52 = vmul.f32 0.3, %v4891_v2  ;;  %v4893_v19 = vadd.f32 %v4892_v13, %v4300_v37  ;;  %v18326_v7 = vld [vmem:[#allocation78_spill] sm:$0xff] }
 0x440   : > { %v4896_v28 = vpop.f32.mrf.mxu0  ;;  %v15677_v9 = vpop.f32.mrf.mxu1  ;;  %5356 = vmatmul.mubr.bf16.gmra.mxu1 %v18323_v34  ;;  %11467 = vmatmul.mubr.bf16.gmra.mxu0 %v18324_v61  ;;  %v6548_v34 = vmax.f32 %v4889_v18, %v6212_v16 }
 0x441   : > { %18322 = vst [vmem:[#allocation151_spill] sm:$0xff] %v15677_v9  ;;  %v6550_v25 = vmax.f32 %v4891_v2, %v6214_v52  ;;  %v6215_v20 = vmul.f32 0.3, %v4893_v19  ;;  %v4897_v47 = vadd.f32 %v4896_v28, %v4304_v41  ;;  %5363 = vmatprep.mubr.bf16.mxu1 %v18325_v63  ;;  %11470 = vmatprep.mubr.bf16.mxu0 %v18326_v7  ;;  %v18332_v7 = vld [vmem:[#allocation83_spill] sm:$0xff] }
 0x442   : > { %v4898_v37 = vpop.f32.mrf.mxu0  ;;  %v5167_v13 = vpop.f32.mrf.mxu1 }
 0x443   : > { %v15685_v50 = vpack.c.bf16 %v6550_v25, %v6547_v49  ;;  %v6551_v48 = vmax.f32 %v4893_v19, %v6215_v20  ;;  %v4899_v9 = vadd.f32 %v4898_v37, %v4306_v1  ;;  %v6217_v2 = vmul.f32 0.3, %v4897_v47  ;;  %v18333_v19 = vld [vmem:[#allocation84_spill] sm:$0xff]  ;;  %v18334_v37 = vld [vmem:[#allocation218_spill] sm:$0xff] }
 0x444   : > { %v4900_v22 = vpop.f32.mrf.mxu0  ;;  %v15687_v61 = vpop.f32.mrf.mxu1  ;;  %v4314_v13 = vadd.f32 %v18332_v7, %v14433_v45  ;;  %v4316_v18 = vadd.f32 %v18333_v19, %v14444_v31  ;;  %v4318_v7 = vadd.f32 %v15048_v43, %v14433_v45 }
 0x445   : > { %18328 = vst [vmem:[#allocation154_spill] sm:$0xff] %v15685_v50  ;;  %18329 = vst [vmem:[#allocation25_spill] sm:$0xff] %v15687_v61  ;;  %v4901_v41 = vadd.f32 %v4900_v22, %v4308_v51  ;;  %v15691_v63 = vpack.c.bf16 %v6551_v48, %v6548_v34  ;;  %v6218_v1 = vmul.f32 0.3, %v4899_v9  ;;  %v6553_v22 = vmax.f32 %v4897_v47, %v6217_v2  ;;  %v18340_v47 = vld [vmem:[#allocation221_spill] sm:$0xff] }
 0x446   : > { %v4902_v52 = vpop.f32.mrf.mxu0  ;;  %v5170_v28 = vpop.f32.mrf.mxu1  ;;  %v4320_v2 = vadd.f32 %v18340_v47, %v14444_v31  ;;  %v18347_v47 = vld [vmem:[#allocation226_spill] sm:$0xff] }
 0x447   : > { %18331 = vst [vmem:[#allocation156_spill] sm:$0xff] %v15691_v63  ;;  %v6220_v49 = vmul.f32 0.3, %v4901_v41  ;;  %v4903_v25 = vadd.f32 %v4902_v52, %v4310_v26  ;;  %v18337_v28 = vld [vmem:[#allocation82_spill] sm:$0xff] }
 0x448   : > { %v4906_v16 = vpop.f32.mrf.mxu0  ;;  %v15697_v20 = vpop.f32.mrf.mxu1  ;;  %5364 = vmatmul.mubr.bf16.gmra.mxu1 %v18334_v37  ;;  %11471 = vmatmul.mubr.bf16.gmra.mxu0 %v18335_v55  ;;  %v6554_v37 = vmax.f32 %v4899_v9, %v6218_v1 }
 0x449   : > { %v6556_v51 = vmax.f32 %v4901_v41, %v6220_v49  ;;  %v6221_v48 = vmul.f32 0.3, %v4903_v25  ;;  %v4907_v34 = vadd.f32 %v4906_v16, %v4314_v13  ;;  %5371 = vmatprep.mubr.bf16.mxu1 %v18336_v54  ;;  %11474 = vmatprep.mubr.bf16.mxu0 %v18337_v28  ;;  %v18342_v28 = vld [vmem:[#allocation87_spill] sm:$0xff] }
 0x44a   : > { %v4908_v26 = vpop.f32.mrf.mxu0  ;;  %v5175_v52 = vpop.f32.mrf.mxu1  ;;  %v4324_v43 = vadd.f32 %v18342_v28, %v14433_v45  ;;  %v18349_v28 = vld [vmem:[#allocation223_spill] sm:$0xff] }
 0x44b   : > { %v15705_v19 = vpack.c.bf16 %v6556_v51, %v6553_v22  ;;  %v6557_v50 = vmax.f32 %v4903_v25, %v6221_v48  ;;  %v4909_v63 = vadd.f32 %v4908_v26, %v4316_v18  ;;  %v6223_v41 = vmul.f32 0.3, %v4907_v34  ;;  %v18343_v25 = vld [vmem:[#allocation88_spill] sm:$0xff]  ;;  %v18346_v52 = vld [vmem:[#allocation81_spill] sm:$0xff] }
 0x44c   : > { %v4910_v61 = vpop.f32.mrf.mxu0  ;;  %v15707_v55 = vpop.f32.mrf.mxu1  ;;  %v4326_v9 = vadd.f32 %v18343_v25, %v14444_v31  ;;  %v18345_v26 = vld [vmem:[#allocation224_spill] sm:$0xff]  ;;  %v4328_v25 = vadd.f32 %v18349_v28, %v14433_v45  ;;  %v18357_v28 = vld [vmem:[#allocation85_spill] sm:$0xff] }
 0x44d   : > { %18338 = vst [vmem:[#allocation30_spill] sm:$0xff] %v15705_v19  ;;  %18339 = vst [vmem:[#allocation152_spill] sm:$0xff] %v15707_v55  ;;  %v4911_v13 = vadd.f32 %v4910_v61, %v4318_v7  ;;  %v15711_v54 = vpack.c.bf16 %v6557_v50, %v6554_v37  ;;  %v6224_v18 = vmul.f32 0.3, %v4909_v63  ;;  %v6559_v61 = vmax.f32 %v4907_v34, %v6223_v41  ;;  %v18352_v34 = vld [vmem:[#allocation227_spill] sm:$0xff] }
 0x44e   : > { %v4912_v49 = vpop.f32.mrf.mxu0  ;;  %v5178_v16 = vpop.f32.mrf.mxu1  ;;  %v4330_v41 = vadd.f32 %v18352_v34, %v14444_v31  ;;  %v18358_v34 = vld [vmem:[#allocation231_spill] sm:$0xff] }
 0x44f   : > { %18341 = vst [vmem:[#allocation153_spill] sm:$0xff] %v15711_v54  ;;  %v6226_v22 = vmul.f32 0.3, %v4911_v13  ;;  %v4913_v51 = vadd.f32 %v4912_v49, %v4320_v2  ;;  %v18348_v16 = vld [vmem:[#allocation86_spill] sm:$0xff] }
 0x450   : > { %v4916_v1 = vpop.f32.mrf.mxu0  ;;  %v15717_v48 = vpop.f32.mrf.mxu1  ;;  %5372 = vmatmul.mubr.bf16.gmra.mxu1 %v18345_v26  ;;  %11475 = vmatmul.mubr.bf16.gmra.mxu0 %v18346_v52  ;;  %v6560_v26 = vmax.f32 %v4909_v63, %v6224_v18 }
 0x451   : > { %18344 = vst [vmem:[#allocation155_spill] sm:$0xff] %v15717_v48  ;;  %v6562_v7 = vmax.f32 %v4911_v13, %v6226_v22  ;;  %v6227_v50 = vmul.f32 0.3, %v4913_v51  ;;  %v4917_v37 = vadd.f32 %v4916_v1, %v4324_v43  ;;  %5379 = vmatprep.mubr.bf16.mxu1 %v18347_v47  ;;  %11478 = vmatprep.mubr.bf16.mxu0 %v18348_v16  ;;  %v18354_v16 = vld [vmem:[#allocation91_spill] sm:$0xff] }
 0x452   : > { %v4918_v2 = vpop.f32.mrf.mxu0  ;;  %v5183_v49 = vpop.f32.mrf.mxu1 }
 0x453   : > { %v15725_v19 = vpack.c.bf16 %v6562_v7, %v6559_v61  ;;  %v6563_v54 = vmax.f32 %v4913_v51, %v6227_v50  ;;  %v4919_v48 = vadd.f32 %v4918_v2, %v4326_v9  ;;  %v6229_v13 = vmul.f32 0.3, %v4917_v37  ;;  %v18355_v51 = vld [vmem:[#allocation92_spill] sm:$0xff]  ;;  %v18356_v2 = vld [vmem:[#allocation229_spill] sm:$0xff] }
 0x454   : > { %v4920_v55 = vpop.f32.mrf.mxu0  ;;  %v15727_v52 = vpop.f32.mrf.mxu1  ;;  %v4334_v49 = vadd.f32 %v18354_v16, %v14433_v45  ;;  %v4336_v63 = vadd.f32 %v18355_v51, %v14444_v31  ;;  %v4338_v16 = vadd.f32 %v15096_v23, %v14433_v45 }
 0x455   : > { %18350 = vst [vmem:[#allocation158_spill] sm:$0xff] %v15725_v19  ;;  %18351 = vst [vmem:[#allocation29_spill] sm:$0xff] %v15727_v52  ;;  %v4921_v43 = vadd.f32 %v4920_v55, %v4328_v25  ;;  %v15731_v47 = vpack.c.bf16 %v6563_v54, %v6560_v26  ;;  %v6230_v9 = vmul.f32 0.3, %v4919_v48  ;;  %v6565_v55 = vmax.f32 %v4917_v37, %v6229_v13  ;;  %v18361_v37 = vld [vmem:[#allocation232_spill] sm:$0xff] }
 0x456   : > { %v4922_v22 = vpop.f32.mrf.mxu0  ;;  %v5186_v1 = vpop.f32.mrf.mxu1  ;;  %v4340_v13 = vadd.f32 %v18361_v37, %v14444_v31  ;;  %v18368_v37 = vld [vmem:[#allocation237_spill] sm:$0xff] }
 0x457   : > { %18353 = vst [vmem:[#allocation160_spill] sm:$0xff] %v15731_v47  ;;  %v6232_v61 = vmul.f32 0.3, %v4921_v43  ;;  %v4923_v7 = vadd.f32 %v4922_v22, %v4330_v41  ;;  %v18359_v1 = vld [vmem:[#allocation90_spill] sm:$0xff] }
 0x458   : > { %v4926_v18 = vpop.f32.mrf.mxu0  ;;  %v15737_v50 = vpop.f32.mrf.mxu1  ;;  %5380 = vmatmul.mubr.bf16.gmra.mxu1 %v18356_v2  ;;  %11479 = vmatmul.mubr.bf16.gmra.mxu0 %v18357_v28  ;;  %v6566_v2 = vmax.f32 %v4919_v48, %v6230_v9 }
 0x459   : > { %v6568_v25 = vmax.f32 %v4921_v43, %v6232_v61  ;;  %v6233_v54 = vmul.f32 0.3, %v4923_v7  ;;  %v4927_v26 = vadd.f32 %v4926_v18, %v4334_v49  ;;  %5387 = vmatprep.mubr.bf16.mxu1 %v18358_v34  ;;  %11482 = vmatprep.mubr.bf16.mxu0 %v18359_v1  ;;  %v18363_v1 = vld [vmem:[#allocation95_spill] sm:$0xff] }
 0x45a   : > { %v4928_v41 = vpop.f32.mrf.mxu0  ;;  %v5191_v22 = vpop.f32.mrf.mxu1  ;;  %v4344_v23 = vadd.f32 %v18363_v1, %v14433_v45  ;;  %v4348_v1 = vadd.f32 %v15123_v60, %v14433_v45 }
 0x45b   : > { %v15745_v51 = vpack.c.bf16 %v6568_v25, %v6565_v55  ;;  %v6569_v19 = vmax.f32 %v4923_v7, %v6233_v54  ;;  %v4929_v47 = vadd.f32 %v4928_v41, %v4336_v63  ;;  %v6235_v43 = vmul.f32 0.3, %v4927_v26  ;;  %v18364_v7 = vld [vmem:[#allocation96_spill] sm:$0xff]  ;;  %v18366_v41 = vld [vmem:[#allocation235_spill] sm:$0xff]  ;;  %v18367_v22 = vld [vmem:[#allocation89_spill] sm:$0xff] }
 0x45c   : > { %v4930_v52 = vpop.f32.mrf.mxu0  ;;  %v15747_v28 = vpop.f32.mrf.mxu1  ;;  %v4346_v48 = vadd.f32 %v18364_v7, %v14444_v31 }
 0x45d   : > { %18360 = vst [vmem:[#allocation34_spill] sm:$0xff] %v15745_v51  ;;  %v4931_v49 = vadd.f32 %v4930_v52, %v4338_v16  ;;  %v15751_v34 = vpack.c.bf16 %v6569_v19, %v6566_v2  ;;  %v6236_v63 = vmul.f32 0.3, %v4929_v47  ;;  %v6571_v52 = vmax.f32 %v4927_v26, %v6235_v43  ;;  %v18372_v26 = vld [vmem:[#allocation236_spill] sm:$0xff] }
 0x45e   : > { %v4932_v61 = vpop.f32.mrf.mxu0  ;;  %v5194_v18 = vpop.f32.mrf.mxu1  ;;  %v4350_v43 = vadd.f32 %v18372_v26, %v14444_v31  ;;  %v18378_v26 = vld [vmem:[#allocation243_spill] sm:$0xff] }
 0x45f   : > { %18362 = vst [vmem:[#allocation36_spill] sm:$0xff] %v15751_v34  ;;  %v6238_v55 = vmul.f32 0.3, %v4931_v49  ;;  %v4933_v25 = vadd.f32 %v4932_v61, %v4340_v13  ;;  %v18369_v18 = vld [vmem:[#allocation94_spill] sm:$0xff] }
 0x460   : > { %v4936_v9 = vpop.f32.mrf.mxu0  ;;  %v15757_v54 = vpop.f32.mrf.mxu1  ;;  %5388 = vmatmul.mubr.bf16.gmra.mxu1 %v18366_v41  ;;  %11483 = vmatmul.mubr.bf16.gmra.mxu0 %v18367_v22  ;;  %v6572_v41 = vmax.f32 %v4929_v47, %v6236_v63 }
 0x461   : > { %18365 = vst [vmem:[#allocation163_spill] sm:$0xff] %v15757_v54  ;;  %v6574_v16 = vmax.f32 %v4931_v49, %v6238_v55  ;;  %v6239_v19 = vmul.f32 0.3, %v4933_v25  ;;  %v4937_v2 = vadd.f32 %v4936_v9, %v4344_v23  ;;  %5395 = vmatprep.mubr.bf16.mxu1 %v18368_v37  ;;  %11486 = vmatprep.mubr.bf16.mxu0 %v18369_v18  ;;  %v18374_v18 = vld [vmem:[#allocation238_spill] sm:$0xff] }
 0x462   : > { %v4938_v13 = vpop.f32.mrf.mxu0  ;;  %v5199_v61 = vpop.f32.mrf.mxu1  ;;  %v4354_v60 = vadd.f32 %v18374_v18, %v14433_v45  ;;  %v4358_v18 = vadd.f32 %v15147_v21, %v14433_v45 }
 0x463   : > { %v15765_v7 = vpack.c.bf16 %v6574_v16, %v6571_v52  ;;  %v6575_v51 = vmax.f32 %v4933_v25, %v6239_v19  ;;  %v4939_v34 = vadd.f32 %v4938_v13, %v4346_v48  ;;  %v6241_v49 = vmul.f32 0.3, %v4937_v2  ;;  %v18375_v25 = vld [vmem:[#allocation99_spill] sm:$0xff]  ;;  %v18376_v13 = vld [vmem:[#allocation241_spill] sm:$0xff] }
 0x464   : > { %v4940_v54 = vpop.f32.mrf.mxu0  ;;  %v15767_v22 = vpop.f32.mrf.mxu1  ;;  %v4356_v47 = vadd.f32 %v18375_v25, %v14444_v31  ;;  %v18377_v61 = vld [vmem:[#allocation93_spill] sm:$0xff] }
 0x465   : > { %18370 = vst [vmem:[#allocation33_spill] sm:$0xff] %v15765_v7  ;;  %18371 = vst [vmem:[#allocation164_spill] sm:$0xff] %v15767_v22  ;;  %v4941_v23 = vadd.f32 %v4940_v54, %v4348_v1  ;;  %v15771_v37 = vpack.c.bf16 %v6575_v51, %v6572_v41  ;;  %v6242_v48 = vmul.f32 0.3, %v4939_v34  ;;  %v6577_v54 = vmax.f32 %v4937_v2, %v6241_v49  ;;  %v12204_v49 = vld [vmem:[%s17824_s5] sm:$0x7] }
 0x466   : > { %v4942_v55 = vpop.f32.mrf.mxu0  ;;  %v5202_v9 = vpop.f32.mrf.mxu1  ;;  %v4360_v2 = vadd.f32 %v15153_v10, %v14444_v31 }
 0x467   : > { %18373 = vst [vmem:[#allocation38_spill] sm:$0xff] %v15771_v37  ;;  %v6244_v52 = vmul.f32 0.3, %v4941_v23  ;;  %v4943_v16 = vadd.f32 %v4942_v55, %v4350_v43  ;;  %v18379_v9 = vld [vmem:[#allocation98_spill] sm:$0xff] }
 0x468   : > { %v4946_v63 = vpop.f32.mrf.mxu0  ;;  %v15777_v19 = vpop.f32.mrf.mxu1  ;;  %5396 = vmatmul.mubr.bf16.gmra.mxu1 %v18376_v13  ;;  %11487 = vmatmul.mubr.bf16.gmra.mxu0 %v18377_v61  ;;  %v6578_v13 = vmax.f32 %v4939_v34, %v6242_v48 }
 0x469   : > { %v6580_v1 = vmax.f32 %v4941_v23, %v6244_v52  ;;  %v6245_v51 = vmul.f32 0.3, %v4943_v16  ;;  %v4947_v41 = vadd.f32 %v4946_v63, %v4354_v60  ;;  %5403 = vmatprep.mubr.bf16.mxu1 %v18378_v26  ;;  %11490 = vmatprep.mubr.bf16.mxu0 %v18379_v9  ;;  %v18380_v23 = vld [vmem:[#allocation3_spill] sm:$0xff]  ;;  %v18383_v26 = vld [vmem:[#allocation97_spill] sm:$0xff] }
 0x46a   : > { %v4948_v43 = vpop.f32.mrf.mxu0  ;;  %v5207_v55 = vpop.f32.mrf.mxu1  ;;  %v18381_v60 = vsub.s32 2, %v18380_v23 }
 0x46b   : > { %v15785_v25 = vpack.c.bf16 %v6580_v1, %v6577_v54  ;;  %v6581_v7 = vmax.f32 %v4943_v16, %v6245_v51  ;;  %v4949_v37 = vadd.f32 %v4948_v43, %v4356_v47  ;;  %v6247_v45 = vmul.f32 0.3, %v4947_v41  ;;  %v18382_v1 = vld [vmem:[#allocation246_spill] sm:$0xff] }
 0x46c   : > { %v4950_v22 = vpop.f32.mrf.mxu0  ;;  %v15787_v61 = vpop.f32.mrf.mxu1  ;;  %v15796_v52 = vrot.slane %v12204_v49, %v18381_v60 }
 0x46d   : > { %v4951_v21 = vadd.f32 %v4950_v22, %v4358_v18  ;;  %v15798_v47 = vpack.c.bf16 %v6581_v7, %v6578_v13  ;;  %v6248_v31 = vmul.f32 0.3, %v4949_v37  ;;  %v6583_v9 = vmax.f32 %v4947_v41, %v6247_v45  ;;  %v18384_v18 = vld [vmem:[#allocation247_spill] sm:$0xff]  ;;  %v18385_v7 = vld [vmem:[#allocation102_spill] sm:$0xff] }
 0x46e   : > { %v4952_v63 = vpop.f32.mrf.mxu0  ;;  %v5210_v16 = vpop.f32.mrf.mxu1  ;;  %v4998_v34 = vadd.f32 %v15180_v35, %v15796_v52  ;;  %v18386_v35 = vld [vmem:[#allocation240_spill] sm:$0xff]  ;;  %v5001_v23 = vadd.f32 %v15189_v3, %v15796_v52  ;;  %v5014_v3 = vadd.f32 %v15220_v14, %v15796_v52  ;;  %v5006_v14 = vadd.f32 %v15200_v12, %v15796_v52 }
 0x46f   : > { %v6250_v48 = vmul.f32 0.3, %v4951_v21  ;;  %v4953_v54 = vadd.f32 %v4952_v63, %v4360_v2  ;;  %v4990_v13 = vadd.f32 %v18386_v35, %v15796_v52  ;;  %v6584_v16 = vmax.f32 %v4949_v37, %v6248_v31  ;;  %v18388_v31 = vld [vmem:[#allocation248_spill] sm:$0xff]  ;;  %v18389_v35 = vld [vmem:[#allocation101_spill] sm:$0xff] }
 0x470   : > { %v15802_v10 = vpop.f32.mrf.mxu1  ;;  %5404 = vmatmul.mubr.bf16.gmra.mxu1 %v18382_v1  ;;  %v11396_v51 = vpop.f32.mrf.mxu0  ;;  %11491 = vmatmul.mubr.bf16.gmra.mxu0 %v18383_v26 }
 0x471   : > { %v6586_v43 = vmax.f32 %v4951_v21, %v6250_v48  ;;  %v6251_v22 = vmul.f32 0.3, %v4953_v54  ;;  %v5479_v55 = vadd.f32 %v11396_v51, %v4998_v34  ;;  %5411 = vmatprep.mubr.bf16.mxu1 %v18384_v18  ;;  %11494 = vmatprep.mubr.bf16.mxu0 %v18385_v7  ;;  %v18387_v34 = vld [vmem:[#allocation244_spill] sm:$0xff] }
 0x472   : > { %v5215_v2 = vpop.f32.mrf.mxu1  ;;  %v5470_v49 = vpop.f32.mrf.mxu0  ;;  %v4993_v48 = vadd.f32 %v18387_v34, %v15796_v52 }
 0x473   : > { %v15812_v60 = vpack.c.bf16 %v6586_v43, %v6583_v9  ;;  %v6587_v63 = vmax.f32 %v4953_v54, %v6251_v22  ;;  %v5471_v41 = vadd.f32 %v5470_v49, %v4990_v13  ;;  %v5925_v1 = vmul.f32 0.3, %v5479_v55 }
 0x474   : > { %v15814_v45 = vpop.f32.mrf.mxu1  ;;  %v11397_v21 = vpop.f32.mrf.mxu0 }
 0x475   : > { %v5482_v51 = vadd.f32 %v11397_v21, %v5001_v23  ;;  %v15818_v7 = vpack.c.bf16 %v6587_v63, %v6584_v16  ;;  %v5919_v54 = vmul.f32 0.3, %v5471_v41  ;;  %v6261_v13 = vmax.f32 %v5479_v55, %v5925_v1  ;;  %v18390_v21 = vld [vmem:[#allocation250_spill] sm:$0xff] }
 0x476   : > { %v5218_v26 = vpop.f32.mrf.mxu1  ;;  %v5473_v18 = vpop.f32.mrf.mxu0  ;;  %v18391_v63 = vld [vmem:[#allocation106_spill] sm:$0xff] }
 0x477   : > { %v5928_v9 = vmul.f32 0.3, %v5482_v51  ;;  %v5474_v43 = vadd.f32 %v5473_v18, %v4993_v48  ;;  %v5017_v48 = vadd.f32 %v15229_v5, %v15796_v52 }
 0x478   : > { %v15822_v37 = vpop.f32.mrf.mxu1  ;;  %5412 = vmatmul.mubr.bf16.gmra.mxu1 %v18388_v31  ;;  %v11400_v22 = vpop.f32.mrf.mxu0  ;;  %11495 = vmatmul.mubr.bf16.gmra.mxu0 %v18389_v35  ;;  %v6255_v31 = vmax.f32 %v5471_v41, %v5919_v54  ;;  %v18392_v41 = vld [vmem:[#allocation115_spill] sm:$0xff] }
 0x479   : > { %v6264_v2 = vmax.f32 %v5482_v51, %v5928_v9  ;;  %v5922_v49 = vmul.f32 0.3, %v5474_v43  ;;  %v5495_v23 = vadd.f32 %v11400_v22, %v5014_v3  ;;  %5419 = vmatprep.mubr.bf16.mxu1 %v18390_v21  ;;  %11498 = vmatprep.mubr.bf16.mxu0 %v18391_v63  ;;  %v5009_v3 = vadd.f32 %v15209_v29, %v15796_v52 }
 0x47a   : > { %v5223_v16 = vpop.f32.mrf.mxu1  ;;  %v5486_v34 = vpop.f32.mrf.mxu0  ;;  %v5030_v63 = vadd.f32 %v15270_v53, %v15796_v52  ;;  %v5022_v53 = vadd.f32 %v15242_v30, %v15796_v52 }
 0x47b   : > { %v15832_v26 = vpack.c.bf16 %v6264_v2, %v6261_v13  ;;  %v6258_v18 = vmax.f32 %v5474_v43, %v5922_v49  ;;  %v5487_v55 = vadd.f32 %v5486_v34, %v5006_v14  ;;  %v5937_v9 = vmul.f32 0.3, %v5495_v23  ;;  %v18393_v49 = vld [vmem:[#allocation105_spill] sm:$0xff] }
 0x47c   : > { %v15834_v1 = vpop.f32.mrf.mxu1  ;;  %v11401_v51 = vpop.f32.mrf.mxu0 }
 0x47d   : > { %v5498_v22 = vadd.f32 %v11401_v51, %v5017_v48  ;;  %v6591_v21 = vpack.c.bf16 %v6258_v18, %v6255_v31  ;;  %v5931_v2 = vmul.f32 0.3, %v5487_v55  ;;  %v6273_v14 = vmax.f32 %v5495_v23, %v5937_v9  ;;  %v18394_v48 = vld [vmem:[#allocation255_spill] sm:$0xff] }
 0x47e   : > { %v5226_v35 = vpop.f32.mrf.mxu1  ;;  %v5489_v12 = vpop.f32.mrf.mxu0  ;;  %v5033_v51 = vadd.f32 %v15287_v36, %v15796_v52 }
 0x47f   : > { %v5940_v5 = vmul.f32 0.3, %v5498_v22  ;;  %v5490_v13 = vadd.f32 %v5489_v12, %v5009_v3  ;;  %v6267_v12 = vmax.f32 %v5487_v55, %v5931_v2  ;;  %v18395_v55 = vld [vmem:[#allocation119_spill] sm:$0xff] }
 0x480   : > { %v15840_v43 = vpop.f32.mrf.mxu1  ;;  %5420 = vmatmul.mubr.bf16.gmra.mxu1 %v18392_v41  ;;  %v11404_v54 = vpop.f32.mrf.mxu0  ;;  %11499 = vmatmul.mubr.bf16.gmra.mxu0 %v18393_v49  ;;  %v5046_v49 = vadd.f32 %v15329_v42, %v15796_v52  ;;  %v5038_v42 = vadd.f32 %v15301_v59, %v15796_v52 }
 0x481   : > { %v6276_v29 = vmax.f32 %v5498_v22, %v5940_v5  ;;  %v5934_v16 = vmul.f32 0.3, %v5490_v13  ;;  %v5511_v34 = vadd.f32 %v11404_v54, %v5030_v63  ;;  %5427 = vmatprep.mubr.bf16.mxu1 %v18394_v48  ;;  %11502 = vmatprep.mubr.bf16.mxu0 %v18137_v24  ;;  %v5025_v63 = vadd.f32 %v15256_v15, %v15796_v52 }
 0x482   : > { %v5231_v18 = vpop.f32.mrf.mxu1  ;;  %v5502_v31 = vpop.f32.mrf.mxu0 }
 0x483   : > { %v15850_v3 = vpack.c.bf16 %v6276_v29, %v6273_v14  ;;  %v6270_v35 = vmax.f32 %v5490_v13, %v5934_v16  ;;  %v5503_v23 = vadd.f32 %v5502_v31, %v5022_v53  ;;  %v5949_v24 = vmul.f32 0.3, %v5511_v34  ;;  %v18396_v18 = vld [vmem:[#allocation254_spill] sm:$0xff] }
 0x484   : > { %v15852_v9 = vpop.f32.mrf.mxu1  ;;  %v11405_v22 = vpop.f32.mrf.mxu0 }
 0x485   : > { %v5514_v5 = vadd.f32 %v11405_v22, %v5033_v51  ;;  %v6597_v54 = vpack.c.bf16 %v6270_v35, %v6267_v12  ;;  %v5943_v29 = vmul.f32 0.3, %v5503_v23  ;;  %v6285_v16 = vmax.f32 %v5511_v34, %v5949_v24 }
 0x486   : > { %v5234_v41 = vpop.f32.mrf.mxu1  ;;  %v5505_v30 = vpop.f32.mrf.mxu0  ;;  %v5049_v35 = vadd.f32 %v15343_v6, %v15796_v52 }
 0x487   : > { %v5952_v36 = vmul.f32 0.3, %v5514_v5  ;;  %v5506_v14 = vadd.f32 %v5505_v30, %v5025_v63  ;;  %v6279_v63 = vmax.f32 %v5503_v23, %v5943_v29  ;;  %v18397_v29 = vld [vmem:[#allocation253_spill] sm:$0xff] }
 0x488   : > { %v15858_v13 = vpop.f32.mrf.mxu1  ;;  %5428 = vmatmul.mubr.bf16.gmra.mxu1 %v18395_v55  ;;  %v11408_v2 = vpop.f32.mrf.mxu0  ;;  %11503 = vmatmul.mubr.bf16.gmra.mxu0 %v18142_v0 }
 0x489   : > { %v6288_v15 = vmax.f32 %v5514_v5, %v5952_v36  ;;  %v5946_v48 = vmul.f32 0.3, %v5506_v14  ;;  %v5527_v53 = vadd.f32 %v11408_v2, %v5046_v49  ;;  %6988 = vmatprep.mubr.bf16.mxu0 %v18396_v18  ;;  %11522 = vmatprep.mubr.bf16.mxu1 %v6591_v21  ;;  %v5041_v5 = vadd.f32 %v15315_v57, %v15796_v52  ;;  %v18398_v18 = vld [vmem:[#allocation117_spill] sm:$0xff] }
 0x48a   : > { %v5239_v31 = vpop.f32.mrf.mxu1  ;;  %v5518_v51 = vpop.f32.mrf.mxu0  ;;  %v5062_v36 = vadd.f32 %v15385_v62, %v15796_v52  ;;  %v5054_v62 = vadd.f32 %v15357_v40, %v15796_v52 }
 0x48b   : > { %v15867_v12 = vpack.c.bf16 %v6288_v15, %v6285_v16  ;;  %v6282_v22 = vmax.f32 %v5506_v14, %v5946_v48  ;;  %v5519_v0 = vadd.f32 %v5518_v51, %v5038_v42  ;;  %v5961_v21 = vmul.f32 0.3, %v5527_v53 }
 0x48c   : > { %v15869_v34 = vpop.f32.mrf.mxu1  ;;  %v11409_v24 = vpop.f32.mrf.mxu0  ;;  %v5065_v51 = vadd.f32 %v15399_v46, %v15796_v52 }
 0x48d   : > { %v5530_v41 = vadd.f32 %v11409_v24, %v5049_v35  ;;  %v6603_v49 = vpack.c.bf16 %v6282_v22, %v6279_v63  ;;  %v5955_v2 = vmul.f32 0.3, %v5519_v0  ;;  %v6297_v16 = vmax.f32 %v5527_v53, %v5961_v21 }
 0x48e   : > { %v5242_v30 = vpop.f32.mrf.mxu1  ;;  %v5521_v59 = vpop.f32.mrf.mxu0 }
 0x48f   : > { %v5964_v6 = vmul.f32 0.3, %v5530_v41  ;;  %v5522_v55 = vadd.f32 %v5521_v59, %v5041_v5  ;;  %v6291_v63 = vmax.f32 %v5519_v0, %v5955_v2  ;;  %v5057_v5 = vadd.f32 %v15371_v56, %v15796_v52  ;;  %v18399_v2 = vld [vmem:[#allocation116_spill] sm:$0xff] }
 0x490   : > { %v15875_v14 = vpop.f32.mrf.mxu1  ;;  %v11412_v23 = vpop.f32.mrf.mxu0  ;;  %6989 = vmatmul.mubr.bf16.vlgmr.msra.gmra.mxu0 %v18397_v29  ;;  %11523 = vmatmul.mubr.bf16.vlgmr.msra.gmra.mxu1 %v15832_v26  ;;  %v5078_v59 = vadd.f32 %v15434_v4, %v15796_v52  ;;  %v5070_v4 = vadd.f32 %v15413_v27, %v15796_v52 }
 0x491   : > { %v6300_v57 = vmax.f32 %v5530_v41, %v5964_v6  ;;  %v5958_v15 = vmul.f32 0.3, %v5522_v55  ;;  %v5543_v48 = vadd.f32 %v11412_v23, %v5062_v36  ;;  %6996 = vmatprep.mubr.bf16.mxu0 %v18398_v18  ;;  %11526 = vmatprep.mubr.bf16.mxu1 %v6597_v54 }
 0x492   : > { %v5247_v42 = vpop.f32.mrf.mxu1  ;;  %v5534_v31 = vpop.f32.mrf.mxu0 }
 0x493   : > { %v15884_v35 = vpack.c.bf16 %v6300_v57, %v6297_v16  ;;  %v6294_v22 = vmax.f32 %v5522_v55, %v5958_v15  ;;  %v5535_v26 = vadd.f32 %v5534_v31, %v5054_v62  ;;  %v5973_v54 = vmul.f32 0.3, %v5543_v48  ;;  %v18400_v57 = vld [vmem:[#allocation8_spill] sm:$0xff] }
 0x494   : > { %v15886_v53 = vpop.f32.mrf.mxu1  ;;  %v11413_v24 = vpop.f32.mrf.mxu0  ;;  %v5081_v62 = vadd.f32 %v15447_v39, %v15796_v52 }
 0x495   : > { %v5546_v21 = vadd.f32 %v11413_v24, %v5065_v51  ;;  %v6609_v30 = vpack.c.bf16 %v6294_v22, %v6291_v63  ;;  %v5967_v6 = vmul.f32 0.3, %v5535_v26  ;;  %v6309_v23 = vmax.f32 %v5543_v48, %v5973_v54  ;;  %v18401_v63 = vld [vmem:[#allocation7_spill] sm:$0xff] }
 0x496   : > { %v5250_v41 = vpop.f32.mrf.mxu1  ;;  %v5537_v40 = vpop.f32.mrf.mxu0  ;;  %v5073_v24 = vadd.f32 %v18401_v63, %v15796_v52  ;;  %v18406_v63 = vld [vmem:[#allocation10_spill] sm:$0xff] }
 0x497   : > { %v5976_v46 = vmul.f32 0.3, %v5546_v21  ;;  %v5538_v36 = vadd.f32 %v5537_v40, %v5057_v5  ;;  %v6303_v51 = vmax.f32 %v5535_v26, %v5967_v6  ;;  %v5094_v41 = vadd.f32 %v15481_v38, %v15796_v52 }
 0x498   : > { %v15892_v55 = vpop.f32.mrf.mxu1  ;;  %v11416_v0 = vpop.f32.mrf.mxu0  ;;  %6997 = vmatmul.mubr.bf16.gmra.mxu0 %v18399_v2  ;;  %11527 = vmatmul.mubr.bf16.gmra.mxu1 %v15850_v3 }
 0x499   : > { %v6312_v56 = vmax.f32 %v5546_v21, %v5976_v46  ;;  %v5970_v29 = vmul.f32 0.3, %v5538_v36  ;;  %v5559_v16 = vadd.f32 %v11416_v0, %v5078_v59  ;;  %7004 = vmatprep.mubr.bf16.mxu0 %v18400_v57  ;;  %11530 = vmatprep.mubr.bf16.mxu1 %v6603_v49 }
 0x49a   : > { %v5255_v15 = vpop.f32.mrf.mxu1  ;;  %v5550_v18 = vpop.f32.mrf.mxu0 }
 0x49b   : > { %v15901_v42 = vpack.c.bf16 %v6312_v56, %v6309_v23  ;;  %v6306_v31 = vmax.f32 %v5538_v36, %v5970_v29  ;;  %v5551_v3 = vadd.f32 %v5550_v18, %v5070_v4  ;;  %v5985_v49 = vmul.f32 0.3, %v5559_v16  ;;  %v18402_v36 = vld [vmem:[#allocation121_spill] sm:$0xff]  ;;  %v18403_v56 = vld [vmem:[#allocation123_spill] sm:$0xff]  ;;  %v18404_v29 = vld [vmem:[#allocation6_spill] sm:$0xff] }
 0x49c   : > { %v15903_v48 = vpop.f32.mrf.mxu1  ;;  %v11417_v22 = vpop.f32.mrf.mxu0  ;;  %v5086_v38 = vadd.f32 %v18404_v29, %v15796_v52  ;;  %v18405_v15 = vld [vmem:[#allocation15_spill] sm:$0xff] }
 0x49d   : > { %v5562_v5 = vadd.f32 %v11417_v22, %v5081_v62  ;;  %v6615_v21 = vpack.c.bf16 %v6306_v31, %v6303_v51  ;;  %v5979_v59 = vmul.f32 0.3, %v5551_v3  ;;  %v6321_v6 = vmax.f32 %v5559_v16, %v5985_v49 }
 0x49e   : > { %v5258_v54 = vpop.f32.mrf.mxu1  ;;  %v5553_v27 = vpop.f32.mrf.mxu0  ;;  %v5097_v18 = vadd.f32 %v18405_v15, %v15796_v52 }
 0x49f   : > { %v5988_v39 = vmul.f32 0.3, %v5562_v5  ;;  %v5554_v40 = vadd.f32 %v5553_v27, %v5073_v24  ;;  %v6315_v51 = vmax.f32 %v5551_v3, %v5979_v59  ;;  %v5089_v24 = vadd.f32 %v18406_v63, %v15796_v52  ;;  %v18408_v59 = vld [vmem:[#allocation122_spill] sm:$0xff] }
 0x4a0   : > { %v15909_v46 = vpop.f32.mrf.mxu1  ;;  %v11420_v26 = vpop.f32.mrf.mxu0  ;;  %7005 = vmatmul.mubr.bf16.gmra.mxu0 %v18402_v36  ;;  %11531 = vmatmul.mubr.bf16.gmra.mxu1 %v15867_v12 }
 0x4a1   : > { %v6324_v0 = vmax.f32 %v5562_v5, %v5988_v39  ;;  %v5982_v2 = vmul.f32 0.3, %v5554_v40  ;;  %v5575_v23 = vadd.f32 %v11420_v26, %v5094_v41  ;;  %7012 = vmatprep.mubr.bf16.mxu0 %v18403_v56  ;;  %11534 = vmatprep.mubr.bf16.mxu1 %v6609_v30  ;;  %v18407_v41 = vld [vmem:[#allocation136_spill] sm:$0xff] }
 0x4a2   : > { %v5263_v57 = vpop.f32.mrf.mxu1  ;;  %v5566_v4 = vpop.f32.mrf.mxu0  ;;  %v5110_v39 = vadd.f32 %v18407_v41, %v15796_v52 }
 0x4a3   : > { %v15918_v62 = vpack.c.bf16 %v6324_v0, %v6321_v6  ;;  %v6318_v31 = vmax.f32 %v5554_v40, %v5982_v2  ;;  %v5567_v12 = vadd.f32 %v5566_v4, %v5086_v38  ;;  %v5997_v30 = vmul.f32 0.3, %v5575_v23  ;;  %v18409_v38 = vld [vmem:[#allocation12_spill] sm:$0xff]  ;;  %v18410_v57 = vld [vmem:[#allocation9_spill] sm:$0xff] }
 0x4a4   : > { %v15920_v16 = vpop.f32.mrf.mxu1  ;;  %v11421_v22 = vpop.f32.mrf.mxu0  ;;  %v5102_v4 = vadd.f32 %v18410_v57, %v15796_v52  ;;  %v18413_v57 = vld [vmem:[#allocation132_spill] sm:$0xff] }
 0x4a5   : > { %v5578_v49 = vadd.f32 %v11421_v22, %v5097_v18  ;;  %v6621_v27 = vpack.c.bf16 %v6318_v31, %v6315_v51  ;;  %v5991_v6 = vmul.f32 0.3, %v5567_v12  ;;  %v6333_v0 = vmax.f32 %v5575_v23, %v5997_v30  ;;  %v18411_v30 = vld [vmem:[#allocation14_spill] sm:$0xff] }
 0x4a6   : > { %v5266_v5 = vpop.f32.mrf.mxu1  ;;  %v5569_v54 = vpop.f32.mrf.mxu0  ;;  %v5113_v31 = vadd.f32 %v15547_v33, %v15796_v52 }
 0x4a7   : > { %v6000_v26 = vmul.f32 0.3, %v5578_v49  ;;  %v5570_v36 = vadd.f32 %v5569_v54, %v5089_v24  ;;  %v6327_v63 = vmax.f32 %v5567_v12, %v5991_v6  ;;  %v18412_v6 = vld [vmem:[#allocation11_spill] sm:$0xff] }
 0x4a8   : > { %v15926_v40 = vpop.f32.mrf.mxu1  ;;  %v11424_v3 = vpop.f32.mrf.mxu0  ;;  %7013 = vmatmul.mubr.bf16.gmra.mxu0 %v18408_v59  ;;  %11535 = vmatmul.mubr.bf16.gmra.mxu1 %v15884_v35 }
 0x4a9   : > { %v6336_v2 = vmax.f32 %v5578_v49, %v6000_v26  ;;  %v5994_v56 = vmul.f32 0.3, %v5570_v36  ;;  %v5591_v29 = vadd.f32 %v11424_v3, %v5110_v39  ;;  %7020 = vmatprep.mubr.bf16.mxu0 %v18409_v38  ;;  %11538 = vmatprep.mubr.bf16.mxu1 %v6615_v21  ;;  %v5105_v49 = vadd.f32 %v18411_v30, %v15796_v52 }
 0x4aa   : > { %v5271_v15 = vpop.f32.mrf.mxu1  ;;  %v5582_v18 = vpop.f32.mrf.mxu0  ;;  %v5126_v26 = vadd.f32 %v15577_v11, %v15796_v52 }
 0x4ab   : > { %v15935_v51 = vpack.c.bf16 %v6336_v2, %v6333_v0  ;;  %v6330_v22 = vmax.f32 %v5570_v36, %v5994_v56  ;;  %v5583_v35 = vadd.f32 %v5582_v18, %v5102_v4  ;;  %v6009_v21 = vmul.f32 0.3, %v5591_v29  ;;  %v18414_v4 = vld [vmem:[#allocation13_spill] sm:$0xff] }
 0x4ac   : > { %v15937_v23 = vpop.f32.mrf.mxu1  ;;  %v11425_v24 = vpop.f32.mrf.mxu0  ;;  %v5118_v11 = vadd.f32 %v18414_v4, %v15796_v52 }
 0x4ad   : > { %v5594_v5 = vadd.f32 %v11425_v24, %v5113_v31  ;;  %v6627_v39 = vpack.c.bf16 %v6330_v22, %v6327_v63  ;;  %v6003_v59 = vmul.f32 0.3, %v5583_v35  ;;  %v6345_v0 = vmax.f32 %v5591_v29, %v6009_v21 }
 0x4ae   : > { %v5274_v54 = vpop.f32.mrf.mxu1  ;;  %v5585_v41 = vpop.f32.mrf.mxu0  ;;  %v5129_v31 = vadd.f32 %v15587_v44, %v15796_v52 }
 0x4af   : > { %v6012_v33 = vmul.f32 0.3, %v5594_v5  ;;  %v5586_v3 = vadd.f32 %v5585_v41, %v5105_v49  ;;  %v6339_v24 = vmax.f32 %v5583_v35, %v6003_v59  ;;  %v5121_v49 = vadd.f32 %v15567_v32, %v15796_v52  ;;  %v18415_v59 = vld [vmem:[#allocation16_spill] sm:$0xff] }
 0x4b0   : > { %v15943_v36 = vpop.f32.mrf.mxu1  ;;  %v11428_v12 = vpop.f32.mrf.mxu0  ;;  %7021 = vmatmul.mubr.bf16.gmra.mxu0 %v18412_v6  ;;  %11539 = vmatmul.mubr.bf16.gmra.mxu1 %v15901_v42 }
 0x4b1   : > { %v6348_v2 = vmax.f32 %v5594_v5, %v6012_v33  ;;  %v6006_v56 = vmul.f32 0.3, %v5586_v3  ;;  %v5607_v38 = vadd.f32 %v11428_v12, %v5126_v26  ;;  %7028 = vmatprep.mubr.bf16.mxu0 %v18413_v57  ;;  %11542 = vmatprep.mubr.bf16.mxu1 %v6621_v27  ;;  %v5142_v26 = vadd.f32 %v15617_v58, %v15796_v52  ;;  %v18417_v57 = vld [vmem:[#allocation23_spill] sm:$0xff] }
 0x4b2   : > { %v5279_v15 = vpop.f32.mrf.mxu1  ;;  %v5598_v18 = vpop.f32.mrf.mxu0  ;;  %v5134_v58 = vadd.f32 %v18417_v57, %v15796_v52  ;;  %v18421_v57 = vld [vmem:[#allocation146_spill] sm:$0xff] }
 0x4b3   : > { %v15952_v22 = vpack.c.bf16 %v6348_v2, %v6345_v0  ;;  %v6342_v63 = vmax.f32 %v5586_v3, %v6006_v56  ;;  %v5599_v42 = vadd.f32 %v5598_v18, %v5118_v11  ;;  %v6021_v27 = vmul.f32 0.3, %v5607_v38  ;;  %v18416_v56 = vld [vmem:[#allocation137_spill] sm:$0xff] }
 0x4b4   : > { %v15954_v29 = vpop.f32.mrf.mxu1  ;;  %v11429_v30 = vpop.f32.mrf.mxu0  ;;  %v5145_v15 = vadd.f32 %v15627_v8, %v15796_v52 }
 0x4b5   : > { %v5610_v21 = vadd.f32 %v11429_v30, %v5129_v31  ;;  %v6633_v41 = vpack.c.bf16 %v6342_v63, %v6339_v24  ;;  %v6015_v12 = vmul.f32 0.3, %v5599_v42  ;;  %v6357_v6 = vmax.f32 %v5607_v38, %v6021_v27  ;;  %v18418_v30 = vld [vmem:[#allocation17_spill] sm:$0xff] }
 0x4b6   : > { %v5282_v5 = vpop.f32.mrf.mxu1  ;;  %v5601_v54 = vpop.f32.mrf.mxu0 }
 0x4b7   : > { %v6024_v44 = vmul.f32 0.3, %v5610_v21  ;;  %v5602_v33 = vadd.f32 %v5601_v54, %v5121_v49  ;;  %v6351_v63 = vmax.f32 %v5599_v42, %v6015_v12  ;;  %v5137_v49 = vadd.f32 %v18418_v30, %v15796_v52  ;;  %v18419_v12 = vld [vmem:[#allocation20_spill] sm:$0xff] }
 0x4b8   : > { %v15960_v3 = vpop.f32.mrf.mxu1  ;;  %v11432_v35 = vpop.f32.mrf.mxu0  ;;  %7029 = vmatmul.mubr.bf16.gmra.mxu0 %v18415_v59  ;;  %11543 = vmatmul.mubr.bf16.gmra.mxu1 %v15918_v62 }
 0x4b9   : > { %v6360_v32 = vmax.f32 %v5610_v21, %v6024_v44  ;;  %v6018_v0 = vmul.f32 0.3, %v5602_v33  ;;  %v5623_v2 = vadd.f32 %v11432_v35, %v5142_v26  ;;  %7036 = vmatprep.mubr.bf16.mxu0 %v18416_v56  ;;  %11546 = vmatprep.mubr.bf16.mxu1 %v6627_v39  ;;  %v5158_v26 = vadd.f32 %v15657_v17, %v15796_v52  ;;  %v18420_v56 = vld [vmem:[#allocation142_spill] sm:$0xff] }
 0x4ba   : > { %v5287_v4 = vpop.f32.mrf.mxu1  ;;  %v5614_v11 = vpop.f32.mrf.mxu0  ;;  %v5150_v17 = vadd.f32 %v18421_v57, %v15796_v52 }
 0x4bb   : > { %v15969_v18 = vpack.c.bf16 %v6360_v32, %v6357_v6  ;;  %v6354_v31 = vmax.f32 %v5602_v33, %v6018_v0  ;;  %v5615_v62 = vadd.f32 %v5614_v11, %v5134_v58  ;;  %v6033_v39 = vmul.f32 0.3, %v5623_v2  ;;  %v18422_v11 = vld [vmem:[#allocation26_spill] sm:$0xff] }
 0x4bc   : > { %v15971_v38 = vpop.f32.mrf.mxu1  ;;  %v11433_v24 = vpop.f32.mrf.mxu0 }
 0x4bd   : > { %v5626_v27 = vadd.f32 %v11433_v24, %v5145_v15  ;;  %v6639_v54 = vpack.c.bf16 %v6354_v31, %v6351_v63  ;;  %v6027_v35 = vmul.f32 0.3, %v5615_v62  ;;  %v6369_v59 = vmax.f32 %v5623_v2, %v6033_v39 }
 0x4be   : > { %v5290_v21 = vpop.f32.mrf.mxu1  ;;  %v5617_v5 = vpop.f32.mrf.mxu0  ;;  %v5161_v15 = vadd.f32 %v18422_v11, %v15796_v52 }
 0x4bf   : > { %v6036_v8 = vmul.f32 0.3, %v5626_v27  ;;  %v5618_v44 = vadd.f32 %v5617_v5, %v5137_v49  ;;  %v6363_v24 = vmax.f32 %v5615_v62, %v6027_v35  ;;  %v18423_v49 = vld [vmem:[#allocation148_spill] sm:$0xff] }
 0x4c0   : > { %v15977_v33 = vpop.f32.mrf.mxu1  ;;  %v11436_v42 = vpop.f32.mrf.mxu0  ;;  %7037 = vmatmul.mubr.bf16.gmra.mxu0 %v18419_v12  ;;  %11547 = vmatmul.mubr.bf16.gmra.mxu1 %v15935_v51  ;;  %v5153_v39 = vadd.f32 %v18423_v49, %v15796_v52  ;;  %v18424_v35 = vld [vmem:[#allocation24_spill] sm:$0xff] }
 0x4c1   : > { %v6372_v6 = vmax.f32 %v5626_v27, %v6036_v8  ;;  %v6030_v32 = vmul.f32 0.3, %v5618_v44  ;;  %v5639_v0 = vadd.f32 %v11436_v42, %v5158_v26  ;;  %7044 = vmatprep.mubr.bf16.mxu0 %v18420_v56  ;;  %11550 = vmatprep.mubr.bf16.mxu1 %v6633_v41  ;;  %v5174_v8 = vadd.f32 %v15697_v20, %v15796_v52 }
 0x4c2   : > { %v5295_v58 = vpop.f32.mrf.mxu1  ;;  %v5630_v4 = vpop.f32.mrf.mxu0 }
 0x4c3   : > { %v15986_v31 = vpack.c.bf16 %v6372_v6, %v6369_v59  ;;  %v6366_v63 = vmax.f32 %v5618_v44, %v6030_v32  ;;  %v5631_v51 = vadd.f32 %v5630_v4, %v5150_v17  ;;  %v6045_v41 = vmul.f32 0.3, %v5639_v0  ;;  %v18425_v17 = vld [vmem:[#allocation147_spill] sm:$0xff] }
 0x4c4   : > { %v15988_v2 = vpop.f32.mrf.mxu1  ;;  %v11437_v30 = vpop.f32.mrf.mxu0  ;;  %v18426_v58 = vld [vmem:[#allocation151_spill] sm:$0xff] }
 0x4c5   : > { %v5642_v27 = vadd.f32 %v11437_v30, %v5161_v15  ;;  %v6645_v26 = vpack.c.bf16 %v6366_v63, %v6363_v24  ;;  %v6039_v59 = vmul.f32 0.3, %v5631_v51  ;;  %v6381_v6 = vmax.f32 %v5639_v0, %v6045_v41  ;;  %v18427_v15 = vld [vmem:[#allocation152_spill] sm:$0xff]  ;;  %v18428_v41 = vld [vmem:[#allocation25_spill] sm:$0xff] }
 0x4c6   : > { %v5298_v21 = vpop.f32.mrf.mxu1  ;;  %v5633_v5 = vpop.f32.mrf.mxu0  ;;  %v5166_v20 = vadd.f32 %v18426_v58, %v15796_v52  ;;  %v5177_v63 = vadd.f32 %v18427_v15, %v15796_v52 }
 0x4c7   : > { %v6048_v42 = vmul.f32 0.3, %v5642_v27  ;;  %v5634_v12 = vadd.f32 %v5633_v5, %v5153_v39  ;;  %v6375_v49 = vmax.f32 %v5631_v51, %v6039_v59  ;;  %v18429_v59 = vld [vmem:[#allocation28_spill] sm:$0xff] }
 0x4c8   : > { %v15994_v44 = vpop.f32.mrf.mxu1  ;;  %v11440_v62 = vpop.f32.mrf.mxu0  ;;  %7045 = vmatmul.mubr.bf16.gmra.mxu0 %v18424_v35  ;;  %11551 = vmatmul.mubr.bf16.gmra.mxu1 %v15952_v22 }
 0x4c9   : > { %v6384_v32 = vmax.f32 %v5642_v27, %v6048_v42  ;;  %v6042_v56 = vmul.f32 0.3, %v5634_v12  ;;  %v5655_v57 = vadd.f32 %v11440_v62, %v5174_v8  ;;  %7052 = vmatprep.mubr.bf16.mxu0 %v18425_v17  ;;  %11554 = vmatprep.mubr.bf16.mxu1 %v6639_v54  ;;  %v5169_v27 = vadd.f32 %v18428_v41, %v15796_v52 }
 0x4ca   : > { %v5303_v4 = vpop.f32.mrf.mxu1  ;;  %v5646_v11 = vpop.f32.mrf.mxu0  ;;  %v5190_v62 = vadd.f32 %v15737_v50, %v15796_v52 }
 0x4cb   : > { %v16003_v24 = vpack.c.bf16 %v6384_v32, %v6381_v6  ;;  %v6378_v30 = vmax.f32 %v5634_v12, %v6042_v56  ;;  %v5647_v22 = vadd.f32 %v5646_v11, %v5166_v20  ;;  %v6057_v54 = vmul.f32 0.3, %v5655_v57  ;;  %v18430_v4 = vld [vmem:[#allocation32_spill] sm:$0xff]  ;;  %v18431_v11 = vld [vmem:[#allocation155_spill] sm:$0xff] }
 0x4cc   : > { %v16005_v0 = vpop.f32.mrf.mxu1  ;;  %v11441_v39 = vpop.f32.mrf.mxu0  ;;  %v5182_v50 = vadd.f32 %v18431_v11, %v15796_v52 }
 0x4cd   : > { %v5658_v21 = vadd.f32 %v11441_v39, %v5177_v63  ;;  %v6651_v42 = vpack.c.bf16 %v6378_v30, %v6375_v49  ;;  %v6051_v32 = vmul.f32 0.3, %v5647_v22  ;;  %v6393_v56 = vmax.f32 %v5655_v57, %v6057_v54  ;;  %v18432_v54 = vld [vmem:[#allocation29_spill] sm:$0xff] }
 0x4ce   : > { %v5306_v5 = vpop.f32.mrf.mxu1  ;;  %v5649_v8 = vpop.f32.mrf.mxu0  ;;  %v5193_v30 = vadd.f32 %v15747_v28, %v15796_v52 }
 0x4cf   : > { %v6060_v35 = vmul.f32 0.3, %v5658_v21  ;;  %v5650_v6 = vadd.f32 %v5649_v8, %v5169_v27  ;;  %v6387_v41 = vmax.f32 %v5647_v22, %v6051_v32  ;;  %v18433_v32 = vld [vmem:[#allocation31_spill] sm:$0xff] }
 0x4d0   : > { %v16011_v12 = vpop.f32.mrf.mxu1  ;;  %v11444_v51 = vpop.f32.mrf.mxu0  ;;  %7053 = vmatmul.mubr.bf16.gmra.mxu0 %v18429_v59  ;;  %11555 = vmatmul.mubr.bf16.gmra.mxu1 %v15969_v18 }
 0x4d1   : > { %v6396_v17 = vmax.f32 %v5658_v21, %v6060_v35  ;;  %v6054_v58 = vmul.f32 0.3, %v5650_v6  ;;  %v5671_v20 = vadd.f32 %v11444_v51, %v5190_v62  ;;  %7060 = vmatprep.mubr.bf16.mxu0 %v18430_v4  ;;  %11558 = vmatprep.mubr.bf16.mxu1 %v6645_v26  ;;  %v5185_v21 = vadd.f32 %v18432_v54, %v15796_v52 }
 0x4d2   : > { %v5311_v15 = vpop.f32.mrf.mxu1  ;;  %v5662_v63 = vpop.f32.mrf.mxu0  ;;  %v5206_v51 = vadd.f32 %v15777_v19, %v15796_v52 }
 0x4d3   : > { %v16020_v49 = vpack.c.bf16 %v6396_v17, %v6393_v56  ;;  %v6390_v39 = vmax.f32 %v5650_v6, %v6054_v58  ;;  %v5663_v18 = vadd.f32 %v5662_v63, %v5182_v50  ;;  %v6069_v26 = vmul.f32 0.3, %v5671_v20  ;;  %v18434_v50 = vld [vmem:[#allocation35_spill] sm:$0xff] }
 0x4d4   : > { %v16022_v57 = vpop.f32.mrf.mxu1  ;;  %v11445_v27 = vpop.f32.mrf.mxu0  ;;  %v18435_v15 = vld [vmem:[#allocation163_spill] sm:$0xff] }
 0x4d5   : > { %v5674_v5 = vadd.f32 %v11445_v27, %v5193_v30  ;;  %v6657_v35 = vpack.c.bf16 %v6390_v39, %v6387_v41  ;;  %v6063_v56 = vmul.f32 0.3, %v5663_v18  ;;  %v6405_v17 = vmax.f32 %v5671_v20, %v6069_v26  ;;  %v18436_v26 = vld [vmem:[#allocation164_spill] sm:$0xff] }
 0x4d6   : > { %v5314_v8 = vpop.f32.mrf.mxu1  ;;  %v5665_v62 = vpop.f32.mrf.mxu0  ;;  %v5198_v19 = vadd.f32 %v18435_v15, %v15796_v52  ;;  %v5209_v39 = vadd.f32 %v15787_v61, %v15796_v52 }
 0x4d7   : > { %v6072_v28 = vmul.f32 0.3, %v5674_v5  ;;  %v5666_v59 = vadd.f32 %v5665_v62, %v5185_v21  ;;  %v6399_v54 = vmax.f32 %v5663_v18, %v6063_v56  ;;  %v18437_v56 = vld [vmem:[#allocation157_spill] sm:$0xff] }
 0x4d8   : > { %v16028_v6 = vpop.f32.mrf.mxu1  ;;  %v11448_v22 = vpop.f32.mrf.mxu0  ;;  %7061 = vmatmul.mubr.bf16.gmra.mxu0 %v18433_v32  ;;  %11559 = vmatmul.mubr.bf16.gmra.mxu1 %v15986_v31 }
 0x4d9   : > { %v6408_v58 = vmax.f32 %v5674_v5, %v6072_v28  ;;  %v6066_v4 = vmul.f32 0.3, %v5666_v59  ;;  %v5687_v11 = vadd.f32 %v11448_v22, %v5206_v51  ;;  %7068 = vmatprep.mubr.bf16.mxu0 %v18434_v50  ;;  %11562 = vmatprep.mubr.bf16.mxu1 %v6651_v42  ;;  %v5201_v5 = vadd.f32 %v18436_v26, %v15796_v52 }
 0x4da   : > { %v5319_v63 = vpop.f32.mrf.mxu1  ;;  %v5678_v30 = vpop.f32.mrf.mxu0  ;;  %v5222_v22 = vadd.f32 %v15822_v37, %v15796_v52  ;;  %v5214_v37 = vadd.f32 %v15802_v10, %v15796_v52  ;;  %v12133_v10 = vld [vmem:[%s17379_s7 + $0x18] sm:$0xff]  }
 0x4db   : > { %v16037_v41 = vpack.c.bf16 %v6408_v58, %v6405_v17  ;;  %v6402_v27 = vmax.f32 %v5666_v59, %v6066_v4  ;;  %v5679_v31 = vadd.f32 %v5678_v30, %v5198_v19  ;;  %v6081_v42 = vmul.f32 0.3, %v5687_v11  ;;  %v18438_v19 = vld [vmem:[#allocation39_spill] sm:$0xff]  ;;  %11634 = vmatprep.subr.bf16.mxu1 %v12133_v10 }
 0x4dc   : > { %v16039_v20 = vpop.f32.mrf.mxu1  ;;  %v11449_v21 = vpop.f32.mrf.mxu0  ;;  %11635 = vmatpush3.bf16.msra.mxu1 %v12133_v10  ;;  %v5254_v10 = vadd.f32 %v15892_v55, %v15796_v52  ;;  %v5246_v55 = vadd.f32 %v15875_v14, %v15796_v52 }
 0x4dd   : > { %v5690_v8 = vadd.f32 %v11449_v21, %v5209_v39  ;;  %v6663_v28 = vpack.c.bf16 %v6402_v27, %v6399_v54  ;;  %v6075_v17 = vmul.f32 0.3, %v5679_v31  ;;  %v6417_v58 = vmax.f32 %v5687_v11, %v6081_v42 }
 0x4de   : > { %v5322_v62 = vpop.f32.mrf.mxu1  ;;  %v5681_v51 = vpop.f32.mrf.mxu0  ;;  %v5225_v39 = vadd.f32 %v15834_v1, %v15796_v52 }
 0x4df   : > { %v6084_v61 = vmul.f32 0.3, %v5690_v8  ;;  %v5682_v32 = vadd.f32 %v5681_v51, %v5201_v5  ;;  %v6411_v21 = vmax.f32 %v5679_v31, %v6075_v17  ;;  %v5217_v5 = vadd.f32 %v15814_v45, %v15796_v52  ;;  %v18439_v45 = vld [vmem:[#allocation159_spill] sm:$0xff] }
 0x4e0   : > { %v16045_v59 = vpop.f32.mrf.mxu1  ;;  %v11452_v18 = vpop.f32.mrf.mxu0  ;;  %7069 = vmatmul.mubr.bf16.gmra.mxu0 %v18437_v56  ;;  %11563 = vmatmul.mubr.bf16.gmra.mxu1 %v16003_v24  ;;  %v5238_v51 = vadd.f32 %v15858_v13, %v15796_v52  ;;  %v5230_v13 = vadd.f32 %v15840_v43, %v15796_v52 }
 0x4e1   : > { %v6420_v4 = vmax.f32 %v5690_v8, %v6084_v61  ;;  %v6078_v50 = vmul.f32 0.3, %v5682_v32  ;;  %v5703_v15 = vadd.f32 %v11452_v18, %v5222_v22  ;;  %7076 = vmatprep.mubr.bf16.mxu0 %v18438_v19  ;;  %11566 = vmatprep.mubr.bf16.mxu1 %v6657_v35 }
 0x4e2   : > { %v5327_v63 = vpop.f32.mrf.mxu1  ;;  %v5694_v30 = vpop.f32.mrf.mxu0 }
 0x4e3   : > { %v16054_v27 = vpack.c.bf16 %v6420_v4, %v6417_v58  ;;  %v6414_v54 = vmax.f32 %v5682_v32, %v6078_v50  ;;  %v5695_v24 = vadd.f32 %v5694_v30, %v5214_v37  ;;  %v6093_v35 = vmul.f32 0.3, %v5703_v15  ;;  %v18440_v50 = vld [vmem:[#allocation166_spill] sm:$0xff] }
 0x4e4   : > { %v16056_v11 = vpop.f32.mrf.mxu1  ;;  %v11453_v26 = vpop.f32.mrf.mxu0  ;;  %v5241_v63 = vadd.f32 %v15869_v34, %v15796_v52 }
 0x4e5   : > { %v5706_v42 = vadd.f32 %v11453_v26, %v5225_v39  ;;  %v6669_v1 = vpack.c.bf16 %v6414_v54, %v6411_v21  ;;  %v6087_v61 = vmul.f32 0.3, %v5695_v24  ;;  %v6429_v18 = vmax.f32 %v5703_v15, %v6093_v35 }
 0x4e6   : > { %v5330_v8 = vpop.f32.mrf.mxu1  ;;  %v5697_v62 = vpop.f32.mrf.mxu0 }
 0x4e7   : > { %v6096_v31 = vmul.f32 0.3, %v5706_v42  ;;  %v5698_v22 = vadd.f32 %v5697_v62, %v5217_v5 }
 0x4e8   : > { %v16065_v32 = vpop.f32.mrf.mxu1  ;;  %v11456_v17 = vpop.f32.mrf.mxu0  ;;  %7077 = vmatmul.mubr.bf16.gmra.mxu0 %v18439_v45  ;;  %11567 = vmatmul.mubr.bf16.gmra.mxu1 %v16020_v49  ;;  %v6423_v49 = vmax.f32 %v5695_v24, %v6087_v61  ;;  %v18442_v45 = vld [vmem:[#allocation174_spill] sm:$0xff] }
 0x4e9   : > { %v6432_v56 = vmax.f32 %v5706_v42, %v6096_v31  ;;  %v6090_v58 = vmul.f32 0.3, %v5698_v22  ;;  %v5719_v4 = vadd.f32 %v11456_v17, %v5238_v51  ;;  %7084 = vmatprep.mubr.bf16.mxu0 %v18440_v50  ;;  %11570 = vmatprep.mubr.bf16.mxu1 %v6663_v28  ;;  %v5233_v28 = vadd.f32 %v15852_v9, %v15796_v52  ;;  %v18441_v31 = vld [vmem:[#allocation44_spill] sm:$0xff] }
 0x4ea   : > { %v5335_v19 = vpop.f32.mrf.mxu1  ;;  %v5710_v37 = vpop.f32.mrf.mxu0 }
 0x4eb   : > { %v16074_v30 = vpack.c.bf16 %v6432_v56, %v6429_v18  ;;  %v6426_v39 = vmax.f32 %v5698_v22, %v6090_v58  ;;  %v5711_v15 = vadd.f32 %v5710_v37, %v5230_v13  ;;  %v6105_v26 = vmul.f32 0.3, %v5719_v4 }
 0x4ec   : > { %v16076_v54 = vpop.f32.mrf.mxu1  ;;  %v11457_v21 = vpop.f32.mrf.mxu0  ;;  %v5257_v58 = vadd.f32 %v15903_v48, %v15796_v52 }
 0x4ed   : > { %v5722_v5 = vadd.f32 %v11457_v21, %v5241_v63  ;;  %v6675_v42 = vpack.c.bf16 %v6426_v39, %v6423_v49  ;;  %v6099_v62 = vmul.f32 0.3, %v5711_v15  ;;  %v6441_v22 = vmax.f32 %v5719_v4, %v6105_v26 }
 0x4ee   : > { %v5338_v43 = vpop.f32.mrf.mxu1  ;;  %v5713_v35 = vpop.f32.mrf.mxu0  ;;  %v5249_v63 = vadd.f32 %v15886_v53, %v15796_v52 }
 0x4ef   : > { %v6108_v34 = vmul.f32 0.3, %v5722_v5  ;;  %v5714_v8 = vadd.f32 %v5713_v35, %v5233_v28  ;;  %v6435_v19 = vmax.f32 %v5711_v15, %v6099_v62  ;;  %v5270_v28 = vadd.f32 %v15926_v40, %v15796_v52  ;;  %v18443_v35 = vld [vmem:[#allocation170_spill] sm:$0xff]  ;;  %v18444_v62 = vld [vmem:[#allocation180_spill] sm:$0xff] }
 0x4f0   : > { %v16082_v51 = vpop.f32.mrf.mxu1  ;;  %v11460_v24 = vpop.f32.mrf.mxu0  ;;  %7085 = vmatmul.mubr.bf16.gmra.mxu0 %v18441_v31  ;;  %11571 = vmatmul.mubr.bf16.gmra.mxu1 %v16037_v41  ;;  %v5262_v40 = vadd.f32 %v15909_v46, %v15796_v52 }
 0x4f1   : > { %v6444_v9 = vmax.f32 %v5722_v5, %v6108_v34  ;;  %v6102_v61 = vmul.f32 0.3, %v5714_v8  ;;  %v5735_v17 = vadd.f32 %v11460_v24, %v5254_v10  ;;  %7092 = vmatprep.mubr.bf16.mxu0 %v18442_v45  ;;  %11574 = vmatprep.mubr.bf16.mxu1 %v6669_v1 }
 0x4f2   : > { %v5343_v18 = vpop.f32.mrf.mxu1  ;;  %v5726_v56 = vpop.f32.mrf.mxu0 }
 0x4f3   : > { %v16091_v50 = vpack.c.bf16 %v6444_v9, %v6441_v22  ;;  %v6438_v13 = vmax.f32 %v5714_v8, %v6102_v61  ;;  %v5727_v41 = vadd.f32 %v5726_v56, %v5246_v55  ;;  %v6117_v1 = vmul.f32 0.3, %v5735_v17 }
 0x4f4   : > { %v16093_v4 = vpop.f32.mrf.mxu1  ;;  %v11461_v37 = vpop.f32.mrf.mxu0  ;;  %v5273_v22 = vadd.f32 %v15937_v23, %v15796_v52  ;;  %v5265_v18 = vadd.f32 %v15920_v16, %v15796_v52 }
 0x4f5   : > { %v5738_v39 = vadd.f32 %v11461_v37, %v5257_v58  ;;  %v6681_v21 = vpack.c.bf16 %v6438_v13, %v6435_v19  ;;  %v6111_v5 = vmul.f32 0.3, %v5727_v41  ;;  %v6453_v10 = vmax.f32 %v5735_v17, %v6117_v1 }
 0x4f6   : > { %v5346_v49 = vpop.f32.mrf.mxu1  ;;  %v5729_v14 = vpop.f32.mrf.mxu0  ;;  %v5286_v19 = vadd.f32 %v15960_v3, %v15796_v52  ;;  %v5278_v3 = vadd.f32 %v15943_v36, %v15796_v52 }
 0x4f7   : > { %v6120_v48 = vmul.f32 0.3, %v5738_v39  ;;  %v5730_v26 = vadd.f32 %v5729_v14, %v5249_v63  ;;  %v6447_v45 = vmax.f32 %v5727_v41, %v6111_v5 }
 0x4f8   : > { %v16099_v43 = vpop.f32.mrf.mxu1  ;;  %v11464_v15 = vpop.f32.mrf.mxu0  ;;  %7093 = vmatmul.mubr.bf16.gmra.mxu0 %v18443_v35  ;;  %11575 = vmatmul.mubr.bf16.gmra.mxu1 %v16054_v27 }
 0x4f9   : > { %v6456_v53 = vmax.f32 %v5738_v39, %v6120_v48  ;;  %v6114_v34 = vmul.f32 0.3, %v5730_v26  ;;  %v5751_v8 = vadd.f32 %v11464_v15, %v5270_v28  ;;  %7100 = vmatprep.mubr.bf16.mxu0 %v18444_v62  ;;  %11578 = vmatprep.mubr.bf16.mxu1 %v6675_v42  ;;  %v18445_v39 = vld [vmem:[#allocation176_spill] sm:$0xff]  ;;  %v5289_v15 = vadd.f32 %v15971_v38, %v15796_v52 }
 0x4fa   : > { %v5351_v24 = vpop.f32.mrf.mxu1  ;;  %v5742_v31 = vpop.f32.mrf.mxu0  ;;  %v18446_v48 = vld [vmem:[#allocation184_spill] sm:$0xff]  ;;  %v5281_v62 = vadd.f32 %v15954_v29, %v15796_v52 }
 0x4fb   : > { %v16108_v9 = vpack.c.bf16 %v6456_v53, %v6453_v10  ;;  %v6450_v61 = vmax.f32 %v5730_v26, %v6114_v34  ;;  %v5743_v27 = vadd.f32 %v5742_v31, %v5262_v40  ;;  %v6129_v42 = vmul.f32 0.3, %v5751_v8 }
 0x4fc   : > { %v16110_v17 = vpop.f32.mrf.mxu1  ;;  %v11465_v55 = vpop.f32.mrf.mxu0 }
 0x4fd   : > { %v5754_v56 = vadd.f32 %v11465_v55, %v5273_v22  ;;  %v6687_v13 = vpack.c.bf16 %v6450_v61, %v6447_v45  ;;  %v6123_v63 = vmul.f32 0.3, %v5743_v27  ;;  %v6465_v49 = vmax.f32 %v5751_v8, %v6129_v42 }
 0x4fe   : > { %v5354_v58 = vpop.f32.mrf.mxu1  ;;  %v5745_v46 = vpop.f32.mrf.mxu0  ;;  %v5302_v22 = vadd.f32 %v15994_v44, %v15796_v52  ;;  %v5294_v44 = vadd.f32 %v15977_v33, %v15796_v52 }
 0x4ff   : > { %v6132_v23 = vmul.f32 0.3, %v5754_v56  ;;  %v5746_v37 = vadd.f32 %v5745_v46, %v5265_v18  ;;  %v6459_v53 = vmax.f32 %v5743_v27, %v6123_v63  ;;  %v18447_v18 = vld [vmem:[#allocation182_spill] sm:$0xff]  ;;  %v18448_v46 = vld [vmem:[#allocation187_spill] sm:$0xff] }
 0x500   : > { %v16116_v1 = vpop.f32.mrf.mxu1  ;;  %v11468_v41 = vpop.f32.mrf.mxu0  ;;  %7101 = vmatmul.mubr.bf16.gmra.mxu0 %v18445_v39  ;;  %11579 = vmatmul.mubr.bf16.gmra.mxu1 %v16074_v30 }
 0x501   : > { %v6468_v16 = vmax.f32 %v5754_v56, %v6132_v23  ;;  %v6126_v14 = vmul.f32 0.3, %v5746_v37  ;;  %v5767_v28 = vadd.f32 %v11468_v41, %v5286_v19  ;;  %7108 = vmatprep.mubr.bf16.mxu0 %v18446_v48  ;;  %11582 = vmatprep.mubr.bf16.mxu1 %v6681_v21 }
 0x502   : > { %v5359_v26 = vpop.f32.mrf.mxu1  ;;  %v5758_v5 = vpop.f32.mrf.mxu0 }
 0x503   : > { %v16125_v35 = vpack.c.bf16 %v6468_v16, %v6465_v49  ;;  %v6462_v10 = vmax.f32 %v5746_v37, %v6126_v14  ;;  %v5759_v30 = vadd.f32 %v5758_v5, %v5278_v3  ;;  %v6141_v21 = vmul.f32 0.3, %v5767_v28 }
 0x504   : > { %v16127_v34 = vpop.f32.mrf.mxu1  ;;  %v11469_v8 = vpop.f32.mrf.mxu0  ;;  %v5305_v37 = vadd.f32 %v16005_v0, %v15796_v52  ;;  %v5297_v14 = vadd.f32 %v15988_v2, %v15796_v52  ;;  %v5318_v26 = vadd.f32 %v16028_v6, %v15796_v52  ;;  %v5310_v6 = vadd.f32 %v16011_v12, %v15796_v52 }
 0x505   : > { %v5770_v40 = vadd.f32 %v11469_v8, %v5289_v15  ;;  %v6693_v31 = vpack.c.bf16 %v6462_v10, %v6459_v53  ;;  %v6135_v45 = vmul.f32 0.3, %v5759_v30  ;;  %v6477_v42 = vmax.f32 %v5767_v28, %v6141_v21 }
 0x506   : > { %v5362_v24 = vpop.f32.mrf.mxu1  ;;  %v5761_v36 = vpop.f32.mrf.mxu0 }
 0x507   : > { %v6144_v38 = vmul.f32 0.3, %v5770_v40  ;;  %v5762_v61 = vadd.f32 %v5761_v36, %v5281_v62  ;;  %v6471_v39 = vmax.f32 %v5759_v30, %v6135_v45  ;;  %v18449_v30 = vld [vmem:[#allocation60_spill] sm:$0xff] }
 0x508   : > { %v16133_v55 = vpop.f32.mrf.mxu1  ;;  %v11472_v27 = vpop.f32.mrf.mxu0  ;;  %7109 = vmatmul.mubr.bf16.gmra.mxu0 %v18447_v18  ;;  %11583 = vmatmul.mubr.bf16.gmra.mxu1 %v16091_v50 }
 0x509   : > { %v6480_v29 = vmax.f32 %v5770_v40, %v6144_v38  ;;  %v6138_v56 = vmul.f32 0.3, %v5762_v61  ;;  %v5783_v58 = vadd.f32 %v11472_v27, %v5302_v22  ;;  %7116 = vmatprep.mubr.bf16.mxu0 %v18448_v46  ;;  %11586 = vmatprep.mubr.bf16.mxu1 %v6687_v13  ;;  %v18450_v40 = vld [vmem:[#allocation64_spill] sm:$0xff]  ;;  %v5321_v22 = vadd.f32 %v16039_v20, %v15796_v52 }
 0x50a   : > { %v5367_v19 = vpop.f32.mrf.mxu1  ;;  %v5774_v23 = vpop.f32.mrf.mxu0  ;;  %v5334_v46 = vadd.f32 %v16065_v32, %v15796_v52  ;;  %v5326_v32 = vadd.f32 %v16045_v59, %v15796_v52 }
 0x50b   : > { %v16142_v63 = vpack.c.bf16 %v6480_v29, %v6477_v42  ;;  %v6474_v41 = vmax.f32 %v5762_v61, %v6138_v56  ;;  %v5775_v50 = vadd.f32 %v5774_v23, %v5294_v44  ;;  %v6153_v13 = vmul.f32 0.3, %v5783_v58 }
 0x50c   : > { %v16144_v49 = vpop.f32.mrf.mxu1  ;;  %v11473_v16 = vpop.f32.mrf.mxu0  ;;  %v5313_v42 = vadd.f32 %v16022_v57, %v15796_v52 }
 0x50d   : > { %v5786_v28 = vadd.f32 %v11473_v16, %v5305_v37  ;;  %v6699_v3 = vpack.c.bf16 %v6474_v41, %v6471_v39  ;;  %v6147_v15 = vmul.f32 0.3, %v5775_v50  ;;  %v6489_v8 = vmax.f32 %v5783_v58, %v6153_v13  ;;  %v18451_v41 = vld [vmem:[#allocation63_spill] sm:$0xff] }
 0x50e   : > { %v5370_v48 = vpop.f32.mrf.mxu1  ;;  %v5777_v33 = vpop.f32.mrf.mxu0 }
 0x50f   : > { %v6156_v0 = vmul.f32 0.3, %v5786_v28  ;;  %v5778_v5 = vadd.f32 %v5777_v33, %v5297_v14  ;;  %v6483_v45 = vmax.f32 %v5775_v50, %v6147_v15  ;;  %v18452_v14 = vld [vmem:[#allocation197_spill] sm:$0xff]  ;;  %v5337_v48 = vadd.f32 %v16076_v54, %v15796_v52 }
 0x510   : > { %v16150_v10 = vpop.f32.mrf.mxu1  ;;  %v11476_v53 = vpop.f32.mrf.mxu0  ;;  %7117 = vmatmul.mubr.bf16.gmra.mxu0 %v18449_v30  ;;  %11587 = vmatmul.mubr.bf16.gmra.mxu1 %v16108_v9 }
 0x511   : > { %v6492_v2 = vmax.f32 %v5786_v28, %v6156_v0  ;;  %v6150_v62 = vmul.f32 0.3, %v5778_v5  ;;  %v5799_v21 = vadd.f32 %v11476_v53, %v5318_v26  ;;  %7124 = vmatprep.mubr.bf16.mxu0 %v18450_v40  ;;  %11590 = vmatprep.mubr.bf16.mxu1 %v6693_v31  ;;  %v5329_v53 = vadd.f32 %v16056_v11, %v15796_v52 }
 0x512   : > { %v5375_v24 = vpop.f32.mrf.mxu1  ;;  %v5790_v36 = vpop.f32.mrf.mxu0 }
 0x513   : > { %v16159_v38 = vpack.c.bf16 %v6492_v2, %v6489_v8  ;;  %v6486_v61 = vmax.f32 %v5778_v5, %v6150_v62  ;;  %v5791_v9 = vadd.f32 %v5790_v36, %v5310_v6  ;;  %v6165_v31 = vmul.f32 0.3, %v5799_v21  ;;  %v18453_v24 = vld [vmem:[#allocation67_spill] sm:$0xff] }
 0x514   : > { %v16161_v27 = vpop.f32.mrf.mxu1  ;;  %v11477_v18 = vpop.f32.mrf.mxu0 }
 0x515   : > { %v5802_v29 = vadd.f32 %v11477_v18, %v5321_v22  ;;  %v6705_v58 = vpack.c.bf16 %v6486_v61, %v6483_v45  ;;  %v6159_v19 = vmul.f32 0.3, %v5791_v9  ;;  %v6501_v39 = vmax.f32 %v5799_v21, %v6165_v31  ;;  %v18454_v45 = vld [vmem:[#allocation202_spill] sm:$0xff]  ;;  %v12134_v18 = vld [vmem:[%s17379_s7 + $0x10] sm:$0xff]  }
 0x516   : > { %v5378_v56 = vpop.f32.mrf.mxu1  ;;  %v5793_v12 = vpop.f32.mrf.mxu0  ;;  %11636 = vmatprep.subr.bf16.mxu1 %v12134_v18 }
 0x517   : > { %v6168_v20 = vmul.f32 0.3, %v5802_v29  ;;  %v5794_v44 = vadd.f32 %v5793_v12, %v5313_v42  ;;  %v6495_v0 = vmax.f32 %v5791_v9, %v6159_v19  ;;  %11637 = vmatpush3.bf16.msra.mxu1 %v12134_v18  ;;  %v18455_v19 = vld [vmem:[#allocation72_spill] sm:$0xff] }
 0x518   : > { %v16167_v23 = vpop.f32.mrf.mxu1  ;;  %v11480_v37 = vpop.f32.mrf.mxu0  ;;  %7125 = vmatmul.mubr.bf16.gmra.mxu0 %v18451_v41  ;;  %11591 = vmatmul.mubr.bf16.gmra.mxu1 %v16125_v35  ;;  %v18456_v41 = vld [vmem:[#allocation207_spill] sm:$0xff] }
 0x519   : > { %v6504_v57 = vmax.f32 %v5802_v29, %v6168_v20  ;;  %v6162_v50 = vmul.f32 0.3, %v5794_v44  ;;  %v5815_v16 = vadd.f32 %v11480_v37, %v5334_v46  ;;  %7132 = vmatprep.mubr.bf16.mxu0 %v18452_v14  ;;  %11594 = vmatprep.mubr.bf16.mxu1 %v6699_v3  ;;  %v5345_v37 = vadd.f32 %v16093_v4, %v15796_v52 }
 0x51a   : > { %v5383_v13 = vpop.f32.mrf.mxu1  ;;  %v5806_v28 = vpop.f32.mrf.mxu0 }
 0x51b   : > { %v6714_v33 = vpack.c.bf16 %v6504_v57, %v6501_v39  ;;  %v6498_v26 = vmax.f32 %v5794_v44, %v6162_v50  ;;  %v5807_v5 = vadd.f32 %v5806_v28, %v5326_v32  ;;  %v6177_v30 = vmul.f32 0.3, %v5815_v16 }
 0x51c   : > { %v16176_v35 = vpop.f32.mrf.mxu1  ;;  %v11481_v15 = vpop.f32.mrf.mxu0  ;;  %v5342_v50 = vadd.f32 %v16082_v51, %v15796_v52  ;;  %v5361_v51 = vadd.f32 %v16127_v34, %v15796_v52 }
 0x51d   : > { %v5818_v3 = vadd.f32 %v11481_v15, %v5337_v48  ;;  %v6711_v59 = vpack.c.bf16 %v6498_v26, %v6495_v0  ;;  %v6171_v40 = vmul.f32 0.3, %v5807_v5  ;;  %v6513_v36 = vmax.f32 %v5815_v16, %v6177_v30 }
 0x51e   : > { %v5386_v8 = vpop.f32.mrf.mxu1  ;;  %v5809_v2 = vpop.f32.mrf.mxu0  ;;  %v5350_v30 = vadd.f32 %v16099_v43, %v15796_v52  ;;  %v5369_v43 = vadd.f32 %v16144_v49, %v15796_v52 }
 0x51f   : > { %v6180_v62 = vmul.f32 0.3, %v5818_v3  ;;  %v5810_v21 = vadd.f32 %v5809_v2, %v5329_v53  ;;  %v6507_v29 = vmax.f32 %v5807_v5, %v6171_v40  ;;  %v18457_v5 = vld [vmem:[#allocation76_spill] sm:$0xff]  ;;  %v18458_v53 = vld [vmem:[#allocation214_spill] sm:$0xff]  ;;  %v5358_v2 = vadd.f32 %v16116_v1, %v15796_v52 }
 0x520   : > { %v16180_v6 = vpop.f32.mrf.mxu1  ;;  %v11484_v54 = vpop.f32.mrf.mxu0  ;;  %7133 = vmatmul.mubr.bf16.gmra.mxu0 %v18453_v24  ;;  %11595 = vmatmul.mubr.bf16.gmra.mxu1 %v16142_v63 }
 0x521   : > { %v6516_v22 = vmax.f32 %v5818_v3, %v6180_v62  ;;  %v6174_v61 = vmul.f32 0.3, %v5810_v21  ;;  %7140 = vmatprep.mubr.bf16.mxu0 %v18454_v45  ;;  %11598 = vmatprep.mubr.bf16.mxu1 %v6705_v58 }
 0x522   : > { %v5391_v11 = vpop.f32.mrf.mxu1  ;;  %v5822_v9 = vpop.f32.mrf.mxu0 }
 0x523   : > { %v6720_v42 = vpack.c.bf16 %v6516_v22, %v6513_v36  ;;  %v6510_v31 = vmax.f32 %v5810_v21, %v6174_v61  ;;  %v5823_v13 = vadd.f32 %v5822_v9, %v5342_v50  ;;  %v5831_v21 = vadd.f32 %v11484_v54, %v5350_v30 }
 0x524   : > { %v16188_v56 = vpop.f32.mrf.mxu1  ;;  %v11485_v12 = vpop.f32.mrf.mxu0  ;;  %v5377_v54 = vadd.f32 %v16161_v27, %v15796_v52 }
 0x525   : > { %v6717_v20 = vpack.c.bf16 %v6510_v31, %v6507_v29  ;;  %v6183_v15 = vmul.f32 0.3, %v5823_v13  ;;  %v6189_v9 = vmul.f32 0.3, %v5831_v21  ;;  %v18459_v31 = vld [vmem:[#allocation80_spill] sm:$0xff] }
 0x526   : > { %v5394_v63 = vpop.f32.mrf.mxu1  ;;  %v5825_v46 = vpop.f32.mrf.mxu0 }
 0x527   : > { %v5826_v16 = vadd.f32 %v5825_v46, %v5345_v37  ;;  %v6519_v34 = vmax.f32 %v5823_v13, %v6183_v15  ;;  %v5366_v63 = vadd.f32 %v16133_v55, %v15796_v52  ;;  %v5374_v37 = vadd.f32 %v16150_v10, %v15796_v52 }
 0x528   : > { %v16190_v44 = vpop.f32.mrf.mxu1  ;;  %v11488_v58 = vpop.f32.mrf.mxu0  ;;  %7141 = vmatmul.mubr.bf16.gmra.mxu0 %v18455_v19  ;;  %11599 = vmatmul.mubr.bf16.gmra.mxu1 %v16159_v38  ;;  %v5353_v38 = vadd.f32 %v16110_v17, %v15796_v52 }
 0x529   : > { %7148 = vmatprep.mubr.bf16.mxu0 %v18456_v41  ;;  %11602 = vmatprep.mubr.bf16.mxu1 %v6711_v59  ;;  %v6186_v26 = vmul.f32 0.3, %v5826_v16 }
 0x52a   : > { %v5399_v39 = vpop.f32.mrf.mxu1  ;;  %v5838_v57 = vpop.f32.mrf.mxu0  ;;  %v5834_v3 = vadd.f32 %v11485_v12, %v5353_v38  ;;  %v18460_v12 = vld [vmem:[#allocation219_spill] sm:$0xff] }
 0x52b   : > { %v6522_v59 = vmax.f32 %v5826_v16, %v6186_v26  ;;  %v5839_v24 = vadd.f32 %v5838_v57, %v5358_v2  ;;  %v5847_v57 = vadd.f32 %v11488_v58, %v5366_v63  ;;  %v18461_v58 = vld [vmem:[#allocation217_spill] sm:$0xff]  ;;  %v18463_v63 = vld [vmem:[#allocation222_spill] sm:$0xff] }
 0x52c   : > { %v16199_v14 = vpop.f32.mrf.mxu1  ;;  %v11489_v32 = vpop.f32.mrf.mxu0  ;;  %v6192_v36 = vmul.f32 0.3, %v5834_v3 }
 0x52d   : > { %v6723_v11 = vpack.c.bf16 %v6522_v59, %v6519_v34  ;;  %v6195_v29 = vmul.f32 0.3, %v5839_v24  ;;  %v5850_v49 = vadd.f32 %v11489_v32, %v5369_v43 }
 0x52e   : > { %v5402_v28 = vpop.f32.mrf.mxu1  ;;  %v5841_v48 = vpop.f32.mrf.mxu0  ;;  %v6528_v46 = vmax.f32 %v5834_v3, %v6192_v36  ;;  %v18462_v3 = vld [vmem:[#allocation225_spill] sm:$0xff] }
 0x52f   : > { %v5842_v62 = vadd.f32 %v5841_v48, %v5361_v51  ;;  %v6531_v16 = vmax.f32 %v5839_v24, %v6195_v29  ;;  %v6204_v48 = vmul.f32 0.3, %v5850_v49  ;;  %v6201_v51 = vmul.f32 0.3, %v5847_v57 }
 0x530   : > { %v16203_v4 = vpop.f32.mrf.mxu1  ;;  %v16205_v0 = vpop.f32.mrf.mxu0  ;;  %7149 = vmatmul.mubr.bf16.gmra.mxu0 %v18457_v5  ;;  %11603 = vmatmul.mubr.bf16.gmra.mxu1 %v6714_v33  ;;  %v5385_v5 = vadd.f32 %v16176_v35, %v15796_v52 }
 0x531   : > { %7156 = vmatprep.mubr.bf16.mxu0 %v18458_v53  ;;  %11606 = vmatprep.mubr.bf16.mxu1 %v6717_v20  ;;  %v6198_v45 = vmul.f32 0.3, %v5842_v62  ;;  %v5393_v53 = vadd.f32 %v16188_v56, %v15796_v52  ;;  %v6537_v24 = vmax.f32 %v5847_v57, %v6201_v51 }
 0x532   : > { %v5407_v8 = vpop.f32.mrf.mxu1  ;;  %v5854_v17 = vpop.f32.mrf.mxu0 }
 0x533   : > { %v6534_v41 = vmax.f32 %v5842_v62, %v6198_v45  ;;  %v5855_v13 = vadd.f32 %v5854_v17, %v5374_v37  ;;  %v5382_v8 = vadd.f32 %v16167_v23, %v15796_v52  ;;  %v6540_v17 = vmax.f32 %v5850_v49, %v6204_v48  ;;  %v18464_v49 = vld [vmem:[#allocation230_spill] sm:$0xff] }
 0x534   : > { %v16215_v33 = vpop.f32.mrf.mxu1  ;;  %v11493_v40 = vpop.f32.mrf.mxu0  ;;  %v5390_v62 = vadd.f32 %v16180_v6, %v15796_v52 }
 0x535   : > { %v6729_v32 = vpack.c.bf16 %v6534_v41, %v6531_v16  ;;  %v6207_v30 = vmul.f32 0.3, %v5855_v13  ;;  %v5866_v35 = vadd.f32 %v11493_v40, %v5385_v5  ;;  %v5863_v36 = vadd.f32 %v16205_v0, %v5382_v8 }
 0x536   : > { %v5410_v22 = vpop.f32.mrf.mxu1  ;;  %v5857_v61 = vpop.f32.mrf.mxu0  ;;  %v5409_v0 = vadd.f32 %v16215_v33, %v15796_v52 }
 0x537   : > { %v5858_v39 = vadd.f32 %v5857_v61, %v5377_v54  ;;  %v6543_v61 = vmax.f32 %v5855_v13, %v6207_v30  ;;  %v6216_v43 = vmul.f32 0.3, %v5866_v35  ;;  %v5401_v54 = vadd.f32 %v16199_v14, %v15796_v52 }
 0x538   : > { %v16219_v18 = vpop.f32.mrf.mxu1  ;;  %v16221_v1 = vpop.f32.mrf.mxu0  ;;  %7157 = vmatmul.mubr.bf16.gmra.mxu0 %v18459_v31  ;;  %11607 = vmatmul.mubr.bf16.gmra.mxu1 %v6720_v42  ;;  %v6525_v42 = vmax.f32 %v5831_v21, %v6189_v9  ;;  %v6213_v29 = vmul.f32 0.3, %v5863_v36 }
 0x539   : > { %7164 = vmatprep.mubr.bf16.mxu0 %v18460_v12  ;;  %11610 = vmatprep.mubr.bf16.mxu1 %v6723_v11  ;;  %v6210_v38 = vmul.f32 0.3, %v5858_v39  ;;  %v6732_v11 = vpack.c.bf16 %v6540_v17, %v6537_v24 }
 0x53a   : > { %v5415_v20 = vpop.f32.mrf.mxu1  ;;  %v5870_v19 = vpop.f32.mrf.mxu0  ;;  %v6726_v28 = vpack.c.bf16 %v6528_v46, %v6525_v42  ;;  %v6549_v16 = vmax.f32 %v5863_v36, %v6213_v29 }
 0x53b   : > { %v6546_v21 = vmax.f32 %v5858_v39, %v6210_v38  ;;  %v5871_v45 = vadd.f32 %v5870_v19, %v5390_v62  ;;  %v5398_v20 = vadd.f32 %v16190_v44, %v15796_v52  ;;  %v6552_v19 = vmax.f32 %v5866_v35, %v6216_v43  ;;  %v18466_v35 = vld [vmem:[#allocation234_spill] sm:$0xff] }
 0x53c   : > { %v16231_v50 = vpop.f32.mrf.mxu1  ;;  %v11497_v27 = vpop.f32.mrf.mxu0  ;;  %v5406_v39 = vadd.f32 %v16203_v4, %v15796_v52 }
 0x53d   : > { %v6735_v40 = vpack.c.bf16 %v6546_v21, %v6543_v61  ;;  %v6219_v46 = vmul.f32 0.3, %v5871_v45  ;;  %v5882_v14 = vadd.f32 %v11497_v27, %v5401_v54  ;;  %v5879_v13 = vadd.f32 %v16221_v1, %v5398_v20  ;;  %v16266_v27 = vld [vmem:[%s17378_s6] ss:$0 sm:$0xff] }
 0x53e   : > { %v5418_v26 = vpop.f32.mrf.mxu1  ;;  %v5873_v55 = vpop.f32.mrf.mxu0 }
 0x53f   : > { %v5874_v34 = vadd.f32 %v5873_v55, %v5393_v53  ;;  %v6555_v48 = vmax.f32 %v5871_v45, %v6219_v46  ;;  %v6738_v55 = vpack.c.bf16 %v6552_v19, %v6549_v16  ;;  %v6228_v38 = vmul.f32 0.3, %v5882_v14  ;;  %v18465_v53 = vld [vmem:[#allocation228_spill] sm:$0xff] }
 0x540   : > { %v16235_v10 = vpop.f32.mrf.mxu1  ;;  %v16237_v15 = vpop.f32.mrf.mxu0  ;;  %7165 = vmatmul.mubr.bf16.gmra.mxu0 %v18461_v58  ;;  %11611 = vmatmul.mubr.bf16.gmra.mxu1 %v6726_v28  ;;  %v6225_v51 = vmul.f32 0.3, %v5879_v13  ;;  %v5417_v58 = vadd.f32 %v16231_v50, %v15796_v52 }
 0x541   : > { %7172 = vmatprep.mubr.bf16.mxu0 %v18462_v3  ;;  %11614 = vmatprep.mubr.bf16.mxu1 %v6729_v32  ;;  %v6222_v31 = vmul.f32 0.3, %v5874_v34 }
 0x542   : > { %v5423_v2 = vpop.f32.mrf.mxu1  ;;  %v5886_v59 = vpop.f32.mrf.mxu0  ;;  %v6561_v45 = vmax.f32 %v5879_v13, %v6225_v51 }
 0x543   : > { %v6558_v42 = vmax.f32 %v5874_v34, %v6222_v31  ;;  %v5887_v26 = vadd.f32 %v5886_v59, %v5406_v39  ;;  %v5414_v2 = vadd.f32 %v16219_v18, %v15796_v52  ;;  %v6564_v59 = vmax.f32 %v5882_v14, %v6228_v38  ;;  %v18467_v14 = vld [vmem:[#allocation233_spill] sm:$0xff] }
 0x544   : > { %v5424_v56 = vpop.f32.mrf.mxu1  ;;  %v11501_v22 = vpop.f32.mrf.mxu0  ;;  %v5422_v34 = vadd.f32 %v16235_v10, %v15796_v52  ;;  %v16284_v10 = vld [vmem:[%s17379_s7 + $0x8] sm:$0xff]  }
 0x545   : > { %v6741_v4 = vpack.c.bf16 %v6558_v42, %v6555_v48  ;;  %v6231_v3 = vmul.f32 0.3, %v5887_v26  ;;  %v5425_v8 = vadd.f32 %v5424_v56, %v15796_v52  ;;  %v5898_v62 = vadd.f32 %v11501_v22, %v5417_v58  ;;  %11654 = vmatprep.subr.bf16.mxu1 %v16284_v10 }
 0x546   : > { %v5426_v9 = vpop.f32.mrf.mxu1  ;;  %v5889_v23 = vpop.f32.mrf.mxu0  ;;  %v5895_v56 = vadd.f32 %v16237_v15, %v5414_v2  ;;  %v6744_v18 = vpack.c.bf16 %v6564_v59, %v6561_v45 }
 0x547   : > { %v5890_v57 = vadd.f32 %v5889_v23, %v5409_v0  ;;  %v6567_v9 = vmax.f32 %v5887_v26, %v6231_v3 }
 0x548   : > { %v16250_v6 = vpop.f32.mrf.mxu1  ;;  %v16252_v12 = vpop.f32.mrf.mxu0  ;;  %7173 = vmatmul.mubr.bf16.gmra.mxu0 %v18463_v63  ;;  %11615 = vmatmul.mubr.bf16.gmra.mxu1 %v6732_v11 }
 0x549   : > { %7180 = vmatprep.mubr.bf16.mxu0 %v18464_v49  ;;  %11618 = vmatprep.mubr.bf16.mxu1 %v6735_v40  ;;  %v6234_v5 = vmul.f32 0.3, %v5890_v57  ;;  %v6240_v40 = vmul.f32 0.3, %v5898_v62  ;;  %v6237_v49 = vmul.f32 0.3, %v5895_v56  ;;  %v5430_v20 = vadd.f32 %v16250_v6, %v15796_v52 }
 0x54a   : > { %v5431_v37 = vpop.f32.mrf.mxu1  ;;  %v5902_v41 = vpop.f32.mrf.mxu0 }
 0x54b   : > { %v6570_v24 = vmax.f32 %v5890_v57, %v6234_v5  ;;  %v5903_v23 = vadd.f32 %v5902_v41, %v5422_v34  ;;  %v18468_v57 = vld [vmem:[#allocation239_spill] sm:$0xff]  ;;  %v6576_v16 = vmax.f32 %v5898_v62, %v6240_v40  ;;  %v6573_v38 = vmax.f32 %v5895_v56, %v6237_v49 }
 0x54c   : > { %v5432_v33 = vpop.f32.mrf.mxu1  ;;  %v11505_v28 = vpop.f32.mrf.mxu0 }
 0x54d   : > { %v5433_v22 = vadd.f32 %v5432_v33, %v15796_v52  ;;  %v6747_v46 = vpack.c.bf16 %v6570_v24, %v6567_v9  ;;  %v6243_v41 = vmul.f32 0.3, %v5903_v23 }
 0x54e   : > { %v5434_v32 = vpop.f32.mrf.mxu1  ;;  %v5905_v44 = vpop.f32.mrf.mxu0 }
 0x54f   : > { %v5906_v36 = vadd.f32 %v5905_v44, %v5425_v8  ;;  %v5914_v13 = vadd.f32 %v11505_v28, %v5433_v22  ;;  %v5911_v32 = vadd.f32 %v16252_v12, %v5430_v20  ;;  %v18472_v20 = vld [vmem:[#allocation245_spill] sm:$0xff] }
 0x550   : > { %v6990_v1 = vpop.f32.mrf.mxu0  ;;  %7181 = vmatmul.mubr.bf16.gmra.mxu0 %v18465_v53  ;;  %v11524_v30 = vpop.f32.mrf.mxu1  ;;  %11619 = vmatmul.mubr.bf16.gmra.mxu1 %v6738_v55 }
 0x551   : > { %v6991_v17 = vadd.f32 %v16266_v27, %v6990_v1  ;;  %7188 = vmatprep.mubr.bf16.mxu0 %v18466_v35  ;;  %11622 = vmatprep.mubr.bf16.mxu1 %v6741_v4  ;;  %v6246_v63 = vmul.f32 0.3, %v5906_v36  ;;  %v6579_v4 = vmax.f32 %v5903_v23, %v6243_v41  ;;  %v6750_v1 = vpack.c.bf16 %v6576_v16, %v6573_v38  ;;  %v18473_v38 = vld [vmem:[#allocation104_spill] sm:$0xff] }
 0x552   : > { %v6992_v21 = vpop.f32.mrf.mxu0  ;;  %v7471_v50 = vpop.f32.mrf.mxu1  ;;  %v6252_v28 = vmul.f32 0.3, %v5914_v13  ;;  %v6249_v2 = vmul.f32 0.3, %v5911_v32 }
 0x553   : > { %v7472_v61 = vadd.f32 %v7471_v50, %v6991_v17  ;;  %v6582_v52 = vmax.f32 %v5906_v36, %v6246_v63  ;;  %v18470_v50 = vld [vmem:[#allocation103_spill] sm:$0xff] }
 0x554   : > { %v6993_v11 = vpop.f32.mrf.mxu0  ;;  %v11525_v43 = vpop.f32.mrf.mxu1  ;;  %v6588_v34 = vmax.f32 %v5914_v13, %v6252_v28 }
 0x555   : > { %v6994_v31 = vadd.f32 %v16266_v27, %v6993_v11  ;;  %v7918_v0 = vmul.f32 0.3, %v7472_v61  ;;  %v6753_v35 = vpack.c.bf16 %v6582_v52, %v6579_v4  ;;  %v6585_v11 = vmax.f32 %v5911_v32, %v6249_v2 }
 0x556   : > { %v6995_v54 = vpop.f32.mrf.mxu0  ;;  %v7474_v29 = vpop.f32.mrf.mxu1 }
 0x557   : > { %v7475_v15 = vadd.f32 %v7474_v29, %v6994_v31  ;;  %v8030_v6 = vmax.f32 %v7472_v61, %v7918_v0  ;;  %v18471_v0 = vld [vmem:[#allocation242_spill] sm:$0xff] }
 0x558   : > { %v6998_v19 = vpop.f32.mrf.mxu0  ;;  %7189 = vmatmul.mubr.bf16.gmra.mxu0 %v18467_v14  ;;  %v16289_v37 = vpop.f32.mrf.mxu1  ;;  %11623 = vmatmul.mubr.bf16.gmra.mxu1 %v6744_v18  ;;  %v6756_v18 = vpack.c.bf16 %v6588_v34, %v6585_v11 }
 0x559   : > { %v7919_v39 = vmul.f32 0.3, %v7475_v15  ;;  %v6999_v42 = vadd.f32 %v16266_v27, %v6998_v19  ;;  %7196 = vmatprep.mubr.bf16.mxu0 %v18468_v57  ;;  %11626 = vmatprep.mubr.bf16.mxu1 %v6747_v46 }
 0x55a   : > { %v7000_v33 = vpop.f32.mrf.mxu0  ;;  %v7487_v48 = vpop.f32.mrf.mxu1 }
 0x55b   : > { %v8031_v26 = vmax.f32 %v7475_v15, %v7919_v39  ;;  %v7480_v55 = vadd.f32 %v11524_v30, %v6999_v42  ;;  %v18469_v30 = vld [vmem:[#allocation100_spill] sm:$0xff] }
 0x55c   : > { %v7001_v44 = vpop.f32.mrf.mxu0  ;;  %v11529_v5 = vpop.f32.mrf.mxu1 }
 0x55d   : > { %v16295_v51 = vpack.c.bf16 %v8031_v26, %v8030_v6  ;;  %v7002_v58 = vadd.f32 %v16266_v27, %v7001_v44  ;;  %v7920_v8 = vmul.f32 0.3, %v7480_v55 }
 0x55e   : > { %v7003_v53 = vpop.f32.mrf.mxu0  ;;  %v7490_v3 = vpop.f32.mrf.mxu1 }
 0x55f   : > { %v7483_v17 = vadd.f32 %v11525_v43, %v7002_v58  ;;  %v8032_v61 = vmax.f32 %v7480_v55, %v7920_v8 }
 0x560   : > { %v7006_v59 = vpop.f32.mrf.mxu0  ;;  %7197 = vmatmul.mubr.bf16.gmra.mxu0 %v18469_v30  ;;  %v16299_v62 = vpop.f32.mrf.mxu1  ;;  %11627 = vmatmul.mubr.bf16.gmra.mxu1 %v6750_v1 }
 0x561   : > { %v7921_v12 = vmul.f32 0.3, %v7483_v17  ;;  %v7007_v21 = vadd.f32 %v16266_v27, %v7006_v59  ;;  %7204 = vmatprep.mubr.bf16.mxu0 %v18470_v50  ;;  %11630 = vmatprep.mubr.bf16.mxu1 %v6753_v35  ;;  %v18475_v50 = vld [vmem:[#allocation107_spill] sm:$0xff] }
 0x562   : > { %v7008_v24 = vpop.f32.mrf.mxu0  ;;  %v7503_v36 = vpop.f32.mrf.mxu1 }
 0x563   : > { %v8033_v45 = vmax.f32 %v7483_v17, %v7921_v12  ;;  %v7488_v56 = vadd.f32 %v7487_v48, %v7007_v21 }
 0x564   : > { %v7009_v43 = vpop.f32.mrf.mxu0  ;;  %v16303_v9 = vpop.f32.mrf.mxu1 }
 0x565   : > { %v16305_v23 = vpack.c.bf16 %v8033_v45, %v8032_v61  ;;  %v7010_v31 = vadd.f32 %v16266_v27, %v7009_v43  ;;  %v7922_v54 = vmul.f32 0.3, %v7488_v56  ;;  %v18476_v61 = vld [vmem:[#allocation251_spill] sm:$0xff] }
 0x566   : > { %v7011_v40 = vpop.f32.mrf.mxu0  ;;  %v7506_v22 = vpop.f32.mrf.mxu1 }
 0x567   : > { %v7491_v29 = vadd.f32 %v7490_v3, %v7010_v31  ;;  %v8034_v41 = vmax.f32 %v7488_v56, %v7922_v54 }
 0x568   : > { %v7014_v63 = vpop.f32.mrf.mxu0  ;;  %7205 = vmatmul.mubr.bf16.gmra.mxu0 %v18471_v0  ;;  %v16309_v15 = vpop.f32.mrf.mxu1  ;;  %11631 = vmatmul.mubr.bf16.gmra.mxu1 %v6756_v18 }
 0x569   : > { %v7923_v46 = vmul.f32 0.3, %v7491_v29  ;;  %v7015_v49 = vadd.f32 %v16266_v27, %v7014_v63  ;;  %7212 = vmatprep.mubr.bf16.mxu0 %v18472_v20  ;;  %v18477_v20 = vld [vmem:[#allocation249_spill] sm:$0xff] }
 0x56a   : > { %v7016_v19 = vpop.f32.mrf.mxu0  ;;  %v7519_v14 = vpop.f32.mrf.mxu1 }
 0x56b   : > { %v8035_v39 = vmax.f32 %v7491_v29, %v7923_v46  ;;  %v7496_v42 = vadd.f32 %v16289_v37, %v7015_v49  ;;  %v18474_v37 = vld [vmem:[#allocation108_spill] sm:$0xff] }
 0x56c   : > { %v7017_v57 = vpop.f32.mrf.mxu0  ;;  %v16314_v16 = vpop.f32.mrf.mxu1 }
 0x56d   : > { %v16316_v13 = vpack.c.bf16 %v8035_v39, %v8034_v41  ;;  %v7018_v33 = vadd.f32 %v16266_v27, %v7017_v57  ;;  %v7924_v6 = vmul.f32 0.3, %v7496_v42  ;;  %v18478_v39 = vld [vmem:[#allocation111_spill] sm:$0xff] }
 0x56e   : > { %v7019_v48 = vpop.f32.mrf.mxu0  ;;  %v7522_v52 = vpop.f32.mrf.mxu1 }
 0x56f   : > { %v7499_v26 = vadd.f32 %v11529_v5, %v7018_v33  ;;  %v8036_v28 = vmax.f32 %v7496_v42, %v7924_v6 }
 0x570   : > { %v7022_v55 = vpop.f32.mrf.mxu0  ;;  %7213 = vmatmul.mubr.bf16.gmra.mxu0 %v18473_v38  ;;  %v16320_v32 = vpop.f32.mrf.mxu1 }
 0x571   : > { %v7925_v44 = vmul.f32 0.3, %v7499_v26  ;;  %v7023_v4 = vadd.f32 %v16266_v27, %v7022_v55  ;;  %7220 = vmatprep.mubr.bf16.mxu0 %v18474_v37 }
 0x572   : > { %v7024_v58 = vpop.f32.mrf.mxu0  ;;  %v16324_v1 = vpop.f32.mrf.mxu1 }
 0x573   : > { %v8037_v53 = vmax.f32 %v7499_v26, %v7925_v44  ;;  %v7504_v3 = vadd.f32 %v7503_v36, %v7023_v4 }
 0x574   : > { %v7025_v8 = vpop.f32.mrf.mxu0  ;;  %v16326_v17 = vpop.f32.mrf.mxu1 }
 0x575   : > { %v16328_v5 = vpack.c.bf16 %v8037_v53, %v8036_v28  ;;  %v7026_v35 = vadd.f32 %v16266_v27, %v7025_v8  ;;  %v7926_v30 = vmul.f32 0.3, %v7504_v3  ;;  %v18479_v53 = vld [vmem:[#allocation252_spill] sm:$0xff] }
 0x576   : > { %v7027_v2 = vpop.f32.mrf.mxu0  ;;  %v16331_v59 = vpop.f32.mrf.mxu1 }
 0x577   : > { %v7507_v12 = vadd.f32 %v7506_v22, %v7026_v35  ;;  %v8038_v11 = vmax.f32 %v7504_v3, %v7926_v30  ;;  %v18480_v35 = vld [vmem:[#allocation110_spill] sm:$0xff] }
 0x578   : > { %v7030_v21 = vpop.f32.mrf.mxu0  ;;  %7221 = vmatmul.mubr.bf16.gmra.mxu0 %v18475_v50  ;;  %v16334_v34 = vpop.f32.mrf.mxu1 }
 0x579   : > { %v7927_v24 = vmul.f32 0.3, %v7507_v12  ;;  %v7031_v36 = vadd.f32 %v16266_v27, %v7030_v21  ;;  %7228 = vmatprep.mubr.bf16.mxu0 %v18476_v61 }
 0x57a   : > { %v7032_v45 = vpop.f32.mrf.mxu0  ;;  %v16338_v56 = vpop.f32.mrf.mxu1 }
 0x57b   : > { %v8039_v43 = vmax.f32 %v7507_v12, %v7927_v24  ;;  %v7512_v31 = vadd.f32 %v16299_v62, %v7031_v36 }
 0x57c   : > { %v7033_v18 = vpop.f32.mrf.mxu0  ;;  %v16341_v40 = vpop.f32.mrf.mxu1 }
 0x57d   : > { %v16343_v22 = vpack.c.bf16 %v8039_v43, %v8038_v11  ;;  %v7034_v54 = vadd.f32 %v16266_v27, %v7033_v18  ;;  %v7928_v0 = vmul.f32 0.3, %v7512_v31 }
 0x57e   : > { %v7035_v29 = vpop.f32.mrf.mxu0  ;;  %v16346_v63 = vpop.f32.mrf.mxu1 }
 0x57f   : > { %v7515_v46 = vadd.f32 %v16303_v9, %v7034_v54  ;;  %v8040_v33 = vmax.f32 %v7512_v31, %v7928_v0  ;;  %v18481_v54 = vld [vmem:[#allocation112_spill] sm:$0xff] }
 0x580   : > { %v7038_v49 = vpop.f32.mrf.mxu0  ;;  %7229 = vmatmul.mubr.bf16.gmra.mxu0 %v18477_v20  ;;  %v16350_v19 = vpop.f32.mrf.mxu1 }
 0x581   : > { %v7929_v41 = vmul.f32 0.3, %v7515_v46  ;;  %v7039_v62 = vadd.f32 %v16266_v27, %v7038_v49  ;;  %7236 = vmatprep.mubr.bf16.mxu0 %v18478_v39 }
 0x582   : > { %v7040_v42 = vpop.f32.mrf.mxu0  ;;  %v16354_v57 = vpop.f32.mrf.mxu1 }
 0x583   : > { %v8041_v48 = vmax.f32 %v7515_v46, %v7929_v41  ;;  %v7520_v6 = vadd.f32 %v7519_v14, %v7039_v62  ;;  %v18482_v46 = vld [vmem:[#allocation114_spill] sm:$0xff] }
 0x584   : > { %v7041_v26 = vpop.f32.mrf.mxu0  ;;  %v16356_v55 = vpop.f32.mrf.mxu1 }
 0x585   : > { %v16358_v9 = vpack.c.bf16 %v8041_v48, %v8040_v33  ;;  %v7042_v38 = vadd.f32 %v16266_v27, %v7041_v26  ;;  %v7930_v37 = vmul.f32 0.3, %v7520_v6 }
 0x586   : > { %v7043_v44 = vpop.f32.mrf.mxu0  ;;  %v16361_v4 = vpop.f32.mrf.mxu1 }
 0x587   : > { %v7523_v58 = vadd.f32 %v7522_v52, %v7042_v38  ;;  %v8042_v12 = vmax.f32 %v7520_v6, %v7930_v37 }
 0x588   : > { %v7046_v28 = vpop.f32.mrf.mxu0  ;;  %7237 = vmatmul.mubr.bf16.gmra.mxu0 %v18479_v53  ;;  %v16364_v3 = vpop.f32.mrf.mxu1 }
 0x589   : > { %v7931_v8 = vmul.f32 0.3, %v7523_v58  ;;  %v7047_v14 = vadd.f32 %v16266_v27, %v7046_v28  ;;  %7244 = vmatprep.mubr.bf16.mxu0 %v18480_v35 }
 0x58a   : > { %v7048_v2 = vpop.f32.mrf.mxu0  ;;  %v16368_v30 = vpop.f32.mrf.mxu1 }
 0x58b   : > { %v8043_v21 = vmax.f32 %v7523_v58, %v7931_v8  ;;  %v7528_v50 = vadd.f32 %v16309_v15, %v7047_v14  ;;  %v18483_v58 = vld [vmem:[#allocation113_spill] sm:$0xff]  ;;  %v18484_v8 = vld [vmem:[#allocation118_spill] sm:$0xff] }
 0x58c   : > { %v7049_v24 = vpop.f32.mrf.mxu0  ;;  %v16371_v36 = vpop.f32.mrf.mxu1 }
 0x58d   : > { %v16373_v52 = vpack.c.bf16 %v8043_v21, %v8042_v12  ;;  %v7050_v61 = vadd.f32 %v16266_v27, %v7049_v24  ;;  %v7932_v43 = vmul.f32 0.3, %v7528_v50 }
 0x58e   : > { %v7051_v45 = vpop.f32.mrf.mxu0  ;;  %v16376_v11 = vpop.f32.mrf.mxu1 }
 0x58f   : > { %v7531_v31 = vadd.f32 %v16314_v16, %v7050_v61  ;;  %v8044_v41 = vmax.f32 %v7528_v50, %v7932_v43 }
 0x590   : > { %v7054_v18 = vpop.f32.mrf.mxu0  ;;  %7245 = vmatmul.mubr.bf16.gmra.mxu0 %v18481_v54  ;;  %v16380_v29 = vpop.f32.mrf.mxu1 }
 0x591   : > { %v7933_v0 = vmul.f32 0.3, %v7531_v31  ;;  %v7055_v15 = vadd.f32 %v16266_v27, %v7054_v18  ;;  %7252 = vmatprep.mubr.bf16.mxu0 %v18482_v46 }
 0x592   : > { %v7056_v49 = vpop.f32.mrf.mxu0  ;;  %v16384_v20 = vpop.f32.mrf.mxu1 }
 0x593   : > { %v8045_v62 = vmax.f32 %v7531_v31, %v7933_v0  ;;  %v7536_v39 = vadd.f32 %v16324_v1, %v7055_v15  ;;  %v18485_v0 = vld [vmem:[#allocation109_spill] sm:$0xff] }
 0x594   : > { %v7057_v42 = vpop.f32.mrf.mxu0  ;;  %v16387_v33 = vpop.f32.mrf.mxu1  ;;  %v18486_v49 = vld [vmem:[#allocation5_spill] sm:$0xff] }
 0x595   : > { %v16389_v16 = vpack.c.bf16 %v8045_v62, %v8044_v41  ;;  %v7058_v48 = vadd.f32 %v16266_v27, %v7057_v42  ;;  %v7934_v38 = vmul.f32 0.3, %v7536_v39 }
 0x596   : > { %v7059_v6 = vpop.f32.mrf.mxu0  ;;  %v16392_v26 = vpop.f32.mrf.mxu1 }
 0x597   : > { %v7539_v44 = vadd.f32 %v16331_v59, %v7058_v48  ;;  %v8046_v2 = vmax.f32 %v7536_v39, %v7934_v38 }
 0x598   : > { %v7062_v37 = vpop.f32.mrf.mxu0  ;;  %7253 = vmatmul.mubr.bf16.gmra.mxu0 %v18483_v58  ;;  %v16396_v28 = vpop.f32.mrf.mxu1 }
 0x599   : > { %v7935_v53 = vmul.f32 0.3, %v7539_v44  ;;  %v7063_v1 = vadd.f32 %v16266_v27, %v7062_v37  ;;  %7260 = vmatprep.mubr.bf16.mxu0 %v18484_v8  ;;  %v12136_v37 = vld [vmem:[%s17379_s7] sm:$0xff]  }
 0x59a   : > { %v7064_v14 = vpop.f32.mrf.mxu0  ;;  %v16400_v35 = vpop.f32.mrf.mxu1 }
 0x59b   : > { %v8047_v12 = vmax.f32 %v7539_v44, %v7935_v53  ;;  %v7544_v21 = vadd.f32 %v16320_v32, %v7063_v1 }
 0x59c   : > { %v7065_v50 = vpop.f32.mrf.mxu0  ;;  %v16403_v24 = vpop.f32.mrf.mxu1 }
 0x59d   : > { %v8150_v59 = vpack.c.bf16 %v8047_v12, %v8046_v2  ;;  %v7066_v61 = vadd.f32 %v16266_v27, %v7065_v50  ;;  %v7936_v31 = vmul.f32 0.3, %v7544_v21  ;;  %v18488_v50 = vld [vmem:[#allocation4_spill] sm:$0xff] }
 0x59e   : > { %v7067_v45 = vpop.f32.mrf.mxu0  ;;  %v16406_v43 = vpop.f32.mrf.mxu1 }
 0x59f   : > { %v7547_v18 = vadd.f32 %v16326_v17, %v7066_v61  ;;  %11638 = vmatprep.mubr.msk.bf16.mxu1 %vm8219_vm1, %v8150_v59  ;;  %v8048_v39 = vmax.f32 %v7544_v21, %v7936_v31  ;;  %v16437_v59 = vld [vmem:[%s17379_s7 + $0x28] sm:$0xff]  }
 0x5a0   : > { %v7070_v54 = vpop.f32.mrf.mxu0  ;;  %7261 = vmatmul.mubr.bf16.gmra.mxu0 %v18485_v0  ;;  %v16411_v15 = vpop.f32.mrf.mxu1 }
 0x5a1   : > { %v7937_v32 = vmul.f32 0.3, %v7547_v18  ;;  %v7071_v46 = vadd.f32 %v16266_v27, %v7070_v54  ;;  %7268 = vmatprep.mubr.bf16.mxu0 %v18486_v49 }
 0x5a2   : > { %v7072_v41 = vpop.f32.mrf.mxu0  ;;  %v16415_v62 = vpop.f32.mrf.mxu1 }
 0x5a3   : > { %v8049_v42 = vmax.f32 %v7547_v18, %v7937_v32  ;;  %v7552_v48 = vadd.f32 %v16338_v56, %v7071_v46  ;;  %v18487_v56 = vld [vmem:[#allocation120_spill] sm:$0xff] }
 0x5a4   : > { %v7073_v17 = vpop.f32.mrf.mxu0  ;;  %v16418_v6 = vpop.f32.mrf.mxu1 }
 0x5a5   : > { %v8151_v38 = vpack.c.bf16 %v8049_v42, %v8048_v39  ;;  %v7074_v44 = vadd.f32 %v16266_v27, %v7073_v17  ;;  %v7938_v1 = vmul.f32 0.3, %v7552_v48 }
 0x5a6   : > { %v7075_v58 = vpop.f32.mrf.mxu0  ;;  %v16424_v53 = vpop.f32.mrf.mxu1 }
 0x5a7   : > { %v7555_v8 = vadd.f32 %v16346_v63, %v7074_v44  ;;  %11639 = vmatmul.mubr.msk.bf16.vlgmr.msra.gmra.mxu1 %vm8219_vm1, %v8151_v38  ;;  %v8050_v45 = vmax.f32 %v7552_v48, %v7938_v1  ;;  %v18489_v48 = vld [vmem:[#allocation124_spill] sm:$0xff]  ;;  %v18490_v44 = vld [vmem:[#allocation125_spill] sm:$0xff] }
 0x5a8   : > { %v7078_v14 = vpop.f32.mrf.mxu0  ;;  %7269 = vmatmul.mubr.bf16.gmra.mxu0 %v18487_v56  ;;  %v16429_v2 = vpop.f32.mrf.mxu1  ;;  %11655 = vmatpush3.bf16.msra.mxu1 %v16284_v10 }
 0x5a9   : > { %v7939_v12 = vmul.f32 0.3, %v7555_v8  ;;  %v7079_v21 = vadd.f32 %v16266_v27, %v7078_v14  ;;  %7276 = vmatprep.mubr.bf16.mxu0 %v18488_v50  ;;  %11656 = vmatprep.subr.bf16.mxu1 %v12136_v37 }
 0x5aa   : > { %v7080_v63 = vpop.f32.mrf.mxu0  ;;  %v16439_v61 = vpop.f32.mrf.mxu1 }
 0x5ab   : > { %v8051_v31 = vmax.f32 %v7555_v8, %v7939_v12  ;;  %v7560_v18 = vadd.f32 %v16334_v34, %v7079_v21 }
 0x5ac   : > { %v7081_v54 = vpop.f32.mrf.mxu0  ;;  %v16442_v10 = vpop.f32.mrf.mxu1  ;;  %11657 = vmatpush3.bf16.msra.mxu1 %v12136_v37 }
 0x5ad   : > { %v8152_v0 = vpack.c.bf16 %v8051_v31, %v8050_v45  ;;  %v7082_v32 = vadd.f32 %v16266_v27, %v7081_v54  ;;  %11674 = vmatprep.subr.bf16.mxu1 %v16437_v59  ;;  %v7940_v41 = vmul.f32 0.3, %v7560_v18 }
 0x5ae   : > { %v7083_v46 = vpop.f32.mrf.mxu0  ;;  %v16446_v49 = vpop.f32.mrf.mxu1 }
 0x5af   : > { %v7563_v39 = vadd.f32 %v16341_v40, %v7082_v32  ;;  %11642 = vmatprep.mubr.msk.bf16.mxu1 %vm8219_vm1, %v8152_v0  ;;  %v8052_v1 = vmax.f32 %v7560_v18, %v7940_v41  ;;  %v18491_v0 = vld [vmem:[#allocation126_spill] sm:$0xff]  ;;  %v18492_v46 = vld [vmem:[#allocation129_spill] sm:$0xff] }
 0x5b0   : > { %v7086_v42 = vpop.f32.mrf.mxu0  ;;  %7277 = vmatmul.mubr.bf16.gmra.mxu0 %v18489_v48  ;;  %v16451_v34 = vpop.f32.mrf.mxu1 }
 0x5b1   : > { %v7941_v17 = vmul.f32 0.3, %v7563_v39  ;;  %v7087_v38 = vadd.f32 %v16266_v27, %v7086_v42  ;;  %7284 = vmatprep.mubr.bf16.mxu0 %v18490_v44 }
 0x5b2   : > { %v7088_v37 = vpop.f32.mrf.mxu0  ;;  %v16455_v58 = vpop.f32.mrf.mxu1 }
 0x5b3   : > { %v8053_v8 = vmax.f32 %v7563_v39, %v7941_v17  ;;  %v7568_v14 = vadd.f32 %v16354_v57, %v7087_v38 }
 0x5b4   : > { %v7089_v40 = vpop.f32.mrf.mxu0  ;;  %v16458_v56 = vpop.f32.mrf.mxu1 }
 0x5b5   : > { %v8153_v12 = vpack.c.bf16 %v8053_v8, %v8052_v1  ;;  %v7090_v21 = vadd.f32 %v16266_v27, %v7089_v40  ;;  %v7942_v45 = vmul.f32 0.3, %v7568_v14 }
 0x5b6   : > { %v7091_v50 = vpop.f32.mrf.mxu0  ;;  %v16461_v63 = vpop.f32.mrf.mxu1 }
 0x5b7   : > { %v7571_v31 = vadd.f32 %v16361_v4, %v7090_v21  ;;  %11643 = vmatmul.mubr.msk.bf16.gmra.mxu1 %vm8219_vm1, %v8153_v12  ;;  %v8054_v42 = vmax.f32 %v7568_v14, %v7942_v45  ;;  %v12141_v14 = vld [vmem:[%s17381_s9 + $0x18] sm:$0xff]  }
 0x5b8   : > { %v7094_v54 = vpop.f32.mrf.mxu0  ;;  %7285 = vmatmul.mubr.bf16.gmra.mxu0 %v18491_v0  ;;  %v16466_v18 = vpop.f32.mrf.mxu1  ;;  %11774 = vmatprep.subr.bf16.mxu0 %v12141_v14 }
 0x5b9   : > { %v7943_v57 = vmul.f32 0.3, %v7571_v31  ;;  %v7095_v32 = vadd.f32 %v16266_v27, %v7094_v54  ;;  %7292 = vmatprep.mubr.bf16.mxu0 %v18492_v46  ;;  %v18494_v54 = vld [vmem:[#allocation128_spill] sm:$0xff]  ;;  %11775 = vmatpush3.bf16.msra.mxu0 %v12141_v14  ;;  %v18495_v14 = vld [vmem:[#allocation130_spill] sm:$0xff] }
 0x5ba   : > { %v7096_v41 = vpop.f32.mrf.mxu0  ;;  %v16470_v39 = vpop.f32.mrf.mxu1 }
 0x5bb   : > { %v8055_v48 = vmax.f32 %v7571_v31, %v7943_v57  ;;  %v7576_v17 = vadd.f32 %v16350_v19, %v7095_v32  ;;  %v18493_v19 = vld [vmem:[#allocation127_spill] sm:$0xff] }
 0x5bc   : > { %v7097_v4 = vpop.f32.mrf.mxu0  ;;  %v16473_v38 = vpop.f32.mrf.mxu1 }
 0x5bd   : > { %v8154_v44 = vpack.c.bf16 %v8055_v48, %v8054_v42  ;;  %v7098_v37 = vadd.f32 %v16266_v27, %v7097_v4  ;;  %v7944_v40 = vmul.f32 0.3, %v7576_v17 }
 0x5be   : > { %v7099_v1 = vpop.f32.mrf.mxu0  ;;  %v16476_v8 = vpop.f32.mrf.mxu1 }
 0x5bf   : > { %v7579_v12 = vadd.f32 %v16356_v55, %v7098_v37  ;;  %11646 = vmatprep.mubr.msk.bf16.mxu1 %vm8219_vm1, %v8154_v44  ;;  %v8056_v55 = vmax.f32 %v7576_v17, %v7944_v40 }
 0x5c0   : > { %v7102_v21 = vpop.f32.mrf.mxu0  ;;  %7293 = vmatmul.mubr.bf16.gmra.mxu0 %v18493_v19  ;;  %v16484_v50 = vpop.f32.mrf.mxu1 }
 0x5c1   : > { %v7945_v45 = vmul.f32 0.3, %v7579_v12  ;;  %v7103_v31 = vadd.f32 %v16266_v27, %v7102_v21  ;;  %7300 = vmatprep.mubr.bf16.mxu0 %v18494_v54 }
 0x5c2   : > { %v7104_v0 = vpop.f32.mrf.mxu0  ;;  %v16488_v57 = vpop.f32.mrf.mxu1 }
 0x5c3   : > { %v8057_v32 = vmax.f32 %v7579_v12, %v7945_v45  ;;  %v7584_v46 = vadd.f32 %v16368_v30, %v7103_v31  ;;  %v18496_v12 = vld [vmem:[#allocation133_spill] sm:$0xff] }
 0x5c4   : > { %v7105_v41 = vpop.f32.mrf.mxu0  ;;  %v16491_v42 = vpop.f32.mrf.mxu1 }
 0x5c5   : > { %v8155_v48 = vpack.c.bf16 %v8057_v32, %v8056_v55  ;;  %v7106_v4 = vadd.f32 %v16266_v27, %v7105_v41  ;;  %v7946_v1 = vmul.f32 0.3, %v7584_v46 }
 0x5c6   : > { %v7107_v44 = vpop.f32.mrf.mxu0  ;;  %v16494_v37 = vpop.f32.mrf.mxu1 }
 0x5c7   : > { %v7587_v21 = vadd.f32 %v16376_v11, %v7106_v4  ;;  %11647 = vmatmul.mubr.msk.bf16.gmra.mxu1 %vm8219_vm1, %v8155_v48  ;;  %v8058_v54 = vmax.f32 %v7584_v46, %v7946_v1  ;;  %v18499_v1 = vld [vmem:[#allocation134_spill] sm:$0xff] }
 0x5c8   : > { %v7110_v19 = vpop.f32.mrf.mxu0  ;;  %7301 = vmatmul.mubr.bf16.gmra.mxu0 %v18495_v14  ;;  %v16499_v17 = vpop.f32.mrf.mxu1 }
 0x5c9   : > { %v7947_v30 = vmul.f32 0.3, %v7587_v21  ;;  %v7111_v40 = vadd.f32 %v16266_v27, %v7110_v19  ;;  %7308 = vmatprep.mubr.bf16.mxu0 %v18496_v12 }
 0x5ca   : > { %v7112_v45 = vpop.f32.mrf.mxu0  ;;  %v16503_v31 = vpop.f32.mrf.mxu1 }
 0x5cb   : > { %v8059_v0 = vmax.f32 %v7587_v21, %v7947_v30  ;;  %v7592_v55 = vadd.f32 %v16364_v3, %v7111_v40  ;;  %v18497_v45 = vld [vmem:[#allocation131_spill] sm:$0xff] }
 0x5cc   : > { %v7113_v11 = vpop.f32.mrf.mxu0  ;;  %v16506_v32 = vpop.f32.mrf.mxu1 }
 0x5cd   : > { %v8156_v41 = vpack.c.bf16 %v8059_v0, %v8058_v54  ;;  %v7114_v48 = vadd.f32 %v16266_v27, %v7113_v11  ;;  %v7948_v14 = vmul.f32 0.3, %v7592_v55 }
 0x5ce   : > { %v7115_v4 = vpop.f32.mrf.mxu0  ;;  %v16509_v44 = vpop.f32.mrf.mxu1 }
 0x5cf   : > { %v7595_v19 = vadd.f32 %v16371_v36, %v7114_v48  ;;  %11650 = vmatprep.mubr.msk.bf16.mxu1 %vm8219_vm1, %v8156_v41  ;;  %v8060_v40 = vmax.f32 %v7592_v55, %v7948_v14 }
 0x5d0   : > { %v7118_v12 = vpop.f32.mrf.mxu0  ;;  %7309 = vmatmul.mubr.bf16.gmra.mxu0 %v18497_v45  ;;  %v16514_v46 = vpop.f32.mrf.mxu1  ;;  %v18501_v45 = vld [vmem:[#allocation135_spill] sm:$0xff] }
 0x5d1   : > { %18498 = vst [vmem:[#allocation161_spill] sm:$0xff] %v16514_v46  ;;  %v7949_v3 = vmul.f32 0.3, %v7595_v19  ;;  %7316 = vmatprep.mubr.bf16.mxu0 %v18499_v1  ;;  %v18503_v1 = vld [vmem:[#allocation138_spill] sm:$0xff] }
 0x5d2   : > { %v7120_v21 = vpop.f32.mrf.mxu0  ;;  %v16517_v30 = vpop.f32.mrf.mxu1 }
 0x5d3   : > { %v8061_v54 = vmax.f32 %v7595_v19, %v7949_v3 }
 0x5d4   : > { %v7121_v0 = vpop.f32.mrf.mxu0  ;;  %v16519_v11 = vpop.f32.mrf.mxu1 }
 0x5d5   : > { %18500 = vst [vmem:[#allocation40_spill] sm:$0xff] %v16519_v11  ;;  %v8157_v4 = vpack.c.bf16 %v8061_v54, %v8060_v40  ;;  %v12138_v54 = vld [vmem:[%s17379_s7 + $0x20] sm:$0xff]  }
 0x5d6   : > { %v7123_v36 = vpop.f32.mrf.mxu0  ;;  %v16521_v48 = vpop.f32.mrf.mxu1 }
 0x5d7   : > { %11651 = vmatmul.mubr.msk.bf16.gmra.mxu1 %vm8219_vm1, %v8157_v4 }
 0x5d8   : > { %v7126_v41 = vpop.f32.mrf.mxu0  ;;  %7317 = vmatmul.mubr.bf16.gmra.mxu0 %v18501_v45  ;;  %v16525_v46 = vpop.f32.mrf.mxu1  ;;  %11658 = vmatprep.mubr.msk.bf16.mxu1 %vm8219_vm1, %v16295_v51  ;;  %v18507_v51 = vld [vmem:[#allocation19_spill] sm:$0xff]  ;;  %v18509_v45 = vld [vmem:[#allocation18_spill] sm:$0xff] }
 0x5d9   : > { %18502 = vst [vmem:[#allocation162_spill] sm:$0xff] %v16525_v46  ;;  %7324 = vmatprep.mubr.bf16.mxu0 %v18503_v1 }
 0x5da   : > { %v7128_v55 = vpop.f32.mrf.mxu0  ;;  %v16530_v14 = vpop.f32.mrf.mxu1 }
 0x5db   : > { %18504 = vst [vmem:[#allocation42_spill] sm:$0xff] %v16530_v14 }
 0x5dc   : > { %v7129_v19 = vpop.f32.mrf.mxu0  ;;  %v16532_v3 = vpop.f32.mrf.mxu1 }
 0x5dd   : > { %18505 = vst [vmem:[#allocation167_spill] sm:$0xff] %v16532_v3 }
 0x5de   : > { %v7131_v21 = vpop.f32.mrf.mxu0  ;;  %v16534_v40 = vpop.f32.mrf.mxu1 }
 0x5df   : > { %18506 = vst [vmem:[#allocation37_spill] sm:$0xff] %v16534_v40  ;;  %11659 = vmatmul.mubr.msk.bf16.vlgmr.msra.gmra.mxu1 %vm8219_vm1, %v16305_v23  ;;  %v16553_v23 = vld [vmem:[%s17379_s7 + $0x38] sm:$0xff]  }
 0x5e0   : > { %v7134_v4 = vpop.f32.mrf.mxu0  ;;  %7325 = vmatmul.mubr.bf16.gmra.mxu0 %v18507_v51  ;;  %v16542_v36 = vpop.f32.mrf.mxu1  ;;  %11662 = vmatprep.mubr.msk.bf16.mxu1 %vm8219_vm1, %v16316_v13 }
 0x5e1   : > { %18508 = vst [vmem:[#allocation168_spill] sm:$0xff] %v16542_v36  ;;  %7332 = vmatprep.mubr.bf16.mxu0 %v18509_v45  ;;  %11675 = vmatpush3.bf16.msra.mxu1 %v16437_v59  ;;  %v7122_v36 = vadd.f32 %v16266_v27, %v7121_v0  ;;  %v7119_v59 = vadd.f32 %v16266_v27, %v7118_v12 }
 0x5e2   : > { %v7136_v1 = vpop.f32.mrf.mxu0  ;;  %v16548_v55 = vpop.f32.mrf.mxu1  ;;  %11676 = vmatprep.subr.bf16.mxu1 %v12138_v54  ;;  %v7130_v12 = vadd.f32 %v16266_v27, %v7129_v19 }
 0x5e3   : > { %18510 = vst [vmem:[#allocation43_spill] sm:$0xff] %v16548_v55  ;;  %v18513_v1 = vld [vmem:[#allocation140_spill] sm:$0xff]  ;;  %v7603_v0 = vadd.f32 %v16392_v26, %v7122_v36  ;;  %v7135_v36 = vadd.f32 %v16266_v27, %v7134_v4 }
 0x5e4   : > { %v7137_v21 = vpop.f32.mrf.mxu0  ;;  %v16555_v51 = vpop.f32.mrf.mxu1  ;;  %v7611_v19 = vadd.f32 %v16387_v33, %v7130_v12 }
 0x5e5   : > { %18511 = vst [vmem:[#allocation165_spill] sm:$0xff] %v16555_v51  ;;  %11677 = vmatpush3.bf16.msra.mxu1 %v12138_v54  ;;  %v18515_v54 = vld [vmem:[#allocation141_spill] sm:$0xff] }
 0x5e6   : > { %v7139_v13 = vpop.f32.mrf.mxu0  ;;  %v16558_v3 = vpop.f32.mrf.mxu1  ;;  %11694 = vmatprep.subr.bf16.mxu1 %v16553_v23 }
 0x5e7   : > { %18512 = vst [vmem:[#allocation169_spill] sm:$0xff] %v16558_v3  ;;  %11663 = vmatmul.mubr.msk.bf16.gmra.mxu1 %vm8219_vm1, %v16328_v5  ;;  %v7600_v3 = vadd.f32 %v16384_v20, %v7119_v59  ;;  %v18519_v59 = vld [vmem:[#allocation139_spill] sm:$0xff] }
 0x5e8   : > { %v7142_v45 = vpop.f32.mrf.mxu0  ;;  %7333 = vmatmul.mubr.bf16.gmra.mxu0 %v18513_v1  ;;  %v16565_v55 = vpop.f32.mrf.mxu1  ;;  %11666 = vmatprep.mubr.msk.bf16.mxu1 %vm8219_vm1, %v16343_v22  ;;  %v7951_v1 = vmul.f32 0.3, %v7603_v0  ;;  %v7127_v22 = vadd.f32 %v16266_v27, %v7126_v41 }
 0x5e9   : > { %18514 = vst [vmem:[#allocation47_spill] sm:$0xff] %v16565_v55  ;;  %7340 = vmatprep.mubr.bf16.mxu0 %v18515_v54  ;;  %v7138_v55 = vadd.f32 %v16266_v27, %v7137_v21  ;;  %v7950_v26 = vmul.f32 0.3, %v7600_v3 }
 0x5ea   : > { %v7144_v13 = vpop.f32.mrf.mxu0  ;;  %v16571_v51 = vpop.f32.mrf.mxu1  ;;  %v8063_v21 = vmax.f32 %v7603_v0, %v7951_v1  ;;  %v18522_v1 = vld [vmem:[#allocation143_spill] sm:$0xff] }
 0x5eb   : > { %18516 = vst [vmem:[#allocation48_spill] sm:$0xff] %v16571_v51  ;;  %v7619_v41 = vadd.f32 %v16406_v43, %v7138_v55  ;;  %v8062_v4 = vmax.f32 %v7600_v3, %v7950_v26  ;;  %v7143_v43 = vadd.f32 %v16266_v27, %v7142_v45 }
 0x5ec   : > { %v7145_v5 = vpop.f32.mrf.mxu0  ;;  %v16574_v46 = vpop.f32.mrf.mxu1 }
 0x5ed   : > { %18517 = vst [vmem:[#allocation172_spill] sm:$0xff] %v16574_v46  ;;  %v7146_v51 = vadd.f32 %v16266_v27, %v7145_v5  ;;  %v7955_v11 = vmul.f32 0.3, %v7619_v41 }
 0x5ee   : > { %v7147_v40 = vpop.f32.mrf.mxu0  ;;  %v16578_v14 = vpop.f32.mrf.mxu1 }
 0x5ef   : > { %18518 = vst [vmem:[#allocation41_spill] sm:$0xff] %v16578_v14  ;;  %11667 = vmatmul.mubr.msk.bf16.gmra.mxu1 %vm8219_vm1, %v16358_v9  ;;  %v18521_v40 = vld [vmem:[#allocation145_spill] sm:$0xff]  ;;  %v7608_v9 = vadd.f32 %v16380_v29, %v7127_v22  ;;  %v18523_v22 = vld [vmem:[#allocation144_spill] sm:$0xff]  ;;  %v8067_v26 = vmax.f32 %v7619_v41, %v7955_v11 }
 0x5f0   : > { %v7150_v20 = vpop.f32.mrf.mxu0  ;;  %7341 = vmatmul.mubr.bf16.gmra.mxu0 %v18519_v59  ;;  %v16585_v54 = vpop.f32.mrf.mxu1  ;;  %11670 = vmatprep.mubr.msk.bf16.mxu1 %vm8219_vm1, %v16373_v52  ;;  %v7616_v59 = vadd.f32 %v16400_v35, %v7135_v36  ;;  %v8158_v52 = vpack.c.bf16 %v8063_v21, %v8062_v4 }
 0x5f1   : > { %18520 = vst [vmem:[#allocation173_spill] sm:$0xff] %v16585_v54  ;;  %7348 = vmatprep.mubr.bf16.mxu0 %v18521_v40  ;;  %v7953_v54 = vmul.f32 0.3, %v7611_v19  ;;  %v7952_v0 = vmul.f32 0.3, %v7608_v9  ;;  %v7151_v35 = vadd.f32 %v16266_v27, %v7150_v20 }
 0x5f2   : > { %v7152_v13 = vpop.f32.mrf.mxu0  ;;  %v16593_v46 = vpop.f32.mrf.mxu1  ;;  %v7954_v29 = vmul.f32 0.3, %v7616_v59 }
 0x5f3   : > { %v8065_v5 = vmax.f32 %v7611_v19, %v7953_v54  ;;  %v8064_v40 = vmax.f32 %v7608_v9, %v7952_v0  ;;  %v7632_v13 = vadd.f32 %v16415_v62, %v7151_v35 }
 0x5f4   : > { %v7153_v14 = vpop.f32.mrf.mxu0  ;;  %v16599_v55 = vpop.f32.mrf.mxu1  ;;  %v8066_v20 = vmax.f32 %v7616_v59, %v7954_v29  ;;  %v18524_v59 = vld [vmem:[#allocation22_spill] sm:$0xff]  ;;  %v18525_v29 = vld [vmem:[#allocation21_spill] sm:$0xff] }
 0x5f5   : > { %v7154_v33 = vadd.f32 %v16266_v27, %v7153_v14  ;;  %v7627_v14 = vadd.f32 %v16403_v24, %v7146_v51  ;;  %v7958_v62 = vmul.f32 0.3, %v7632_v13 }
 0x5f6   : > { %v7155_v12 = vpop.f32.mrf.mxu0  ;;  %v16610_v21 = vpop.f32.mrf.mxu1  ;;  %v8160_v24 = vpack.c.bf16 %v8067_v26, %v8066_v20 }
 0x5f7   : > { %11671 = vmatmul.mubr.msk.bf16.gmra.mxu1 %vm8219_vm1, %v16389_v16  ;;  %v7635_v45 = vadd.f32 %v16424_v53, %v7154_v33  ;;  %v7624_v16 = vadd.f32 %v16396_v28, %v7143_v43  ;;  %v8159_v12 = vpack.c.bf16 %v8065_v5, %v8064_v40  ;;  %v12140_v53 = vld [vmem:[%s17379_s7 + $0x30] sm:$0xff]   ;;  %v8070_v26 = vmax.f32 %v7632_v13, %v7958_v62  ;;  %v18526_v13 = vld [vmem:[#allocation27_spill] sm:$0xff] }
 0x5f8   : > { %v7158_v3 = vpop.f32.mrf.mxu0  ;;  %7349 = vmatmul.mubr.bf16.gmra.mxu0 %v18522_v1  ;;  %11678 = vmatprep.mubr.msk.bf16.mxu1 %vm8219_vm1, %v8158_v52  ;;  %v7957_v52 = vmul.f32 0.3, %v7627_v14  ;;  %v16618_v41 = vpop.f32.mrf.mxu1  ;;  %v16630_v1 = vld [vmem:[%s17379_s7 + $0x48] sm:$0xff]  }
 0x5f9   : > { %7356 = vmatprep.mubr.bf16.mxu0 %v18523_v22  ;;  %v7959_v51 = vmul.f32 0.3, %v7635_v45  ;;  %v7956_v11 = vmul.f32 0.3, %v7624_v16  ;;  %v7159_v28 = vadd.f32 %v16266_v27, %v7158_v3 }
 0x5fa   : > { %v7160_v36 = vpop.f32.mrf.mxu0  ;;  %v8069_v33 = vmax.f32 %v7627_v14, %v7957_v52  ;;  %v16633_v14 = vpop.f32.mrf.mxu1 }
 0x5fb   : > { %v8071_v35 = vmax.f32 %v7635_v45, %v7959_v51  ;;  %v8068_v5 = vmax.f32 %v7624_v16, %v7956_v11  ;;  %v7640_v22 = vadd.f32 %v16411_v15, %v7159_v28 }
 0x5fc   : > { %v7161_v4 = vpop.f32.mrf.mxu0  ;;  %v16638_v52 = vpop.f32.mrf.mxu1 }
 0x5fd   : > { %v7162_v54 = vadd.f32 %v16266_v27, %v7161_v4  ;;  %v8161_v40 = vpack.c.bf16 %v8069_v33, %v8068_v5  ;;  %v8162_v45 = vpack.c.bf16 %v8071_v35, %v8070_v26  ;;  %v18528_v26 = vld [vmem:[#allocation150_spill] sm:$0xff] }
 0x5fe   : > { %v7163_v19 = vpop.f32.mrf.mxu0  ;;  %v16651_v11 = vpop.f32.mrf.mxu1 }
 0x5ff   : > { %11679 = vmatmul.mubr.msk.bf16.vlgmr.msra.gmra.mxu1 %vm8219_vm1, %v8159_v12  ;;  %v7643_v0 = vadd.f32 %v16418_v6, %v7162_v54  ;;  %v7960_v12 = vmul.f32 0.3, %v7640_v22  ;;  %v18527_v19 = vld [vmem:[#allocation149_spill] sm:$0xff] }
 0x600   : > { %v7166_v9 = vpop.f32.mrf.mxu0  ;;  %7357 = vmatmul.mubr.bf16.gmra.mxu0 %v18524_v59  ;;  %11682 = vmatprep.mubr.msk.bf16.mxu1 %vm8219_vm1, %v8160_v24  ;;  %v16647_v24 = vld [vmem:[%s17378_s6] ss:$0 sm:$0xff]  ;;  %v16655_v35 = vpop.f32.mrf.mxu1 }
 0x601   : > { %v7167_v43 = vadd.f32 %v16266_v27, %v7166_v9  ;;  %7364 = vmatprep.mubr.bf16.mxu0 %v18525_v29  ;;  %11695 = vmatpush3.bf16.msra.mxu1 %v16553_v23  ;;  %v7961_v20 = vmul.f32 0.3, %v7643_v0 }
 0x602   : > { %v7168_v3 = vpop.f32.mrf.mxu0  ;;  %11696 = vmatprep.subr.bf16.mxu1 %v12140_v53 }
 0x603   : > { %v7648_v6 = vadd.f32 %v16439_v61, %v7167_v43  ;;  %v8073_v54 = vmax.f32 %v7643_v0, %v7961_v20  ;;  %v16663_v20 = vpop.f32.mrf.mxu1 }
 0x604   : > { %v7169_v36 = vpop.f32.mrf.mxu0 }
 0x605   : > { %v7170_v23 = vadd.f32 %v16266_v27, %v7169_v36  ;;  %11697 = vmatpush3.bf16.msra.mxu1 %v12140_v53  ;;  %v7962_v16 = vmul.f32 0.3, %v7648_v6  ;;  %v18529_v36 = vld [vmem:[#allocation156_spill] sm:$0xff] }
 0x606   : > { %v7171_v4 = vpop.f32.mrf.mxu0  ;;  %11714 = vmatprep.subr.bf16.mxu1 %v16630_v1 }
 0x607   : > { %v7651_v15 = vadd.f32 %v16446_v49, %v7170_v23  ;;  %11683 = vmatmul.mubr.msk.bf16.gmra.mxu1 %vm8219_vm1, %v8161_v40  ;;  %v8072_v49 = vmax.f32 %v7640_v22, %v7960_v12  ;;  %v8074_v28 = vmax.f32 %v7648_v6, %v7962_v16 }
 0x608   : > { %v7174_v61 = vpop.f32.mrf.mxu0  ;;  %7365 = vmatmul.mubr.bf16.gmra.mxu0 %v18526_v13  ;;  %11686 = vmatprep.mubr.msk.bf16.mxu1 %vm8219_vm1, %v8162_v45 }
 0x609   : > { %v7963_v27 = vmul.f32 0.3, %v7651_v15  ;;  %v7175_v51 = vadd.f32 %v16647_v24, %v7174_v61  ;;  %7372 = vmatprep.mubr.bf16.mxu0 %v18527_v19  ;;  %v8163_v33 = vpack.c.bf16 %v8073_v54, %v8072_v49  ;;  %v16667_v61 = vpop.f32.mrf.mxu1  ;;  %v18531_v49 = vld [vmem:[#allocation153_spill] sm:$0xff] }
 0x60a   : > { %v7176_v53 = vpop.f32.mrf.mxu0 }
 0x60b   : > { %v8075_v62 = vmax.f32 %v7651_v15, %v7963_v27  ;;  %v7656_v9 = vadd.f32 %v16429_v2, %v7175_v51  ;;  %v18530_v51 = vld [vmem:[#allocation154_spill] sm:$0xff] }
 0x60c   : > { %v7177_v59 = vpop.f32.mrf.mxu0 }
 0x60d   : > { %v8164_v0 = vpack.c.bf16 %v8075_v62, %v8074_v28  ;;  %v7178_v43 = vadd.f32 %v16647_v24, %v7177_v59  ;;  %v7964_v3 = vmul.f32 0.3, %v7656_v9  ;;  %v16674_v28 = vpop.f32.mrf.mxu1 }
 0x60e   : > { %v7179_v29 = vpop.f32.mrf.mxu0 }
 0x60f   : > { %v7659_v5 = vadd.f32 %v16442_v10, %v7178_v43  ;;  %11687 = vmatmul.mubr.msk.bf16.gmra.mxu1 %vm8219_vm1, %v8163_v33  ;;  %v8076_v23 = vmax.f32 %v7656_v9, %v7964_v3  ;;  %v16678_v29 = vpop.f32.mrf.mxu1 }
 0x610   : > { %v7182_v22 = vpop.f32.mrf.mxu0  ;;  %7373 = vmatmul.mubr.bf16.gmra.mxu0 %v18528_v26  ;;  %11690 = vmatprep.mubr.msk.bf16.mxu1 %vm8219_vm1, %v8164_v0  ;;  %v18532_v26 = vld [vmem:[#allocation30_spill] sm:$0xff] }
 0x611   : > { %v7965_v6 = vmul.f32 0.3, %v7659_v5  ;;  %v7183_v2 = vadd.f32 %v16647_v24, %v7182_v22  ;;  %7380 = vmatprep.mubr.bf16.mxu0 %v18529_v36  ;;  %v18533_v36 = vld [vmem:[#allocation160_spill] sm:$0xff] }
 0x612   : > { %v7184_v40 = vpop.f32.mrf.mxu0 }
 0x613   : > { %v8077_v45 = vmax.f32 %v7659_v5, %v7965_v6  ;;  %v7664_v4 = vadd.f32 %v16455_v58, %v7183_v2  ;;  %v16685_v40 = vpop.f32.mrf.mxu1 }
 0x614   : > { %v7185_v10 = vpop.f32.mrf.mxu0 }
 0x615   : > { %v8165_v12 = vpack.c.bf16 %v8077_v45, %v8076_v23  ;;  %v7186_v16 = vadd.f32 %v16647_v24, %v7185_v10  ;;  %v7966_v13 = vmul.f32 0.3, %v7664_v4 }
 0x616   : > { %v7187_v15 = vpop.f32.mrf.mxu0 }
 0x617   : > { %v7667_v54 = vadd.f32 %v16461_v63, %v7186_v16  ;;  %11691 = vmatmul.mubr.msk.bf16.gmra.mxu1 %vm8219_vm1, %v8165_v12  ;;  %v8078_v62 = vmax.f32 %v7664_v4, %v7966_v13  ;;  %v12143_v16 = vld [vmem:[%s17379_s7 + $0x40] sm:$0xff]   ;;  %v16692_v13 = vpop.f32.mrf.mxu1 }
 0x618   : > { %v7190_v27 = vpop.f32.mrf.mxu0  ;;  %7381 = vmatmul.mubr.bf16.gmra.mxu0 %v18530_v51 }
 0x619   : > { %v7967_v19 = vmul.f32 0.3, %v7667_v54  ;;  %v7191_v53 = vadd.f32 %v16647_v24, %v7190_v27  ;;  %7388 = vmatprep.mubr.bf16.mxu0 %v18531_v49  ;;  %v18535_v49 = vld [vmem:[#allocation36_spill] sm:$0xff] }
 0x61a   : > { %v7192_v58 = vpop.f32.mrf.mxu0 }
 0x61b   : > { %v8079_v9 = vmax.f32 %v7667_v54, %v7967_v19  ;;  %v7672_v59 = vadd.f32 %v16451_v34, %v7191_v53  ;;  %v18534_v19 = vld [vmem:[#allocation158_spill] sm:$0xff] }
 0x61c   : > { %v7193_v33 = vpop.f32.mrf.mxu0  ;;  %v16703_v58 = vld [vmem:[%s17379_s7 + $0x58] sm:$0xff]  }
 0x61d   : > { %v8166_v0 = vpack.c.bf16 %v8079_v9, %v8078_v62  ;;  %v7194_v63 = vadd.f32 %v16647_v24, %v7193_v33  ;;  %v7968_v3 = vmul.f32 0.3, %v7672_v59 }
 0x61e   : > { %v7195_v43 = vpop.f32.mrf.mxu0 }
 0x61f   : > { %v7675_v5 = vadd.f32 %v16458_v56, %v7194_v63  ;;  %11698 = vmatprep.mubr.msk.bf16.mxu1 %vm8219_vm1, %v8166_v0  ;;  %v8080_v23 = vmax.f32 %v7672_v59, %v7968_v3 }
 0x620   : > { %v7198_v22 = vpop.f32.mrf.mxu0  ;;  %7389 = vmatmul.mubr.bf16.gmra.mxu0 %v18532_v26 }
 0x621   : > { %v7969_v6 = vmul.f32 0.3, %v7675_v5  ;;  %v7199_v2 = vadd.f32 %v16647_v24, %v7198_v22  ;;  %7396 = vmatprep.mubr.bf16.mxu0 %v18533_v36  ;;  %v18537_v36 = vld [vmem:[#allocation38_spill] sm:$0xff] }
 0x622   : > { %v7200_v34 = vpop.f32.mrf.mxu0 }
 0x623   : > { %v8081_v45 = vmax.f32 %v7675_v5, %v7969_v6  ;;  %v7680_v4 = vadd.f32 %v16470_v39, %v7199_v2  ;;  %v18536_v6 = vld [vmem:[#allocation34_spill] sm:$0xff] }
 0x624   : > { %v7201_v10 = vpop.f32.mrf.mxu0 }
 0x625   : > { %v8167_v12 = vpack.c.bf16 %v8081_v45, %v8080_v23  ;;  %v7202_v56 = vadd.f32 %v16647_v24, %v7201_v10  ;;  %v7970_v54 = vmul.f32 0.3, %v7680_v4 }
 0x626   : > { %v7203_v15 = vpop.f32.mrf.mxu0 }
 0x627   : > { %v7683_v27 = vadd.f32 %v16476_v8, %v7202_v56  ;;  %11699 = vmatmul.mubr.msk.bf16.vlgmr.msra.gmra.mxu1 %vm8219_vm1, %v8167_v12  ;;  %v16705_v8 = vpop.f32.mrf.mxu1  ;;  %v8082_v9 = vmax.f32 %v7680_v4, %v7970_v54 }
 0x628   : > { %v7206_v51 = vpop.f32.mrf.mxu0  ;;  %7397 = vmatmul.mubr.bf16.gmra.mxu0 %v18534_v19  ;;  %11715 = vmatpush3.bf16.msra.mxu1 %v16630_v1  ;;  %v18538_v19 = vld [vmem:[#allocation33_spill] sm:$0xff] }
 0x629   : > { %v7971_v39 = vmul.f32 0.3, %v7683_v27  ;;  %v7207_v53 = vadd.f32 %v16647_v24, %v7206_v51  ;;  %7404 = vmatprep.mubr.bf16.mxu0 %v18535_v49  ;;  %11716 = vmatprep.subr.bf16.mxu1 %v12143_v16  ;;  %v16710_v3 = vpop.f32.mrf.mxu1 }
 0x62a   : > { %v7208_v62 = vpop.f32.mrf.mxu0 }
 0x62b   : > { %v8083_v59 = vmax.f32 %v7683_v27, %v7971_v39  ;;  %v7688_v33 = vadd.f32 %v16466_v18, %v7207_v53  ;;  %v16717_v23 = vpop.f32.mrf.mxu1 }
 0x62c   : > { %v7209_v0 = vpop.f32.mrf.mxu0  ;;  %11717 = vmatpush3.bf16.msra.mxu1 %v12143_v16 }
 0x62d   : > { %v8168_v1 = vpack.c.bf16 %v8083_v59, %v8082_v9  ;;  %v7210_v63 = vadd.f32 %v16647_v24, %v7209_v0  ;;  %11734 = vmatprep.subr.bf16.mxu1 %v16703_v58  ;;  %v7972_v5 = vmul.f32 0.3, %v7688_v33  ;;  %v16721_v15 = vpop.f32.mrf.mxu1 }
 0x62e   : > { %v7211_v43 = vpop.f32.mrf.mxu0 }
 0x62f   : > { %v7691_v22 = vadd.f32 %v16473_v38, %v7210_v63  ;;  %11702 = vmatprep.mubr.msk.bf16.mxu1 %vm8219_vm1, %v8168_v1  ;;  %v8084_v45 = vmax.f32 %v7688_v33, %v7972_v5  ;;  %v16728_v49 = vpop.f32.mrf.mxu1 }
 0x630   : > { %v7214_v26 = vpop.f32.mrf.mxu0  ;;  %7405 = vmatmul.mubr.bf16.gmra.mxu0 %v18536_v6 }
 0x631   : > { %v7973_v2 = vmul.f32 0.3, %v7691_v22  ;;  %v7215_v18 = vadd.f32 %v16647_v24, %v7214_v26  ;;  %7412 = vmatprep.mubr.bf16.mxu0 %v18537_v36  ;;  %v16732_v63 = vpop.f32.mrf.mxu1 }
 0x632   : > { %v7216_v34 = vpop.f32.mrf.mxu0 }
 0x633   : > { %v8085_v4 = vmax.f32 %v7691_v22, %v7973_v2  ;;  %v7696_v10 = vadd.f32 %v16488_v57, %v7215_v18  ;;  %v16739_v6 = vpop.f32.mrf.mxu1 }
 0x634   : > { %v7217_v12 = vpop.f32.mrf.mxu0 }
 0x635   : > { %v8169_v56 = vpack.c.bf16 %v8085_v4, %v8084_v45  ;;  %v7218_v38 = vadd.f32 %v16647_v24, %v7217_v12  ;;  %v7974_v54 = vmul.f32 0.3, %v7696_v10 }
 0x636   : > { %v7219_v16 = vpop.f32.mrf.mxu0 }
 0x637   : > { %v7699_v27 = vadd.f32 %v16494_v37, %v7218_v38  ;;  %11703 = vmatmul.mubr.msk.bf16.gmra.mxu1 %vm8219_vm1, %v8169_v56  ;;  %v8086_v62 = vmax.f32 %v7696_v10, %v7974_v54  ;;  %v16743_v10 = vpop.f32.mrf.mxu1 }
 0x638   : > { %v7222_v51 = vpop.f32.mrf.mxu0  ;;  %7413 = vmatmul.mubr.bf16.gmra.mxu0 %v18538_v19 }
 0x639   : > { %v7975_v39 = vmul.f32 0.3, %v7699_v27  ;;  %v7223_v53 = vadd.f32 %v16647_v24, %v7222_v51  ;;  %7420 = vmatprep.mubr.bf16.mxu0 %v15798_v47 }
 0x63a   : > { %v7224_v57 = vpop.f32.mrf.mxu0 }
 0x63b   : > { %v8087_v9 = vmax.f32 %v7699_v27, %v7975_v39  ;;  %v7704_v59 = vadd.f32 %v16484_v50, %v7223_v53 }
 0x63c   : > { %v7225_v33 = vpop.f32.mrf.mxu0 }
 0x63d   : > { %v8170_v0 = vpack.c.bf16 %v8087_v9, %v8086_v62  ;;  %v7226_v37 = vadd.f32 %v16647_v24, %v7225_v33  ;;  %v7976_v43 = vmul.f32 0.3, %v7704_v59 }
 0x63e   : > { %v7227_v1 = vpop.f32.mrf.mxu0 }
 0x63f   : > { %v7707_v5 = vadd.f32 %v16491_v42, %v7226_v37  ;;  %11706 = vmatprep.mubr.msk.bf16.mxu1 %vm8219_vm1, %v8170_v0  ;;  %v8088_v2 = vmax.f32 %v7704_v59, %v7976_v43 }
 0x640   : > { %v7230_v47 = vpop.f32.mrf.mxu0  ;;  %7421 = vmatmul.mubr.bf16.gmra.mxu0 %v15785_v25 }
 0x641   : > { %v7977_v22 = vmul.f32 0.3, %v7707_v5  ;;  %v7231_v26 = vadd.f32 %v16647_v24, %v7230_v47  ;;  %7428 = vmatprep.mubr.bf16.mxu0 %v15818_v7 }
 0x642   : > { %v7232_v50 = vpop.f32.mrf.mxu0 }
 0x643   : > { %v8089_v18 = vmax.f32 %v7707_v5, %v7977_v22  ;;  %v7712_v36 = vadd.f32 %v16503_v31, %v7231_v26  ;;  %v16749_v31 = vpop.f32.mrf.mxu1 }
 0x644   : > { %v7233_v34 = vpop.f32.mrf.mxu0 }
 0x645   : > { %v8171_v45 = vpack.c.bf16 %v8089_v18, %v8088_v2  ;;  %v7234_v42 = vadd.f32 %v16647_v24, %v7233_v34  ;;  %v7978_v25 = vmul.f32 0.3, %v7712_v36  ;;  %v16753_v57 = vpop.f32.mrf.mxu1 }
 0x646   : > { %v7235_v4 = vpop.f32.mrf.mxu0 }
 0x647   : > { %v7715_v12 = vadd.f32 %v16509_v44, %v7234_v42  ;;  %11707 = vmatmul.mubr.msk.bf16.gmra.mxu1 %vm8219_vm1, %v8171_v45  ;;  %v8090_v54 = vmax.f32 %v7712_v36, %v7978_v25  ;;  %v16758_v37 = vpop.f32.mrf.mxu1  ;;  %v18539_v25 = vld [vmem:[#allocation161_spill] sm:$0xff] }
 0x648   : > { %v7238_v7 = vpop.f32.mrf.mxu0  ;;  %7429 = vmatmul.mubr.bf16.gmra.mxu0 %v15812_v60 }
 0x649   : > { %v7979_v56 = vmul.f32 0.3, %v7715_v12  ;;  %v7239_v38 = vadd.f32 %v16647_v24, %v7238_v7  ;;  %v16762_v50 = vpop.f32.mrf.mxu1 }
 0x64a   : > { %v7240_v16 = vpop.f32.mrf.mxu0 }
 0x64b   : > { %v8091_v27 = vmax.f32 %v7715_v12, %v7979_v56  ;;  %v7720_v51 = vadd.f32 %v16499_v17, %v7239_v38  ;;  %v16767_v42 = vpop.f32.mrf.mxu1 }
 0x64c   : > { %v7241_v19 = vpop.f32.mrf.mxu0 }
 0x64d   : > { %v8172_v39 = vpack.c.bf16 %v8091_v27, %v8090_v54  ;;  %v7242_v53 = vadd.f32 %v16647_v24, %v7241_v19  ;;  %v7980_v62 = vmul.f32 0.3, %v7720_v51  ;;  %v16771_v54 = vpop.f32.mrf.mxu1  ;;  %v18540_v27 = vld [vmem:[#allocation40_spill] sm:$0xff] }
 0x64e   : > { %v7243_v44 = vpop.f32.mrf.mxu0 }
 0x64f   : > { %v7723_v60 = vadd.f32 %v16506_v32, %v7242_v53  ;;  %11710 = vmatprep.mubr.msk.bf16.mxu1 %vm8219_vm1, %v8172_v39  ;;  %v8092_v17 = vmax.f32 %v7720_v51, %v7980_v62  ;;  %v16776_v62 = vpop.f32.mrf.mxu1 }
 0x650   : > { %v7246_v9 = vpop.f32.mrf.mxu0 }
 0x651   : > { %v7981_v59 = vmul.f32 0.3, %v7723_v60  ;;  %v7247_v33 = vadd.f32 %v16647_v24, %v7246_v9 }
 0x652   : > { %v7248_v0 = vpop.f32.mrf.mxu0 }
 0x653   : > { %v8093_v1 = vmax.f32 %v7723_v60, %v7981_v59  ;;  %v7728_v43 = vadd.f32 %v16517_v30, %v7247_v33  ;;  %v18541_v59 = vld [vmem:[#allocation42_spill] sm:$0xff] }
 0x654   : > { %v7249_v5 = vpop.f32.mrf.mxu0 }
 0x655   : > { %v8173_v47 = vpack.c.bf16 %v8093_v1, %v8092_v17  ;;  %v7250_v22 = vadd.f32 %v16647_v24, %v7249_v5  ;;  %v7982_v32 = vmul.f32 0.3, %v7728_v43 }
 0x656   : > { %v7251_v26 = vpop.f32.mrf.mxu0 }
 0x657   : > { %v7731_v2 = vadd.f32 %v16521_v48, %v7250_v22  ;;  %11711 = vmatmul.mubr.msk.bf16.gmra.mxu1 %vm8219_vm1, %v8173_v47  ;;  %v8094_v30 = vmax.f32 %v7728_v43, %v7982_v32  ;;  %v12145_v43 = vld [vmem:[%s17379_s7 + $0x50] sm:$0xff]   ;;  %v16783_v47 = vpop.f32.mrf.mxu1 }
 0x658   : > { %v7254_v18 = vpop.f32.mrf.mxu0  ;;  %v18542_v26 = vld [vmem:[#allocation37_spill] sm:$0xff] }
 0x659   : > { %v7983_v36 = vmul.f32 0.3, %v7731_v2  ;;  %v7255_v34 = vadd.f32 %v16647_v24, %v7254_v18 }
 0x65a   : > { %v7256_v45 = vpop.f32.mrf.mxu0 }
 0x65b   : > { %v8095_v4 = vmax.f32 %v7731_v2, %v7983_v36  ;;  %v7736_v12 = vadd.f32 %v18539_v25, %v7255_v34  ;;  %v16792_v34 = vld [vmem:[%s17379_s7 + $0x68] sm:$0xff]  }
 0x65c   : > { %v7257_v7 = vpop.f32.mrf.mxu0 }
 0x65d   : > { %v8174_v56 = vpack.c.bf16 %v8095_v4, %v8094_v30  ;;  %v7258_v38 = vadd.f32 %v16647_v24, %v7257_v7  ;;  %v7984_v48 = vmul.f32 0.3, %v7736_v12  ;;  %v16794_v30 = vpop.f32.mrf.mxu1 }
 0x65e   : > { %v7259_v16 = vpop.f32.mrf.mxu0 }
 0x65f   : > { %v7739_v51 = vadd.f32 %v18540_v27, %v7258_v38  ;;  %11718 = vmatprep.mubr.msk.bf16.mxu1 %vm8219_vm1, %v8174_v56  ;;  %v8096_v60 = vmax.f32 %v7736_v12, %v7984_v48  ;;  %v18543_v12 = vld [vmem:[#allocation162_spill] sm:$0xff] }
 0x660   : > { %v7262_v19 = vpop.f32.mrf.mxu0 }
 0x661   : > { %v7985_v39 = vmul.f32 0.3, %v7739_v51  ;;  %v7263_v53 = vadd.f32 %v16647_v24, %v7262_v19 }
 0x662   : > { %v7264_v44 = vpop.f32.mrf.mxu0 }
 0x663   : > { %v8097_v9 = vmax.f32 %v7739_v51, %v7985_v39  ;;  %v7744_v33 = vadd.f32 %v18541_v59, %v7263_v53  ;;  %v18544_v51 = vld [vmem:[#allocation167_spill] sm:$0xff] }
 0x664   : > { %v7265_v0 = vpop.f32.mrf.mxu0 }
 0x665   : > { %v8175_v17 = vpack.c.bf16 %v8097_v9, %v8096_v60  ;;  %v7266_v1 = vadd.f32 %v16647_v24, %v7265_v0  ;;  %v7986_v22 = vmul.f32 0.3, %v7744_v33  ;;  %v18545_v0 = vld [vmem:[#allocation43_spill] sm:$0xff] }
 0x666   : > { %v7267_v5 = vpop.f32.mrf.mxu0 }
 0x667   : > { %v7747_v32 = vadd.f32 %v18542_v26, %v7266_v1  ;;  %11719 = vmatmul.mubr.msk.bf16.vlgmr.msra.gmra.mxu1 %vm8219_vm1, %v8175_v17  ;;  %v8098_v4 = vmax.f32 %v7744_v33, %v7986_v22 }
 0x668   : > { %v7270_v2 = vpop.f32.mrf.mxu0  ;;  %11735 = vmatpush3.bf16.msra.mxu1 %v16703_v58  ;;  %v16797_v58 = vpop.f32.mrf.mxu1 }
 0x669   : > { %v7987_v18 = vmul.f32 0.3, %v7747_v32  ;;  %v7271_v36 = vadd.f32 %v16647_v24, %v7270_v2  ;;  %11736 = vmatprep.subr.bf16.mxu1 %v12145_v43  ;;  %v18546_v2 = vld [vmem:[#allocation169_spill] sm:$0xff] }
 0x66a   : > { %v7272_v45 = vpop.f32.mrf.mxu0  ;;  %v16803_v53 = vpop.f32.mrf.mxu1 }
 0x66b   : > { %v8099_v25 = vmax.f32 %v7747_v32, %v7987_v18  ;;  %v7752_v7 = vadd.f32 %v18543_v12, %v7271_v36 }
 0x66c   : > { %v7273_v56 = vpop.f32.mrf.mxu0  ;;  %11737 = vmatpush3.bf16.msra.mxu1 %v12145_v43  ;;  %v16807_v43 = vpop.f32.mrf.mxu1 }
 0x66d   : > { %v8176_v38 = vpack.c.bf16 %v8099_v25, %v8098_v4  ;;  %v7274_v16 = vadd.f32 %v16647_v24, %v7273_v56  ;;  %11754 = vmatprep.subr.bf16.mxu1 %v16792_v34  ;;  %v7988_v27 = vmul.f32 0.3, %v7752_v7 }
 0x66e   : > { %v7275_v48 = vpop.f32.mrf.mxu0  ;;  %v16812_v45 = vpop.f32.mrf.mxu1 }
 0x66f   : > { %v7755_v19 = vadd.f32 %v18544_v51, %v7274_v16  ;;  %11722 = vmatprep.mubr.msk.bf16.mxu1 %vm8219_vm1, %v8176_v38  ;;  %v8100_v59 = vmax.f32 %v7752_v7, %v7988_v27  ;;  %18547 = vst [vmem:[#allocation46_spill] sm:$0xff] %v16812_v45  ;;  %v18548_v16 = vld [vmem:[#allocation168_spill] sm:$0xff] }
 0x670   : > { %v7278_v39 = vpop.f32.mrf.mxu0 }
 0x671   : > { %v7989_v44 = vmul.f32 0.3, %v7755_v19  ;;  %v7279_v60 = vadd.f32 %v16647_v24, %v7278_v39 }
 0x672   : > { %v7280_v9 = vpop.f32.mrf.mxu0 }
 0x673   : > { %v8101_v33 = vmax.f32 %v7755_v19, %v7989_v44  ;;  %v7760_v17 = vadd.f32 %v18545_v0, %v7279_v60  ;;  %v18549_v9 = vld [vmem:[#allocation165_spill] sm:$0xff] }
 0x674   : > { %v7281_v1 = vpop.f32.mrf.mxu0 }
 0x675   : > { %v8177_v5 = vpack.c.bf16 %v8101_v33, %v8100_v59  ;;  %v7282_v22 = vadd.f32 %v16647_v24, %v7281_v1  ;;  %v7990_v32 = vmul.f32 0.3, %v7760_v17 }
 0x676   : > { %v7283_v26 = vpop.f32.mrf.mxu0 }
 0x677   : > { %v7763_v18 = vadd.f32 %v18546_v2, %v7282_v22  ;;  %11723 = vmatmul.mubr.msk.bf16.gmra.mxu1 %vm8219_vm1, %v8177_v5  ;;  %v8102_v7 = vmax.f32 %v7760_v17, %v7990_v32  ;;  %v16815_v38 = vpop.f32.mrf.mxu1  ;;  %v18550_v32 = vld [vmem:[#allocation48_spill] sm:$0xff] }
 0x678   : > { %v7286_v36 = vpop.f32.mrf.mxu0 }
 0x679   : > { %v7991_v4 = vmul.f32 0.3, %v7763_v18  ;;  %v7287_v25 = vadd.f32 %v16647_v24, %v7286_v36  ;;  %v16819_v60 = vpop.f32.mrf.mxu1 }
 0x67a   : > { %v7288_v12 = vpop.f32.mrf.mxu0 }
 0x67b   : > { %v8103_v56 = vmax.f32 %v7763_v18, %v7991_v4  ;;  %v7768_v48 = vadd.f32 %v18548_v16, %v7287_v25  ;;  %v16824_v22 = vpop.f32.mrf.mxu1 }
 0x67c   : > { %v7289_v27 = vpop.f32.mrf.mxu0 }
 0x67d   : > { %v8178_v51 = vpack.c.bf16 %v8103_v56, %v8102_v7  ;;  %v7290_v19 = vadd.f32 %v16647_v24, %v7289_v27  ;;  %v7992_v44 = vmul.f32 0.3, %v7768_v48  ;;  %v16828_v12 = vpop.f32.mrf.mxu1  ;;  %v18551_v56 = vld [vmem:[#allocation41_spill] sm:$0xff] }
 0x67e   : > { %v7291_v39 = vpop.f32.mrf.mxu0 }
 0x67f   : > { %v7771_v59 = vadd.f32 %v18549_v9, %v7290_v19  ;;  %11726 = vmatprep.mubr.msk.bf16.mxu1 %vm8219_vm1, %v8178_v51  ;;  %v8104_v5 = vmax.f32 %v7768_v48, %v7992_v44 }
 0x680   : > { %v7294_v33 = vpop.f32.mrf.mxu0 }
 0x681   : > { %v7993_v0 = vmul.f32 0.3, %v7771_v59  ;;  %v7295_v17 = vadd.f32 %v16647_v24, %v7294_v33 }
 0x682   : > { %v7296_v1 = vpop.f32.mrf.mxu0 }
 0x683   : > { %v8105_v26 = vmax.f32 %v7771_v59, %v7993_v0  ;;  %v7776_v2 = vadd.f32 %v18550_v32, %v7295_v17  ;;  %v18552_v59 = vld [vmem:[#allocation47_spill] sm:$0xff] }
 0x684   : > { %v7297_v18 = vpop.f32.mrf.mxu0 }
 0x685   : > { %v8179_v36 = vpack.c.bf16 %v8105_v26, %v8104_v5  ;;  %v7298_v4 = vadd.f32 %v16647_v24, %v7297_v18  ;;  %v7994_v7 = vmul.f32 0.3, %v7776_v2  ;;  %v18553_v18 = vld [vmem:[#allocation172_spill] sm:$0xff] }
 0x686   : > { %v7299_v25 = vpop.f32.mrf.mxu0 }
 0x687   : > { %v7779_v16 = vadd.f32 %v18551_v56, %v7298_v4  ;;  %11727 = vmatmul.mubr.msk.bf16.gmra.mxu1 %vm8219_vm1, %v8179_v36  ;;  %v16832_v48 = vpop.f32.mrf.mxu1  ;;  %v8106_v44 = vmax.f32 %v7776_v2, %v7994_v7 }
 0x688   : > { %v7302_v27 = vpop.f32.mrf.mxu0 }
 0x689   : > { %v7995_v51 = vmul.f32 0.3, %v7779_v16  ;;  %v7303_v19 = vadd.f32 %v16647_v24, %v7302_v27  ;;  %v16836_v1 = vpop.f32.mrf.mxu1 }
 0x68a   : > { %v7304_v39 = vpop.f32.mrf.mxu0 }
 0x68b   : > { %v8107_v9 = vmax.f32 %v7779_v16, %v7995_v51  ;;  %v7784_v33 = vadd.f32 %v18552_v59, %v7303_v19  ;;  %v16841_v25 = vpop.f32.mrf.mxu1 }
 0x68c   : > { %v7305_v0 = vpop.f32.mrf.mxu0 }
 0x68d   : > { %v8180_v17 = vpack.c.bf16 %v8107_v9, %v8106_v44  ;;  %v7306_v5 = vadd.f32 %v16647_v24, %v7305_v0  ;;  %v7996_v32 = vmul.f32 0.3, %v7784_v33  ;;  %v16845_v44 = vpop.f32.mrf.mxu1 }
 0x68e   : > { %v7307_v26 = vpop.f32.mrf.mxu0 }
 0x68f   : > { %v7787_v36 = vadd.f32 %v18553_v18, %v7306_v5  ;;  %11730 = vmatprep.mubr.msk.bf16.mxu1 %vm8219_vm1, %v8180_v17  ;;  %v8108_v16 = vmax.f32 %v7784_v33, %v7996_v32 }
 0x690   : > { %v7310_v4 = vpop.f32.mrf.mxu0 }
 0x691   : > { %v7997_v56 = vmul.f32 0.3, %v7787_v36  ;;  %v7311_v2 = vadd.f32 %v16647_v24, %v7310_v4 }
 0x692   : > { %v7312_v7 = vpop.f32.mrf.mxu0 }
 0x693   : > { %v8109_v27 = vmax.f32 %v7787_v36, %v7997_v56  ;;  %v7792_v51 = vadd.f32 %v16593_v46, %v7311_v2  ;;  %v16858_v36 = vld [vmem:[%s17381_s9 + $0x10] sm:$0xff]  }
 0x694   : > { %v7313_v19 = vpop.f32.mrf.mxu0  ;;  %v18554_v2 = vld [vmem:[#allocation173_spill] sm:$0xff]  ;;  %11776 = vmatprep.subr.bf16.mxu0 %v16858_v36 }
 0x695   : > { %v8181_v39 = vpack.c.bf16 %v8109_v27, %v8108_v16  ;;  %v7314_v9 = vadd.f32 %v16647_v24, %v7313_v19  ;;  %v7998_v0 = vmul.f32 0.3, %v7792_v51  ;;  %11777 = vmatpush3.bf16.msra.mxu0 %v16858_v36 }
 0x696   : > { %v7315_v59 = vpop.f32.mrf.mxu0 }
 0x697   : > { %v7795_v17 = vadd.f32 %v16610_v21, %v7314_v9  ;;  %v16849_v5 = vpop.f32.mrf.mxu1  ;;  %11731 = vmatmul.mubr.msk.bf16.gmra.mxu1 %vm8219_vm1, %v8181_v39  ;;  %v8110_v4 = vmax.f32 %v7792_v51, %v7998_v0 }
 0x698   : > { %v7318_v26 = vpop.f32.mrf.mxu0 }
 0x699   : > { %v7999_v18 = vmul.f32 0.3, %v7795_v17  ;;  %v7319_v33 = vadd.f32 %v16647_v24, %v7318_v26  ;;  %v16853_v32 = vpop.f32.mrf.mxu1 }
 0x69a   : > { %v7320_v46 = vpop.f32.mrf.mxu0 }
 0x69b   : > { %v8111_v56 = vmax.f32 %v7795_v17, %v7999_v18  ;;  %v7800_v21 = vadd.f32 %v18554_v2, %v7319_v33  ;;  %v16861_v7 = vpop.f32.mrf.mxu1 }
 0x69c   : > { %v7321_v16 = vpop.f32.mrf.mxu0 }
 0x69d   : > { %v8182_v27 = vpack.c.bf16 %v8111_v56, %v8110_v4  ;;  %v7322_v19 = vadd.f32 %v16647_v24, %v7321_v16  ;;  %v16865_v39 = vpop.f32.mrf.mxu1  ;;  %v8000_v59 = vmul.f32 0.3, %v7800_v21 }
 0x69e   : > { %v7323_v9 = vpop.f32.mrf.mxu0 }
 0x69f   : > { %v7803_v26 = vadd.f32 %v16599_v55, %v7322_v19  ;;  %v11660_v51 = vpop.f32.mrf.mxu1  ;;  %11738 = vmatprep.mubr.msk.bf16.mxu1 %vm8219_vm1, %v8182_v27  ;;  %v8112_v2 = vmax.f32 %v7800_v21, %v8000_v59 }
 0x6a0   : > { %v16871_v0 = vadd.f32 %v11660_v51, %v16797_v58  ;;  %v7326_v17 = vpop.f32.mrf.mxu0 }
 0x6a1   : > { %v8001_v18 = vmul.f32 0.3, %v7803_v26  ;;  %v7327_v33 = vadd.f32 %v16647_v24, %v7326_v17  ;;  %v8411_v46 = vpop.f32.mrf.mxu1 }
 0x6a2   : > { %v16875_v4 = vadd.f32 %v8411_v46, %v16803_v53  ;;  %v7328_v56 = vpop.f32.mrf.mxu0  ;;  %v12147_v53 = vld [vmem:[%s17379_s7 + $0x60] sm:$0xff]  }
 0x6a3   : > { %v8113_v16 = vmax.f32 %v7803_v26, %v8001_v18  ;;  %v7808_v9 = vadd.f32 %v16633_v14, %v7327_v33  ;;  %v11661_v55 = vpop.f32.mrf.mxu1 }
 0x6a4   : > { %v16879_v19 = vadd.f32 %v11661_v55, %v16807_v43  ;;  %v7329_v27 = vpop.f32.mrf.mxu0 }
 0x6a5   : > { %v8183_v58 = vpack.c.bf16 %v8113_v16, %v8112_v2  ;;  %v7330_v51 = vadd.f32 %v16647_v24, %v7329_v27  ;;  %v16882_v45 = vpop.f32.mrf.mxu1  ;;  %v8002_v46 = vmul.f32 0.3, %v7808_v9 }
 0x6a6   : > { %v7331_v17 = vpop.f32.mrf.mxu0 }
 0x6a7   : > { %v7811_v21 = vadd.f32 %v16651_v11, %v7330_v51  ;;  %v11664_v59 = vpop.f32.mrf.mxu1  ;;  %11739 = vmatmul.mubr.msk.bf16.vlgmr.msra.gmra.mxu1 %vm8219_vm1, %v8183_v58  ;;  %v8114_v16 = vmax.f32 %v7808_v9, %v8002_v46 }
 0x6a8   : > { %v16890_v14 = vadd.f32 %v11664_v59, %v16815_v38  ;;  %v7334_v43 = vpop.f32.mrf.mxu0  ;;  %11755 = vmatpush3.bf16.msra.mxu1 %v16792_v34 }
 0x6a9   : > { %v8003_v26 = vmul.f32 0.3, %v7811_v21  ;;  %v7335_v18 = vadd.f32 %v16647_v24, %v7334_v43  ;;  %v8427_v33 = vpop.f32.mrf.mxu1  ;;  %11756 = vmatprep.subr.bf16.mxu1 %v12147_v53 }
 0x6aa   : > { %v16895_v56 = vadd.f32 %v8427_v33, %v16819_v60  ;;  %v7336_v2 = vpop.f32.mrf.mxu0  ;;  %v16907_v60 = vld [vmem:[%s17381_s9 + $0x18] sm:$0xff]  }
 0x6ab   : > { %v8115_v11 = vmax.f32 %v7811_v21, %v8003_v26  ;;  %v7816_v55 = vadd.f32 %v16618_v41, %v7335_v18  ;;  %v11665_v27 = vpop.f32.mrf.mxu1 }
 0x6ac   : > { %v16899_v38 = vadd.f32 %v11665_v27, %v16824_v22  ;;  %v7337_v58 = vpop.f32.mrf.mxu0  ;;  %11757 = vmatpush3.bf16.msra.mxu1 %v12147_v53 }
 0x6ad   : > { %v8184_v34 = vpack.c.bf16 %v8115_v11, %v8114_v16  ;;  %v7338_v51 = vadd.f32 %v16647_v24, %v7337_v58  ;;  %v16902_v17 = vpop.f32.mrf.mxu1  ;;  %11918 = vmatprep.subr.bf16.mxu1 %v16907_v60  ;;  %v8004_v41 = vmul.f32 0.3, %v7816_v55 }
 0x6ae   : > { %v7339_v9 = vpop.f32.mrf.mxu0 }
 0x6af   : > { %v7819_v46 = vadd.f32 %v16638_v52, %v7338_v51  ;;  %v11668_v22 = vpop.f32.mrf.mxu1  ;;  %11742 = vmatprep.mubr.msk.bf16.mxu1 %vm8219_vm1, %v8184_v34  ;;  %v8116_v2 = vmax.f32 %v7816_v55, %v8004_v41 }
 0x6b0   : > { %v16913_v53 = vadd.f32 %v11668_v22, %v16832_v48  ;;  %v7342_v21 = vpop.f32.mrf.mxu0 }
 0x6b1   : > { %v8005_v59 = vmul.f32 0.3, %v7819_v46  ;;  %v7343_v43 = vadd.f32 %v16647_v24, %v7342_v21  ;;  %v8443_v26 = vpop.f32.mrf.mxu1 }
 0x6b2   : > { %v16917_v18 = vadd.f32 %v8443_v26, %v16836_v1  ;;  %v7344_v33 = vpop.f32.mrf.mxu0 }
 0x6b3   : > { %v8117_v16 = vmax.f32 %v7819_v46, %v8005_v59  ;;  %v7824_v11 = vadd.f32 %v16663_v20, %v7343_v43  ;;  %v11669_v52 = vpop.f32.mrf.mxu1 }
 0x6b4   : > { %v16921_v27 = vadd.f32 %v11669_v52, %v16841_v25  ;;  %v7345_v58 = vpop.f32.mrf.mxu0 }
 0x6b5   : > { %v8185_v48 = vpack.c.bf16 %v8117_v16, %v8116_v2  ;;  %v7346_v34 = vadd.f32 %v16647_v24, %v7345_v58  ;;  %v16924_v51 = vpop.f32.mrf.mxu1  ;;  %v8006_v22 = vmul.f32 0.3, %v7824_v11 }
 0x6b6   : > { %v7347_v9 = vpop.f32.mrf.mxu0 }
 0x6b7   : > { %v7827_v1 = vadd.f32 %v16674_v28, %v7346_v34  ;;  %v11672_v21 = vpop.f32.mrf.mxu1  ;;  %11743 = vmatmul.mubr.msk.bf16.gmra.mxu1 %vm8219_vm1, %v8185_v48  ;;  %v8118_v26 = vmax.f32 %v7824_v11, %v8006_v22 }
 0x6b8   : > { %v16929_v55 = vadd.f32 %v11672_v21, %v16849_v5  ;;  %v7350_v20 = vpop.f32.mrf.mxu0 }
 0x6b9   : > { %v8007_v41 = vmul.f32 0.3, %v7827_v1  ;;  %v7351_v25 = vadd.f32 %v16647_v24, %v7350_v20  ;;  %v8459_v46 = vpop.f32.mrf.mxu1 }
 0x6ba   : > { %v16933_v59 = vadd.f32 %v8459_v46, %v16853_v32  ;;  %v7352_v43 = vpop.f32.mrf.mxu0 }
 0x6bb   : > { %v8119_v33 = vmax.f32 %v7827_v1, %v8007_v41  ;;  %v7832_v2 = vadd.f32 %v16655_v35, %v7351_v25  ;;  %v11673_v28 = vpop.f32.mrf.mxu1 }
 0x6bc   : > { %v16937_v16 = vadd.f32 %v11673_v28, %v16861_v7  ;;  %v7353_v52 = vpop.f32.mrf.mxu0 }
 0x6bd   : > { %v8186_v5 = vpack.c.bf16 %v8119_v33, %v8118_v26  ;;  %v7354_v58 = vadd.f32 %v16647_v24, %v7353_v52  ;;  %v16940_v48 = vpop.f32.mrf.mxu1  ;;  %v8008_v9 = vmul.f32 0.3, %v7832_v2 }
 0x6be   : > { %v7355_v34 = vpop.f32.mrf.mxu0 }
 0x6bf   : > { %v7835_v32 = vadd.f32 %v16667_v61, %v7354_v58  ;;  %v11680_v21 = vpop.f32.mrf.mxu1  ;;  %11746 = vmatprep.mubr.msk.bf16.mxu1 %vm8219_vm1, %v8186_v5  ;;  %v8120_v25 = vmax.f32 %v7832_v2, %v8008_v9 }
 0x6c0   : > { %v16945_v11 = vadd.f32 %v11680_v21, %v16871_v0  ;;  %v7358_v35 = vpop.f32.mrf.mxu0 }
 0x6c1   : > { %v8009_v22 = vmul.f32 0.3, %v7835_v32  ;;  %v7359_v7 = vadd.f32 %v16647_v24, %v7358_v35  ;;  %v8549_v1 = vpop.f32.mrf.mxu1 }
 0x6c2   : > { %v16949_v20 = vadd.f32 %v8549_v1, %v16875_v4  ;;  %v7360_v41 = vpop.f32.mrf.mxu0 }
 0x6c3   : > { %v8121_v46 = vmax.f32 %v7835_v32, %v8009_v22  ;;  %v7840_v43 = vadd.f32 %v16685_v40, %v7359_v7  ;;  %v11681_v61 = vpop.f32.mrf.mxu1 }
 0x6c4   : > { %v16953_v26 = vadd.f32 %v11681_v61, %v16879_v19  ;;  %v7361_v33 = vpop.f32.mrf.mxu0 }
 0x6c5   : > { %v8187_v0 = vpack.c.bf16 %v8121_v46, %v8120_v25  ;;  %v7362_v28 = vadd.f32 %v16647_v24, %v7361_v33  ;;  %v16956_v52 = vpop.f32.mrf.mxu1  ;;  %v8010_v58 = vmul.f32 0.3, %v7840_v43 }
 0x6c6   : > { %v7363_v5 = vpop.f32.mrf.mxu0 }
 0x6c7   : > { %v7843_v4 = vadd.f32 %v16705_v8, %v7362_v28  ;;  %v11684_v34 = vpop.f32.mrf.mxu1  ;;  %11747 = vmatmul.mubr.msk.bf16.gmra.mxu1 %vm8219_vm1, %v8187_v0  ;;  %v8122_v22 = vmax.f32 %v7840_v43, %v8010_v58 }
 0x6c8   : > { %v16961_v2 = vadd.f32 %v11684_v34, %v16890_v14  ;;  %v7366_v40 = vpop.f32.mrf.mxu0 }
 0x6c9   : > { %v8011_v9 = vmul.f32 0.3, %v7843_v4  ;;  %v7367_v19 = vadd.f32 %v16647_v24, %v7366_v40  ;;  %v8565_v32 = vpop.f32.mrf.mxu1 }
 0x6ca   : > { %v16965_v21 = vadd.f32 %v8565_v32, %v16895_v56  ;;  %v7368_v35 = vpop.f32.mrf.mxu0 }
 0x6cb   : > { %v8123_v7 = vmax.f32 %v7843_v4, %v8011_v9  ;;  %v7848_v1 = vadd.f32 %v16678_v29, %v7367_v19  ;;  %v11685_v8 = vpop.f32.mrf.mxu1 }
 0x6cc   : > { %v16969_v41 = vadd.f32 %v11685_v8, %v16899_v38  ;;  %v7369_v25 = vpop.f32.mrf.mxu0 }
 0x6cd   : > { %v8188_v14 = vpack.c.bf16 %v8123_v7, %v8122_v22  ;;  %v7370_v46 = vadd.f32 %v16647_v24, %v7369_v25  ;;  %v16972_v61 = vpop.f32.mrf.mxu1  ;;  %v8012_v0 = vmul.f32 0.3, %v7848_v1 }
 0x6ce   : > { %v7371_v33 = vpop.f32.mrf.mxu0 }
 0x6cf   : > { %v7851_v56 = vadd.f32 %v16692_v13, %v7370_v46  ;;  %v11688_v28 = vpop.f32.mrf.mxu1  ;;  %11750 = vmatprep.mubr.msk.bf16.mxu1 %vm8219_vm1, %v8188_v14  ;;  %v8124_v40 = vmax.f32 %v7848_v1, %v8012_v0 }
 0x6d0   : > { %v16977_v43 = vadd.f32 %v11688_v28, %v16913_v53  ;;  %v7374_v29 = vpop.f32.mrf.mxu0 }
 0x6d1   : > { %v8013_v5 = vmul.f32 0.3, %v7851_v56  ;;  %v7375_v38 = vadd.f32 %v16647_v24, %v7374_v29  ;;  %v8581_v58 = vpop.f32.mrf.mxu1 }
 0x6d2   : > { %v16981_v4 = vadd.f32 %v8581_v58, %v16917_v18  ;;  %v7376_v34 = vpop.f32.mrf.mxu0 }
 0x6d3   : > { %v8125_v9 = vmax.f32 %v7851_v56, %v8013_v5  ;;  %v7856_v19 = vadd.f32 %v16717_v23, %v7375_v38  ;;  %v11689_v13 = vpop.f32.mrf.mxu1 }
 0x6d4   : > { %v16985_v32 = vadd.f32 %v11689_v13, %v16921_v27  ;;  %v7377_v35 = vpop.f32.mrf.mxu0 }
 0x6d5   : > { %v8189_v53 = vpack.c.bf16 %v8125_v9, %v8124_v40  ;;  %v7378_v22 = vadd.f32 %v16647_v24, %v7377_v35  ;;  %v16988_v7 = vpop.f32.mrf.mxu1  ;;  %v8014_v25 = vmul.f32 0.3, %v7856_v19 }
 0x6d6   : > { %v7379_v8 = vpop.f32.mrf.mxu0 }
 0x6d7   : > { %v7859_v18 = vadd.f32 %v16728_v49, %v7378_v22  ;;  %v11692_v14 = vpop.f32.mrf.mxu1  ;;  %11751 = vmatmul.mubr.msk.bf16.gmra.mxu1 %vm8219_vm1, %v8189_v53  ;;  %v8126_v28 = vmax.f32 %v7856_v19, %v8014_v25 }
 0x6d8   : > { %v16993_v1 = vadd.f32 %v11692_v14, %v16929_v55  ;;  %v7382_v23 = vpop.f32.mrf.mxu0 }
 0x6d9   : > { %v8015_v46 = vmul.f32 0.3, %v7859_v18  ;;  %v7383_v27 = vadd.f32 %v16647_v24, %v7382_v23  ;;  %v8597_v33 = vpop.f32.mrf.mxu1 }
 0x6da   : > { %v16997_v0 = vadd.f32 %v8597_v33, %v16933_v59  ;;  %v7384_v56 = vpop.f32.mrf.mxu0 }
 0x6db   : > { %v8127_v29 = vmax.f32 %v7859_v18, %v8015_v46  ;;  %v7864_v5 = vadd.f32 %v16710_v3, %v7383_v27  ;;  %v11693_v49 = vpop.f32.mrf.mxu1  ;;  %v17009_v3 = vld [vmem:[%s17378_s6] ss:$0 sm:$0xff] }
 0x6dc   : > { %v17001_v38 = vadd.f32 %v11693_v49, %v16937_v16  ;;  %v7385_v58 = vpop.f32.mrf.mxu0 }
 0x6dd   : > { %v8190_v55 = vpack.c.bf16 %v8127_v29, %v8126_v28  ;;  %v7386_v34 = vadd.f32 %v16647_v24, %v7385_v58  ;;  %v8016_v9 = vmul.f32 0.3, %v7864_v5  ;;  %v17013_v18 = vpop.f32.mrf.mxu1 }
 0x6de   : > { %v7387_v40 = vpop.f32.mrf.mxu0 }
 0x6df   : > { %v7867_v13 = vadd.f32 %v16721_v15, %v7386_v34  ;;  %11758 = vmatprep.mubr.msk.bf16.mxu1 %vm8219_vm1, %v8190_v55  ;;  %v8128_v53 = vmax.f32 %v7864_v5, %v8016_v9 }
 0x6e0   : > { %v7390_v59 = vpop.f32.mrf.mxu0 }
 0x6e1   : > { %v8017_v35 = vmul.f32 0.3, %v7867_v13  ;;  %v7391_v16 = vadd.f32 %v17009_v3, %v7390_v59 }
 0x6e2   : > { %v7392_v19 = vpop.f32.mrf.mxu0 }
 0x6e3   : > { %v8129_v22 = vmax.f32 %v7867_v13, %v8017_v35  ;;  %v7872_v24 = vadd.f32 %v16739_v6, %v7391_v16 }
 0x6e4   : > { %v7393_v8 = vpop.f32.mrf.mxu0 }
 0x6e5   : > { %v8191_v25 = vpack.c.bf16 %v8129_v22, %v8128_v53  ;;  %v7394_v15 = vadd.f32 %v17009_v3, %v7393_v8  ;;  %v8018_v23 = vmul.f32 0.3, %v7872_v24 }
 0x6e6   : > { %v7395_v14 = vpop.f32.mrf.mxu0 }
 0x6e7   : > { %v7875_v46 = vadd.f32 %v16749_v31, %v7394_v15  ;;  %v11700_v27 = vpop.f32.mrf.mxu1  ;;  %11759 = vmatmul.mubr.msk.bf16.vlgmr.msra.gmra.mxu1 %vm8219_vm1, %v8191_v25  ;;  %v8130_v31 = vmax.f32 %v7872_v24, %v8018_v23 }
 0x6e8   : > { %v17019_v33 = vadd.f32 %v11700_v27, %v16945_v11  ;;  %v7398_v56 = vpop.f32.mrf.mxu0  ;;  %11920 = vmatpush3.bf16.msra.mxu1 %v16907_v60 }
 0x6e9   : > { %v8019_v6 = vmul.f32 0.3, %v7875_v46  ;;  %v7399_v28 = vadd.f32 %v17009_v3, %v7398_v56  ;;  %v8703_v29 = vpop.f32.mrf.mxu1  ;;  %11919 = vmatprep.subr.bf16.mxu1 %v16858_v36 }
 0x6ea   : > { %v17025_v5 = vadd.f32 %v8703_v29, %v16949_v20  ;;  %v7400_v49 = vpop.f32.mrf.mxu0 }
 0x6eb   : > { %v8131_v58 = vmax.f32 %v7875_v46, %v8019_v6  ;;  %v7880_v55 = vadd.f32 %v16732_v63, %v7399_v28  ;;  %v11701_v34 = vpop.f32.mrf.mxu1  ;;  %v8431_v28 = vadd.f32 %v16902_v17, %v16828_v12 }
 0x6ec   : > { %v17029_v11 = vadd.f32 %v11701_v34, %v16953_v26  ;;  %v7401_v40 = vpop.f32.mrf.mxu0  ;;  %11921 = vmatpush3.bf16.msra.mxu1 %v16858_v36 }
 0x6ed   : > { %v8192_v60 = vpack.c.bf16 %v8131_v58, %v8130_v31  ;;  %v7402_v9 = vadd.f32 %v17009_v3, %v7401_v40  ;;  %v8020_v59 = vmul.f32 0.3, %v7880_v55  ;;  %v17037_v8 = vpop.f32.mrf.mxu1 }
 0x6ee   : > { %v7403_v13 = vpop.f32.mrf.mxu0 }
 0x6ef   : > { %v7883_v20 = vadd.f32 %v16743_v10, %v7402_v9  ;;  %11762 = vmatprep.mubr.msk.bf16.mxu1 %vm8219_vm1, %v8192_v60  ;;  %v8132_v53 = vmax.f32 %v7880_v55, %v8020_v59 }
 0x6f0   : > { %v7406_v35 = vpop.f32.mrf.mxu0 }
 0x6f1   : > { %v8021_v16 = vmul.f32 0.3, %v7883_v20  ;;  %v7407_v63 = vadd.f32 %v17009_v3, %v7406_v35 }
 0x6f2   : > { %v7408_v19 = vpop.f32.mrf.mxu0 }
 0x6f3   : > { %v8133_v26 = vmax.f32 %v7883_v20, %v8021_v16  ;;  %v7888_v22 = vadd.f32 %v16758_v37, %v7407_v63 }
 0x6f4   : > { %v7409_v24 = vpop.f32.mrf.mxu0 }
 0x6f5   : > { %v8193_v36 = vpack.c.bf16 %v8133_v26, %v8132_v53  ;;  %v7410_v25 = vadd.f32 %v17009_v3, %v7409_v24  ;;  %v8022_v14 = vmul.f32 0.3, %v7888_v22 }
 0x6f6   : > { %v7411_v15 = vpop.f32.mrf.mxu0 }
 0x6f7   : > { %v7891_v10 = vadd.f32 %v16767_v42, %v7410_v25  ;;  %v11704_v23 = vpop.f32.mrf.mxu1  ;;  %11763 = vmatmul.mubr.msk.bf16.gmra.mxu1 %vm8219_vm1, %v8193_v36  ;;  %v8134_v31 = vmax.f32 %v7888_v22, %v8022_v14 }
 0x6f8   : > { %v17043_v46 = vadd.f32 %v11704_v23, %v16961_v2  ;;  %v7414_v27 = vpop.f32.mrf.mxu0  ;;  %v8617_v2 = vadd.f32 %v16972_v61, %v8431_v28 }
 0x6f9   : > { %v8023_v56 = vmul.f32 0.3, %v7891_v10  ;;  %v7415_v37 = vadd.f32 %v17009_v3, %v7414_v27  ;;  %v8719_v6 = vpop.f32.mrf.mxu1 }
 0x6fa   : > { %v17049_v29 = vadd.f32 %v8719_v6, %v16965_v21  ;;  %v7416_v49 = vpop.f32.mrf.mxu0 }
 0x6fb   : > { %v8135_v42 = vmax.f32 %v7891_v10, %v8023_v56  ;;  %v7896_v58 = vadd.f32 %v16753_v57, %v7415_v37  ;;  %v11705_v55 = vpop.f32.mrf.mxu1 }
 0x6fc   : > { %v17054_v34 = vadd.f32 %v11705_v55, %v16969_v41  ;;  %v7417_v40 = vpop.f32.mrf.mxu0 }
 0x6fd   : > { %v8194_v60 = vpack.c.bf16 %v8135_v42, %v8134_v31  ;;  %v7418_v9 = vadd.f32 %v17009_v3, %v7417_v40  ;;  %v8722_v13 = vpop.f32.mrf.mxu1  ;;  %v8024_v21 = vmul.f32 0.3, %v7896_v58 }
 0x6fe   : > { %v17057_v12 = vadd.f32 %v8722_v13, %v8617_v2  ;;  %v7419_v17 = vpop.f32.mrf.mxu0 }
 0x6ff   : > { %v7899_v59 = vadd.f32 %v16762_v50, %v7418_v9  ;;  %11766 = vmatprep.mubr.msk.bf16.mxu1 %vm8219_vm1, %v8194_v60  ;;  %v8136_v41 = vmax.f32 %v7896_v58, %v8024_v21 }
 0x700   : > { %v7422_v57 = vpop.f32.mrf.mxu0 }
 0x701   : > { %v8025_v20 = vmul.f32 0.3, %v7899_v59  ;;  %v7423_v61 = vadd.f32 %v17009_v3, %v7422_v57 }
 0x702   : > { %v7424_v35 = vpop.f32.mrf.mxu0 }
 0x703   : > { %v8137_v16 = vmax.f32 %v7899_v59, %v8025_v20  ;;  %v7904_v63 = vadd.f32 %v16776_v62, %v7423_v61  ;;  %v8447_v62 = vadd.f32 %v16924_v51, %v16845_v44  ;;  %v18555_v35 = vld [vmem:[#allocation46_spill] sm:$0xff] }
 0x704   : > { %v7425_v19 = vpop.f32.mrf.mxu0 }
 0x705   : > { %v8195_v53 = vpack.c.bf16 %v8137_v16, %v8136_v41  ;;  %v7426_v26 = vadd.f32 %v17009_v3, %v7425_v19  ;;  %v8026_v24 = vmul.f32 0.3, %v7904_v63  ;;  %v8621_v49 = vadd.f32 %v16988_v7, %v8447_v62 }
 0x706   : > { %v7427_v22 = vpop.f32.mrf.mxu0  ;;  %v8415_v41 = vadd.f32 %v16882_v45, %v18555_v35 }
 0x707   : > { %v7907_v36 = vadd.f32 %v16794_v30, %v7426_v26  ;;  %v11708_v50 = vpop.f32.mrf.mxu1  ;;  %11767 = vmatmul.mubr.msk.bf16.gmra.mxu1 %vm8219_vm1, %v8195_v53  ;;  %v8138_v37 = vmax.f32 %v7904_v63, %v8026_v24 }
 0x708   : > { %v8776_v25 = vadd.f32 %v11708_v50, %v16977_v43  ;;  %v7430_v15 = vpop.f32.mrf.mxu0  ;;  %v8613_v63 = vadd.f32 %v16956_v52, %v8415_v41 }
 0x709   : > { %v8027_v14 = vmul.f32 0.3, %v7907_v36  ;;  %v7431_v10 = vadd.f32 %v17009_v3, %v7430_v15  ;;  %v8735_v23 = vpop.f32.mrf.mxu1 }
 0x70a   : > { %v8774_v27 = vadd.f32 %v8735_v23, %v16981_v4  ;;  %v7432_v56 = vpop.f32.mrf.mxu0 }
 0x70b   : > { %v8139_v6 = vmax.f32 %v7907_v36, %v8027_v14  ;;  %v7912_v30 = vadd.f32 %v16771_v54, %v7431_v10  ;;  %v11709_v28 = vpop.f32.mrf.mxu1 }
 0x70c   : > { %v17074_v43 = vadd.f32 %v11709_v28, %v16985_v32  ;;  %v7433_v31 = vpop.f32.mrf.mxu0 }
 0x70d   : > { %v8196_v42 = vpack.c.bf16 %v8139_v6, %v8138_v37  ;;  %v7434_v58 = vadd.f32 %v17009_v3, %v7433_v31  ;;  %v8738_v55 = vpop.f32.mrf.mxu1  ;;  %v8028_v51 = vmul.f32 0.3, %v7912_v30  ;;  %v8463_v3 = vadd.f32 %v16940_v48, %v16865_v39 }
 0x70e   : > { %v17077_v2 = vadd.f32 %v8738_v55, %v8621_v49  ;;  %v7435_v44 = vpop.f32.mrf.mxu0 }
 0x70f   : > { %v7915_v4 = vadd.f32 %v16783_v47, %v7434_v58  ;;  %11770 = vmatprep.mubr.msk.bf16.mxu1 %vm8219_vm1, %v8196_v42  ;;  %v8140_v40 = vmax.f32 %v7912_v30, %v8028_v51  ;;  %v8625_v47 = vadd.f32 %v17013_v18, %v8463_v3 }
 0x711   : > { %v8029_v54 = vmul.f32 0.3, %v7915_v4 }
 0x713   : > { %v8141_v60 = vmax.f32 %v7915_v4, %v8029_v54 }
 0x715   : > { %v8197_v7 = vpack.c.bf16 %v8141_v60, %v8140_v40 }
 0x717   : > { %v11712_v9 = vpop.f32.mrf.mxu1  ;;  %11771 = vmatmul.mubr.msk.bf16.gmra.mxu1 %vm8219_vm1, %v8197_v7 }
 0x718   : > { %v8780_v32 = vadd.f32 %v11712_v9, %v16993_v1 }
 0x719   : > { %v8751_v13 = vpop.f32.mrf.mxu1 }
 0x71a   : > { %v8778_v17 = vadd.f32 %v8751_v13, %v16997_v0  ;;  %v8767_v0 = vadd.f32 %v17037_v8, %v8613_v63 }
 0x71b   : > { %v11713_v21 = vpop.f32.mrf.mxu1 }
 0x71c   : > { %v8781_v59 = vadd.f32 %v11713_v21, %v17001_v38 }
 0x71d   : > { %v8754_v57 = vpop.f32.mrf.mxu1 }
 0x71e   : > { %v8779_v20 = vadd.f32 %v8754_v57, %v8625_v47  ;;  %v17132_v57 = vld [vmem:[%s17380_s8] ss:$0 sm:$0xff] }
 0x727   : > { %v11720_v61 = vpop.f32.mrf.mxu1 }
 0x728   : > { %v8922_v16 = vadd.f32 %v11720_v61, %v17019_v33 }
 0x729   : > { %v8857_v1 = vpop.f32.mrf.mxu1 }
 0x72a   : > { %v8920_v39 = vadd.f32 %v8857_v1, %v17025_v5 }
 0x72b   : > { %v11721_v48 = vpop.f32.mrf.mxu1 }
 0x72c   : > { %v8923_v18 = vadd.f32 %v11721_v48, %v17029_v11 }
 0x72d   : > { %v8860_v19 = vpop.f32.mrf.mxu1 }
 0x72e   : > { %v8921_v38 = vadd.f32 %v8860_v19, %v8767_v0 }
 0x737   : > { %v11724_v53 = vpop.f32.mrf.mxu1 }
 0x738   : > { %v8926_v26 = vadd.f32 %v11724_v53, %v17043_v46 }
 0x739   : > { %v8873_v22 = vpop.f32.mrf.mxu1 }
 0x73a   : > { %v8924_v45 = vadd.f32 %v8873_v22, %v17049_v29 }
 0x73b   : > { %v11725_v24 = vpop.f32.mrf.mxu1 }
 0x73c   : > { %v8927_v33 = vadd.f32 %v11725_v24, %v17054_v34 }
 0x73d   : > { %v8876_v36 = vpop.f32.mrf.mxu1 }
 0x73e   : > { %v8925_v52 = vadd.f32 %v8876_v36, %v17057_v12 }
 0x747   : > { %v11728_v5 = vpop.f32.mrf.mxu1 }
 0x748   : > { %v17099_v50 = vadd.f32 %v11728_v5, %v8776_v25 }
 0x749   : > { %v8889_v8 = vpop.f32.mrf.mxu1 }
 0x74a   : > { %v17101_v15 = vadd.f32 %v8889_v8, %v8774_v27  ;;  %v17118_v27 = vld [vmem:[%s17381_s9 + $0x8] sm:$0xff]  }
 0x74b   : > { %v17103_v11 = vpop.f32.mrf.mxu1  ;;  %11786 = vmatprep.subr.bf16.mxu1 %v17118_v27 }
 0x74d   : > { %v17105_v14 = vpop.f32.mrf.mxu1 }
 0x757   : > { %v11732_v46 = vpop.f32.mrf.mxu1 }
 0x758   : > { %v17107_v10 = vadd.f32 %v11732_v46, %v8780_v32 }
 0x759   : > { %v8905_v29 = vpop.f32.mrf.mxu1 }
 0x75a   : > { %v17109_v23 = vadd.f32 %v8905_v29, %v8778_v17 }
 0x75b   : > { %v11733_v34 = vpop.f32.mrf.mxu1 }
 0x75c   : > { %v17111_v62 = vadd.f32 %v11733_v34, %v8781_v59 }
 0x75d   : > { %v8908_v12 = vpop.f32.mrf.mxu1 }
 0x75e   : > { %v17113_v56 = vadd.f32 %v8908_v12, %v8779_v20 }
 0x767   : > { %v11740_v25 = vpop.f32.mrf.mxu1 }
 0x768   : > { %v9076_v37 = vadd.f32 %v11740_v25, %v8922_v16 }
 0x769   : > { %v9011_v6 = vpop.f32.mrf.mxu1 }
 0x76a   : > { %v9074_v30 = vadd.f32 %v9011_v6, %v8920_v39 }
 0x76b   : > { %v11741_v28 = vpop.f32.mrf.mxu1 }
 0x76c   : > { %v9077_v49 = vadd.f32 %v11741_v28, %v8923_v18 }
 0x76d   : > { %v9014_v31 = vpop.f32.mrf.mxu1 }
 0x76e   : > { %v9075_v42 = vadd.f32 %v9014_v31, %v8921_v38 }
 0x777   : > { %v11744_v58 = vpop.f32.mrf.mxu1 }
 0x778   : > { %v9080_v55 = vadd.f32 %v11744_v58, %v8926_v26 }
 0x779   : > { %v9027_v44 = vpop.f32.mrf.mxu1 }
 0x77a   : > { %v9078_v51 = vadd.f32 %v9027_v44, %v8924_v45 }
 0x77b   : > { %v11745_v4 = vpop.f32.mrf.mxu1 }
 0x77c   : > { %v9081_v54 = vadd.f32 %v11745_v4, %v8927_v33 }
 0x77d   : > { %v9030_v40 = vpop.f32.mrf.mxu1 }
 0x77e   : > { %v9079_v60 = vadd.f32 %v9030_v40, %v8925_v52 }
 0x787   : > { %v11748_v7 = vpop.f32.mrf.mxu1 }
 0x789   : > { %v9043_v9 = vpop.f32.mrf.mxu1 }
 0x78b   : > { %v11749_v32 = vpop.f32.mrf.mxu1 }
 0x78d   : > { %v9046_v13 = vpop.f32.mrf.mxu1 }
 0x797   : > { %v17121_v3 = vpop.f32.mrf.mxu1 }
 0x799   : > { %v17123_v17 = vpop.f32.mrf.mxu1 }
 0x79b   : > { %v17125_v21 = vpop.f32.mrf.mxu1 }
 0x79d   : > { %v17127_v47 = vpop.f32.mrf.mxu1 }
 0x7a7   : > { %v11760_v59 = vpop.f32.mrf.mxu1 }
 0x7a8   : > { %v9230_v20 = vadd.f32 %v11760_v59, %v9076_v37 }
 0x7a9   : > { %v9165_v61 = vpop.f32.mrf.mxu1 }
 0x7aa   : > { %v9253_v35 = vadd.f32 %v17132_v57, %v9230_v20  ;;  %v9228_v41 = vadd.f32 %v9165_v61, %v9074_v30  ;;  %v9084_v20 = vadd.f32 %v11748_v7, %v17099_v50 }
 0x7ab   : > { %v11761_v16 = vpop.f32.mrf.mxu1 }
 0x7ac   : > { %v9251_v1 = vadd.f32 %v17132_v57, %v9228_v41  ;;  %v9231_v63 = vadd.f32 %v11761_v16, %v9077_v49  ;;  %v9269_v48 = vmul.f32 0.3, %v9253_v35 }
 0x7ad   : > { %v9168_v39 = vpop.f32.mrf.mxu1 }
 0x7ae   : > { %v9254_v0 = vadd.f32 %v17132_v57, %v9231_v63  ;;  %v9229_v18 = vadd.f32 %v9168_v39, %v9075_v42  ;;  %v9267_v19 = vmul.f32 0.3, %v9251_v1  ;;  %v9285_v26 = vmax.f32 %v9253_v35, %v9269_v48 }
 0x7af   : > { %v8931_v35 = vadd.f32 %v17103_v11, %v17074_v43 }
 0x7b0   : > { %v9270_v38 = vmul.f32 0.3, %v9254_v0  ;;  %v9252_v53 = vadd.f32 %v17132_v57, %v9229_v18  ;;  %v9283_v24 = vmax.f32 %v9251_v1, %v9267_v19  ;;  %v8929_v1 = vadd.f32 %v17105_v14, %v17077_v2 }
 0x7b1   : > { %v9085_v63 = vadd.f32 %v11749_v32, %v8931_v35 }
 0x7b2   : > { %v9286_v22 = vmax.f32 %v9254_v0, %v9270_v38  ;;  %v9268_v45 = vmul.f32 0.3, %v9252_v53  ;;  %v9083_v18 = vadd.f32 %v9046_v13, %v8929_v1  ;;  %v9088_v13 = vadd.f32 %v17121_v3, %v17107_v10 }
 0x7b3   : > { %v9087_v10 = vadd.f32 %v17127_v47, %v17113_v56  ;;  %v12150_v56 = vld [vmem:[%s17381_s9] sm:$0xff]   ;;  %v12151_v47 = vld [vmem:[%s17383_s11 + $0x8] sm:$0xff]  }
 0x7b4   : > { %v17138_v33 = vpack.c.bf16 %v9286_v22, %v9285_v26  ;;  %v9284_v36 = vmax.f32 %v9252_v53, %v9268_v45 }
 0x7b6   : > { %v17140_v52 = vpack.c.bf16 %v9284_v36, %v9283_v24 }
 0x7b7   : > { %v11764_v5 = vpop.f32.mrf.mxu1 }
 0x7b8   : > { %v9234_v8 = vadd.f32 %v11764_v5, %v9080_v55  ;;  %v9086_v5 = vadd.f32 %v17123_v17, %v17109_v23 }
 0x7b9   : > { %v9181_v46 = vpop.f32.mrf.mxu1 }
 0x7ba   : > { %v9257_v29 = vadd.f32 %v17132_v57, %v9234_v8  ;;  %v9232_v34 = vadd.f32 %v9181_v46, %v9078_v51 }
 0x7bb   : > { %v11765_v12 = vpop.f32.mrf.mxu1 }
 0x7bc   : > { %v9255_v25 = vadd.f32 %v17132_v57, %v9232_v34  ;;  %v9235_v37 = vadd.f32 %v11765_v12, %v9081_v54  ;;  %v9273_v30 = vmul.f32 0.3, %v9257_v29 }
 0x7bd   : > { %v9184_v6 = vpop.f32.mrf.mxu1 }
 0x7be   : > { %v9258_v28 = vadd.f32 %v17132_v57, %v9235_v37  ;;  %v9233_v49 = vadd.f32 %v9184_v6, %v9079_v60  ;;  %v9271_v31 = vmul.f32 0.3, %v9255_v25  ;;  %v9289_v44 = vmax.f32 %v9257_v29, %v9273_v30 }
 0x7bf   : > { %v9082_v60 = vadd.f32 %v9043_v9, %v17101_v15  ;;  %v9089_v29 = vadd.f32 %v17125_v21, %v17111_v62 }
 0x7c0   : > { %v9274_v42 = vmul.f32 0.3, %v9258_v28  ;;  %v9256_v58 = vadd.f32 %v17132_v57, %v9233_v49  ;;  %v9287_v40 = vmax.f32 %v9255_v25, %v9271_v31 }
 0x7c2   : > { %v9290_v4 = vmax.f32 %v9258_v28, %v9274_v42  ;;  %v9272_v55 = vmul.f32 0.3, %v9256_v58 }
 0x7c4   : > { %v17146_v59 = vpack.c.bf16 %v9290_v4, %v9289_v44  ;;  %v9288_v51 = vmax.f32 %v9256_v58, %v9272_v55 }
 0x7c6   : > { %v17149_v61 = vpack.c.bf16 %v9288_v51, %v9287_v40 }
 0x7c7   : > { %v11768_v54 = vpop.f32.mrf.mxu1 }
 0x7c8   : > { %v9238_v41 = vadd.f32 %v11768_v54, %v9084_v20 }
 0x7c9   : > { %v9197_v16 = vpop.f32.mrf.mxu1 }
 0x7ca   : > { %v9261_v39 = vadd.f32 %v17132_v57, %v9238_v41  ;;  %v9236_v48 = vadd.f32 %v9197_v16, %v9082_v60  ;;  %v10847_v16 = vld [vmem:[%s17382_s10] ss:$0 sm:$0xff] }
 0x7cb   : > { %v11769_v0 = vpop.f32.mrf.mxu1 }
 0x7cc   : > { %v9259_v50 = vadd.f32 %v17132_v57, %v9236_v48  ;;  %v9239_v7 = vadd.f32 %v11769_v0, %v9085_v63  ;;  %v9277_v38 = vmul.f32 0.3, %v9261_v39 }
 0x7cd   : > { %v9200_v19 = vpop.f32.mrf.mxu1 }
 0x7ce   : > { %v9262_v43 = vadd.f32 %v17132_v57, %v9239_v7  ;;  %v9237_v11 = vadd.f32 %v9200_v19, %v9083_v18  ;;  %v9275_v15 = vmul.f32 0.3, %v9259_v50  ;;  %v9293_v26 = vmax.f32 %v9261_v39, %v9277_v38 }
 0x7d0   : > { %v9278_v9 = vmul.f32 0.3, %v9262_v43  ;;  %v9260_v53 = vadd.f32 %v17132_v57, %v9237_v11  ;;  %v9291_v32 = vmax.f32 %v9259_v50, %v9275_v15 }
 0x7d2   : > { %v9294_v2 = vmax.f32 %v9262_v43, %v9278_v9  ;;  %v9276_v14 = vmul.f32 0.3, %v9260_v53 }
 0x7d4   : > { %v9304_v22 = vpack.c.bf16 %v9294_v2, %v9293_v26  ;;  %v9292_v45 = vmax.f32 %v9260_v53, %v9276_v14 }
 0x7d6   : > { %v9303_v24 = vpack.c.bf16 %v9292_v45, %v9291_v32 }
 0x7d7   : > { %v11772_v36 = vpop.f32.mrf.mxu1 }
 0x7d8   : > { %v9242_v8 = vadd.f32 %v11772_v36, %v9088_v13  ;;  %11778 = vmatprep.mubr.msk.bf16.mxu0 %vm8219_vm1, %v9303_v24 }
 0x7d9   : > { %v9213_v46 = vpop.f32.mrf.mxu1  ;;  %11779 = vmatmul.mubr.msk.bf16.vlgmr.msra.gmra.mxu0 %vm8219_vm1, %v9304_v22 }
 0x7da   : > { %v9265_v34 = vadd.f32 %v17132_v57, %v9242_v8  ;;  %v9240_v12 = vadd.f32 %v9213_v46, %v9086_v5 }
 0x7db   : > { %v11773_v25 = vpop.f32.mrf.mxu1 }
 0x7dc   : > { %v9263_v3 = vadd.f32 %v17132_v57, %v9240_v12  ;;  %v9243_v37 = vadd.f32 %v11773_v25, %v9089_v29  ;;  %v9281_v17 = vmul.f32 0.3, %v9265_v34 }
 0x7dd   : > { %v9216_v23 = vpop.f32.mrf.mxu1 }
 0x7de   : > { %v9266_v6 = vadd.f32 %v17132_v57, %v9243_v37  ;;  %v9241_v30 = vadd.f32 %v9216_v23, %v9087_v10  ;;  %v9279_v28 = vmul.f32 0.3, %v9263_v3  ;;  %v9297_v62 = vmax.f32 %v9265_v34, %v9281_v17 }
 0x7e0   : > { %v9282_v49 = vmul.f32 0.3, %v9266_v6  ;;  %v9264_v31 = vadd.f32 %v17132_v57, %v9241_v30  ;;  %v9295_v58 = vmax.f32 %v9263_v3, %v9279_v28  ;;  %v12153_v57 = vld [vmem:[%s17383_s11 + $0x18] sm:$0xff]  }
 0x7e1   : > { %11798 = vmatprep.subr.bf16.mxu0 %v12153_v57 }
 0x7e2   : > { %v9298_v21 = vmax.f32 %v9266_v6, %v9282_v49  ;;  %v9280_v42 = vmul.f32 0.3, %v9264_v31  ;;  %11799 = vmatpush3.bf16.msra.mxu0 %v12153_v57 }
 0x7e4   : > { %v9306_v44 = vpack.c.bf16 %v9298_v21, %v9297_v62  ;;  %v9296_v4 = vmax.f32 %v9264_v31, %v9280_v42  ;;  %v12155_v21 = vld [vmem:[%s17385_s13 + $0x18] sm:$0xff]   ;;  %v12217_v42 = vmov 0.0  }
 0x7e6   : > { %v9305_v55 = vpack.c.bf16 %v9296_v4, %v9295_v58  ;;  %v12156_v58 = vld [vmem:[%s17385_s13 + $0x28] sm:$0xff]   ;;  %v12158_v4 = vld [vmem:[%s17385_s13 + $0x20] sm:$0xff]  }
 0x7e8   : > { %11782 = vmatprep.mubr.msk.bf16.mxu1 %vm8219_vm1, %v9305_v55 }
 0x7e9   : > { %11783 = vmatmul.mubr.msk.bf16.vlgmr.msra.gmra.mxu1 %vm8219_vm1, %v9306_v44  ;;  %v12157_v44 = vld [vmem:[%s17385_s13 + $0x10] sm:$0xff]  }
 0x7ea   : > { %11787 = vmatpush3.bf16.msra.mxu1 %v17118_v27  ;;  %11790 = vmatprep.mubr.msk.bf16.mxu1 %vm8219_vm1, %v17140_v52  ;;  %v12152_v27 = vld [vmem:[%s17383_s11] sm:$0xff]  }
 0x7eb   : > { %11788 = vmatprep.subr.bf16.mxu1 %v12150_v56 }
 0x7ee   : > { %11789 = vmatpush3.bf16.msra.mxu1 %v12150_v56 }
 0x7ef   : > { %11806 = vmatprep.subr.bf16.mxu1 %v12151_v47 }
 0x7f1   : > { %11791 = vmatmul.mubr.msk.bf16.vlgmr.msra.gmra.mxu1 %vm8219_vm1, %v17138_v33  ;;  %v12154_v33 = vld [vmem:[%s17383_s11 + $0x10] sm:$0xff]  }
 0x7f2   : > { %11794 = vmatprep.mubr.msk.bf16.mxu1 %vm8219_vm1, %v17149_v61  ;;  %11807 = vmatpush3.bf16.msra.mxu1 %v12151_v47 }
 0x7f3   : > { %11808 = vmatprep.subr.bf16.mxu1 %v12152_v27  ;;  %11800 = vmatprep.subr.bf16.mxu0 %v12154_v33 }
 0x7f4   : > { %11801 = vmatpush3.bf16.msra.mxu0 %v12154_v33 }
 0x7f5   : > { %11814 = vmatprep.subr.bf16.mxu0 %v12217_v42 }
 0x7f6   : > { %11809 = vmatpush3.bf16.msra.mxu1 %v12152_v27 }
 0x7f7   : > { %11822 = vmatprep.subr.bf16.mxu1 %v12217_v42 }
 0x7f9   : > { %11795 = vmatmul.mubr.msk.bf16.gmra.mxu1 %vm8219_vm1, %v17146_v59 }
 0x899   : > { %v11780_v40 = vpop.f32.mrf.mxu0 }
 0x89b   : > { %v9374_v20 = vpop.f32.mrf.mxu0 }
 0x89d   : > { %v11781_v35 = vpop.f32.mrf.mxu0 }
 0x89f   : > { %v9377_v0 = vpop.f32.mrf.mxu0 }
 0x8a9   : > { %v11784_v52 = vpop.f32.mrf.mxu1 }
 0x8ab   : > { %v9390_v59 = vpop.f32.mrf.mxu1 }
 0x8ad   : > { %v11785_v51 = vpop.f32.mrf.mxu1 }
 0x8af   : > { %v9393_v61 = vpop.f32.mrf.mxu1 }
 0x8b1   : > { %v11792_v54 = vpop.f32.mrf.mxu1 }
 0x8b2   : > { %v9472_v60 = vadd.f32 %v11792_v54, %v11780_v40  ;;  %v10860_v40 = vld [vmem:[%s17384_s12] ss:$0 sm:$0xff] }
 0x8b3   : > { %v9463_v41 = vpop.f32.mrf.mxu1 }
 0x8b4   : > { %v9464_v1 = vadd.f32 %v9463_v41, %v9374_v20  ;;  %v9503_v18 = vadd.f32 %v10847_v16, %v9472_v60 }
 0x8b5   : > { %v11793_v63 = vpop.f32.mrf.mxu1 }
 0x8b6   : > { %v9501_v39 = vadd.f32 %v10847_v16, %v9464_v1  ;;  %v9475_v48 = vadd.f32 %v11793_v63, %v11781_v35  ;;  %v9511_v9 = vmul.f32 0.3, %v9503_v18 }
 0x8b7   : > { %v9466_v50 = vpop.f32.mrf.mxu1 }
 0x8b8   : > { %v9504_v7 = vadd.f32 %v10847_v16, %v9475_v48  ;;  %v9467_v19 = vadd.f32 %v9466_v50, %v9377_v0  ;;  %v9509_v43 = vmul.f32 0.3, %v9501_v39  ;;  %v9519_v36 = vmax.f32 %v9503_v18, %v9511_v9  ;;  %v12159_v18 = vld [vmem:[%s17385_s13 + $0x38] sm:$0xff]  }
 0x8b9   : > { %v11796_v38 = vpop.f32.mrf.mxu1 }
 0x8ba   : > { %v9512_v11 = vmul.f32 0.3, %v9504_v7  ;;  %v9502_v15 = vadd.f32 %v10847_v16, %v9467_v19  ;;  %v9488_v53 = vadd.f32 %v11796_v38, %v11784_v52  ;;  %v9517_v45 = vmax.f32 %v9501_v39, %v9509_v43  ;;  %v12160_v38 = vld [vmem:[%s17385_s13 + $0x30] sm:$0xff]  }
 0x8bb   : > { %v9479_v26 = vpop.f32.mrf.mxu1 }
 0x8bc   : > { %v9510_v2 = vmul.f32 0.3, %v9502_v15  ;;  %v9480_v14 = vadd.f32 %v9479_v26, %v9390_v59  ;;  %v9520_v32 = vmax.f32 %v9504_v7, %v9512_v11  ;;  %v9507_v5 = vadd.f32 %v10847_v16, %v9488_v53  ;;  %v12162_v53 = vld [vmem:[%s17385_s13] sm:$0xff]  }
 0x8bd   : > { %v11797_v22 = vpop.f32.mrf.mxu1 }
 0x8be   : > { %v9518_v13 = vmax.f32 %v9502_v15, %v9510_v2  ;;  %v9505_v24 = vadd.f32 %v10847_v16, %v9480_v14  ;;  %v9491_v8 = vadd.f32 %v11797_v22, %v11785_v51  ;;  %v9526_v12 = vpack.c.bf16 %v9520_v32, %v9519_v36  ;;  %v12161_v15 = vld [vmem:[%s17385_s13 + $0x8] sm:$0xff]   ;;  %v12163_v2 = vld [vmem:[%s17387_s15 + $0x38] sm:$0xff]   ;;  %v12164_v14 = vld [vmem:[%s17387_s15 + $0x30] sm:$0xff]  }
 0x8bf   : > { %v9482_v46 = vpop.f32.mrf.mxu1  ;;  %v9515_v37 = vmul.f32 0.3, %v9507_v5  ;;  %v12165_v32 = vld [vmem:[%s17387_s15 + $0x28] sm:$0xff]   ;;  %v12166_v22 = vld [vmem:[%s17387_s15 + $0x58] sm:$0xff]   ;;  %v12170_v36 = vld [vmem:[%s17387_s15 + $0x40] sm:$0xff]  }
 0x8c0   : > { %v9525_v29 = vpack.c.bf16 %v9518_v13, %v9517_v45  ;;  %v9483_v34 = vadd.f32 %v9482_v46, %v9393_v61  ;;  %v9508_v25 = vadd.f32 %v10847_v16, %v9491_v8  ;;  %v9513_v10 = vmul.f32 0.3, %v9505_v24  ;;  %v12167_v45 = vld [vmem:[%s17387_s15 + $0x20] sm:$0xff]   ;;  %v12168_v13 = vld [vmem:[%s17387_s15 + $0x50] sm:$0xff]  }
 0x8c1   : > { %v9523_v49 = vmax.f32 %v9507_v5, %v9515_v37 }
 0x8c2   : > { %v9506_v3 = vadd.f32 %v10847_v16, %v9483_v34  ;;  %11810 = vmatprep.mubr.msk.bf16.mxu1 %vm8219_vm1, %v9525_v29  ;;  %v9516_v23 = vmul.f32 0.3, %v9508_v25  ;;  %v9521_v30 = vmax.f32 %v9505_v24, %v9513_v10  ;;  %v12169_v24 = vld [vmem:[%s17387_s15 + $0x48] sm:$0xff]  }
 0x8c3   : > { %11811 = vmatmul.mubr.msk.bf16.vlgmr.msra.gmra.mxu1 %vm8219_vm1, %v9526_v12 }
 0x8c4   : > { %v9514_v17 = vmul.f32 0.3, %v9506_v3  ;;  %v9524_v6 = vmax.f32 %v9508_v25, %v9516_v23  ;;  %11823 = vmatpush3.bf16.msra.mxu1 %v12155_v21  ;;  %11826 = vmatprep.mubr.msk.bf16.mxu1 %vm12218_vm2, %v12217_v42 }
 0x8c5   : > { %11824 = vmatprep.subr.bf16.mxu1 %v12217_v42 }
 0x8c6   : > { %v9522_v28 = vmax.f32 %v9506_v3, %v9514_v17  ;;  %v9528_v62 = vpack.c.bf16 %v9524_v6, %v9523_v49  ;;  %v10882_v6 = vld [vmem:[%s17386_s14] ss:$0 sm:$0xff] }
 0x8c8   : > { %v9527_v31 = vpack.c.bf16 %v9522_v28, %v9521_v30  ;;  %11825 = vmatpush3.bf16.msra.mxu1 %v12157_v44 }
 0x8c9   : > { %11838 = vmatprep.subr.bf16.mxu1 %v12217_v42 }
 0x8ca   : > { %11802 = vmatprep.mubr.msk.bf16.mxu0 %vm8219_vm1, %v9527_v31 }
 0x8cb   : > { %11803 = vmatmul.mubr.msk.bf16.vlgmr.msra.gmra.mxu0 %vm8219_vm1, %v9528_v62 }
 0x8cc   : > { %11815 = vmatpush3.bf16.msra.mxu0 %v12156_v58  ;;  %11818 = vmatprep.mubr.msk.bf16.mxu0 %vm12218_vm2, %v12217_v42 }
 0x8cd   : > { %11816 = vmatprep.subr.bf16.mxu0 %v12217_v42 }
 0x8d0   : > { %11817 = vmatpush3.bf16.msra.mxu0 %v12158_v4 }
 0x8d1   : > { %11830 = vmatprep.subr.bf16.mxu0 %v12217_v42 }
 0x983   : > { %v11812_v55 = vpop.f32.mrf.mxu1 }
 0x985   : > { %v9657_v56 = vpop.f32.mrf.mxu1 }
 0x987   : > { %v11813_v27 = vpop.f32.mrf.mxu1 }
 0x989   : > { %v9660_v20 = vpop.f32.mrf.mxu1 }
 0x98b   : > { %v11804_v47 = vpop.f32.mrf.mxu0 }
 0x98c   : > { %v9666_v33 = vadd.f32 %v11812_v55, %v11804_v47 }
 0x98d   : > { %v9590_v57 = vpop.f32.mrf.mxu0 }
 0x98e   : > { %v9658_v52 = vadd.f32 %v9657_v56, %v9590_v57  ;;  %v9681_v54 = vadd.f32 %v10860_v40, %v9666_v33 }
 0x98f   : > { %v11805_v59 = vpop.f32.mrf.mxu0 }
 0x990   : > { %v9679_v51 = vadd.f32 %v10860_v40, %v9658_v52  ;;  %v9685_v1 = vmul.f32 0.3, %v9681_v54  ;;  %v9669_v39 = vadd.f32 %v11813_v27, %v11805_v59 }
 0x991   : > { %v9593_v61 = vpop.f32.mrf.mxu0 }
 0x992   : > { %v9683_v35 = vmul.f32 0.3, %v9679_v51  ;;  %v9661_v60 = vadd.f32 %v9660_v20, %v9593_v61  ;;  %v9689_v50 = vmax.f32 %v9681_v54, %v9685_v1  ;;  %v9682_v7 = vadd.f32 %v10860_v40, %v9669_v39  ;;  %v12173_v1 = vld [vmem:[%s17389_s17 + $0x28] sm:$0xff]   ;;  %v12175_v39 = vld [vmem:[%s17389_s17 + $0x18] sm:$0xff]  }
 0x994   : > { %v9687_v41 = vmax.f32 %v9679_v51, %v9683_v35  ;;  %v9680_v16 = vadd.f32 %v10860_v40, %v9661_v60  ;;  %v9693_v43 = vpack.c.bf16 %v9689_v50, %v9689_v50  ;;  %v9686_v11 = vmul.f32 0.3, %v9682_v7  ;;  %v12171_v60 = vld [vmem:[%s17389_s17 + $0x38] sm:$0xff]  }
 0x995   : > { %v12179_v50 = vld [vmem:[%s17391_s19 + $0x18] sm:$0xff]  }
 0x996   : > { %v9691_v63 = vpack.c.bf16 %v9687_v41, %v9687_v41  ;;  %v9684_v48 = vmul.f32 0.3, %v9680_v16  ;;  %v9690_v9 = vmax.f32 %v9682_v7, %v9686_v11  ;;  %v12180_v7 = vld [vmem:[%s17391_s19 + $0x10] sm:$0xff]  }
 0x998   : > { %v9688_v0 = vmax.f32 %v9680_v16, %v9684_v48  ;;  %11827 = vmatmul.mubr.msk.bf16.vlgmr.msra.gmra.mxu1 %vm8219_vm1, %v9691_v63  ;;  %v9694_v26 = vpack.c.bf16 %v9690_v9, %v9690_v9  ;;  %v12172_v16 = vld [vmem:[%s17389_s17 + $0x30] sm:$0xff]   ;;  %v12174_v63 = vld [vmem:[%s17389_s17 + $0x20] sm:$0xff]  }
 0x999   : > { %11839 = vmatpush3.bf16.msra.mxu1 %v12155_v21  ;;  %11842 = vmatprep.mubr.msk.bf16.mxu1 %vm12218_vm2, %v12217_v42  ;;  %v12176_v48 = vld [vmem:[%s17389_s17 + $0x10] sm:$0xff]   ;;  %v10914_v9 = vld [vmem:[%s17388_s16] ss:$0 sm:$0xff] }
 0x99a   : > { %v9692_v19 = vpack.c.bf16 %v9688_v0, %v9688_v0  ;;  %11840 = vmatprep.subr.bf16.mxu1 %v12217_v42  ;;  %v12177_v0 = vld [vmem:[%s17389_s17 + $0x8] sm:$0xff]  }
 0x99c   : > { %11819 = vmatmul.mubr.msk.bf16.vlgmr.msra.gmra.mxu0 %vm8219_vm1, %v9692_v19 }
 0x99d   : > { %11831 = vmatpush3.bf16.msra.mxu0 %v12159_v18  ;;  %11841 = vmatpush3.bf16.msra.mxu1 %v12157_v44  ;;  %v12178_v18 = vld [vmem:[%s17389_s17] sm:$0xff]  }
 0x99e   : > { %11832 = vmatprep.subr.bf16.mxu0 %v12217_v42  ;;  %11854 = vmatprep.subr.bf16.mxu1 %v12217_v42 }
 0x99f   : > { %11834 = vmatprep.mubr.msk.bf16.mxu0 %vm12218_vm2, %v12217_v42 }
 0x9a0   : > { %11843 = vmatmul.mubr.msk.bf16.vlgmr.msra.gmra.mxu1 %vm8219_vm1, %v9693_v43 }
 0x9a1   : > { %11833 = vmatpush3.bf16.msra.mxu0 %v12160_v38  ;;  %11855 = vmatpush3.bf16.msra.mxu1 %v12156_v58 }
 0x9a2   : > { %11846 = vmatprep.subr.bf16.mxu0 %v12217_v42  ;;  %11856 = vmatprep.subr.bf16.mxu1 %v12217_v42 }
 0x9a3   : > { %11858 = vmatprep.mubr.msk.bf16.mxu1 %vm12218_vm2, %v12217_v42 }
 0x9a4   : > { %11835 = vmatmul.mubr.msk.bf16.vlgmr.msra.gmra.mxu0 %vm8219_vm1, %v9693_v43 }
 0x9a5   : > { %11847 = vmatpush3.bf16.msra.mxu0 %v12161_v15  ;;  %11857 = vmatpush3.bf16.msra.mxu1 %v12158_v4 }
 0x9a6   : > { %11848 = vmatprep.subr.bf16.mxu0 %v12217_v42  ;;  %11850 = vmatprep.mubr.msk.bf16.mxu0 %vm12218_vm2, %v12217_v42 }
 0x9a7   : > { %11874 = vmatprep.subr.bf16.mxu1 %v12217_v42 }
 0x9a8   : > { %11859 = vmatmul.mubr.msk.bf16.vlgmr.msra.gmra.mxu1 %vm8219_vm1, %v9694_v26 }
 0x9a9   : > { %11849 = vmatpush3.bf16.msra.mxu0 %v12162_v53  ;;  %11882 = vmatprep.mubr.msk.bf16.mxu1 %vm12218_vm2, %v12217_v42 }
 0x9aa   : > { %11862 = vmatprep.subr.bf16.mxu0 %v12217_v42  ;;  %11875 = vmatpush3.bf16.msra.mxu1 %v12163_v2 }
 0x9ab   : > { %11876 = vmatprep.subr.bf16.mxu1 %v12217_v42 }
 0x9ac   : > { %11851 = vmatmul.mubr.msk.bf16.vlgmr.msra.gmra.mxu0 %vm8219_vm1, %v9692_v19 }
 0x9ad   : > { %11870 = vmatprep.mubr.msk.bf16.mxu0 %vm12218_vm2, %v12217_v42  ;;  %11863 = vmatpush3.bf16.msra.mxu0 %v12166_v22 }
 0x9ae   : > { %11877 = vmatpush3.bf16.msra.mxu1 %v12164_v14  ;;  %11864 = vmatprep.subr.bf16.mxu0 %v12217_v42 }
 0x9af   : > { %11878 = vmatprep.subr.bf16.mxu1 %v12217_v42 }
 0x9b1   : > { %11865 = vmatpush3.bf16.msra.mxu0 %v12168_v13 }
 0x9b2   : > { %11879 = vmatpush3.bf16.msra.mxu1 %v12165_v32  ;;  %11866 = vmatprep.subr.bf16.mxu0 %v12217_v42 }
 0x9b3   : > { %11880 = vmatprep.subr.bf16.mxu1 %v12217_v42 }
 0x9b5   : > { %11867 = vmatpush3.bf16.msra.mxu0 %v12169_v24  ;;  %v12181_v24 = vld [vmem:[%s17391_s19 + $0x8] sm:$0xff]  }
 0x9b6   : > { %11881 = vmatpush3.bf16.msra.mxu1 %v12167_v45  ;;  %11868 = vmatprep.subr.bf16.mxu0 %v12217_v42 }
 0x9b7   : > { %11906 = vmatprep.subr.bf16.mxu1 %v12217_v42 }
 0x9b9   : > { %11869 = vmatpush3.bf16.msra.mxu0 %v12170_v36  ;;  %v12182_v36 = vld [vmem:[%s17391_s19] sm:$0xff]  }
 0x9ba   : > { %11886 = vmatprep.subr.bf16.mxu0 %v12217_v42 }
 0xa58   : > { %v9809_v5 = vpop.f32.mrf.mxu1 }
 0xa5a   : > { %v11828_v8 = vpop.f32.mrf.mxu1 }
 0xa5c   : > { %v9754_v46 = vpop.f32.mrf.mxu0  ;;  %v9812_v29 = vpop.f32.mrf.mxu1 }
 0xa5d   : > { %v9810_v23 = vadd.f32 %v9809_v5, %v9754_v46  ;;  %v10915_v5 = vld [vmem:[%s17390_s18] ss:$0 sm:$0xff] }
 0xa5e   : > { %v11820_v34 = vpop.f32.mrf.mxu0  ;;  %v11829_v12 = vpop.f32.mrf.mxu1 }
 0xa60   : > { %v9757_v25 = vpop.f32.mrf.mxu0  ;;  %v9925_v10 = vpop.f32.mrf.mxu1 }
 0xa62   : > { %v11821_v3 = vpop.f32.mrf.mxu0  ;;  %v11844_v37 = vpop.f32.mrf.mxu1 }
 0xa64   : > { %v9869_v17 = vpop.f32.mrf.mxu0  ;;  %v9928_v30 = vpop.f32.mrf.mxu1 }
 0xa65   : > { %v9875_v28 = vadd.f32 %v9869_v17, %v9810_v23 }
 0xa66   : > { %v11836_v49 = vpop.f32.mrf.mxu0  ;;  %v11845_v31 = vpop.f32.mrf.mxu1 }
 0xa67   : > { %v9883_v62 = vadd.f32 %v10882_v6, %v9875_v28 }
 0xa68   : > { %v9872_v21 = vpop.f32.mrf.mxu0  ;;  %v10020_v58 = vpop.f32.mrf.mxu1 }
 0xa69   : > { %v9884_v44 = vmul.f32 0.3, %v9883_v62 }
 0xa6a   : > { %v11837_v4 = vpop.f32.mrf.mxu0  ;;  %v11860_v55 = vpop.f32.mrf.mxu1 }
 0xa6b   : > { %v9885_v56 = vmax.f32 %v9883_v62, %v9884_v44 }
 0xa6c   : > { %v9977_v47 = vpop.f32.mrf.mxu0  ;;  %v10023_v27 = vpop.f32.mrf.mxu1 }
 0xa6d   : > { %v9886_v57 = vpack.c.bf16 %v9885_v56, %v9885_v56  ;;  %v9978_v33 = vadd.f32 %v9977_v47, %v9925_v10 }
 0xa6e   : > { %v11852_v52 = vpop.f32.mrf.mxu0  ;;  %v11861_v40 = vpop.f32.mrf.mxu1 }
 0xa6f   : > { %v10026_v59 = vadd.f32 %v10020_v58, %v9978_v33  ;;  %11883 = vmatmul.mubr.msk.bf16.vlgmr.msra.gmra.mxu1 %vm10073_vm3, %v9886_v57 }
 0xa70   : > { %v9980_v51 = vpop.f32.mrf.mxu0  ;;  %11914 = vmatprep.mubr.msk.bf16.mxu1 %vm12218_vm2, %v12217_v42  ;;  %11907 = vmatpush3.bf16.msra.mxu1 %v12179_v50 }
 0xa71   : > { %v10027_v20 = vadd.f32 %v10882_v6, %v10026_v59  ;;  %11908 = vmatprep.subr.bf16.mxu1 %v12217_v42 }
 0xa72   : > { %v11853_v61 = vpop.f32.mrf.mxu0 }
 0xa73   : > { %v10028_v54 = vmul.f32 0.3, %v10027_v20 }
 0xa74   : > { %11909 = vmatpush3.bf16.msra.mxu1 %v12180_v7 }
 0xa75   : > { %v10029_v35 = vmax.f32 %v10027_v20, %v10028_v54  ;;  %11910 = vmatprep.subr.bf16.mxu1 %v12217_v42 }
 0xa77   : > { %v10030_v41 = vpack.c.bf16 %v10029_v35, %v10029_v35 }
 0xa78   : > { %11911 = vmatpush3.bf16.msra.mxu1 %v12181_v24 }
 0xa79   : > { %11871 = vmatmul.mubr.msk.bf16.vlgmr.msra.gmra.mxu0 %vm10073_vm3, %v10030_v41  ;;  %11912 = vmatprep.subr.bf16.mxu1 %v12217_v42 }
 0xa7a   : > { %11887 = vmatpush3.bf16.msra.mxu0 %v12171_v60  ;;  %11902 = vmatprep.mubr.msk.bf16.mxu0 %vm12218_vm2, %v12217_v42 }
 0xa7b   : > { %11888 = vmatprep.subr.bf16.mxu0 %v12217_v42 }
 0xa7c   : > { %11913 = vmatpush3.bf16.msra.mxu1 %v12182_v36 }
 0xa7e   : > { %11889 = vmatpush3.bf16.msra.mxu0 %v12172_v16 }
 0xa7f   : > { %11890 = vmatprep.subr.bf16.mxu0 %v12217_v42 }
 0xa82   : > { %11891 = vmatpush3.bf16.msra.mxu0 %v12173_v1 }
 0xa83   : > { %11892 = vmatprep.subr.bf16.mxu0 %v12217_v42 }
 0xa86   : > { %11893 = vmatpush3.bf16.msra.mxu0 %v12174_v63 }
 0xa87   : > { %11894 = vmatprep.subr.bf16.mxu0 %v12217_v42 }
 0xa8a   : > { %11895 = vmatpush3.bf16.msra.mxu0 %v12175_v39 }
 0xa8b   : > { %11896 = vmatprep.subr.bf16.mxu0 %v12217_v42 }
 0xa8e   : > { %11897 = vmatpush3.bf16.msra.mxu0 %v12176_v48 }
 0xa8f   : > { %11898 = vmatprep.subr.bf16.mxu0 %v12217_v42 }
 0xa92   : > { %11899 = vmatpush3.bf16.msra.mxu0 %v12177_v0 }
 0xa93   : > { %11900 = vmatprep.subr.bf16.mxu0 %v12217_v42  ;;  %v10924_v42 = vld [vmem:[#allocation2] ss:$0 sm:$0xff] }
 0xa96   : > { %11901 = vmatpush3.bf16.msra.mxu0 %v12178_v18 }
 0xb2f   : > { %v10178_v19 = vpop.f32.mrf.mxu1 }
 0xb31   : > { %v11884_v38 = vpop.f32.mrf.mxu1 }
 0xb33   : > { %v10181_v43 = vpop.f32.mrf.mxu1 }
 0xb35   : > { %v11885_v11 = vpop.f32.mrf.mxu1 }
 0xb39   : > { %v10111_v15 = vpop.f32.mrf.mxu0 }
 0xb3a   : > { %v10179_v53 = vadd.f32 %v10178_v19, %v10111_v15 }
 0xb3b   : > { %v11872_v26 = vpop.f32.mrf.mxu0 }
 0xb3c   : > { %v10191_v2 = vadd.f32 %v10914_v9, %v10179_v53 }
 0xb3d   : > { %v10114_v14 = vpop.f32.mrf.mxu0 }
 0xb3e   : > { %v10192_v32 = vmul.f32 0.3, %v10191_v2 }
 0xb3f   : > { %v11873_v22 = vpop.f32.mrf.mxu0 }
 0xb40   : > { %v10193_v45 = vmax.f32 %v10191_v2, %v10192_v32 }
 0xb42   : > { %v10194_v13 = vpack.c.bf16 %v10193_v45, %v10193_v45 }
 0xb44   : > { %11903 = vmatmul.mubr.bf16.vlgmr.msra.gmra.mxu0 %v10194_v13 }
 0xc04   : > { %v10300_v8 = vpop.f32.mrf.mxu0 }
 0xc05   : > { %v10301_v46 = vadd.f32 %v10915_v5, %v10300_v8 }
 0xc06   : > { %v11904_v29 = vpop.f32.mrf.mxu0 }
 0xc07   : > { %v10306_v34 = vmul.f32 0.3, %v10301_v46 }
 0xc08   : > { %v10303_v12 = vpop.f32.mrf.mxu0 }
 0xc09   : > { %v10307_v25 = vmax.f32 %v10301_v46, %v10306_v34 }
 0xc0a   : > { %v11905_v10 = vpop.f32.mrf.mxu0 }
 0xc0b   : > { %v10308_v3 = vpack.c.bf16 %v10307_v25, %v10307_v25 }
 0xc0d   : > { %11915 = vmatmul.mubr.msk.bf16.vlgmr.msra.gmra.mxu1 %vm10073_vm3, %v10308_v3 }
 0xccd   : > { %v10385_v37 = vpop.f32.mrf.mxu1 }
 0xcce   : > { %v10386_v23 = vadd.f32 %v10924_v42, %v10385_v37 }
 0xccf   : > { %v11916_v17 = vpop.f32.mrf.mxu1 }
 0xcd0   : > { %10392 = vst.msk [vmem:[%s658_s4] sm:$0xff] %vm10391_vm4, %v10386_v23 }
 0xcd1   : > { %v10388_v6 = vpop.f32.mrf.mxu1 }
 0xcd3   : > { %v11917_v30 = vpop.f32.mrf.mxu1 }
 0xcd4 PF: > { %s33_s26 = sadd.s32 1, %s12214_s26  }
 0xcd5   : > { %p30_p5 = scmp.ge.s32.totalorder %s33_s26, 4  }
 0xcd7   :  { %32 = sbr.rel (!%p30_p5) target bundleno = 7 (0x7), region = 147 }

</bundles_post_ra>
